<compile_context>
chip_gen: v7x
topology: tpu7x:2x2x1
jax: 0.10.0
libtpu: 0.0.40
codegen_flags: <defaults>
</compile_context>

<pallas_src>
import numpy as np
import jax
import jax.numpy as jnp
from jax.experimental import pallas as pl
from jax.experimental.pallas import tpu as pltpu


def fasttext_kernel(bag_idx_ref, v_idx_ref,      # SMEM scalar-prefetch: (B,L), (B,J) int32
                    inv_cnt_ref,                 # VMEM (TB, 1) f32, 1 / bag length
                    u_w_hbm, v_w_hbm,            # HBM (pl.ANY): (Ru, Kp), (Rv, Kp)
                    s_ref,                       # VMEM out (TB, J) f32
                    u_buf, v_buf,                # VMEM scratch (TB,L,Kp), (TB,J,Kp)
                    u_sem, v_sem):               # DMA sems (TB,L), (TB,J)
    TB, L, _ = u_buf.shape
    J = v_buf.shape[1]
    b0 = pl.program_id(0) * TB

    # In-kernel gather: one row DMA per (example, bag slot) and per
    # (example, target) straight from the HBM embedding tables.
    copies = []
    for tb in range(TB):
        for l in range(L):
            row = bag_idx_ref[b0 + tb, l]
            cp = pltpu.make_async_copy(u_w_hbm.at[pl.ds(row, 1)],
                                       u_buf.at[tb, pl.ds(l, 1)],
                                       u_sem.at[tb, l])
            cp.start()
            copies.append(cp)
    for tb in range(TB):
        for j in range(J):
            row = v_idx_ref[b0 + tb, j]
            cp = pltpu.make_async_copy(v_w_hbm.at[pl.ds(row, 1)],
                                       v_buf.at[tb, pl.ds(j, 1)],
                                       v_sem.at[tb, j])
            cp.start()
            copies.append(cp)
    for cp in copies:
        cp.wait()

    # EmbeddingBag(mode='mean'): padding slots point at the zero sentinel row,
    # so the masked sum is a plain sum; the 1/count scale is applied to the
    # (much smaller) score matrix below.
    u_bag = u_buf[...].astype(jnp.float32)                     # (TB, L, Kp)
    v_emb = v_buf[...].astype(jnp.float32)                     # (TB, J, Kp)
    emb_u = jnp.sum(u_bag, axis=1, keepdims=True)              # (TB, 1, Kp)

    # einsum('ik,ijk->ij') as a batched MXU matmul, f32 accumulation; the
    # (TB, J, Kp) broadcast intermediate is never materialized.
    s = jnp.einsum('bqk,bjk->bqj', emb_u, v_emb,
                   preferred_element_type=jnp.float32)         # (TB, 1, J)
    s_ref[...] = (s[:, 0, :] * inv_cnt_ref[...]).astype(s_ref.dtype)


def fasttext_forward(u_weight, v_weight, bag_idx, inv_counts, v_idx, *, batch_tile=8):
    """u_weight/v_weight: lane-padded (rows, Kp) tables (u has a zero sentinel
    row for bag padding).  bag_idx (B,L) / v_idx (B,J) are int32 row ids,
    inv_counts is (B,1) f32 = 1 / bag length."""
    B, L = bag_idx.shape
    J = v_idx.shape[1]
    Kp = u_weight.shape[1]
    assert v_weight.shape[1] == Kp
    assert Kp % 128 == 0, "pad emb_dim to a multiple of 128 lanes"
    assert B % batch_tile == 0
    TB = batch_tile
    dtype = u_weight.dtype
    itemsize = jnp.dtype(dtype).itemsize

    flops = 2 * B * J * Kp + B * L * Kp + B * J
    bytes_accessed = ((B * L * Kp + B * J * Kp) * itemsize
                      + B * J * 4 + B * 4
                      + bag_idx.size * 4 + v_idx.size * 4)

    return pl.pallas_call(
        fasttext_kernel,
        out_shape=jax.ShapeDtypeStruct((B, J), jnp.float32),
        grid_spec=pltpu.PrefetchScalarGridSpec(
            num_scalar_prefetch=2,               # bag_idx, v_idx -> SMEM
            grid=(B // TB,),
            in_specs=[
                pl.BlockSpec((TB, 1), lambda i, *_: (i, 0)),   # inv_counts
                pl.BlockSpec(memory_space=pl.ANY),             # u_weight stays in HBM
                pl.BlockSpec(memory_space=pl.ANY),             # v_weight stays in HBM
            ],
            out_specs=pl.BlockSpec((TB, J), lambda i, *_: (i, 0)),
            scratch_shapes=[
                pltpu.VMEM((TB, L, Kp), dtype),
                pltpu.VMEM((TB, J, Kp), dtype),
                pltpu.SemaphoreType.DMA((TB, L)),
                pltpu.SemaphoreType.DMA((TB, J)),
            ],
        ),
        compiler_params=pltpu.CompilerParams(
            dimension_semantics=("parallel",),    # shard batch tiles across TCs (v7x)
            vmem_limit_bytes=32 * 1024 * 1024,
        ),
        cost_estimate=pl.CostEstimate(
            flops=flops, transcendentals=0, bytes_accessed=bytes_accessed),
    )(bag_idx, v_idx, inv_counts, u_weight, v_weight)


def simulate_get_bag(word_ids, vocab_size, n_buckets, max_bag, pad_row):
    """Deterministic stand-in for fastText's model.get_bag: word id + ngrams.
    Padding slots get the zero sentinel row index; returns per-example counts."""
    B = len(word_ids)
    bag_idx = np.full((B, max_bag), pad_row, dtype=np.int32)
    counts = np.zeros((B,), dtype=np.float32)
    for b, w in enumerate(word_ids):
        n = 1 + (int(w) % (max_bag - 1))  # variable-length bags, >= 1
        idxs = [int(w)] + [
            vocab_size + (int(w) * 7 + i * 13 + 1) % n_buckets for i in range(n - 1)
        ]
        bag_idx[b, :n] = np.array(idxs, dtype=np.int32)
        counts[b] = n
    return bag_idx, counts


if __name__ == "__main__":
    # Synthetic "model": logical emb_dim = 32 (lane-padded to 128), 16 words,
    # 48 ngram buckets.
    vocab_size, n_buckets, emb_dim = 16, 48, 32
    B, J, max_bag = 16, 5, 4          # batch, 1 positive + 4 negatives, max bag length
    LANE = 128
    Kp = max(LANE, ((emb_dim + LANE - 1) // LANE) * LANE)

    key = jax.random.PRNGKey(0)
    k_u, k_v, k_uidx, k_vidx = jax.random.split(key, 4)

    # Deterministic parameter init (stands in for model.get_input/output_matrix).
    u_rows = vocab_size + n_buckets
    u_weight = jax.random.normal(k_u, (u_rows, emb_dim), jnp.float32) * 0.1
    v_weight = jax.random.normal(k_v, (vocab_size, emb_dim), jnp.float32) * 0.1

    # Lane-pad emb_dim to 128 (zeros change nothing numerically) and append an
    # all-zero sentinel row to the input table for bag padding slots.
    # TODO(synk): on v6e/v7x store the tables in bfloat16 (f32 accumulation) to
    #             halve HBM traffic; kept f32 here for the tight reference check.
    u_weight_p = jnp.zeros((u_rows + 1, Kp), jnp.float32).at[:u_rows, :emb_dim].set(u_weight)
    v_weight_p = jnp.zeros((vocab_size, Kp), jnp.float32).at[:, :emb_dim].set(v_weight)
    pad_row = u_rows  # index of the zero sentinel row

    # Inputs: u = word ids (B,), v = target ids (B, J).
    u_ids = jax.random.randint(k_uidx, (B,), 0, vocab_size, dtype=jnp.int32)
    v_idx = jax.random.randint(k_vidx, (B, J), 0, vocab_size, dtype=jnp.int32)

    bag_idx_np, counts_np = simulate_get_bag(
        np.asarray(u_ids).tolist(), vocab_size, n_buckets, max_bag, pad_row
    )
    bag_idx = jnp.asarray(bag_idx_np)
    counts = jnp.asarray(np.maximum(counts_np, 1.0))           # guard counts == 0
    inv_counts = (1.0 / counts).reshape(B, 1).astype(jnp.float32)

    s = fasttext_forward(u_weight_p, v_weight_p, bag_idx, inv_counts, v_idx, batch_tile=8)
    s = jax.block_until_ready(s)

    # Pure-JAX reference for the exact PyTorch semantics.
    u_bag_ref = jnp.take(u_weight_p, bag_idx, axis=0)          # (B, L, Kp), pads are zero
    emb_u_ref = u_bag_ref.sum(1) / counts[:, None]
    emb_v_ref = jnp.take(v_weight_p, v_idx, axis=0)            # (B, J, Kp)
    s_ref = jnp.einsum("ik,ijk->ij", emb_u_ref, emb_v_ref)

    assert s.shape == (B, J) and s.dtype == jnp.float32
    np.testing.assert_allclose(np.asarray(s), np.asarray(s_ref), rtol=1e-5, atol=1e-5)
    print("KERNEL_OK")
</pallas_src>

<mosaic_0001>
module attributes {stable_mosaic.version = 11 : i64} {
  func.func @fasttext_kernel(%arg0: i32, %arg1: memref<16x4xi32, #tpu.memory_space<smem>>, %arg2: memref<16x5xi32, #tpu.memory_space<smem>>, %arg3: memref<8x1xf32, #tpu.memory_space<vmem>>, %arg4: memref<65x128xf32, #tpu.memory_space<any>>, %arg5: memref<16x128xf32, #tpu.memory_space<any>>, %arg6: memref<8x5xf32, #tpu.memory_space<vmem>>, %arg7: memref<8x4x128xf32, #tpu.memory_space<vmem>>, %arg8: memref<8x5x128xf32, #tpu.memory_space<vmem>>, %arg9: memref<8x4x!tpu.dma_semaphore, #tpu.memory_space<semaphore_mem>>, %arg10: memref<8x5x!tpu.dma_semaphore, #tpu.memory_space<semaphore_mem>>) attributes {dimension_semantics = [#tpu.dimension_semantics<parallel>], iteration_bounds = array<i64: 2>, scalar_prefetch = 2 : i64, scratch_operands = 4 : i64, tpu.core_type = #tpu.core_type<tc>, window_params = [{transform_indices = @transform_0, window_bounds = array<i64: 8, 1>}, {}, {}, {transform_indices = @transform_3, window_bounds = array<i64: 8, 5>}]} {
    %c8_i32 = arith.constant 8 : i32
    %0 = arith.muli %arg0, %c8_i32 : i32
    %c0_i32 = arith.constant 0 : i32
    %1 = arith.addi %0, %c0_i32 : i32
    %2 = arith.index_cast %1 : i32 to index
    %c0 = arith.constant 0 : index
    %3 = memref.load %arg1[%2, %c0] : memref<16x4xi32, #tpu.memory_space<smem>>
    %c0_i32_0 = arith.constant 0 : i32
    %c0_i32_1 = arith.constant 0 : i32
    %c0_i32_2 = arith.constant 0 : i32
    %c0_i32_3 = arith.constant 0 : i32
    %4 = tpu.memref_slice %arg4[%3, %c0_i32_3] : memref<65x128xf32, #tpu.memory_space<any>> -> memref<1x128xf32, #tpu.memory_space<any>>
    %c0_i32_4 = arith.constant 0 : i32
    %c0_i32_5 = arith.constant 0 : i32
    %5 = tpu.memref_slice %arg7[%c0_i32_0, %c0_i32_4, %c0_i32_5] : memref<8x4x128xf32, #tpu.memory_space<vmem>> -> memref<1x1x128xf32, #tpu.memory_space<vmem>>
    %6 = tpu.memref_squeeze %5 : memref<1x1x128xf32, #tpu.memory_space<vmem>> -> memref<1x128xf32, #tpu.memory_space<vmem>>
    %7 = tpu.memref_slice %arg9[%c0_i32_1, %c0_i32_2] : memref<8x4x!tpu.dma_semaphore, #tpu.memory_space<semaphore_mem>> -> memref<1x1x!tpu.dma_semaphore, #tpu.memory_space<semaphore_mem>>
    %8 = tpu.memref_squeeze %7 : memref<1x1x!tpu.dma_semaphore, #tpu.memory_space<semaphore_mem>> -> memref<!tpu.dma_semaphore, #tpu.memory_space<semaphore_mem>>
    tpu.enqueue_dma source(%4 : memref<1x128xf32, #tpu.memory_space<any>>) target(%6 : memref<1x128xf32, #tpu.memory_space<vmem>>) target_semaphore(%8 : memref<!tpu.dma_semaphore, #tpu.memory_space<semaphore_mem>>)
    %c0_i32_6 = arith.constant 0 : i32
    %9 = arith.addi %0, %c0_i32_6 : i32
    %10 = arith.index_cast %9 : i32 to index
    %c1 = arith.constant 1 : index
    %11 = memref.load %arg1[%10, %c1] : memref<16x4xi32, #tpu.memory_space<smem>>
    %c0_i32_7 = arith.constant 0 : i32
    %c0_i32_8 = arith.constant 0 : i32
    %c1_i32 = arith.constant 1 : i32
    %c0_i32_9 = arith.constant 0 : i32
    %12 = tpu.memref_slice %arg4[%11, %c0_i32_9] : memref<65x128xf32, #tpu.memory_space<any>> -> memref<1x128xf32, #tpu.memory_space<any>>
    %c1_i32_10 = arith.constant 1 : i32
    %c0_i32_11 = arith.constant 0 : i32
    %13 = tpu.memref_slice %arg7[%c0_i32_7, %c1_i32_10, %c0_i32_11] : memref<8x4x128xf32, #tpu.memory_space<vmem>> -> memref<1x1x128xf32, #tpu.memory_space<vmem>>
    %14 = tpu.memref_squeeze %13 : memref<1x1x128xf32, #tpu.memory_space<vmem>> -> memref<1x128xf32, #tpu.memory_space<vmem>>
    %15 = tpu.memref_slice %arg9[%c0_i32_8, %c1_i32] : memref<8x4x!tpu.dma_semaphore, #tpu.memory_space<semaphore_mem>> -> memref<1x1x!tpu.dma_semaphore, #tpu.memory_space<semaphore_mem>>
    %16 = tpu.memref_squeeze %15 : memref<1x1x!tpu.dma_semaphore, #tpu.memory_space<semaphore_mem>> -> memref<!tpu.dma_semaphore, #tpu.memory_space<semaphore_mem>>
    tpu.enqueue_dma source(%12 : memref<1x128xf32, #tpu.memory_space<any>>) target(%14 : memref<1x128xf32, #tpu.memory_space<vmem>>) target_semaphore(%16 : memref<!tpu.dma_semaphore, #tpu.memory_space<semaphore_mem>>)
    %c0_i32_12 = arith.constant 0 : i32
    %17 = arith.addi %0, %c0_i32_12 : i32
    %18 = arith.index_cast %17 : i32 to index
    %c2 = arith.constant 2 : index
    %19 = memref.load %arg1[%18, %c2] : memref<16x4xi32, #tpu.memory_space<smem>>
    %c0_i32_13 = arith.constant 0 : i32
    %c0_i32_14 = arith.constant 0 : i32
    %c2_i32 = arith.constant 2 : i32
    %c0_i32_15 = arith.constant 0 : i32
    %20 = tpu.memref_slice %arg4[%19, %c0_i32_15] : memref<65x128xf32, #tpu.memory_space<any>> -> memref<1x128xf32, #tpu.memory_space<any>>
    %c2_i32_16 = arith.constant 2 : i32
    %c0_i32_17 = arith.constant 0 : i32
    %21 = tpu.memref_slice %arg7[%c0_i32_13, %c2_i32_16, %c0_i32_17] : memref<8x4x128xf32, #tpu.memory_space<vmem>> -> memref<1x1x128xf32, #tpu.memory_space<vmem>>
    %22 = tpu.memref_squeeze %21 : memref<1x1x128xf32, #tpu.memory_space<vmem>> -> memref<1x128xf32, #tpu.memory_space<vmem>>
    %23 = tpu.memref_slice %arg9[%c0_i32_14, %c2_i32] : memref<8x4x!tpu.dma_semaphore, #tpu.memory_space<semaphore_mem>> -> memref<1x1x!tpu.dma_semaphore, #tpu.memory_space<semaphore_mem>>
    %24 = tpu.memref_squeeze %23 : memref<1x1x!tpu.dma_semaphore, #tpu.memory_space<semaphore_mem>> -> memref<!tpu.dma_semaphore, #tpu.memory_space<semaphore_mem>>
    tpu.enqueue_dma source(%20 : memref<1x128xf32, #tpu.memory_space<any>>) target(%22 : memref<1x128xf32, #tpu.memory_space<vmem>>) target_semaphore(%24 : memref<!tpu.dma_semaphore, #tpu.memory_space<semaphore_mem>>)
    %c0_i32_18 = arith.constant 0 : i32
    %25 = arith.addi %0, %c0_i32_18 : i32
    %26 = arith.index_cast %25 : i32 to index
    %c3 = arith.constant 3 : index
    %27 = memref.load %arg1[%26, %c3] : memref<16x4xi32, #tpu.memory_space<smem>>
    %c0_i32_19 = arith.constant 0 : i32
    %c0_i32_20 = arith.constant 0 : i32
    %c3_i32 = arith.constant 3 : i32
    %c0_i32_21 = arith.constant 0 : i32
    %28 = tpu.memref_slice %arg4[%27, %c0_i32_21] : memref<65x128xf32, #tpu.memory_space<any>> -> memref<1x128xf32, #tpu.memory_space<any>>
    %c3_i32_22 = arith.constant 3 : i32
    %c0_i32_23 = arith.constant 0 : i32
    %29 = tpu.memref_slice %arg7[%c0_i32_19, %c3_i32_22, %c0_i32_23] : memref<8x4x128xf32, #tpu.memory_space<vmem>> -> memref<1x1x128xf32, #tpu.memory_space<vmem>>
    %30 = tpu.memref_squeeze %29 : memref<1x1x128xf32, #tpu.memory_space<vmem>> -> memref<1x128xf32, #tpu.memory_space<vmem>>
    %31 = tpu.memref_slice %arg9[%c0_i32_20, %c3_i32] : memref<8x4x!tpu.dma_semaphore, #tpu.memory_space<semaphore_mem>> -> memref<1x1x!tpu.dma_semaphore, #tpu.memory_space<semaphore_mem>>
    %32 = tpu.memref_squeeze %31 : memref<1x1x!tpu.dma_semaphore, #tpu.memory_space<semaphore_mem>> -> memref<!tpu.dma_semaphore, #tpu.memory_space<semaphore_mem>>
    tpu.enqueue_dma source(%28 : memref<1x128xf32, #tpu.memory_space<any>>) target(%30 : memref<1x128xf32, #tpu.memory_space<vmem>>) target_semaphore(%32 : memref<!tpu.dma_semaphore, #tpu.memory_space<semaphore_mem>>)
    %c1_i32_24 = arith.constant 1 : i32
    %33 = arith.addi %0, %c1_i32_24 : i32
    %34 = arith.index_cast %33 : i32 to index
    %c0_25 = arith.constant 0 : index
    %35 = memref.load %arg1[%34, %c0_25] : memref<16x4xi32, #tpu.memory_space<smem>>
    %c1_i32_26 = arith.constant 1 : i32
    %c1_i32_27 = arith.constant 1 : i32
    %c0_i32_28 = arith.constant 0 : i32
    %c0_i32_29 = arith.constant 0 : i32
    %36 = tpu.memref_slice %arg4[%35, %c0_i32_29] : memref<65x128xf32, #tpu.memory_space<any>> -> memref<1x128xf32, #tpu.memory_space<any>>
    %c0_i32_30 = arith.constant 0 : i32
    %c0_i32_31 = arith.constant 0 : i32
    %37 = tpu.memref_slice %arg7[%c1_i32_26, %c0_i32_30, %c0_i32_31] : memref<8x4x128xf32, #tpu.memory_space<vmem>> -> memref<1x1x128xf32, #tpu.memory_space<vmem>>
    %38 = tpu.memref_squeeze %37 : memref<1x1x128xf32, #tpu.memory_space<vmem>> -> memref<1x128xf32, #tpu.memory_space<vmem>>
    %39 = tpu.memref_slice %arg9[%c1_i32_27, %c0_i32_28] : memref<8x4x!tpu.dma_semaphore, #tpu.memory_space<semaphore_mem>> -> memref<1x1x!tpu.dma_semaphore, #tpu.memory_space<semaphore_mem>>
    %40 = tpu.memref_squeeze %39 : memref<1x1x!tpu.dma_semaphore, #tpu.memory_space<semaphore_mem>> -> memref<!tpu.dma_semaphore, #tpu.memory_space<semaphore_mem>>
    tpu.enqueue_dma source(%36 : memref<1x128xf32, #tpu.memory_space<any>>) target(%38 : memref<1x128xf32, #tpu.memory_space<vmem>>) target_semaphore(%40 : memref<!tpu.dma_semaphore, #tpu.memory_space<semaphore_mem>>)
    %c1_i32_32 = arith.constant 1 : i32
    %41 = arith.addi %0, %c1_i32_32 : i32
    %42 = arith.index_cast %41 : i32 to index
    %c1_33 = arith.constant 1 : index
    %43 = memref.load %arg1[%42, %c1_33] : memref<16x4xi32, #tpu.memory_space<smem>>
    %c1_i32_34 = arith.constant 1 : i32
    %c1_i32_35 = arith.constant 1 : i32
    %c1_i32_36 = arith.constant 1 : i32
    %c0_i32_37 = arith.constant 0 : i32
    %44 = tpu.memref_slice %arg4[%43, %c0_i32_37] : memref<65x128xf32, #tpu.memory_space<any>> -> memref<1x128xf32, #tpu.memory_space<any>>
    %c1_i32_38 = arith.constant 1 : i32
    %c0_i32_39 = arith.constant 0 : i32
    %45 = tpu.memref_slice %arg7[%c1_i32_34, %c1_i32_38, %c0_i32_39] : memref<8x4x128xf32, #tpu.memory_space<vmem>> -> memref<1x1x128xf32, #tpu.memory_space<vmem>>
    %46 = tpu.memref_squeeze %45 : memref<1x1x128xf32, #tpu.memory_space<vmem>> -> memref<1x128xf32, #tpu.memory_space<vmem>>
    %47 = tpu.memref_slice %arg9[%c1_i32_35, %c1_i32_36] : memref<8x4x!tpu.dma_semaphore, #tpu.memory_space<semaphore_mem>> -> memref<1x1x!tpu.dma_semaphore, #tpu.memory_space<semaphore_mem>>
    %48 = tpu.memref_squeeze %47 : memref<1x1x!tpu.dma_semaphore, #tpu.memory_space<semaphore_mem>> -> memref<!tpu.dma_semaphore, #tpu.memory_space<semaphore_mem>>
    tpu.enqueue_dma source(%44 : memref<1x128xf32, #tpu.memory_space<any>>) target(%46 : memref<1x128xf32, #tpu.memory_space<vmem>>) target_semaphore(%48 : memref<!tpu.dma_semaphore, #tpu.memory_space<semaphore_mem>>)
    %c1_i32_40 = arith.constant 1 : i32
    %49 = arith.addi %0, %c1_i32_40 : i32
    %50 = arith.index_cast %49 : i32 to index
    %c2_41 = arith.constant 2 : index
    %51 = memref.load %arg1[%50, %c2_41] : memref<16x4xi32, #tpu.memory_space<smem>>
    %c1_i32_42 = arith.constant 1 : i32
    %c1_i32_43 = arith.constant 1 : i32
    %c2_i32_44 = arith.constant 2 : i32
    %c0_i32_45 = arith.constant 0 : i32
    %52 = tpu.memref_slice %arg4[%51, %c0_i32_45] : memref<65x128xf32, #tpu.memory_space<any>> -> memref<1x128xf32, #tpu.memory_space<any>>
    %c2_i32_46 = arith.constant 2 : i32
    %c0_i32_47 = arith.constant 0 : i32
    %53 = tpu.memref_slice %arg7[%c1_i32_42, %c2_i32_46, %c0_i32_47] : memref<8x4x128xf32, #tpu.memory_space<vmem>> -> memref<1x1x128xf32, #tpu.memory_space<vmem>>
    %54 = tpu.memref_squeeze %53 : memref<1x1x128xf32, #tpu.memory_space<vmem>> -> memref<1x128xf32, #tpu.memory_space<vmem>>
    %55 = tpu.memref_slice %arg9[%c1_i32_43, %c2_i32_44] : memref<8x4x!tpu.dma_semaphore, #tpu.memory_space<semaphore_mem>> -> memref<1x1x!tpu.dma_semaphore, #tpu.memory_space<semaphore_mem>>
    %56 = tpu.memref_squeeze %55 : memref<1x1x!tpu.dma_semaphore, #tpu.memory_space<semaphore_mem>> -> memref<!tpu.dma_semaphore, #tpu.memory_space<semaphore_mem>>
    tpu.enqueue_dma source(%52 : memref<1x128xf32, #tpu.memory_space<any>>) target(%54 : memref<1x128xf32, #tpu.memory_space<vmem>>) target_semaphore(%56 : memref<!tpu.dma_semaphore, #tpu.memory_space<semaphore_mem>>)
    %c1_i32_48 = arith.constant 1 : i32
    %57 = arith.addi %0, %c1_i32_48 : i32
    %58 = arith.index_cast %57 : i32 to index
    %c3_49 = arith.constant 3 : index
    %59 = memref.load %arg1[%58, %c3_49] : memref<16x4xi32, #tpu.memory_space<smem>>
    %c1_i32_50 = arith.constant 1 : i32
    %c1_i32_51 = arith.constant 1 : i32
    %c3_i32_52 = arith.constant 3 : i32
    %c0_i32_53 = arith.constant 0 : i32
    %60 = tpu.memref_slice %arg4[%59, %c0_i32_53] : memref<65x128xf32, #tpu.memory_space<any>> -> memref<1x128xf32, #tpu.memory_space<any>>
    %c3_i32_54 = arith.constant 3 : i32
    %c0_i32_55 = arith.constant 0 : i32
    %61 = tpu.memref_slice %arg7[%c1_i32_50, %c3_i32_54, %c0_i32_55] : memref<8x4x128xf32, #tpu.memory_space<vmem>> -> memref<1x1x128xf32, #tpu.memory_space<vmem>>
    %62 = tpu.memref_squeeze %61 : memref<1x1x128xf32, #tpu.memory_space<vmem>> -> memref<1x128xf32, #tpu.memory_space<vmem>>
    %63 = tpu.memref_slice %arg9[%c1_i32_51, %c3_i32_52] : memref<8x4x!tpu.dma_semaphore, #tpu.memory_space<semaphore_mem>> -> memref<1x1x!tpu.dma_semaphore, #tpu.memory_space<semaphore_mem>>
    %64 = tpu.memref_squeeze %63 : memref<1x1x!tpu.dma_semaphore, #tpu.memory_space<semaphore_mem>> -> memref<!tpu.dma_semaphore, #tpu.memory_space<semaphore_mem>>
    tpu.enqueue_dma source(%60 : memref<1x128xf32, #tpu.memory_space<any>>) target(%62 : memref<1x128xf32, #tpu.memory_space<vmem>>) target_semaphore(%64 : memref<!tpu.dma_semaphore, #tpu.memory_space<semaphore_mem>>)
    %c2_i32_56 = arith.constant 2 : i32
    %65 = arith.addi %0, %c2_i32_56 : i32
    %66 = arith.index_cast %65 : i32 to index
    %c0_57 = arith.constant 0 : index
    %67 = memref.load %arg1[%66, %c0_57] : memref<16x4xi32, #tpu.memory_space<smem>>
    %c2_i32_58 = arith.constant 2 : i32
    %c2_i32_59 = arith.constant 2 : i32
    %c0_i32_60 = arith.constant 0 : i32
    %c0_i32_61 = arith.constant 0 : i32
    %68 = tpu.memref_slice %arg4[%67, %c0_i32_61] : memref<65x128xf32, #tpu.memory_space<any>> -> memref<1x128xf32, #tpu.memory_space<any>>
    %c0_i32_62 = arith.constant 0 : i32
    %c0_i32_63 = arith.constant 0 : i32
    %69 = tpu.memref_slice %arg7[%c2_i32_58, %c0_i32_62, %c0_i32_63] : memref<8x4x128xf32, #tpu.memory_space<vmem>> -> memref<1x1x128xf32, #tpu.memory_space<vmem>>
    %70 = tpu.memref_squeeze %69 : memref<1x1x128xf32, #tpu.memory_space<vmem>> -> memref<1x128xf32, #tpu.memory_space<vmem>>
    %71 = tpu.memref_slice %arg9[%c2_i32_59, %c0_i32_60] : memref<8x4x!tpu.dma_semaphore, #tpu.memory_space<semaphore_mem>> -> memref<1x1x!tpu.dma_semaphore, #tpu.memory_space<semaphore_mem>>
    %72 = tpu.memref_squeeze %71 : memref<1x1x!tpu.dma_semaphore, #tpu.memory_space<semaphore_mem>> -> memref<!tpu.dma_semaphore, #tpu.memory_space<semaphore_mem>>
    tpu.enqueue_dma source(%68 : memref<1x128xf32, #tpu.memory_space<any>>) target(%70 : memref<1x128xf32, #tpu.memory_space<vmem>>) target_semaphore(%72 : memref<!tpu.dma_semaphore, #tpu.memory_space<semaphore_mem>>)
    %c2_i32_64 = arith.constant 2 : i32
    %73 = arith.addi %0, %c2_i32_64 : i32
    %74 = arith.index_cast %73 : i32 to index
    %c1_65 = arith.constant 1 : index
    %75 = memref.load %arg1[%74, %c1_65] : memref<16x4xi32, #tpu.memory_space<smem>>
    %c2_i32_66 = arith.constant 2 : i32
    %c2_i32_67 = arith.constant 2 : i32
    %c1_i32_68 = arith.constant 1 : i32
    %c0_i32_69 = arith.constant 0 : i32
    %76 = tpu.memref_slice %arg4[%75, %c0_i32_69] : memref<65x128xf32, #tpu.memory_space<any>> -> memref<1x128xf32, #tpu.memory_space<any>>
    %c1_i32_70 = arith.constant 1 : i32
    %c0_i32_71 = arith.constant 0 : i32
    %77 = tpu.memref_slice %arg7[%c2_i32_66, %c1_i32_70, %c0_i32_71] : memref<8x4x128xf32, #tpu.memory_space<vmem>> -> memref<1x1x128xf32, #tpu.memory_space<vmem>>
    %78 = tpu.memref_squeeze %77 : memref<1x1x128xf32, #tpu.memory_space<vmem>> -> memref<1x128xf32, #tpu.memory_space<vmem>>
    %79 = tpu.memref_slice %arg9[%c2_i32_67, %c1_i32_68] : memref<8x4x!tpu.dma_semaphore, #tpu.memory_space<semaphore_mem>> -> memref<1x1x!tpu.dma_semaphore, #tpu.memory_space<semaphore_mem>>
    %80 = tpu.memref_squeeze %79 : memref<1x1x!tpu.dma_semaphore, #tpu.memory_space<semaphore_mem>> -> memref<!tpu.dma_semaphore, #tpu.memory_space<semaphore_mem>>
    tpu.enqueue_dma source(%76 : memref<1x128xf32, #tpu.memory_space<any>>) target(%78 : memref<1x128xf32, #tpu.memory_space<vmem>>) target_semaphore(%80 : memref<!tpu.dma_semaphore, #tpu.memory_space<semaphore_mem>>)
    %c2_i32_72 = arith.constant 2 : i32
    %81 = arith.addi %0, %c2_i32_72 : i32
    %82 = arith.index_cast %81 : i32 to index
    %c2_73 = arith.constant 2 : index
    %83 = memref.load %arg1[%82, %c2_73] : memref<16x4xi32, #tpu.memory_space<smem>>
    %c2_i32_74 = arith.constant 2 : i32
    %c2_i32_75 = arith.constant 2 : i32
    %c2_i32_76 = arith.constant 2 : i32
    %c0_i32_77 = arith.constant 0 : i32
    %84 = tpu.memref_slice %arg4[%83, %c0_i32_77] : memref<65x128xf32, #tpu.memory_space<any>> -> memref<1x128xf32, #tpu.memory_space<any>>
    %c2_i32_78 = arith.constant 2 : i32
    %c0_i32_79 = arith.constant 0 : i32
    %85 = tpu.memref_slice %arg7[%c2_i32_74, %c2_i32_78, %c0_i32_79] : memref<8x4x128xf32, #tpu.memory_space<vmem>> -> memref<1x1x128xf32, #tpu.memory_space<vmem>>
    %86 = tpu.memref_squeeze %85 : memref<1x1x128xf32, #tpu.memory_space<vmem>> -> memref<1x128xf32, #tpu.memory_space<vmem>>
    %87 = tpu.memref_slice %arg9[%c2_i32_75, %c2_i32_76] : memref<8x4x!tpu.dma_semaphore, #tpu.memory_space<semaphore_mem>> -> memref<1x1x!tpu.dma_semaphore, #tpu.memory_space<semaphore_mem>>
    %88 = tpu.memref_squeeze %87 : memref<1x1x!tpu.dma_semaphore, #tpu.memory_space<semaphore_mem>> -> memref<!tpu.dma_semaphore, #tpu.memory_space<semaphore_mem>>
    tpu.enqueue_dma source(%84 : memref<1x128xf32, #tpu.memory_space<any>>) target(%86 : memref<1x128xf32, #tpu.memory_space<vmem>>) target_semaphore(%88 : memref<!tpu.dma_semaphore, #tpu.memory_space<semaphore_mem>>)
    %c2_i32_80 = arith.constant 2 : i32
    %89 = arith.addi %0, %c2_i32_80 : i32
    %90 = arith.index_cast %89 : i32 to index
    %c3_81 = arith.constant 3 : index
    %91 = memref.load %arg1[%90, %c3_81] : memref<16x4xi32, #tpu.memory_space<smem>>
    %c2_i32_82 = arith.constant 2 : i32
    %c2_i32_83 = arith.constant 2 : i32
    %c3_i32_84 = arith.constant 3 : i32
    %c0_i32_85 = arith.constant 0 : i32
    %92 = tpu.memref_slice %arg4[%91, %c0_i32_85] : memref<65x128xf32, #tpu.memory_space<any>> -> memref<1x128xf32, #tpu.memory_space<any>>
    %c3_i32_86 = arith.constant 3 : i32
    %c0_i32_87 = arith.constant 0 : i32
    %93 = tpu.memref_slice %arg7[%c2_i32_82, %c3_i32_86, %c0_i32_87] : memref<8x4x128xf32, #tpu.memory_space<vmem>> -> memref<1x1x128xf32, #tpu.memory_space<vmem>>
    %94 = tpu.memref_squeeze %93 : memref<1x1x128xf32, #tpu.memory_space<vmem>> -> memref<1x128xf32, #tpu.memory_space<vmem>>
    %95 = tpu.memref_slice %arg9[%c2_i32_83, %c3_i32_84] : memref<8x4x!tpu.dma_semaphore, #tpu.memory_space<semaphore_mem>> -> memref<1x1x!tpu.dma_semaphore, #tpu.memory_space<semaphore_mem>>
    %96 = tpu.memref_squeeze %95 : memref<1x1x!tpu.dma_semaphore, #tpu.memory_space<semaphore_mem>> -> memref<!tpu.dma_semaphore, #tpu.memory_space<semaphore_mem>>
    tpu.enqueue_dma source(%92 : memref<1x128xf32, #tpu.memory_space<any>>) target(%94 : memref<1x128xf32, #tpu.memory_space<vmem>>) target_semaphore(%96 : memref<!tpu.dma_semaphore, #tpu.memory_space<semaphore_mem>>)
    %c3_i32_88 = arith.constant 3 : i32
    %97 = arith.addi %0, %c3_i32_88 : i32
    %98 = arith.index_cast %97 : i32 to index
    %c0_89 = arith.constant 0 : index
    %99 = memref.load %arg1[%98, %c0_89] : memref<16x4xi32, #tpu.memory_space<smem>>
    %c3_i32_90 = arith.constant 3 : i32
    %c3_i32_91 = arith.constant 3 : i32
    %c0_i32_92 = arith.constant 0 : i32
    %c0_i32_93 = arith.constant 0 : i32
    %100 = tpu.memref_slice %arg4[%99, %c0_i32_93] : memref<65x128xf32, #tpu.memory_space<any>> -> memref<1x128xf32, #tpu.memory_space<any>>
    %c0_i32_94 = arith.constant 0 : i32
    %c0_i32_95 = arith.constant 0 : i32
    %101 = tpu.memref_slice %arg7[%c3_i32_90, %c0_i32_94, %c0_i32_95] : memref<8x4x128xf32, #tpu.memory_space<vmem>> -> memref<1x1x128xf32, #tpu.memory_space<vmem>>
    %102 = tpu.memref_squeeze %101 : memref<1x1x128xf32, #tpu.memory_space<vmem>> -> memref<1x128xf32, #tpu.memory_space<vmem>>
    %103 = tpu.memref_slice %arg9[%c3_i32_91, %c0_i32_92] : memref<8x4x!tpu.dma_semaphore, #tpu.memory_space<semaphore_mem>> -> memref<1x1x!tpu.dma_semaphore, #tpu.memory_space<semaphore_mem>>
    %104 = tpu.memref_squeeze %103 : memref<1x1x!tpu.dma_semaphore, #tpu.memory_space<semaphore_mem>> -> memref<!tpu.dma_semaphore, #tpu.memory_space<semaphore_mem>>
    tpu.enqueue_dma source(%100 : memref<1x128xf32, #tpu.memory_space<any>>) target(%102 : memref<1x128xf32, #tpu.memory_space<vmem>>) target_semaphore(%104 : memref<!tpu.dma_semaphore, #tpu.memory_space<semaphore_mem>>)
    %c3_i32_96 = arith.constant 3 : i32
    %105 = arith.addi %0, %c3_i32_96 : i32
    %106 = arith.index_cast %105 : i32 to index
    %c1_97 = arith.constant 1 : index
    %107 = memref.load %arg1[%106, %c1_97] : memref<16x4xi32, #tpu.memory_space<smem>>
    %c3_i32_98 = arith.constant 3 : i32
    %c3_i32_99 = arith.constant 3 : i32
    %c1_i32_100 = arith.constant 1 : i32
    %c0_i32_101 = arith.constant 0 : i32
    %108 = tpu.memref_slice %arg4[%107, %c0_i32_101] : memref<65x128xf32, #tpu.memory_space<any>> -> memref<1x128xf32, #tpu.memory_space<any>>
    %c1_i32_102 = arith.constant 1 : i32
    %c0_i32_103 = arith.constant 0 : i32
    %109 = tpu.memref_slice %arg7[%c3_i32_98, %c1_i32_102, %c0_i32_103] : memref<8x4x128xf32, #tpu.memory_space<vmem>> -> memref<1x1x128xf32, #tpu.memory_space<vmem>>
    %110 = tpu.memref_squeeze %109 : memref<1x1x128xf32, #tpu.memory_space<vmem>> -> memref<1x128xf32, #tpu.memory_space<vmem>>
    %111 = tpu.memref_slice %arg9[%c3_i32_99, %c1_i32_100] : memref<8x4x!tpu.dma_semaphore, #tpu.memory_space<semaphore_mem>> -> memref<1x1x!tpu.dma_semaphore, #tpu.memory_space<semaphore_mem>>
    %112 = tpu.memref_squeeze %111 : memref<1x1x!tpu.dma_semaphore, #tpu.memory_space<semaphore_mem>> -> memref<!tpu.dma_semaphore, #tpu.memory_space<semaphore_mem>>
    tpu.enqueue_dma source(%108 : memref<1x128xf32, #tpu.memory_space<any>>) target(%110 : memref<1x128xf32, #tpu.memory_space<vmem>>) target_semaphore(%112 : memref<!tpu.dma_semaphore, #tpu.memory_space<semaphore_mem>>)
    %c3_i32_104 = arith.constant 3 : i32
    %113 = arith.addi %0, %c3_i32_104 : i32
    %114 = arith.index_cast %113 : i32 to index
    %c2_105 = arith.constant 2 : index
    %115 = memref.load %arg1[%114, %c2_105] : memref<16x4xi32, #tpu.memory_space<smem>>
    %c3_i32_106 = arith.constant 3 : i32
    %c3_i32_107 = arith.constant 3 : i32
    %c2_i32_108 = arith.constant 2 : i32
    %c0_i32_109 = arith.constant 0 : i32
    %116 = tpu.memref_slice %arg4[%115, %c0_i32_109] : memref<65x128xf32, #tpu.memory_space<any>> -> memref<1x128xf32, #tpu.memory_space<any>>
    %c2_i32_110 = arith.constant 2 : i32
    %c0_i32_111 = arith.constant 0 : i32
    %117 = tpu.memref_slice %arg7[%c3_i32_106, %c2_i32_110, %c0_i32_111] : memref<8x4x128xf32, #tpu.memory_space<vmem>> -> memref<1x1x128xf32, #tpu.memory_space<vmem>>
    %118 = tpu.memref_squeeze %117 : memref<1x1x128xf32, #tpu.memory_space<vmem>> -> memref<1x128xf32, #tpu.memory_space<vmem>>
    %119 = tpu.memref_slice %arg9[%c3_i32_107, %c2_i32_108] : memref<8x4x!tpu.dma_semaphore, #tpu.memory_space<semaphore_mem>> -> memref<1x1x!tpu.dma_semaphore, #tpu.memory_space<semaphore_mem>>
    %120 = tpu.memref_squeeze %119 : memref<1x1x!tpu.dma_semaphore, #tpu.memory_space<semaphore_mem>> -> memref<!tpu.dma_semaphore, #tpu.memory_space<semaphore_mem>>
    tpu.enqueue_dma source(%116 : memref<1x128xf32, #tpu.memory_space<any>>) target(%118 : memref<1x128xf32, #tpu.memory_space<vmem>>) target_semaphore(%120 : memref<!tpu.dma_semaphore, #tpu.memory_space<semaphore_mem>>)
    %c3_i32_112 = arith.constant 3 : i32
    %121 = arith.addi %0, %c3_i32_112 : i32
    %122 = arith.index_cast %121 : i32 to index
    %c3_113 = arith.constant 3 : index
    %123 = memref.load %arg1[%122, %c3_113] : memref<16x4xi32, #tpu.memory_space<smem>>
    %c3_i32_114 = arith.constant 3 : i32
    %c3_i32_115 = arith.constant 3 : i32
    %c3_i32_116 = arith.constant 3 : i32
    %c0_i32_117 = arith.constant 0 : i32
    %124 = tpu.memref_slice %arg4[%123, %c0_i32_117] : memref<65x128xf32, #tpu.memory_space<any>> -> memref<1x128xf32, #tpu.memory_space<any>>
    %c3_i32_118 = arith.constant 3 : i32
    %c0_i32_119 = arith.constant 0 : i32
    %125 = tpu.memref_slice %arg7[%c3_i32_114, %c3_i32_118, %c0_i32_119] : memref<8x4x128xf32, #tpu.memory_space<vmem>> -> memref<1x1x128xf32, #tpu.memory_space<vmem>>
    %126 = tpu.memref_squeeze %125 : memref<1x1x128xf32, #tpu.memory_space<vmem>> -> memref<1x128xf32, #tpu.memory_space<vmem>>
    %127 = tpu.memref_slice %arg9[%c3_i32_115, %c3_i32_116] : memref<8x4x!tpu.dma_semaphore, #tpu.memory_space<semaphore_mem>> -> memref<1x1x!tpu.dma_semaphore, #tpu.memory_space<semaphore_mem>>
    %128 = tpu.memref_squeeze %127 : memref<1x1x!tpu.dma_semaphore, #tpu.memory_space<semaphore_mem>> -> memref<!tpu.dma_semaphore, #tpu.memory_space<semaphore_mem>>
    tpu.enqueue_dma source(%124 : memref<1x128xf32, #tpu.memory_space<any>>) target(%126 : memref<1x128xf32, #tpu.memory_space<vmem>>) target_semaphore(%128 : memref<!tpu.dma_semaphore, #tpu.memory_space<semaphore_mem>>)
    %c4_i32 = arith.constant 4 : i32
    %129 = arith.addi %0, %c4_i32 : i32
    %130 = arith.index_cast %129 : i32 to index
    %c0_120 = arith.constant 0 : index
    %131 = memref.load %arg1[%130, %c0_120] : memref<16x4xi32, #tpu.memory_space<smem>>
    %c4_i32_121 = arith.constant 4 : i32
    %c4_i32_122 = arith.constant 4 : i32
    %c0_i32_123 = arith.constant 0 : i32
    %c0_i32_124 = arith.constant 0 : i32
    %132 = tpu.memref_slice %arg4[%131, %c0_i32_124] : memref<65x128xf32, #tpu.memory_space<any>> -> memref<1x128xf32, #tpu.memory_space<any>>
    %c0_i32_125 = arith.constant 0 : i32
    %c0_i32_126 = arith.constant 0 : i32
    %133 = tpu.memref_slice %arg7[%c4_i32_121, %c0_i32_125, %c0_i32_126] : memref<8x4x128xf32, #tpu.memory_space<vmem>> -> memref<1x1x128xf32, #tpu.memory_space<vmem>>
    %134 = tpu.memref_squeeze %133 : memref<1x1x128xf32, #tpu.memory_space<vmem>> -> memref<1x128xf32, #tpu.memory_space<vmem>>
    %135 = tpu.memref_slice %arg9[%c4_i32_122, %c0_i32_123] : memref<8x4x!tpu.dma_semaphore, #tpu.memory_space<semaphore_mem>> -> memref<1x1x!tpu.dma_semaphore, #tpu.memory_space<semaphore_mem>>
    %136 = tpu.memref_squeeze %135 : memref<1x1x!tpu.dma_semaphore, #tpu.memory_space<semaphore_mem>> -> memref<!tpu.dma_semaphore, #tpu.memory_space<semaphore_mem>>
    tpu.enqueue_dma source(%132 : memref<1x128xf32, #tpu.memory_space<any>>) target(%134 : memref<1x128xf32, #tpu.memory_space<vmem>>) target_semaphore(%136 : memref<!tpu.dma_semaphore, #tpu.memory_space<semaphore_mem>>)
    %c4_i32_127 = arith.constant 4 : i32
    %137 = arith.addi %0, %c4_i32_127 : i32
    %138 = arith.index_cast %137 : i32 to index
    %c1_128 = arith.constant 1 : index
    %139 = memref.load %arg1[%138, %c1_128] : memref<16x4xi32, #tpu.memory_space<smem>>
    %c4_i32_129 = arith.constant 4 : i32
    %c4_i32_130 = arith.constant 4 : i32
    %c1_i32_131 = arith.constant 1 : i32
    %c0_i32_132 = arith.constant 0 : i32
    %140 = tpu.memref_slice %arg4[%139, %c0_i32_132] : memref<65x128xf32, #tpu.memory_space<any>> -> memref<1x128xf32, #tpu.memory_space<any>>
    %c1_i32_133 = arith.constant 1 : i32
    %c0_i32_134 = arith.constant 0 : i32
    %141 = tpu.memref_slice %arg7[%c4_i32_129, %c1_i32_133, %c0_i32_134] : memref<8x4x128xf32, #tpu.memory_space<vmem>> -> memref<1x1x128xf32, #tpu.memory_space<vmem>>
    %142 = tpu.memref_squeeze %141 : memref<1x1x128xf32, #tpu.memory_space<vmem>> -> memref<1x128xf32, #tpu.memory_space<vmem>>
    %143 = tpu.memref_slice %arg9[%c4_i32_130, %c1_i32_131] : memref<8x4x!tpu.dma_semaphore, #tpu.memory_space<semaphore_mem>> -> memref<1x1x!tpu.dma_semaphore, #tpu.memory_space<semaphore_mem>>
    %144 = tpu.memref_squeeze %143 : memref<1x1x!tpu.dma_semaphore, #tpu.memory_space<semaphore_mem>> -> memref<!tpu.dma_semaphore, #tpu.memory_space<semaphore_mem>>
    tpu.enqueue_dma source(%140 : memref<1x128xf32, #tpu.memory_space<any>>) target(%142 : memref<1x128xf32, #tpu.memory_space<vmem>>) target_semaphore(%144 : memref<!tpu.dma_semaphore, #tpu.memory_space<semaphore_mem>>)
    %c4_i32_135 = arith.constant 4 : i32
    %145 = arith.addi %0, %c4_i32_135 : i32
    %146 = arith.index_cast %145 : i32 to index
    %c2_136 = arith.constant 2 : index
    %147 = memref.load %arg1[%146, %c2_136] : memref<16x4xi32, #tpu.memory_space<smem>>
    %c4_i32_137 = arith.constant 4 : i32
    %c4_i32_138 = arith.constant 4 : i32
    %c2_i32_139 = arith.constant 2 : i32
    %c0_i32_140 = arith.constant 0 : i32
    %148 = tpu.memref_slice %arg4[%147, %c0_i32_140] : memref<65x128xf32, #tpu.memory_space<any>> -> memref<1x128xf32, #tpu.memory_space<any>>
    %c2_i32_141 = arith.constant 2 : i32
    %c0_i32_142 = arith.constant 0 : i32
    %149 = tpu.memref_slice %arg7[%c4_i32_137, %c2_i32_141, %c0_i32_142] : memref<8x4x128xf32, #tpu.memory_space<vmem>> -> memref<1x1x128xf32, #tpu.memory_space<vmem>>
    %150 = tpu.memref_squeeze %149 : memref<1x1x128xf32, #tpu.memory_space<vmem>> -> memref<1x128xf32, #tpu.memory_space<vmem>>
    %151 = tpu.memref_slice %arg9[%c4_i32_138, %c2_i32_139] : memref<8x4x!tpu.dma_semaphore, #tpu.memory_space<semaphore_mem>> -> memref<1x1x!tpu.dma_semaphore, #tpu.memory_space<semaphore_mem>>
    %152 = tpu.memref_squeeze %151 : memref<1x1x!tpu.dma_semaphore, #tpu.memory_space<semaphore_mem>> -> memref<!tpu.dma_semaphore, #tpu.memory_space<semaphore_mem>>
    tpu.enqueue_dma source(%148 : memref<1x128xf32, #tpu.memory_space<any>>) target(%150 : memref<1x128xf32, #tpu.memory_space<vmem>>) target_semaphore(%152 : memref<!tpu.dma_semaphore, #tpu.memory_space<semaphore_mem>>)
    %c4_i32_143 = arith.constant 4 : i32
    %153 = arith.addi %0, %c4_i32_143 : i32
    %154 = arith.index_cast %153 : i32 to index
    %c3_144 = arith.constant 3 : index
    %155 = memref.load %arg1[%154, %c3_144] : memref<16x4xi32, #tpu.memory_space<smem>>
    %c4_i32_145 = arith.constant 4 : i32
    %c4_i32_146 = arith.constant 4 : i32
    %c3_i32_147 = arith.constant 3 : i32
    %c0_i32_148 = arith.constant 0 : i32
    %156 = tpu.memref_slice %arg4[%155, %c0_i32_148] : memref<65x128xf32, #tpu.memory_space<any>> -> memref<1x128xf32, #tpu.memory_space<any>>
    %c3_i32_149 = arith.constant 3 : i32
    %c0_i32_150 = arith.constant 0 : i32
    %157 = tpu.memref_slice %arg7[%c4_i32_145, %c3_i32_149, %c0_i32_150] : memref<8x4x128xf32, #tpu.memory_space<vmem>> -> memref<1x1x128xf32, #tpu.memory_space<vmem>>
    %158 = tpu.memref_squeeze %157 : memref<1x1x128xf32, #tpu.memory_space<vmem>> -> memref<1x128xf32, #tpu.memory_space<vmem>>
    %159 = tpu.memref_slice %arg9[%c4_i32_146, %c3_i32_147] : memref<8x4x!tpu.dma_semaphore, #tpu.memory_space<semaphore_mem>> -> memref<1x1x!tpu.dma_semaphore, #tpu.memory_space<semaphore_mem>>
    %160 = tpu.memref_squeeze %159 : memref<1x1x!tpu.dma_semaphore, #tpu.memory_space<semaphore_mem>> -> memref<!tpu.dma_semaphore, #tpu.memory_space<semaphore_mem>>
    tpu.enqueue_dma source(%156 : memref<1x128xf32, #tpu.memory_space<any>>) target(%158 : memref<1x128xf32, #tpu.memory_space<vmem>>) target_semaphore(%160 : memref<!tpu.dma_semaphore, #tpu.memory_space<semaphore_mem>>)
    %c5_i32 = arith.constant 5 : i32
    %161 = arith.addi %0, %c5_i32 : i32
    %162 = arith.index_cast %161 : i32 to index
    %c0_151 = arith.constant 0 : index
    %163 = memref.load %arg1[%162, %c0_151] : memref<16x4xi32, #tpu.memory_space<smem>>
    %c5_i32_152 = arith.constant 5 : i32
    %c5_i32_153 = arith.constant 5 : i32
    %c0_i32_154 = arith.constant 0 : i32
    %c0_i32_155 = arith.constant 0 : i32
    %164 = tpu.memref_slice %arg4[%163, %c0_i32_155] : memref<65x128xf32, #tpu.memory_space<any>> -> memref<1x128xf32, #tpu.memory_space<any>>
    %c0_i32_156 = arith.constant 0 : i32
    %c0_i32_157 = arith.constant 0 : i32
    %165 = tpu.memref_slice %arg7[%c5_i32_152, %c0_i32_156, %c0_i32_157] : memref<8x4x128xf32, #tpu.memory_space<vmem>> -> memref<1x1x128xf32, #tpu.memory_space<vmem>>
    %166 = tpu.memref_squeeze %165 : memref<1x1x128xf32, #tpu.memory_space<vmem>> -> memref<1x128xf32, #tpu.memory_space<vmem>>
    %167 = tpu.memref_slice %arg9[%c5_i32_153, %c0_i32_154] : memref<8x4x!tpu.dma_semaphore, #tpu.memory_space<semaphore_mem>> -> memref<1x1x!tpu.dma_semaphore, #tpu.memory_space<semaphore_mem>>
    %168 = tpu.memref_squeeze %167 : memref<1x1x!tpu.dma_semaphore, #tpu.memory_space<semaphore_mem>> -> memref<!tpu.dma_semaphore, #tpu.memory_space<semaphore_mem>>
    tpu.enqueue_dma source(%164 : memref<1x128xf32, #tpu.memory_space<any>>) target(%166 : memref<1x128xf32, #tpu.memory_space<vmem>>) target_semaphore(%168 : memref<!tpu.dma_semaphore, #tpu.memory_space<semaphore_mem>>)
    %c5_i32_158 = arith.constant 5 : i32
    %169 = arith.addi %0, %c5_i32_158 : i32
    %170 = arith.index_cast %169 : i32 to index
    %c1_159 = arith.constant 1 : index
    %171 = memref.load %arg1[%170, %c1_159] : memref<16x4xi32, #tpu.memory_space<smem>>
    %c5_i32_160 = arith.constant 5 : i32
    %c5_i32_161 = arith.constant 5 : i32
    %c1_i32_162 = arith.constant 1 : i32
    %c0_i32_163 = arith.constant 0 : i32
    %172 = tpu.memref_slice %arg4[%171, %c0_i32_163] : memref<65x128xf32, #tpu.memory_space<any>> -> memref<1x128xf32, #tpu.memory_space<any>>
    %c1_i32_164 = arith.constant 1 : i32
    %c0_i32_165 = arith.constant 0 : i32
    %173 = tpu.memref_slice %arg7[%c5_i32_160, %c1_i32_164, %c0_i32_165] : memref<8x4x128xf32, #tpu.memory_space<vmem>> -> memref<1x1x128xf32, #tpu.memory_space<vmem>>
    %174 = tpu.memref_squeeze %173 : memref<1x1x128xf32, #tpu.memory_space<vmem>> -> memref<1x128xf32, #tpu.memory_space<vmem>>
    %175 = tpu.memref_slice %arg9[%c5_i32_161, %c1_i32_162] : memref<8x4x!tpu.dma_semaphore, #tpu.memory_space<semaphore_mem>> -> memref<1x1x!tpu.dma_semaphore, #tpu.memory_space<semaphore_mem>>
    %176 = tpu.memref_squeeze %175 : memref<1x1x!tpu.dma_semaphore, #tpu.memory_space<semaphore_mem>> -> memref<!tpu.dma_semaphore, #tpu.memory_space<semaphore_mem>>
    tpu.enqueue_dma source(%172 : memref<1x128xf32, #tpu.memory_space<any>>) target(%174 : memref<1x128xf32, #tpu.memory_space<vmem>>) target_semaphore(%176 : memref<!tpu.dma_semaphore, #tpu.memory_space<semaphore_mem>>)
    %c5_i32_166 = arith.constant 5 : i32
    %177 = arith.addi %0, %c5_i32_166 : i32
    %178 = arith.index_cast %177 : i32 to index
    %c2_167 = arith.constant 2 : index
    %179 = memref.load %arg1[%178, %c2_167] : memref<16x4xi32, #tpu.memory_space<smem>>
    %c5_i32_168 = arith.constant 5 : i32
    %c5_i32_169 = arith.constant 5 : i32
    %c2_i32_170 = arith.constant 2 : i32
    %c0_i32_171 = arith.constant 0 : i32
    %180 = tpu.memref_slice %arg4[%179, %c0_i32_171] : memref<65x128xf32, #tpu.memory_space<any>> -> memref<1x128xf32, #tpu.memory_space<any>>
    %c2_i32_172 = arith.constant 2 : i32
    %c0_i32_173 = arith.constant 0 : i32
    %181 = tpu.memref_slice %arg7[%c5_i32_168, %c2_i32_172, %c0_i32_173] : memref<8x4x128xf32, #tpu.memory_space<vmem>> -> memref<1x1x128xf32, #tpu.memory_space<vmem>>
    %182 = tpu.memref_squeeze %181 : memref<1x1x128xf32, #tpu.memory_space<vmem>> -> memref<1x128xf32, #tpu.memory_space<vmem>>
    %183 = tpu.memref_slice %arg9[%c5_i32_169, %c2_i32_170] : memref<8x4x!tpu.dma_semaphore, #tpu.memory_space<semaphore_mem>> -> memref<1x1x!tpu.dma_semaphore, #tpu.memory_space<semaphore_mem>>
    %184 = tpu.memref_squeeze %183 : memref<1x1x!tpu.dma_semaphore, #tpu.memory_space<semaphore_mem>> -> memref<!tpu.dma_semaphore, #tpu.memory_space<semaphore_mem>>
    tpu.enqueue_dma source(%180 : memref<1x128xf32, #tpu.memory_space<any>>) target(%182 : memref<1x128xf32, #tpu.memory_space<vmem>>) target_semaphore(%184 : memref<!tpu.dma_semaphore, #tpu.memory_space<semaphore_mem>>)
    %c5_i32_174 = arith.constant 5 : i32
    %185 = arith.addi %0, %c5_i32_174 : i32
    %186 = arith.index_cast %185 : i32 to index
    %c3_175 = arith.constant 3 : index
    %187 = memref.load %arg1[%186, %c3_175] : memref<16x4xi32, #tpu.memory_space<smem>>
    %c5_i32_176 = arith.constant 5 : i32
    %c5_i32_177 = arith.constant 5 : i32
    %c3_i32_178 = arith.constant 3 : i32
    %c0_i32_179 = arith.constant 0 : i32
    %188 = tpu.memref_slice %arg4[%187, %c0_i32_179] : memref<65x128xf32, #tpu.memory_space<any>> -> memref<1x128xf32, #tpu.memory_space<any>>
    %c3_i32_180 = arith.constant 3 : i32
    %c0_i32_181 = arith.constant 0 : i32
    %189 = tpu.memref_slice %arg7[%c5_i32_176, %c3_i32_180, %c0_i32_181] : memref<8x4x128xf32, #tpu.memory_space<vmem>> -> memref<1x1x128xf32, #tpu.memory_space<vmem>>
    %190 = tpu.memref_squeeze %189 : memref<1x1x128xf32, #tpu.memory_space<vmem>> -> memref<1x128xf32, #tpu.memory_space<vmem>>
    %191 = tpu.memref_slice %arg9[%c5_i32_177, %c3_i32_178] : memref<8x4x!tpu.dma_semaphore, #tpu.memory_space<semaphore_mem>> -> memref<1x1x!tpu.dma_semaphore, #tpu.memory_space<semaphore_mem>>
    %192 = tpu.memref_squeeze %191 : memref<1x1x!tpu.dma_semaphore, #tpu.memory_space<semaphore_mem>> -> memref<!tpu.dma_semaphore, #tpu.memory_space<semaphore_mem>>
    tpu.enqueue_dma source(%188 : memref<1x128xf32, #tpu.memory_space<any>>) target(%190 : memref<1x128xf32, #tpu.memory_space<vmem>>) target_semaphore(%192 : memref<!tpu.dma_semaphore, #tpu.memory_space<semaphore_mem>>)
    %c6_i32 = arith.constant 6 : i32
    %193 = arith.addi %0, %c6_i32 : i32
    %194 = arith.index_cast %193 : i32 to index
    %c0_182 = arith.constant 0 : index
    %195 = memref.load %arg1[%194, %c0_182] : memref<16x4xi32, #tpu.memory_space<smem>>
    %c6_i32_183 = arith.constant 6 : i32
    %c6_i32_184 = arith.constant 6 : i32
    %c0_i32_185 = arith.constant 0 : i32
    %c0_i32_186 = arith.constant 0 : i32
    %196 = tpu.memref_slice %arg4[%195, %c0_i32_186] : memref<65x128xf32, #tpu.memory_space<any>> -> memref<1x128xf32, #tpu.memory_space<any>>
    %c0_i32_187 = arith.constant 0 : i32
    %c0_i32_188 = arith.constant 0 : i32
    %197 = tpu.memref_slice %arg7[%c6_i32_183, %c0_i32_187, %c0_i32_188] : memref<8x4x128xf32, #tpu.memory_space<vmem>> -> memref<1x1x128xf32, #tpu.memory_space<vmem>>
    %198 = tpu.memref_squeeze %197 : memref<1x1x128xf32, #tpu.memory_space<vmem>> -> memref<1x128xf32, #tpu.memory_space<vmem>>
    %199 = tpu.memref_slice %arg9[%c6_i32_184, %c0_i32_185] : memref<8x4x!tpu.dma_semaphore, #tpu.memory_space<semaphore_mem>> -> memref<1x1x!tpu.dma_semaphore, #tpu.memory_space<semaphore_mem>>
    %200 = tpu.memref_squeeze %199 : memref<1x1x!tpu.dma_semaphore, #tpu.memory_space<semaphore_mem>> -> memref<!tpu.dma_semaphore, #tpu.memory_space<semaphore_mem>>
    tpu.enqueue_dma source(%196 : memref<1x128xf32, #tpu.memory_space<any>>) target(%198 : memref<1x128xf32, #tpu.memory_space<vmem>>) target_semaphore(%200 : memref<!tpu.dma_semaphore, #tpu.memory_space<semaphore_mem>>)
    %c6_i32_189 = arith.constant 6 : i32
    %201 = arith.addi %0, %c6_i32_189 : i32
    %202 = arith.index_cast %201 : i32 to index
    %c1_190 = arith.constant 1 : index
    %203 = memref.load %arg1[%202, %c1_190] : memref<16x4xi32, #tpu.memory_space<smem>>
    %c6_i32_191 = arith.constant 6 : i32
    %c6_i32_192 = arith.constant 6 : i32
    %c1_i32_193 = arith.constant 1 : i32
    %c0_i32_194 = arith.constant 0 : i32
    %204 = tpu.memref_slice %arg4[%203, %c0_i32_194] : memref<65x128xf32, #tpu.memory_space<any>> -> memref<1x128xf32, #tpu.memory_space<any>>
    %c1_i32_195 = arith.constant 1 : i32
    %c0_i32_196 = arith.constant 0 : i32
    %205 = tpu.memref_slice %arg7[%c6_i32_191, %c1_i32_195, %c0_i32_196] : memref<8x4x128xf32, #tpu.memory_space<vmem>> -> memref<1x1x128xf32, #tpu.memory_space<vmem>>
    %206 = tpu.memref_squeeze %205 : memref<1x1x128xf32, #tpu.memory_space<vmem>> -> memref<1x128xf32, #tpu.memory_space<vmem>>
    %207 = tpu.memref_slice %arg9[%c6_i32_192, %c1_i32_193] : memref<8x4x!tpu.dma_semaphore, #tpu.memory_space<semaphore_mem>> -> memref<1x1x!tpu.dma_semaphore, #tpu.memory_space<semaphore_mem>>
    %208 = tpu.memref_squeeze %207 : memref<1x1x!tpu.dma_semaphore, #tpu.memory_space<semaphore_mem>> -> memref<!tpu.dma_semaphore, #tpu.memory_space<semaphore_mem>>
    tpu.enqueue_dma source(%204 : memref<1x128xf32, #tpu.memory_space<any>>) target(%206 : memref<1x128xf32, #tpu.memory_space<vmem>>) target_semaphore(%208 : memref<!tpu.dma_semaphore, #tpu.memory_space<semaphore_mem>>)
    %c6_i32_197 = arith.constant 6 : i32
    %209 = arith.addi %0, %c6_i32_197 : i32
    %210 = arith.index_cast %209 : i32 to index
    %c2_198 = arith.constant 2 : index
    %211 = memref.load %arg1[%210, %c2_198] : memref<16x4xi32, #tpu.memory_space<smem>>
    %c6_i32_199 = arith.constant 6 : i32
    %c6_i32_200 = arith.constant 6 : i32
    %c2_i32_201 = arith.constant 2 : i32
    %c0_i32_202 = arith.constant 0 : i32
    %212 = tpu.memref_slice %arg4[%211, %c0_i32_202] : memref<65x128xf32, #tpu.memory_space<any>> -> memref<1x128xf32, #tpu.memory_space<any>>
    %c2_i32_203 = arith.constant 2 : i32
    %c0_i32_204 = arith.constant 0 : i32
    %213 = tpu.memref_slice %arg7[%c6_i32_199, %c2_i32_203, %c0_i32_204] : memref<8x4x128xf32, #tpu.memory_space<vmem>> -> memref<1x1x128xf32, #tpu.memory_space<vmem>>
    %214 = tpu.memref_squeeze %213 : memref<1x1x128xf32, #tpu.memory_space<vmem>> -> memref<1x128xf32, #tpu.memory_space<vmem>>
    %215 = tpu.memref_slice %arg9[%c6_i32_200, %c2_i32_201] : memref<8x4x!tpu.dma_semaphore, #tpu.memory_space<semaphore_mem>> -> memref<1x1x!tpu.dma_semaphore, #tpu.memory_space<semaphore_mem>>
    %216 = tpu.memref_squeeze %215 : memref<1x1x!tpu.dma_semaphore, #tpu.memory_space<semaphore_mem>> -> memref<!tpu.dma_semaphore, #tpu.memory_space<semaphore_mem>>
    tpu.enqueue_dma source(%212 : memref<1x128xf32, #tpu.memory_space<any>>) target(%214 : memref<1x128xf32, #tpu.memory_space<vmem>>) target_semaphore(%216 : memref<!tpu.dma_semaphore, #tpu.memory_space<semaphore_mem>>)
    %c6_i32_205 = arith.constant 6 : i32
    %217 = arith.addi %0, %c6_i32_205 : i32
    %218 = arith.index_cast %217 : i32 to index
    %c3_206 = arith.constant 3 : index
    %219 = memref.load %arg1[%218, %c3_206] : memref<16x4xi32, #tpu.memory_space<smem>>
    %c6_i32_207 = arith.constant 6 : i32
    %c6_i32_208 = arith.constant 6 : i32
    %c3_i32_209 = arith.constant 3 : i32
    %c0_i32_210 = arith.constant 0 : i32
    %220 = tpu.memref_slice %arg4[%219, %c0_i32_210] : memref<65x128xf32, #tpu.memory_space<any>> -> memref<1x128xf32, #tpu.memory_space<any>>
    %c3_i32_211 = arith.constant 3 : i32
    %c0_i32_212 = arith.constant 0 : i32
    %221 = tpu.memref_slice %arg7[%c6_i32_207, %c3_i32_211, %c0_i32_212] : memref<8x4x128xf32, #tpu.memory_space<vmem>> -> memref<1x1x128xf32, #tpu.memory_space<vmem>>
    %222 = tpu.memref_squeeze %221 : memref<1x1x128xf32, #tpu.memory_space<vmem>> -> memref<1x128xf32, #tpu.memory_space<vmem>>
    %223 = tpu.memref_slice %arg9[%c6_i32_208, %c3_i32_209] : memref<8x4x!tpu.dma_semaphore, #tpu.memory_space<semaphore_mem>> -> memref<1x1x!tpu.dma_semaphore, #tpu.memory_space<semaphore_mem>>
    %224 = tpu.memref_squeeze %223 : memref<1x1x!tpu.dma_semaphore, #tpu.memory_space<semaphore_mem>> -> memref<!tpu.dma_semaphore, #tpu.memory_space<semaphore_mem>>
    tpu.enqueue_dma source(%220 : memref<1x128xf32, #tpu.memory_space<any>>) target(%222 : memref<1x128xf32, #tpu.memory_space<vmem>>) target_semaphore(%224 : memref<!tpu.dma_semaphore, #tpu.memory_space<semaphore_mem>>)
    %c7_i32 = arith.constant 7 : i32
    %225 = arith.addi %0, %c7_i32 : i32
    %226 = arith.index_cast %225 : i32 to index
    %c0_213 = arith.constant 0 : index
    %227 = memref.load %arg1[%226, %c0_213] : memref<16x4xi32, #tpu.memory_space<smem>>
    %c7_i32_214 = arith.constant 7 : i32
    %c7_i32_215 = arith.constant 7 : i32
    %c0_i32_216 = arith.constant 0 : i32
    %c0_i32_217 = arith.constant 0 : i32
    %228 = tpu.memref_slice %arg4[%227, %c0_i32_217] : memref<65x128xf32, #tpu.memory_space<any>> -> memref<1x128xf32, #tpu.memory_space<any>>
    %c0_i32_218 = arith.constant 0 : i32
    %c0_i32_219 = arith.constant 0 : i32
    %229 = tpu.memref_slice %arg7[%c7_i32_214, %c0_i32_218, %c0_i32_219] : memref<8x4x128xf32, #tpu.memory_space<vmem>> -> memref<1x1x128xf32, #tpu.memory_space<vmem>>
    %230 = tpu.memref_squeeze %229 : memref<1x1x128xf32, #tpu.memory_space<vmem>> -> memref<1x128xf32, #tpu.memory_space<vmem>>
    %231 = tpu.memref_slice %arg9[%c7_i32_215, %c0_i32_216] : memref<8x4x!tpu.dma_semaphore, #tpu.memory_space<semaphore_mem>> -> memref<1x1x!tpu.dma_semaphore, #tpu.memory_space<semaphore_mem>>
    %232 = tpu.memref_squeeze %231 : memref<1x1x!tpu.dma_semaphore, #tpu.memory_space<semaphore_mem>> -> memref<!tpu.dma_semaphore, #tpu.memory_space<semaphore_mem>>
    tpu.enqueue_dma source(%228 : memref<1x128xf32, #tpu.memory_space<any>>) target(%230 : memref<1x128xf32, #tpu.memory_space<vmem>>) target_semaphore(%232 : memref<!tpu.dma_semaphore, #tpu.memory_space<semaphore_mem>>)
    %c7_i32_220 = arith.constant 7 : i32
    %233 = arith.addi %0, %c7_i32_220 : i32
    %234 = arith.index_cast %233 : i32 to index
    %c1_221 = arith.constant 1 : index
    %235 = memref.load %arg1[%234, %c1_221] : memref<16x4xi32, #tpu.memory_space<smem>>
    %c7_i32_222 = arith.constant 7 : i32
    %c7_i32_223 = arith.constant 7 : i32
    %c1_i32_224 = arith.constant 1 : i32
    %c0_i32_225 = arith.constant 0 : i32
    %236 = tpu.memref_slice %arg4[%235, %c0_i32_225] : memref<65x128xf32, #tpu.memory_space<any>> -> memref<1x128xf32, #tpu.memory_space<any>>
    %c1_i32_226 = arith.constant 1 : i32
    %c0_i32_227 = arith.constant 0 : i32
    %237 = tpu.memref_slice %arg7[%c7_i32_222, %c1_i32_226, %c0_i32_227] : memref<8x4x128xf32, #tpu.memory_space<vmem>> -> memref<1x1x128xf32, #tpu.memory_space<vmem>>
    %238 = tpu.memref_squeeze %237 : memref<1x1x128xf32, #tpu.memory_space<vmem>> -> memref<1x128xf32, #tpu.memory_space<vmem>>
    %239 = tpu.memref_slice %arg9[%c7_i32_223, %c1_i32_224] : memref<8x4x!tpu.dma_semaphore, #tpu.memory_space<semaphore_mem>> -> memref<1x1x!tpu.dma_semaphore, #tpu.memory_space<semaphore_mem>>
    %240 = tpu.memref_squeeze %239 : memref<1x1x!tpu.dma_semaphore, #tpu.memory_space<semaphore_mem>> -> memref<!tpu.dma_semaphore, #tpu.memory_space<semaphore_mem>>
    tpu.enqueue_dma source(%236 : memref<1x128xf32, #tpu.memory_space<any>>) target(%238 : memref<1x128xf32, #tpu.memory_space<vmem>>) target_semaphore(%240 : memref<!tpu.dma_semaphore, #tpu.memory_space<semaphore_mem>>)
    %c7_i32_228 = arith.constant 7 : i32
    %241 = arith.addi %0, %c7_i32_228 : i32
    %242 = arith.index_cast %241 : i32 to index
    %c2_229 = arith.constant 2 : index
    %243 = memref.load %arg1[%242, %c2_229] : memref<16x4xi32, #tpu.memory_space<smem>>
    %c7_i32_230 = arith.constant 7 : i32
    %c7_i32_231 = arith.constant 7 : i32
    %c2_i32_232 = arith.constant 2 : i32
    %c0_i32_233 = arith.constant 0 : i32
    %244 = tpu.memref_slice %arg4[%243, %c0_i32_233] : memref<65x128xf32, #tpu.memory_space<any>> -> memref<1x128xf32, #tpu.memory_space<any>>
    %c2_i32_234 = arith.constant 2 : i32
    %c0_i32_235 = arith.constant 0 : i32
    %245 = tpu.memref_slice %arg7[%c7_i32_230, %c2_i32_234, %c0_i32_235] : memref<8x4x128xf32, #tpu.memory_space<vmem>> -> memref<1x1x128xf32, #tpu.memory_space<vmem>>
    %246 = tpu.memref_squeeze %245 : memref<1x1x128xf32, #tpu.memory_space<vmem>> -> memref<1x128xf32, #tpu.memory_space<vmem>>
    %247 = tpu.memref_slice %arg9[%c7_i32_231, %c2_i32_232] : memref<8x4x!tpu.dma_semaphore, #tpu.memory_space<semaphore_mem>> -> memref<1x1x!tpu.dma_semaphore, #tpu.memory_space<semaphore_mem>>
    %248 = tpu.memref_squeeze %247 : memref<1x1x!tpu.dma_semaphore, #tpu.memory_space<semaphore_mem>> -> memref<!tpu.dma_semaphore, #tpu.memory_space<semaphore_mem>>
    tpu.enqueue_dma source(%244 : memref<1x128xf32, #tpu.memory_space<any>>) target(%246 : memref<1x128xf32, #tpu.memory_space<vmem>>) target_semaphore(%248 : memref<!tpu.dma_semaphore, #tpu.memory_space<semaphore_mem>>)
    %c7_i32_236 = arith.constant 7 : i32
    %249 = arith.addi %0, %c7_i32_236 : i32
    %250 = arith.index_cast %249 : i32 to index
    %c3_237 = arith.constant 3 : index
    %251 = memref.load %arg1[%250, %c3_237] : memref<16x4xi32, #tpu.memory_space<smem>>
    %c7_i32_238 = arith.constant 7 : i32
    %c7_i32_239 = arith.constant 7 : i32
    %c3_i32_240 = arith.constant 3 : i32
    %c0_i32_241 = arith.constant 0 : i32
    %252 = tpu.memref_slice %arg4[%251, %c0_i32_241] : memref<65x128xf32, #tpu.memory_space<any>> -> memref<1x128xf32, #tpu.memory_space<any>>
    %c3_i32_242 = arith.constant 3 : i32
    %c0_i32_243 = arith.constant 0 : i32
    %253 = tpu.memref_slice %arg7[%c7_i32_238, %c3_i32_242, %c0_i32_243] : memref<8x4x128xf32, #tpu.memory_space<vmem>> -> memref<1x1x128xf32, #tpu.memory_space<vmem>>
    %254 = tpu.memref_squeeze %253 : memref<1x1x128xf32, #tpu.memory_space<vmem>> -> memref<1x128xf32, #tpu.memory_space<vmem>>
    %255 = tpu.memref_slice %arg9[%c7_i32_239, %c3_i32_240] : memref<8x4x!tpu.dma_semaphore, #tpu.memory_space<semaphore_mem>> -> memref<1x1x!tpu.dma_semaphore, #tpu.memory_space<semaphore_mem>>
    %256 = tpu.memref_squeeze %255 : memref<1x1x!tpu.dma_semaphore, #tpu.memory_space<semaphore_mem>> -> memref<!tpu.dma_semaphore, #tpu.memory_space<semaphore_mem>>
    tpu.enqueue_dma source(%252 : memref<1x128xf32, #tpu.memory_space<any>>) target(%254 : memref<1x128xf32, #tpu.memory_space<vmem>>) target_semaphore(%256 : memref<!tpu.dma_semaphore, #tpu.memory_space<semaphore_mem>>)
    %c0_i32_244 = arith.constant 0 : i32
    %257 = arith.addi %0, %c0_i32_244 : i32
    %258 = arith.index_cast %257 : i32 to index
    %c0_245 = arith.constant 0 : index
    %259 = memref.load %arg2[%258, %c0_245] : memref<16x5xi32, #tpu.memory_space<smem>>
    %c0_i32_246 = arith.constant 0 : i32
    %c0_i32_247 = arith.constant 0 : i32
    %c0_i32_248 = arith.constant 0 : i32
    %c0_i32_249 = arith.constant 0 : i32
    %260 = tpu.memref_slice %arg5[%259, %c0_i32_249] : memref<16x128xf32, #tpu.memory_space<any>> -> memref<1x128xf32, #tpu.memory_space<any>>
    %c0_i32_250 = arith.constant 0 : i32
    %c0_i32_251 = arith.constant 0 : i32
    %261 = tpu.memref_slice %arg8[%c0_i32_246, %c0_i32_250, %c0_i32_251] : memref<8x5x128xf32, #tpu.memory_space<vmem>> -> memref<1x1x128xf32, #tpu.memory_space<vmem>>
    %262 = tpu.memref_squeeze %261 : memref<1x1x128xf32, #tpu.memory_space<vmem>> -> memref<1x128xf32, #tpu.memory_space<vmem>>
    %263 = tpu.memref_slice %arg10[%c0_i32_247, %c0_i32_248] : memref<8x5x!tpu.dma_semaphore, #tpu.memory_space<semaphore_mem>> -> memref<1x1x!tpu.dma_semaphore, #tpu.memory_space<semaphore_mem>>
    %264 = tpu.memref_squeeze %263 : memref<1x1x!tpu.dma_semaphore, #tpu.memory_space<semaphore_mem>> -> memref<!tpu.dma_semaphore, #tpu.memory_space<semaphore_mem>>
    tpu.enqueue_dma source(%260 : memref<1x128xf32, #tpu.memory_space<any>>) target(%262 : memref<1x128xf32, #tpu.memory_space<vmem>>) target_semaphore(%264 : memref<!tpu.dma_semaphore, #tpu.memory_space<semaphore_mem>>)
    %c0_i32_252 = arith.constant 0 : i32
    %265 = arith.addi %0, %c0_i32_252 : i32
    %266 = arith.index_cast %265 : i32 to index
    %c1_253 = arith.constant 1 : index
    %267 = memref.load %arg2[%266, %c1_253] : memref<16x5xi32, #tpu.memory_space<smem>>
    %c0_i32_254 = arith.constant 0 : i32
    %c0_i32_255 = arith.constant 0 : i32
    %c1_i32_256 = arith.constant 1 : i32
    %c0_i32_257 = arith.constant 0 : i32
    %268 = tpu.memref_slice %arg5[%267, %c0_i32_257] : memref<16x128xf32, #tpu.memory_space<any>> -> memref<1x128xf32, #tpu.memory_space<any>>
    %c1_i32_258 = arith.constant 1 : i32
    %c0_i32_259 = arith.constant 0 : i32
    %269 = tpu.memref_slice %arg8[%c0_i32_254, %c1_i32_258, %c0_i32_259] : memref<8x5x128xf32, #tpu.memory_space<vmem>> -> memref<1x1x128xf32, #tpu.memory_space<vmem>>
    %270 = tpu.memref_squeeze %269 : memref<1x1x128xf32, #tpu.memory_space<vmem>> -> memref<1x128xf32, #tpu.memory_space<vmem>>
    %271 = tpu.memref_slice %arg10[%c0_i32_255, %c1_i32_256] : memref<8x5x!tpu.dma_semaphore, #tpu.memory_space<semaphore_mem>> -> memref<1x1x!tpu.dma_semaphore, #tpu.memory_space<semaphore_mem>>
    %272 = tpu.memref_squeeze %271 : memref<1x1x!tpu.dma_semaphore, #tpu.memory_space<semaphore_mem>> -> memref<!tpu.dma_semaphore, #tpu.memory_space<semaphore_mem>>
    tpu.enqueue_dma source(%268 : memref<1x128xf32, #tpu.memory_space<any>>) target(%270 : memref<1x128xf32, #tpu.memory_space<vmem>>) target_semaphore(%272 : memref<!tpu.dma_semaphore, #tpu.memory_space<semaphore_mem>>)
    %c0_i32_260 = arith.constant 0 : i32
    %273 = arith.addi %0, %c0_i32_260 : i32
    %274 = arith.index_cast %273 : i32 to index
    %c2_261 = arith.constant 2 : index
    %275 = memref.load %arg2[%274, %c2_261] : memref<16x5xi32, #tpu.memory_space<smem>>
    %c0_i32_262 = arith.constant 0 : i32
    %c0_i32_263 = arith.constant 0 : i32
    %c2_i32_264 = arith.constant 2 : i32
    %c0_i32_265 = arith.constant 0 : i32
    %276 = tpu.memref_slice %arg5[%275, %c0_i32_265] : memref<16x128xf32, #tpu.memory_space<any>> -> memref<1x128xf32, #tpu.memory_space<any>>
    %c2_i32_266 = arith.constant 2 : i32
    %c0_i32_267 = arith.constant 0 : i32
    %277 = tpu.memref_slice %arg8[%c0_i32_262, %c2_i32_266, %c0_i32_267] : memref<8x5x128xf32, #tpu.memory_space<vmem>> -> memref<1x1x128xf32, #tpu.memory_space<vmem>>
    %278 = tpu.memref_squeeze %277 : memref<1x1x128xf32, #tpu.memory_space<vmem>> -> memref<1x128xf32, #tpu.memory_space<vmem>>
    %279 = tpu.memref_slice %arg10[%c0_i32_263, %c2_i32_264] : memref<8x5x!tpu.dma_semaphore, #tpu.memory_space<semaphore_mem>> -> memref<1x1x!tpu.dma_semaphore, #tpu.memory_space<semaphore_mem>>
    %280 = tpu.memref_squeeze %279 : memref<1x1x!tpu.dma_semaphore, #tpu.memory_space<semaphore_mem>> -> memref<!tpu.dma_semaphore, #tpu.memory_space<semaphore_mem>>
    tpu.enqueue_dma source(%276 : memref<1x128xf32, #tpu.memory_space<any>>) target(%278 : memref<1x128xf32, #tpu.memory_space<vmem>>) target_semaphore(%280 : memref<!tpu.dma_semaphore, #tpu.memory_space<semaphore_mem>>)
    %c0_i32_268 = arith.constant 0 : i32
    %281 = arith.addi %0, %c0_i32_268 : i32
    %282 = arith.index_cast %281 : i32 to index
    %c3_269 = arith.constant 3 : index
    %283 = memref.load %arg2[%282, %c3_269] : memref<16x5xi32, #tpu.memory_space<smem>>
    %c0_i32_270 = arith.constant 0 : i32
    %c0_i32_271 = arith.constant 0 : i32
    %c3_i32_272 = arith.constant 3 : i32
    %c0_i32_273 = arith.constant 0 : i32
    %284 = tpu.memref_slice %arg5[%283, %c0_i32_273] : memref<16x128xf32, #tpu.memory_space<any>> -> memref<1x128xf32, #tpu.memory_space<any>>
    %c3_i32_274 = arith.constant 3 : i32
    %c0_i32_275 = arith.constant 0 : i32
    %285 = tpu.memref_slice %arg8[%c0_i32_270, %c3_i32_274, %c0_i32_275] : memref<8x5x128xf32, #tpu.memory_space<vmem>> -> memref<1x1x128xf32, #tpu.memory_space<vmem>>
    %286 = tpu.memref_squeeze %285 : memref<1x1x128xf32, #tpu.memory_space<vmem>> -> memref<1x128xf32, #tpu.memory_space<vmem>>
    %287 = tpu.memref_slice %arg10[%c0_i32_271, %c3_i32_272] : memref<8x5x!tpu.dma_semaphore, #tpu.memory_space<semaphore_mem>> -> memref<1x1x!tpu.dma_semaphore, #tpu.memory_space<semaphore_mem>>
    %288 = tpu.memref_squeeze %287 : memref<1x1x!tpu.dma_semaphore, #tpu.memory_space<semaphore_mem>> -> memref<!tpu.dma_semaphore, #tpu.memory_space<semaphore_mem>>
    tpu.enqueue_dma source(%284 : memref<1x128xf32, #tpu.memory_space<any>>) target(%286 : memref<1x128xf32, #tpu.memory_space<vmem>>) target_semaphore(%288 : memref<!tpu.dma_semaphore, #tpu.memory_space<semaphore_mem>>)
    %c0_i32_276 = arith.constant 0 : i32
    %289 = arith.addi %0, %c0_i32_276 : i32
    %290 = arith.index_cast %289 : i32 to index
    %c4 = arith.constant 4 : index
    %291 = memref.load %arg2[%290, %c4] : memref<16x5xi32, #tpu.memory_space<smem>>
    %c0_i32_277 = arith.constant 0 : i32
    %c0_i32_278 = arith.constant 0 : i32
    %c4_i32_279 = arith.constant 4 : i32
    %c0_i32_280 = arith.constant 0 : i32
    %292 = tpu.memref_slice %arg5[%291, %c0_i32_280] : memref<16x128xf32, #tpu.memory_space<any>> -> memref<1x128xf32, #tpu.memory_space<any>>
    %c4_i32_281 = arith.constant 4 : i32
    %c0_i32_282 = arith.constant 0 : i32
    %293 = tpu.memref_slice %arg8[%c0_i32_277, %c4_i32_281, %c0_i32_282] : memref<8x5x128xf32, #tpu.memory_space<vmem>> -> memref<1x1x128xf32, #tpu.memory_space<vmem>>
    %294 = tpu.memref_squeeze %293 : memref<1x1x128xf32, #tpu.memory_space<vmem>> -> memref<1x128xf32, #tpu.memory_space<vmem>>
    %295 = tpu.memref_slice %arg10[%c0_i32_278, %c4_i32_279] : memref<8x5x!tpu.dma_semaphore, #tpu.memory_space<semaphore_mem>> -> memref<1x1x!tpu.dma_semaphore, #tpu.memory_space<semaphore_mem>>
    %296 = tpu.memref_squeeze %295 : memref<1x1x!tpu.dma_semaphore, #tpu.memory_space<semaphore_mem>> -> memref<!tpu.dma_semaphore, #tpu.memory_space<semaphore_mem>>
    tpu.enqueue_dma source(%292 : memref<1x128xf32, #tpu.memory_space<any>>) target(%294 : memref<1x128xf32, #tpu.memory_space<vmem>>) target_semaphore(%296 : memref<!tpu.dma_semaphore, #tpu.memory_space<semaphore_mem>>)
    %c1_i32_283 = arith.constant 1 : i32
    %297 = arith.addi %0, %c1_i32_283 : i32
    %298 = arith.index_cast %297 : i32 to index
    %c0_284 = arith.constant 0 : index
    %299 = memref.load %arg2[%298, %c0_284] : memref<16x5xi32, #tpu.memory_space<smem>>
    %c1_i32_285 = arith.constant 1 : i32
    %c1_i32_286 = arith.constant 1 : i32
    %c0_i32_287 = arith.constant 0 : i32
    %c0_i32_288 = arith.constant 0 : i32
    %300 = tpu.memref_slice %arg5[%299, %c0_i32_288] : memref<16x128xf32, #tpu.memory_space<any>> -> memref<1x128xf32, #tpu.memory_space<any>>
    %c0_i32_289 = arith.constant 0 : i32
    %c0_i32_290 = arith.constant 0 : i32
    %301 = tpu.memref_slice %arg8[%c1_i32_285, %c0_i32_289, %c0_i32_290] : memref<8x5x128xf32, #tpu.memory_space<vmem>> -> memref<1x1x128xf32, #tpu.memory_space<vmem>>
    %302 = tpu.memref_squeeze %301 : memref<1x1x128xf32, #tpu.memory_space<vmem>> -> memref<1x128xf32, #tpu.memory_space<vmem>>
    %303 = tpu.memref_slice %arg10[%c1_i32_286, %c0_i32_287] : memref<8x5x!tpu.dma_semaphore, #tpu.memory_space<semaphore_mem>> -> memref<1x1x!tpu.dma_semaphore, #tpu.memory_space<semaphore_mem>>
    %304 = tpu.memref_squeeze %303 : memref<1x1x!tpu.dma_semaphore, #tpu.memory_space<semaphore_mem>> -> memref<!tpu.dma_semaphore, #tpu.memory_space<semaphore_mem>>
    tpu.enqueue_dma source(%300 : memref<1x128xf32, #tpu.memory_space<any>>) target(%302 : memref<1x128xf32, #tpu.memory_space<vmem>>) target_semaphore(%304 : memref<!tpu.dma_semaphore, #tpu.memory_space<semaphore_mem>>)
    %c1_i32_291 = arith.constant 1 : i32
    %305 = arith.addi %0, %c1_i32_291 : i32
    %306 = arith.index_cast %305 : i32 to index
    %c1_292 = arith.constant 1 : index
    %307 = memref.load %arg2[%306, %c1_292] : memref<16x5xi32, #tpu.memory_space<smem>>
    %c1_i32_293 = arith.constant 1 : i32
    %c1_i32_294 = arith.constant 1 : i32
    %c1_i32_295 = arith.constant 1 : i32
    %c0_i32_296 = arith.constant 0 : i32
    %308 = tpu.memref_slice %arg5[%307, %c0_i32_296] : memref<16x128xf32, #tpu.memory_space<any>> -> memref<1x128xf32, #tpu.memory_space<any>>
    %c1_i32_297 = arith.constant 1 : i32
    %c0_i32_298 = arith.constant 0 : i32
    %309 = tpu.memref_slice %arg8[%c1_i32_293, %c1_i32_297, %c0_i32_298] : memref<8x5x128xf32, #tpu.memory_space<vmem>> -> memref<1x1x128xf32, #tpu.memory_space<vmem>>
    %310 = tpu.memref_squeeze %309 : memref<1x1x128xf32, #tpu.memory_space<vmem>> -> memref<1x128xf32, #tpu.memory_space<vmem>>
    %311 = tpu.memref_slice %arg10[%c1_i32_294, %c1_i32_295] : memref<8x5x!tpu.dma_semaphore, #tpu.memory_space<semaphore_mem>> -> memref<1x1x!tpu.dma_semaphore, #tpu.memory_space<semaphore_mem>>
    %312 = tpu.memref_squeeze %311 : memref<1x1x!tpu.dma_semaphore, #tpu.memory_space<semaphore_mem>> -> memref<!tpu.dma_semaphore, #tpu.memory_space<semaphore_mem>>
    tpu.enqueue_dma source(%308 : memref<1x128xf32, #tpu.memory_space<any>>) target(%310 : memref<1x128xf32, #tpu.memory_space<vmem>>) target_semaphore(%312 : memref<!tpu.dma_semaphore, #tpu.memory_space<semaphore_mem>>)
    %c1_i32_299 = arith.constant 1 : i32
    %313 = arith.addi %0, %c1_i32_299 : i32
    %314 = arith.index_cast %313 : i32 to index
    %c2_300 = arith.constant 2 : index
    %315 = memref.load %arg2[%314, %c2_300] : memref<16x5xi32, #tpu.memory_space<smem>>
    %c1_i32_301 = arith.constant 1 : i32
    %c1_i32_302 = arith.constant 1 : i32
    %c2_i32_303 = arith.constant 2 : i32
    %c0_i32_304 = arith.constant 0 : i32
    %316 = tpu.memref_slice %arg5[%315, %c0_i32_304] : memref<16x128xf32, #tpu.memory_space<any>> -> memref<1x128xf32, #tpu.memory_space<any>>
    %c2_i32_305 = arith.constant 2 : i32
    %c0_i32_306 = arith.constant 0 : i32
    %317 = tpu.memref_slice %arg8[%c1_i32_301, %c2_i32_305, %c0_i32_306] : memref<8x5x128xf32, #tpu.memory_space<vmem>> -> memref<1x1x128xf32, #tpu.memory_space<vmem>>
    %318 = tpu.memref_squeeze %317 : memref<1x1x128xf32, #tpu.memory_space<vmem>> -> memref<1x128xf32, #tpu.memory_space<vmem>>
    %319 = tpu.memref_slice %arg10[%c1_i32_302, %c2_i32_303] : memref<8x5x!tpu.dma_semaphore, #tpu.memory_space<semaphore_mem>> -> memref<1x1x!tpu.dma_semaphore, #tpu.memory_space<semaphore_mem>>
    %320 = tpu.memref_squeeze %319 : memref<1x1x!tpu.dma_semaphore, #tpu.memory_space<semaphore_mem>> -> memref<!tpu.dma_semaphore, #tpu.memory_space<semaphore_mem>>
    tpu.enqueue_dma source(%316 : memref<1x128xf32, #tpu.memory_space<any>>) target(%318 : memref<1x128xf32, #tpu.memory_space<vmem>>) target_semaphore(%320 : memref<!tpu.dma_semaphore, #tpu.memory_space<semaphore_mem>>)
    %c1_i32_307 = arith.constant 1 : i32
    %321 = arith.addi %0, %c1_i32_307 : i32
    %322 = arith.index_cast %321 : i32 to index
    %c3_308 = arith.constant 3 : index
    %323 = memref.load %arg2[%322, %c3_308] : memref<16x5xi32, #tpu.memory_space<smem>>
    %c1_i32_309 = arith.constant 1 : i32
    %c1_i32_310 = arith.constant 1 : i32
    %c3_i32_311 = arith.constant 3 : i32
    %c0_i32_312 = arith.constant 0 : i32
    %324 = tpu.memref_slice %arg5[%323, %c0_i32_312] : memref<16x128xf32, #tpu.memory_space<any>> -> memref<1x128xf32, #tpu.memory_space<any>>
    %c3_i32_313 = arith.constant 3 : i32
    %c0_i32_314 = arith.constant 0 : i32
    %325 = tpu.memref_slice %arg8[%c1_i32_309, %c3_i32_313, %c0_i32_314] : memref<8x5x128xf32, #tpu.memory_space<vmem>> -> memref<1x1x128xf32, #tpu.memory_space<vmem>>
    %326 = tpu.memref_squeeze %325 : memref<1x1x128xf32, #tpu.memory_space<vmem>> -> memref<1x128xf32, #tpu.memory_space<vmem>>
    %327 = tpu.memref_slice %arg10[%c1_i32_310, %c3_i32_311] : memref<8x5x!tpu.dma_semaphore, #tpu.memory_space<semaphore_mem>> -> memref<1x1x!tpu.dma_semaphore, #tpu.memory_space<semaphore_mem>>
    %328 = tpu.memref_squeeze %327 : memref<1x1x!tpu.dma_semaphore, #tpu.memory_space<semaphore_mem>> -> memref<!tpu.dma_semaphore, #tpu.memory_space<semaphore_mem>>
    tpu.enqueue_dma source(%324 : memref<1x128xf32, #tpu.memory_space<any>>) target(%326 : memref<1x128xf32, #tpu.memory_space<vmem>>) target_semaphore(%328 : memref<!tpu.dma_semaphore, #tpu.memory_space<semaphore_mem>>)
    %c1_i32_315 = arith.constant 1 : i32
    %329 = arith.addi %0, %c1_i32_315 : i32
    %330 = arith.index_cast %329 : i32 to index
    %c4_316 = arith.constant 4 : index
    %331 = memref.load %arg2[%330, %c4_316] : memref<16x5xi32, #tpu.memory_space<smem>>
    %c1_i32_317 = arith.constant 1 : i32
    %c1_i32_318 = arith.constant 1 : i32
    %c4_i32_319 = arith.constant 4 : i32
    %c0_i32_320 = arith.constant 0 : i32
    %332 = tpu.memref_slice %arg5[%331, %c0_i32_320] : memref<16x128xf32, #tpu.memory_space<any>> -> memref<1x128xf32, #tpu.memory_space<any>>
    %c4_i32_321 = arith.constant 4 : i32
    %c0_i32_322 = arith.constant 0 : i32
    %333 = tpu.memref_slice %arg8[%c1_i32_317, %c4_i32_321, %c0_i32_322] : memref<8x5x128xf32, #tpu.memory_space<vmem>> -> memref<1x1x128xf32, #tpu.memory_space<vmem>>
    %334 = tpu.memref_squeeze %333 : memref<1x1x128xf32, #tpu.memory_space<vmem>> -> memref<1x128xf32, #tpu.memory_space<vmem>>
    %335 = tpu.memref_slice %arg10[%c1_i32_318, %c4_i32_319] : memref<8x5x!tpu.dma_semaphore, #tpu.memory_space<semaphore_mem>> -> memref<1x1x!tpu.dma_semaphore, #tpu.memory_space<semaphore_mem>>
    %336 = tpu.memref_squeeze %335 : memref<1x1x!tpu.dma_semaphore, #tpu.memory_space<semaphore_mem>> -> memref<!tpu.dma_semaphore, #tpu.memory_space<semaphore_mem>>
    tpu.enqueue_dma source(%332 : memref<1x128xf32, #tpu.memory_space<any>>) target(%334 : memref<1x128xf32, #tpu.memory_space<vmem>>) target_semaphore(%336 : memref<!tpu.dma_semaphore, #tpu.memory_space<semaphore_mem>>)
    %c2_i32_323 = arith.constant 2 : i32
    %337 = arith.addi %0, %c2_i32_323 : i32
    %338 = arith.index_cast %337 : i32 to index
    %c0_324 = arith.constant 0 : index
    %339 = memref.load %arg2[%338, %c0_324] : memref<16x5xi32, #tpu.memory_space<smem>>
    %c2_i32_325 = arith.constant 2 : i32
    %c2_i32_326 = arith.constant 2 : i32
    %c0_i32_327 = arith.constant 0 : i32
    %c0_i32_328 = arith.constant 0 : i32
    %340 = tpu.memref_slice %arg5[%339, %c0_i32_328] : memref<16x128xf32, #tpu.memory_space<any>> -> memref<1x128xf32, #tpu.memory_space<any>>
    %c0_i32_329 = arith.constant 0 : i32
    %c0_i32_330 = arith.constant 0 : i32
    %341 = tpu.memref_slice %arg8[%c2_i32_325, %c0_i32_329, %c0_i32_330] : memref<8x5x128xf32, #tpu.memory_space<vmem>> -> memref<1x1x128xf32, #tpu.memory_space<vmem>>
    %342 = tpu.memref_squeeze %341 : memref<1x1x128xf32, #tpu.memory_space<vmem>> -> memref<1x128xf32, #tpu.memory_space<vmem>>
    %343 = tpu.memref_slice %arg10[%c2_i32_326, %c0_i32_327] : memref<8x5x!tpu.dma_semaphore, #tpu.memory_space<semaphore_mem>> -> memref<1x1x!tpu.dma_semaphore, #tpu.memory_space<semaphore_mem>>
    %344 = tpu.memref_squeeze %343 : memref<1x1x!tpu.dma_semaphore, #tpu.memory_space<semaphore_mem>> -> memref<!tpu.dma_semaphore, #tpu.memory_space<semaphore_mem>>
    tpu.enqueue_dma source(%340 : memref<1x128xf32, #tpu.memory_space<any>>) target(%342 : memref<1x128xf32, #tpu.memory_space<vmem>>) target_semaphore(%344 : memref<!tpu.dma_semaphore, #tpu.memory_space<semaphore_mem>>)
    %c2_i32_331 = arith.constant 2 : i32
    %345 = arith.addi %0, %c2_i32_331 : i32
    %346 = arith.index_cast %345 : i32 to index
    %c1_332 = arith.constant 1 : index
    %347 = memref.load %arg2[%346, %c1_332] : memref<16x5xi32, #tpu.memory_space<smem>>
    %c2_i32_333 = arith.constant 2 : i32
    %c2_i32_334 = arith.constant 2 : i32
    %c1_i32_335 = arith.constant 1 : i32
    %c0_i32_336 = arith.constant 0 : i32
    %348 = tpu.memref_slice %arg5[%347, %c0_i32_336] : memref<16x128xf32, #tpu.memory_space<any>> -> memref<1x128xf32, #tpu.memory_space<any>>
    %c1_i32_337 = arith.constant 1 : i32
    %c0_i32_338 = arith.constant 0 : i32
    %349 = tpu.memref_slice %arg8[%c2_i32_333, %c1_i32_337, %c0_i32_338] : memref<8x5x128xf32, #tpu.memory_space<vmem>> -> memref<1x1x128xf32, #tpu.memory_space<vmem>>
    %350 = tpu.memref_squeeze %349 : memref<1x1x128xf32, #tpu.memory_space<vmem>> -> memref<1x128xf32, #tpu.memory_space<vmem>>
    %351 = tpu.memref_slice %arg10[%c2_i32_334, %c1_i32_335] : memref<8x5x!tpu.dma_semaphore, #tpu.memory_space<semaphore_mem>> -> memref<1x1x!tpu.dma_semaphore, #tpu.memory_space<semaphore_mem>>
    %352 = tpu.memref_squeeze %351 : memref<1x1x!tpu.dma_semaphore, #tpu.memory_space<semaphore_mem>> -> memref<!tpu.dma_semaphore, #tpu.memory_space<semaphore_mem>>
    tpu.enqueue_dma source(%348 : memref<1x128xf32, #tpu.memory_space<any>>) target(%350 : memref<1x128xf32, #tpu.memory_space<vmem>>) target_semaphore(%352 : memref<!tpu.dma_semaphore, #tpu.memory_space<semaphore_mem>>)
    %c2_i32_339 = arith.constant 2 : i32
    %353 = arith.addi %0, %c2_i32_339 : i32
    %354 = arith.index_cast %353 : i32 to index
    %c2_340 = arith.constant 2 : index
    %355 = memref.load %arg2[%354, %c2_340] : memref<16x5xi32, #tpu.memory_space<smem>>
    %c2_i32_341 = arith.constant 2 : i32
    %c2_i32_342 = arith.constant 2 : i32
    %c2_i32_343 = arith.constant 2 : i32
    %c0_i32_344 = arith.constant 0 : i32
    %356 = tpu.memref_slice %arg5[%355, %c0_i32_344] : memref<16x128xf32, #tpu.memory_space<any>> -> memref<1x128xf32, #tpu.memory_space<any>>
    %c2_i32_345 = arith.constant 2 : i32
    %c0_i32_346 = arith.constant 0 : i32
    %357 = tpu.memref_slice %arg8[%c2_i32_341, %c2_i32_345, %c0_i32_346] : memref<8x5x128xf32, #tpu.memory_space<vmem>> -> memref<1x1x128xf32, #tpu.memory_space<vmem>>
    %358 = tpu.memref_squeeze %357 : memref<1x1x128xf32, #tpu.memory_space<vmem>> -> memref<1x128xf32, #tpu.memory_space<vmem>>
    %359 = tpu.memref_slice %arg10[%c2_i32_342, %c2_i32_343] : memref<8x5x!tpu.dma_semaphore, #tpu.memory_space<semaphore_mem>> -> memref<1x1x!tpu.dma_semaphore, #tpu.memory_space<semaphore_mem>>
    %360 = tpu.memref_squeeze %359 : memref<1x1x!tpu.dma_semaphore, #tpu.memory_space<semaphore_mem>> -> memref<!tpu.dma_semaphore, #tpu.memory_space<semaphore_mem>>
    tpu.enqueue_dma source(%356 : memref<1x128xf32, #tpu.memory_space<any>>) target(%358 : memref<1x128xf32, #tpu.memory_space<vmem>>) target_semaphore(%360 : memref<!tpu.dma_semaphore, #tpu.memory_space<semaphore_mem>>)
    %c2_i32_347 = arith.constant 2 : i32
    %361 = arith.addi %0, %c2_i32_347 : i32
    %362 = arith.index_cast %361 : i32 to index
    %c3_348 = arith.constant 3 : index
    %363 = memref.load %arg2[%362, %c3_348] : memref<16x5xi32, #tpu.memory_space<smem>>
    %c2_i32_349 = arith.constant 2 : i32
    %c2_i32_350 = arith.constant 2 : i32
    %c3_i32_351 = arith.constant 3 : i32
    %c0_i32_352 = arith.constant 0 : i32
    %364 = tpu.memref_slice %arg5[%363, %c0_i32_352] : memref<16x128xf32, #tpu.memory_space<any>> -> memref<1x128xf32, #tpu.memory_space<any>>
    %c3_i32_353 = arith.constant 3 : i32
    %c0_i32_354 = arith.constant 0 : i32
    %365 = tpu.memref_slice %arg8[%c2_i32_349, %c3_i32_353, %c0_i32_354] : memref<8x5x128xf32, #tpu.memory_space<vmem>> -> memref<1x1x128xf32, #tpu.memory_space<vmem>>
    %366 = tpu.memref_squeeze %365 : memref<1x1x128xf32, #tpu.memory_space<vmem>> -> memref<1x128xf32, #tpu.memory_space<vmem>>
    %367 = tpu.memref_slice %arg10[%c2_i32_350, %c3_i32_351] : memref<8x5x!tpu.dma_semaphore, #tpu.memory_space<semaphore_mem>> -> memref<1x1x!tpu.dma_semaphore, #tpu.memory_space<semaphore_mem>>
    %368 = tpu.memref_squeeze %367 : memref<1x1x!tpu.dma_semaphore, #tpu.memory_space<semaphore_mem>> -> memref<!tpu.dma_semaphore, #tpu.memory_space<semaphore_mem>>
    tpu.enqueue_dma source(%364 : memref<1x128xf32, #tpu.memory_space<any>>) target(%366 : memref<1x128xf32, #tpu.memory_space<vmem>>) target_semaphore(%368 : memref<!tpu.dma_semaphore, #tpu.memory_space<semaphore_mem>>)
    %c2_i32_355 = arith.constant 2 : i32
    %369 = arith.addi %0, %c2_i32_355 : i32
    %370 = arith.index_cast %369 : i32 to index
    %c4_356 = arith.constant 4 : index
    %371 = memref.load %arg2[%370, %c4_356] : memref<16x5xi32, #tpu.memory_space<smem>>
    %c2_i32_357 = arith.constant 2 : i32
    %c2_i32_358 = arith.constant 2 : i32
    %c4_i32_359 = arith.constant 4 : i32
    %c0_i32_360 = arith.constant 0 : i32
    %372 = tpu.memref_slice %arg5[%371, %c0_i32_360] : memref<16x128xf32, #tpu.memory_space<any>> -> memref<1x128xf32, #tpu.memory_space<any>>
    %c4_i32_361 = arith.constant 4 : i32
    %c0_i32_362 = arith.constant 0 : i32
    %373 = tpu.memref_slice %arg8[%c2_i32_357, %c4_i32_361, %c0_i32_362] : memref<8x5x128xf32, #tpu.memory_space<vmem>> -> memref<1x1x128xf32, #tpu.memory_space<vmem>>
    %374 = tpu.memref_squeeze %373 : memref<1x1x128xf32, #tpu.memory_space<vmem>> -> memref<1x128xf32, #tpu.memory_space<vmem>>
    %375 = tpu.memref_slice %arg10[%c2_i32_358, %c4_i32_359] : memref<8x5x!tpu.dma_semaphore, #tpu.memory_space<semaphore_mem>> -> memref<1x1x!tpu.dma_semaphore, #tpu.memory_space<semaphore_mem>>
    %376 = tpu.memref_squeeze %375 : memref<1x1x!tpu.dma_semaphore, #tpu.memory_space<semaphore_mem>> -> memref<!tpu.dma_semaphore, #tpu.memory_space<semaphore_mem>>
    tpu.enqueue_dma source(%372 : memref<1x128xf32, #tpu.memory_space<any>>) target(%374 : memref<1x128xf32, #tpu.memory_space<vmem>>) target_semaphore(%376 : memref<!tpu.dma_semaphore, #tpu.memory_space<semaphore_mem>>)
    %c3_i32_363 = arith.constant 3 : i32
    %377 = arith.addi %0, %c3_i32_363 : i32
    %378 = arith.index_cast %377 : i32 to index
    %c0_364 = arith.constant 0 : index
    %379 = memref.load %arg2[%378, %c0_364] : memref<16x5xi32, #tpu.memory_space<smem>>
    %c3_i32_365 = arith.constant 3 : i32
    %c3_i32_366 = arith.constant 3 : i32
    %c0_i32_367 = arith.constant 0 : i32
    %c0_i32_368 = arith.constant 0 : i32
    %380 = tpu.memref_slice %arg5[%379, %c0_i32_368] : memref<16x128xf32, #tpu.memory_space<any>> -> memref<1x128xf32, #tpu.memory_space<any>>
    %c0_i32_369 = arith.constant 0 : i32
    %c0_i32_370 = arith.constant 0 : i32
    %381 = tpu.memref_slice %arg8[%c3_i32_365, %c0_i32_369, %c0_i32_370] : memref<8x5x128xf32, #tpu.memory_space<vmem>> -> memref<1x1x128xf32, #tpu.memory_space<vmem>>
    %382 = tpu.memref_squeeze %381 : memref<1x1x128xf32, #tpu.memory_space<vmem>> -> memref<1x128xf32, #tpu.memory_space<vmem>>
    %383 = tpu.memref_slice %arg10[%c3_i32_366, %c0_i32_367] : memref<8x5x!tpu.dma_semaphore, #tpu.memory_space<semaphore_mem>> -> memref<1x1x!tpu.dma_semaphore, #tpu.memory_space<semaphore_mem>>
    %384 = tpu.memref_squeeze %383 : memref<1x1x!tpu.dma_semaphore, #tpu.memory_space<semaphore_mem>> -> memref<!tpu.dma_semaphore, #tpu.memory_space<semaphore_mem>>
    tpu.enqueue_dma source(%380 : memref<1x128xf32, #tpu.memory_space<any>>) target(%382 : memref<1x128xf32, #tpu.memory_space<vmem>>) target_semaphore(%384 : memref<!tpu.dma_semaphore, #tpu.memory_space<semaphore_mem>>)
    %c3_i32_371 = arith.constant 3 : i32
    %385 = arith.addi %0, %c3_i32_371 : i32
    %386 = arith.index_cast %385 : i32 to index
    %c1_372 = arith.constant 1 : index
    %387 = memref.load %arg2[%386, %c1_372] : memref<16x5xi32, #tpu.memory_space<smem>>
    %c3_i32_373 = arith.constant 3 : i32
    %c3_i32_374 = arith.constant 3 : i32
    %c1_i32_375 = arith.constant 1 : i32
    %c0_i32_376 = arith.constant 0 : i32
    %388 = tpu.memref_slice %arg5[%387, %c0_i32_376] : memref<16x128xf32, #tpu.memory_space<any>> -> memref<1x128xf32, #tpu.memory_space<any>>
    %c1_i32_377 = arith.constant 1 : i32
    %c0_i32_378 = arith.constant 0 : i32
    %389 = tpu.memref_slice %arg8[%c3_i32_373, %c1_i32_377, %c0_i32_378] : memref<8x5x128xf32, #tpu.memory_space<vmem>> -> memref<1x1x128xf32, #tpu.memory_space<vmem>>
    %390 = tpu.memref_squeeze %389 : memref<1x1x128xf32, #tpu.memory_space<vmem>> -> memref<1x128xf32, #tpu.memory_space<vmem>>
    %391 = tpu.memref_slice %arg10[%c3_i32_374, %c1_i32_375] : memref<8x5x!tpu.dma_semaphore, #tpu.memory_space<semaphore_mem>> -> memref<1x1x!tpu.dma_semaphore, #tpu.memory_space<semaphore_mem>>
    %392 = tpu.memref_squeeze %391 : memref<1x1x!tpu.dma_semaphore, #tpu.memory_space<semaphore_mem>> -> memref<!tpu.dma_semaphore, #tpu.memory_space<semaphore_mem>>
    tpu.enqueue_dma source(%388 : memref<1x128xf32, #tpu.memory_space<any>>) target(%390 : memref<1x128xf32, #tpu.memory_space<vmem>>) target_semaphore(%392 : memref<!tpu.dma_semaphore, #tpu.memory_space<semaphore_mem>>)
    %c3_i32_379 = arith.constant 3 : i32
    %393 = arith.addi %0, %c3_i32_379 : i32
    %394 = arith.index_cast %393 : i32 to index
    %c2_380 = arith.constant 2 : index
    %395 = memref.load %arg2[%394, %c2_380] : memref<16x5xi32, #tpu.memory_space<smem>>
    %c3_i32_381 = arith.constant 3 : i32
    %c3_i32_382 = arith.constant 3 : i32
    %c2_i32_383 = arith.constant 2 : i32
    %c0_i32_384 = arith.constant 0 : i32
    %396 = tpu.memref_slice %arg5[%395, %c0_i32_384] : memref<16x128xf32, #tpu.memory_space<any>> -> memref<1x128xf32, #tpu.memory_space<any>>
    %c2_i32_385 = arith.constant 2 : i32
    %c0_i32_386 = arith.constant 0 : i32
    %397 = tpu.memref_slice %arg8[%c3_i32_381, %c2_i32_385, %c0_i32_386] : memref<8x5x128xf32, #tpu.memory_space<vmem>> -> memref<1x1x128xf32, #tpu.memory_space<vmem>>
    %398 = tpu.memref_squeeze %397 : memref<1x1x128xf32, #tpu.memory_space<vmem>> -> memref<1x128xf32, #tpu.memory_space<vmem>>
    %399 = tpu.memref_slice %arg10[%c3_i32_382, %c2_i32_383] : memref<8x5x!tpu.dma_semaphore, #tpu.memory_space<semaphore_mem>> -> memref<1x1x!tpu.dma_semaphore, #tpu.memory_space<semaphore_mem>>
    %400 = tpu.memref_squeeze %399 : memref<1x1x!tpu.dma_semaphore, #tpu.memory_space<semaphore_mem>> -> memref<!tpu.dma_semaphore, #tpu.memory_space<semaphore_mem>>
    tpu.enqueue_dma source(%396 : memref<1x128xf32, #tpu.memory_space<any>>) target(%398 : memref<1x128xf32, #tpu.memory_space<vmem>>) target_semaphore(%400 : memref<!tpu.dma_semaphore, #tpu.memory_space<semaphore_mem>>)
    %c3_i32_387 = arith.constant 3 : i32
    %401 = arith.addi %0, %c3_i32_387 : i32
    %402 = arith.index_cast %401 : i32 to index
    %c3_388 = arith.constant 3 : index
    %403 = memref.load %arg2[%402, %c3_388] : memref<16x5xi32, #tpu.memory_space<smem>>
    %c3_i32_389 = arith.constant 3 : i32
    %c3_i32_390 = arith.constant 3 : i32
    %c3_i32_391 = arith.constant 3 : i32
    %c0_i32_392 = arith.constant 0 : i32
    %404 = tpu.memref_slice %arg5[%403, %c0_i32_392] : memref<16x128xf32, #tpu.memory_space<any>> -> memref<1x128xf32, #tpu.memory_space<any>>
    %c3_i32_393 = arith.constant 3 : i32
    %c0_i32_394 = arith.constant 0 : i32
    %405 = tpu.memref_slice %arg8[%c3_i32_389, %c3_i32_393, %c0_i32_394] : memref<8x5x128xf32, #tpu.memory_space<vmem>> -> memref<1x1x128xf32, #tpu.memory_space<vmem>>
    %406 = tpu.memref_squeeze %405 : memref<1x1x128xf32, #tpu.memory_space<vmem>> -> memref<1x128xf32, #tpu.memory_space<vmem>>
    %407 = tpu.memref_slice %arg10[%c3_i32_390, %c3_i32_391] : memref<8x5x!tpu.dma_semaphore, #tpu.memory_space<semaphore_mem>> -> memref<1x1x!tpu.dma_semaphore, #tpu.memory_space<semaphore_mem>>
    %408 = tpu.memref_squeeze %407 : memref<1x1x!tpu.dma_semaphore, #tpu.memory_space<semaphore_mem>> -> memref<!tpu.dma_semaphore, #tpu.memory_space<semaphore_mem>>
    tpu.enqueue_dma source(%404 : memref<1x128xf32, #tpu.memory_space<any>>) target(%406 : memref<1x128xf32, #tpu.memory_space<vmem>>) target_semaphore(%408 : memref<!tpu.dma_semaphore, #tpu.memory_space<semaphore_mem>>)
    %c3_i32_395 = arith.constant 3 : i32
    %409 = arith.addi %0, %c3_i32_395 : i32
    %410 = arith.index_cast %409 : i32 to index
    %c4_396 = arith.constant 4 : index
    %411 = memref.load %arg2[%410, %c4_396] : memref<16x5xi32, #tpu.memory_space<smem>>
    %c3_i32_397 = arith.constant 3 : i32
    %c3_i32_398 = arith.constant 3 : i32
    %c4_i32_399 = arith.constant 4 : i32
    %c0_i32_400 = arith.constant 0 : i32
    %412 = tpu.memref_slice %arg5[%411, %c0_i32_400] : memref<16x128xf32, #tpu.memory_space<any>> -> memref<1x128xf32, #tpu.memory_space<any>>
    %c4_i32_401 = arith.constant 4 : i32
    %c0_i32_402 = arith.constant 0 : i32
    %413 = tpu.memref_slice %arg8[%c3_i32_397, %c4_i32_401, %c0_i32_402] : memref<8x5x128xf32, #tpu.memory_space<vmem>> -> memref<1x1x128xf32, #tpu.memory_space<vmem>>
    %414 = tpu.memref_squeeze %413 : memref<1x1x128xf32, #tpu.memory_space<vmem>> -> memref<1x128xf32, #tpu.memory_space<vmem>>
    %415 = tpu.memref_slice %arg10[%c3_i32_398, %c4_i32_399] : memref<8x5x!tpu.dma_semaphore, #tpu.memory_space<semaphore_mem>> -> memref<1x1x!tpu.dma_semaphore, #tpu.memory_space<semaphore_mem>>
    %416 = tpu.memref_squeeze %415 : memref<1x1x!tpu.dma_semaphore, #tpu.memory_space<semaphore_mem>> -> memref<!tpu.dma_semaphore, #tpu.memory_space<semaphore_mem>>
    tpu.enqueue_dma source(%412 : memref<1x128xf32, #tpu.memory_space<any>>) target(%414 : memref<1x128xf32, #tpu.memory_space<vmem>>) target_semaphore(%416 : memref<!tpu.dma_semaphore, #tpu.memory_space<semaphore_mem>>)
    %c4_i32_403 = arith.constant 4 : i32
    %417 = arith.addi %0, %c4_i32_403 : i32
    %418 = arith.index_cast %417 : i32 to index
    %c0_404 = arith.constant 0 : index
    %419 = memref.load %arg2[%418, %c0_404] : memref<16x5xi32, #tpu.memory_space<smem>>
    %c4_i32_405 = arith.constant 4 : i32
    %c4_i32_406 = arith.constant 4 : i32
    %c0_i32_407 = arith.constant 0 : i32
    %c0_i32_408 = arith.constant 0 : i32
    %420 = tpu.memref_slice %arg5[%419, %c0_i32_408] : memref<16x128xf32, #tpu.memory_space<any>> -> memref<1x128xf32, #tpu.memory_space<any>>
    %c0_i32_409 = arith.constant 0 : i32
    %c0_i32_410 = arith.constant 0 : i32
    %421 = tpu.memref_slice %arg8[%c4_i32_405, %c0_i32_409, %c0_i32_410] : memref<8x5x128xf32, #tpu.memory_space<vmem>> -> memref<1x1x128xf32, #tpu.memory_space<vmem>>
    %422 = tpu.memref_squeeze %421 : memref<1x1x128xf32, #tpu.memory_space<vmem>> -> memref<1x128xf32, #tpu.memory_space<vmem>>
    %423 = tpu.memref_slice %arg10[%c4_i32_406, %c0_i32_407] : memref<8x5x!tpu.dma_semaphore, #tpu.memory_space<semaphore_mem>> -> memref<1x1x!tpu.dma_semaphore, #tpu.memory_space<semaphore_mem>>
    %424 = tpu.memref_squeeze %423 : memref<1x1x!tpu.dma_semaphore, #tpu.memory_space<semaphore_mem>> -> memref<!tpu.dma_semaphore, #tpu.memory_space<semaphore_mem>>
    tpu.enqueue_dma source(%420 : memref<1x128xf32, #tpu.memory_space<any>>) target(%422 : memref<1x128xf32, #tpu.memory_space<vmem>>) target_semaphore(%424 : memref<!tpu.dma_semaphore, #tpu.memory_space<semaphore_mem>>)
    %c4_i32_411 = arith.constant 4 : i32
    %425 = arith.addi %0, %c4_i32_411 : i32
    %426 = arith.index_cast %425 : i32 to index
    %c1_412 = arith.constant 1 : index
    %427 = memref.load %arg2[%426, %c1_412] : memref<16x5xi32, #tpu.memory_space<smem>>
    %c4_i32_413 = arith.constant 4 : i32
    %c4_i32_414 = arith.constant 4 : i32
    %c1_i32_415 = arith.constant 1 : i32
    %c0_i32_416 = arith.constant 0 : i32
    %428 = tpu.memref_slice %arg5[%427, %c0_i32_416] : memref<16x128xf32, #tpu.memory_space<any>> -> memref<1x128xf32, #tpu.memory_space<any>>
    %c1_i32_417 = arith.constant 1 : i32
    %c0_i32_418 = arith.constant 0 : i32
    %429 = tpu.memref_slice %arg8[%c4_i32_413, %c1_i32_417, %c0_i32_418] : memref<8x5x128xf32, #tpu.memory_space<vmem>> -> memref<1x1x128xf32, #tpu.memory_space<vmem>>
    %430 = tpu.memref_squeeze %429 : memref<1x1x128xf32, #tpu.memory_space<vmem>> -> memref<1x128xf32, #tpu.memory_space<vmem>>
    %431 = tpu.memref_slice %arg10[%c4_i32_414, %c1_i32_415] : memref<8x5x!tpu.dma_semaphore, #tpu.memory_space<semaphore_mem>> -> memref<1x1x!tpu.dma_semaphore, #tpu.memory_space<semaphore_mem>>
    %432 = tpu.memref_squeeze %431 : memref<1x1x!tpu.dma_semaphore, #tpu.memory_space<semaphore_mem>> -> memref<!tpu.dma_semaphore, #tpu.memory_space<semaphore_mem>>
    tpu.enqueue_dma source(%428 : memref<1x128xf32, #tpu.memory_space<any>>) target(%430 : memref<1x128xf32, #tpu.memory_space<vmem>>) target_semaphore(%432 : memref<!tpu.dma_semaphore, #tpu.memory_space<semaphore_mem>>)
    %c4_i32_419 = arith.constant 4 : i32
    %433 = arith.addi %0, %c4_i32_419 : i32
    %434 = arith.index_cast %433 : i32 to index
    %c2_420 = arith.constant 2 : index
    %435 = memref.load %arg2[%434, %c2_420] : memref<16x5xi32, #tpu.memory_space<smem>>
    %c4_i32_421 = arith.constant 4 : i32
    %c4_i32_422 = arith.constant 4 : i32
    %c2_i32_423 = arith.constant 2 : i32
    %c0_i32_424 = arith.constant 0 : i32
    %436 = tpu.memref_slice %arg5[%435, %c0_i32_424] : memref<16x128xf32, #tpu.memory_space<any>> -> memref<1x128xf32, #tpu.memory_space<any>>
    %c2_i32_425 = arith.constant 2 : i32
    %c0_i32_426 = arith.constant 0 : i32
    %437 = tpu.memref_slice %arg8[%c4_i32_421, %c2_i32_425, %c0_i32_426] : memref<8x5x128xf32, #tpu.memory_space<vmem>> -> memref<1x1x128xf32, #tpu.memory_space<vmem>>
    %438 = tpu.memref_squeeze %437 : memref<1x1x128xf32, #tpu.memory_space<vmem>> -> memref<1x128xf32, #tpu.memory_space<vmem>>
    %439 = tpu.memref_slice %arg10[%c4_i32_422, %c2_i32_423] : memref<8x5x!tpu.dma_semaphore, #tpu.memory_space<semaphore_mem>> -> memref<1x1x!tpu.dma_semaphore, #tpu.memory_space<semaphore_mem>>
    %440 = tpu.memref_squeeze %439 : memref<1x1x!tpu.dma_semaphore, #tpu.memory_space<semaphore_mem>> -> memref<!tpu.dma_semaphore, #tpu.memory_space<semaphore_mem>>
    tpu.enqueue_dma source(%436 : memref<1x128xf32, #tpu.memory_space<any>>) target(%438 : memref<1x128xf32, #tpu.memory_space<vmem>>) target_semaphore(%440 : memref<!tpu.dma_semaphore, #tpu.memory_space<semaphore_mem>>)
    %c4_i32_427 = arith.constant 4 : i32
    %441 = arith.addi %0, %c4_i32_427 : i32
    %442 = arith.index_cast %441 : i32 to index
    %c3_428 = arith.constant 3 : index
    %443 = memref.load %arg2[%442, %c3_428] : memref<16x5xi32, #tpu.memory_space<smem>>
    %c4_i32_429 = arith.constant 4 : i32
    %c4_i32_430 = arith.constant 4 : i32
    %c3_i32_431 = arith.constant 3 : i32
    %c0_i32_432 = arith.constant 0 : i32
    %444 = tpu.memref_slice %arg5[%443, %c0_i32_432] : memref<16x128xf32, #tpu.memory_space<any>> -> memref<1x128xf32, #tpu.memory_space<any>>
    %c3_i32_433 = arith.constant 3 : i32
    %c0_i32_434 = arith.constant 0 : i32
    %445 = tpu.memref_slice %arg8[%c4_i32_429, %c3_i32_433, %c0_i32_434] : memref<8x5x128xf32, #tpu.memory_space<vmem>> -> memref<1x1x128xf32, #tpu.memory_space<vmem>>
    %446 = tpu.memref_squeeze %445 : memref<1x1x128xf32, #tpu.memory_space<vmem>> -> memref<1x128xf32, #tpu.memory_space<vmem>>
    %447 = tpu.memref_slice %arg10[%c4_i32_430, %c3_i32_431] : memref<8x5x!tpu.dma_semaphore, #tpu.memory_space<semaphore_mem>> -> memref<1x1x!tpu.dma_semaphore, #tpu.memory_space<semaphore_mem>>
    %448 = tpu.memref_squeeze %447 : memref<1x1x!tpu.dma_semaphore, #tpu.memory_space<semaphore_mem>> -> memref<!tpu.dma_semaphore, #tpu.memory_space<semaphore_mem>>
    tpu.enqueue_dma source(%444 : memref<1x128xf32, #tpu.memory_space<any>>) target(%446 : memref<1x128xf32, #tpu.memory_space<vmem>>) target_semaphore(%448 : memref<!tpu.dma_semaphore, #tpu.memory_space<semaphore_mem>>)
    %c4_i32_435 = arith.constant 4 : i32
    %449 = arith.addi %0, %c4_i32_435 : i32
    %450 = arith.index_cast %449 : i32 to index
    %c4_436 = arith.constant 4 : index
    %451 = memref.load %arg2[%450, %c4_436] : memref<16x5xi32, #tpu.memory_space<smem>>
    %c4_i32_437 = arith.constant 4 : i32
    %c4_i32_438 = arith.constant 4 : i32
    %c4_i32_439 = arith.constant 4 : i32
    %c0_i32_440 = arith.constant 0 : i32
    %452 = tpu.memref_slice %arg5[%451, %c0_i32_440] : memref<16x128xf32, #tpu.memory_space<any>> -> memref<1x128xf32, #tpu.memory_space<any>>
    %c4_i32_441 = arith.constant 4 : i32
    %c0_i32_442 = arith.constant 0 : i32
    %453 = tpu.memref_slice %arg8[%c4_i32_437, %c4_i32_441, %c0_i32_442] : memref<8x5x128xf32, #tpu.memory_space<vmem>> -> memref<1x1x128xf32, #tpu.memory_space<vmem>>
    %454 = tpu.memref_squeeze %453 : memref<1x1x128xf32, #tpu.memory_space<vmem>> -> memref<1x128xf32, #tpu.memory_space<vmem>>
    %455 = tpu.memref_slice %arg10[%c4_i32_438, %c4_i32_439] : memref<8x5x!tpu.dma_semaphore, #tpu.memory_space<semaphore_mem>> -> memref<1x1x!tpu.dma_semaphore, #tpu.memory_space<semaphore_mem>>
    %456 = tpu.memref_squeeze %455 : memref<1x1x!tpu.dma_semaphore, #tpu.memory_space<semaphore_mem>> -> memref<!tpu.dma_semaphore, #tpu.memory_space<semaphore_mem>>
    tpu.enqueue_dma source(%452 : memref<1x128xf32, #tpu.memory_space<any>>) target(%454 : memref<1x128xf32, #tpu.memory_space<vmem>>) target_semaphore(%456 : memref<!tpu.dma_semaphore, #tpu.memory_space<semaphore_mem>>)
    %c5_i32_443 = arith.constant 5 : i32
    %457 = arith.addi %0, %c5_i32_443 : i32
    %458 = arith.index_cast %457 : i32 to index
    %c0_444 = arith.constant 0 : index
    %459 = memref.load %arg2[%458, %c0_444] : memref<16x5xi32, #tpu.memory_space<smem>>
    %c5_i32_445 = arith.constant 5 : i32
    %c5_i32_446 = arith.constant 5 : i32
    %c0_i32_447 = arith.constant 0 : i32
    %c0_i32_448 = arith.constant 0 : i32
    %460 = tpu.memref_slice %arg5[%459, %c0_i32_448] : memref<16x128xf32, #tpu.memory_space<any>> -> memref<1x128xf32, #tpu.memory_space<any>>
    %c0_i32_449 = arith.constant 0 : i32
    %c0_i32_450 = arith.constant 0 : i32
    %461 = tpu.memref_slice %arg8[%c5_i32_445, %c0_i32_449, %c0_i32_450] : memref<8x5x128xf32, #tpu.memory_space<vmem>> -> memref<1x1x128xf32, #tpu.memory_space<vmem>>
    %462 = tpu.memref_squeeze %461 : memref<1x1x128xf32, #tpu.memory_space<vmem>> -> memref<1x128xf32, #tpu.memory_space<vmem>>
    %463 = tpu.memref_slice %arg10[%c5_i32_446, %c0_i32_447] : memref<8x5x!tpu.dma_semaphore, #tpu.memory_space<semaphore_mem>> -> memref<1x1x!tpu.dma_semaphore, #tpu.memory_space<semaphore_mem>>
    %464 = tpu.memref_squeeze %463 : memref<1x1x!tpu.dma_semaphore, #tpu.memory_space<semaphore_mem>> -> memref<!tpu.dma_semaphore, #tpu.memory_space<semaphore_mem>>
    tpu.enqueue_dma source(%460 : memref<1x128xf32, #tpu.memory_space<any>>) target(%462 : memref<1x128xf32, #tpu.memory_space<vmem>>) target_semaphore(%464 : memref<!tpu.dma_semaphore, #tpu.memory_space<semaphore_mem>>)
    %c5_i32_451 = arith.constant 5 : i32
    %465 = arith.addi %0, %c5_i32_451 : i32
    %466 = arith.index_cast %465 : i32 to index
    %c1_452 = arith.constant 1 : index
    %467 = memref.load %arg2[%466, %c1_452] : memref<16x5xi32, #tpu.memory_space<smem>>
    %c5_i32_453 = arith.constant 5 : i32
    %c5_i32_454 = arith.constant 5 : i32
    %c1_i32_455 = arith.constant 1 : i32
    %c0_i32_456 = arith.constant 0 : i32
    %468 = tpu.memref_slice %arg5[%467, %c0_i32_456] : memref<16x128xf32, #tpu.memory_space<any>> -> memref<1x128xf32, #tpu.memory_space<any>>
    %c1_i32_457 = arith.constant 1 : i32
    %c0_i32_458 = arith.constant 0 : i32
    %469 = tpu.memref_slice %arg8[%c5_i32_453, %c1_i32_457, %c0_i32_458] : memref<8x5x128xf32, #tpu.memory_space<vmem>> -> memref<1x1x128xf32, #tpu.memory_space<vmem>>
    %470 = tpu.memref_squeeze %469 : memref<1x1x128xf32, #tpu.memory_space<vmem>> -> memref<1x128xf32, #tpu.memory_space<vmem>>
    %471 = tpu.memref_slice %arg10[%c5_i32_454, %c1_i32_455] : memref<8x5x!tpu.dma_semaphore, #tpu.memory_space<semaphore_mem>> -> memref<1x1x!tpu.dma_semaphore, #tpu.memory_space<semaphore_mem>>
    %472 = tpu.memref_squeeze %471 : memref<1x1x!tpu.dma_semaphore, #tpu.memory_space<semaphore_mem>> -> memref<!tpu.dma_semaphore, #tpu.memory_space<semaphore_mem>>
    tpu.enqueue_dma source(%468 : memref<1x128xf32, #tpu.memory_space<any>>) target(%470 : memref<1x128xf32, #tpu.memory_space<vmem>>) target_semaphore(%472 : memref<!tpu.dma_semaphore, #tpu.memory_space<semaphore_mem>>)
    %c5_i32_459 = arith.constant 5 : i32
    %473 = arith.addi %0, %c5_i32_459 : i32
    %474 = arith.index_cast %473 : i32 to index
    %c2_460 = arith.constant 2 : index
    %475 = memref.load %arg2[%474, %c2_460] : memref<16x5xi32, #tpu.memory_space<smem>>
    %c5_i32_461 = arith.constant 5 : i32
    %c5_i32_462 = arith.constant 5 : i32
    %c2_i32_463 = arith.constant 2 : i32
    %c0_i32_464 = arith.constant 0 : i32
    %476 = tpu.memref_slice %arg5[%475, %c0_i32_464] : memref<16x128xf32, #tpu.memory_space<any>> -> memref<1x128xf32, #tpu.memory_space<any>>
    %c2_i32_465 = arith.constant 2 : i32
    %c0_i32_466 = arith.constant 0 : i32
    %477 = tpu.memref_slice %arg8[%c5_i32_461, %c2_i32_465, %c0_i32_466] : memref<8x5x128xf32, #tpu.memory_space<vmem>> -> memref<1x1x128xf32, #tpu.memory_space<vmem>>
    %478 = tpu.memref_squeeze %477 : memref<1x1x128xf32, #tpu.memory_space<vmem>> -> memref<1x128xf32, #tpu.memory_space<vmem>>
    %479 = tpu.memref_slice %arg10[%c5_i32_462, %c2_i32_463] : memref<8x5x!tpu.dma_semaphore, #tpu.memory_space<semaphore_mem>> -> memref<1x1x!tpu.dma_semaphore, #tpu.memory_space<semaphore_mem>>
    %480 = tpu.memref_squeeze %479 : memref<1x1x!tpu.dma_semaphore, #tpu.memory_space<semaphore_mem>> -> memref<!tpu.dma_semaphore, #tpu.memory_space<semaphore_mem>>
    tpu.enqueue_dma source(%476 : memref<1x128xf32, #tpu.memory_space<any>>) target(%478 : memref<1x128xf32, #tpu.memory_space<vmem>>) target_semaphore(%480 : memref<!tpu.dma_semaphore, #tpu.memory_space<semaphore_mem>>)
    %c5_i32_467 = arith.constant 5 : i32
    %481 = arith.addi %0, %c5_i32_467 : i32
    %482 = arith.index_cast %481 : i32 to index
    %c3_468 = arith.constant 3 : index
    %483 = memref.load %arg2[%482, %c3_468] : memref<16x5xi32, #tpu.memory_space<smem>>
    %c5_i32_469 = arith.constant 5 : i32
    %c5_i32_470 = arith.constant 5 : i32
    %c3_i32_471 = arith.constant 3 : i32
    %c0_i32_472 = arith.constant 0 : i32
    %484 = tpu.memref_slice %arg5[%483, %c0_i32_472] : memref<16x128xf32, #tpu.memory_space<any>> -> memref<1x128xf32, #tpu.memory_space<any>>
    %c3_i32_473 = arith.constant 3 : i32
    %c0_i32_474 = arith.constant 0 : i32
    %485 = tpu.memref_slice %arg8[%c5_i32_469, %c3_i32_473, %c0_i32_474] : memref<8x5x128xf32, #tpu.memory_space<vmem>> -> memref<1x1x128xf32, #tpu.memory_space<vmem>>
    %486 = tpu.memref_squeeze %485 : memref<1x1x128xf32, #tpu.memory_space<vmem>> -> memref<1x128xf32, #tpu.memory_space<vmem>>
    %487 = tpu.memref_slice %arg10[%c5_i32_470, %c3_i32_471] : memref<8x5x!tpu.dma_semaphore, #tpu.memory_space<semaphore_mem>> -> memref<1x1x!tpu.dma_semaphore, #tpu.memory_space<semaphore_mem>>
    %488 = tpu.memref_squeeze %487 : memref<1x1x!tpu.dma_semaphore, #tpu.memory_space<semaphore_mem>> -> memref<!tpu.dma_semaphore, #tpu.memory_space<semaphore_mem>>
    tpu.enqueue_dma source(%484 : memref<1x128xf32, #tpu.memory_space<any>>) target(%486 : memref<1x128xf32, #tpu.memory_space<vmem>>) target_semaphore(%488 : memref<!tpu.dma_semaphore, #tpu.memory_space<semaphore_mem>>)
    %c5_i32_475 = arith.constant 5 : i32
    %489 = arith.addi %0, %c5_i32_475 : i32
    %490 = arith.index_cast %489 : i32 to index
    %c4_476 = arith.constant 4 : index
    %491 = memref.load %arg2[%490, %c4_476] : memref<16x5xi32, #tpu.memory_space<smem>>
    %c5_i32_477 = arith.constant 5 : i32
    %c5_i32_478 = arith.constant 5 : i32
    %c4_i32_479 = arith.constant 4 : i32
    %c0_i32_480 = arith.constant 0 : i32
    %492 = tpu.memref_slice %arg5[%491, %c0_i32_480] : memref<16x128xf32, #tpu.memory_space<any>> -> memref<1x128xf32, #tpu.memory_space<any>>
    %c4_i32_481 = arith.constant 4 : i32
    %c0_i32_482 = arith.constant 0 : i32
    %493 = tpu.memref_slice %arg8[%c5_i32_477, %c4_i32_481, %c0_i32_482] : memref<8x5x128xf32, #tpu.memory_space<vmem>> -> memref<1x1x128xf32, #tpu.memory_space<vmem>>
    %494 = tpu.memref_squeeze %493 : memref<1x1x128xf32, #tpu.memory_space<vmem>> -> memref<1x128xf32, #tpu.memory_space<vmem>>
    %495 = tpu.memref_slice %arg10[%c5_i32_478, %c4_i32_479] : memref<8x5x!tpu.dma_semaphore, #tpu.memory_space<semaphore_mem>> -> memref<1x1x!tpu.dma_semaphore, #tpu.memory_space<semaphore_mem>>
    %496 = tpu.memref_squeeze %495 : memref<1x1x!tpu.dma_semaphore, #tpu.memory_space<semaphore_mem>> -> memref<!tpu.dma_semaphore, #tpu.memory_space<semaphore_mem>>
    tpu.enqueue_dma source(%492 : memref<1x128xf32, #tpu.memory_space<any>>) target(%494 : memref<1x128xf32, #tpu.memory_space<vmem>>) target_semaphore(%496 : memref<!tpu.dma_semaphore, #tpu.memory_space<semaphore_mem>>)
    %c6_i32_483 = arith.constant 6 : i32
    %497 = arith.addi %0, %c6_i32_483 : i32
    %498 = arith.index_cast %497 : i32 to index
    %c0_484 = arith.constant 0 : index
    %499 = memref.load %arg2[%498, %c0_484] : memref<16x5xi32, #tpu.memory_space<smem>>
    %c6_i32_485 = arith.constant 6 : i32
    %c6_i32_486 = arith.constant 6 : i32
    %c0_i32_487 = arith.constant 0 : i32
    %c0_i32_488 = arith.constant 0 : i32
    %500 = tpu.memref_slice %arg5[%499, %c0_i32_488] : memref<16x128xf32, #tpu.memory_space<any>> -> memref<1x128xf32, #tpu.memory_space<any>>
    %c0_i32_489 = arith.constant 0 : i32
    %c0_i32_490 = arith.constant 0 : i32
    %501 = tpu.memref_slice %arg8[%c6_i32_485, %c0_i32_489, %c0_i32_490] : memref<8x5x128xf32, #tpu.memory_space<vmem>> -> memref<1x1x128xf32, #tpu.memory_space<vmem>>
    %502 = tpu.memref_squeeze %501 : memref<1x1x128xf32, #tpu.memory_space<vmem>> -> memref<1x128xf32, #tpu.memory_space<vmem>>
    %503 = tpu.memref_slice %arg10[%c6_i32_486, %c0_i32_487] : memref<8x5x!tpu.dma_semaphore, #tpu.memory_space<semaphore_mem>> -> memref<1x1x!tpu.dma_semaphore, #tpu.memory_space<semaphore_mem>>
    %504 = tpu.memref_squeeze %503 : memref<1x1x!tpu.dma_semaphore, #tpu.memory_space<semaphore_mem>> -> memref<!tpu.dma_semaphore, #tpu.memory_space<semaphore_mem>>
    tpu.enqueue_dma source(%500 : memref<1x128xf32, #tpu.memory_space<any>>) target(%502 : memref<1x128xf32, #tpu.memory_space<vmem>>) target_semaphore(%504 : memref<!tpu.dma_semaphore, #tpu.memory_space<semaphore_mem>>)
    %c6_i32_491 = arith.constant 6 : i32
    %505 = arith.addi %0, %c6_i32_491 : i32
    %506 = arith.index_cast %505 : i32 to index
    %c1_492 = arith.constant 1 : index
    %507 = memref.load %arg2[%506, %c1_492] : memref<16x5xi32, #tpu.memory_space<smem>>
    %c6_i32_493 = arith.constant 6 : i32
    %c6_i32_494 = arith.constant 6 : i32
    %c1_i32_495 = arith.constant 1 : i32
    %c0_i32_496 = arith.constant 0 : i32
    %508 = tpu.memref_slice %arg5[%507, %c0_i32_496] : memref<16x128xf32, #tpu.memory_space<any>> -> memref<1x128xf32, #tpu.memory_space<any>>
    %c1_i32_497 = arith.constant 1 : i32
    %c0_i32_498 = arith.constant 0 : i32
    %509 = tpu.memref_slice %arg8[%c6_i32_493, %c1_i32_497, %c0_i32_498] : memref<8x5x128xf32, #tpu.memory_space<vmem>> -> memref<1x1x128xf32, #tpu.memory_space<vmem>>
    %510 = tpu.memref_squeeze %509 : memref<1x1x128xf32, #tpu.memory_space<vmem>> -> memref<1x128xf32, #tpu.memory_space<vmem>>
    %511 = tpu.memref_slice %arg10[%c6_i32_494, %c1_i32_495] : memref<8x5x!tpu.dma_semaphore, #tpu.memory_space<semaphore_mem>> -> memref<1x1x!tpu.dma_semaphore, #tpu.memory_space<semaphore_mem>>
    %512 = tpu.memref_squeeze %511 : memref<1x1x!tpu.dma_semaphore, #tpu.memory_space<semaphore_mem>> -> memref<!tpu.dma_semaphore, #tpu.memory_space<semaphore_mem>>
    tpu.enqueue_dma source(%508 : memref<1x128xf32, #tpu.memory_space<any>>) target(%510 : memref<1x128xf32, #tpu.memory_space<vmem>>) target_semaphore(%512 : memref<!tpu.dma_semaphore, #tpu.memory_space<semaphore_mem>>)
    %c6_i32_499 = arith.constant 6 : i32
    %513 = arith.addi %0, %c6_i32_499 : i32
    %514 = arith.index_cast %513 : i32 to index
    %c2_500 = arith.constant 2 : index
    %515 = memref.load %arg2[%514, %c2_500] : memref<16x5xi32, #tpu.memory_space<smem>>
    %c6_i32_501 = arith.constant 6 : i32
    %c6_i32_502 = arith.constant 6 : i32
    %c2_i32_503 = arith.constant 2 : i32
    %c0_i32_504 = arith.constant 0 : i32
    %516 = tpu.memref_slice %arg5[%515, %c0_i32_504] : memref<16x128xf32, #tpu.memory_space<any>> -> memref<1x128xf32, #tpu.memory_space<any>>
    %c2_i32_505 = arith.constant 2 : i32
    %c0_i32_506 = arith.constant 0 : i32
    %517 = tpu.memref_slice %arg8[%c6_i32_501, %c2_i32_505, %c0_i32_506] : memref<8x5x128xf32, #tpu.memory_space<vmem>> -> memref<1x1x128xf32, #tpu.memory_space<vmem>>
    %518 = tpu.memref_squeeze %517 : memref<1x1x128xf32, #tpu.memory_space<vmem>> -> memref<1x128xf32, #tpu.memory_space<vmem>>
    %519 = tpu.memref_slice %arg10[%c6_i32_502, %c2_i32_503] : memref<8x5x!tpu.dma_semaphore, #tpu.memory_space<semaphore_mem>> -> memref<1x1x!tpu.dma_semaphore, #tpu.memory_space<semaphore_mem>>
    %520 = tpu.memref_squeeze %519 : memref<1x1x!tpu.dma_semaphore, #tpu.memory_space<semaphore_mem>> -> memref<!tpu.dma_semaphore, #tpu.memory_space<semaphore_mem>>
    tpu.enqueue_dma source(%516 : memref<1x128xf32, #tpu.memory_space<any>>) target(%518 : memref<1x128xf32, #tpu.memory_space<vmem>>) target_semaphore(%520 : memref<!tpu.dma_semaphore, #tpu.memory_space<semaphore_mem>>)
    %c6_i32_507 = arith.constant 6 : i32
    %521 = arith.addi %0, %c6_i32_507 : i32
    %522 = arith.index_cast %521 : i32 to index
    %c3_508 = arith.constant 3 : index
    %523 = memref.load %arg2[%522, %c3_508] : memref<16x5xi32, #tpu.memory_space<smem>>
    %c6_i32_509 = arith.constant 6 : i32
    %c6_i32_510 = arith.constant 6 : i32
    %c3_i32_511 = arith.constant 3 : i32
    %c0_i32_512 = arith.constant 0 : i32
    %524 = tpu.memref_slice %arg5[%523, %c0_i32_512] : memref<16x128xf32, #tpu.memory_space<any>> -> memref<1x128xf32, #tpu.memory_space<any>>
    %c3_i32_513 = arith.constant 3 : i32
    %c0_i32_514 = arith.constant 0 : i32
    %525 = tpu.memref_slice %arg8[%c6_i32_509, %c3_i32_513, %c0_i32_514] : memref<8x5x128xf32, #tpu.memory_space<vmem>> -> memref<1x1x128xf32, #tpu.memory_space<vmem>>
    %526 = tpu.memref_squeeze %525 : memref<1x1x128xf32, #tpu.memory_space<vmem>> -> memref<1x128xf32, #tpu.memory_space<vmem>>
    %527 = tpu.memref_slice %arg10[%c6_i32_510, %c3_i32_511] : memref<8x5x!tpu.dma_semaphore, #tpu.memory_space<semaphore_mem>> -> memref<1x1x!tpu.dma_semaphore, #tpu.memory_space<semaphore_mem>>
    %528 = tpu.memref_squeeze %527 : memref<1x1x!tpu.dma_semaphore, #tpu.memory_space<semaphore_mem>> -> memref<!tpu.dma_semaphore, #tpu.memory_space<semaphore_mem>>
    tpu.enqueue_dma source(%524 : memref<1x128xf32, #tpu.memory_space<any>>) target(%526 : memref<1x128xf32, #tpu.memory_space<vmem>>) target_semaphore(%528 : memref<!tpu.dma_semaphore, #tpu.memory_space<semaphore_mem>>)
    %c6_i32_515 = arith.constant 6 : i32
    %529 = arith.addi %0, %c6_i32_515 : i32
    %530 = arith.index_cast %529 : i32 to index
    %c4_516 = arith.constant 4 : index
    %531 = memref.load %arg2[%530, %c4_516] : memref<16x5xi32, #tpu.memory_space<smem>>
    %c6_i32_517 = arith.constant 6 : i32
    %c6_i32_518 = arith.constant 6 : i32
    %c4_i32_519 = arith.constant 4 : i32
    %c0_i32_520 = arith.constant 0 : i32
    %532 = tpu.memref_slice %arg5[%531, %c0_i32_520] : memref<16x128xf32, #tpu.memory_space<any>> -> memref<1x128xf32, #tpu.memory_space<any>>
    %c4_i32_521 = arith.constant 4 : i32
    %c0_i32_522 = arith.constant 0 : i32
    %533 = tpu.memref_slice %arg8[%c6_i32_517, %c4_i32_521, %c0_i32_522] : memref<8x5x128xf32, #tpu.memory_space<vmem>> -> memref<1x1x128xf32, #tpu.memory_space<vmem>>
    %534 = tpu.memref_squeeze %533 : memref<1x1x128xf32, #tpu.memory_space<vmem>> -> memref<1x128xf32, #tpu.memory_space<vmem>>
    %535 = tpu.memref_slice %arg10[%c6_i32_518, %c4_i32_519] : memref<8x5x!tpu.dma_semaphore, #tpu.memory_space<semaphore_mem>> -> memref<1x1x!tpu.dma_semaphore, #tpu.memory_space<semaphore_mem>>
    %536 = tpu.memref_squeeze %535 : memref<1x1x!tpu.dma_semaphore, #tpu.memory_space<semaphore_mem>> -> memref<!tpu.dma_semaphore, #tpu.memory_space<semaphore_mem>>
    tpu.enqueue_dma source(%532 : memref<1x128xf32, #tpu.memory_space<any>>) target(%534 : memref<1x128xf32, #tpu.memory_space<vmem>>) target_semaphore(%536 : memref<!tpu.dma_semaphore, #tpu.memory_space<semaphore_mem>>)
    %c7_i32_523 = arith.constant 7 : i32
    %537 = arith.addi %0, %c7_i32_523 : i32
    %538 = arith.index_cast %537 : i32 to index
    %c0_524 = arith.constant 0 : index
    %539 = memref.load %arg2[%538, %c0_524] : memref<16x5xi32, #tpu.memory_space<smem>>
    %c7_i32_525 = arith.constant 7 : i32
    %c7_i32_526 = arith.constant 7 : i32
    %c0_i32_527 = arith.constant 0 : i32
    %c0_i32_528 = arith.constant 0 : i32
    %540 = tpu.memref_slice %arg5[%539, %c0_i32_528] : memref<16x128xf32, #tpu.memory_space<any>> -> memref<1x128xf32, #tpu.memory_space<any>>
    %c0_i32_529 = arith.constant 0 : i32
    %c0_i32_530 = arith.constant 0 : i32
    %541 = tpu.memref_slice %arg8[%c7_i32_525, %c0_i32_529, %c0_i32_530] : memref<8x5x128xf32, #tpu.memory_space<vmem>> -> memref<1x1x128xf32, #tpu.memory_space<vmem>>
    %542 = tpu.memref_squeeze %541 : memref<1x1x128xf32, #tpu.memory_space<vmem>> -> memref<1x128xf32, #tpu.memory_space<vmem>>
    %543 = tpu.memref_slice %arg10[%c7_i32_526, %c0_i32_527] : memref<8x5x!tpu.dma_semaphore, #tpu.memory_space<semaphore_mem>> -> memref<1x1x!tpu.dma_semaphore, #tpu.memory_space<semaphore_mem>>
    %544 = tpu.memref_squeeze %543 : memref<1x1x!tpu.dma_semaphore, #tpu.memory_space<semaphore_mem>> -> memref<!tpu.dma_semaphore, #tpu.memory_space<semaphore_mem>>
    tpu.enqueue_dma source(%540 : memref<1x128xf32, #tpu.memory_space<any>>) target(%542 : memref<1x128xf32, #tpu.memory_space<vmem>>) target_semaphore(%544 : memref<!tpu.dma_semaphore, #tpu.memory_space<semaphore_mem>>)
    %c7_i32_531 = arith.constant 7 : i32
    %545 = arith.addi %0, %c7_i32_531 : i32
    %546 = arith.index_cast %545 : i32 to index
    %c1_532 = arith.constant 1 : index
    %547 = memref.load %arg2[%546, %c1_532] : memref<16x5xi32, #tpu.memory_space<smem>>
    %c7_i32_533 = arith.constant 7 : i32
    %c7_i32_534 = arith.constant 7 : i32
    %c1_i32_535 = arith.constant 1 : i32
    %c0_i32_536 = arith.constant 0 : i32
    %548 = tpu.memref_slice %arg5[%547, %c0_i32_536] : memref<16x128xf32, #tpu.memory_space<any>> -> memref<1x128xf32, #tpu.memory_space<any>>
    %c1_i32_537 = arith.constant 1 : i32
    %c0_i32_538 = arith.constant 0 : i32
    %549 = tpu.memref_slice %arg8[%c7_i32_533, %c1_i32_537, %c0_i32_538] : memref<8x5x128xf32, #tpu.memory_space<vmem>> -> memref<1x1x128xf32, #tpu.memory_space<vmem>>
    %550 = tpu.memref_squeeze %549 : memref<1x1x128xf32, #tpu.memory_space<vmem>> -> memref<1x128xf32, #tpu.memory_space<vmem>>
    %551 = tpu.memref_slice %arg10[%c7_i32_534, %c1_i32_535] : memref<8x5x!tpu.dma_semaphore, #tpu.memory_space<semaphore_mem>> -> memref<1x1x!tpu.dma_semaphore, #tpu.memory_space<semaphore_mem>>
    %552 = tpu.memref_squeeze %551 : memref<1x1x!tpu.dma_semaphore, #tpu.memory_space<semaphore_mem>> -> memref<!tpu.dma_semaphore, #tpu.memory_space<semaphore_mem>>
    tpu.enqueue_dma source(%548 : memref<1x128xf32, #tpu.memory_space<any>>) target(%550 : memref<1x128xf32, #tpu.memory_space<vmem>>) target_semaphore(%552 : memref<!tpu.dma_semaphore, #tpu.memory_space<semaphore_mem>>)
    %c7_i32_539 = arith.constant 7 : i32
    %553 = arith.addi %0, %c7_i32_539 : i32
    %554 = arith.index_cast %553 : i32 to index
    %c2_540 = arith.constant 2 : index
    %555 = memref.load %arg2[%554, %c2_540] : memref<16x5xi32, #tpu.memory_space<smem>>
    %c7_i32_541 = arith.constant 7 : i32
    %c7_i32_542 = arith.constant 7 : i32
    %c2_i32_543 = arith.constant 2 : i32
    %c0_i32_544 = arith.constant 0 : i32
    %556 = tpu.memref_slice %arg5[%555, %c0_i32_544] : memref<16x128xf32, #tpu.memory_space<any>> -> memref<1x128xf32, #tpu.memory_space<any>>
    %c2_i32_545 = arith.constant 2 : i32
    %c0_i32_546 = arith.constant 0 : i32
    %557 = tpu.memref_slice %arg8[%c7_i32_541, %c2_i32_545, %c0_i32_546] : memref<8x5x128xf32, #tpu.memory_space<vmem>> -> memref<1x1x128xf32, #tpu.memory_space<vmem>>
    %558 = tpu.memref_squeeze %557 : memref<1x1x128xf32, #tpu.memory_space<vmem>> -> memref<1x128xf32, #tpu.memory_space<vmem>>
    %559 = tpu.memref_slice %arg10[%c7_i32_542, %c2_i32_543] : memref<8x5x!tpu.dma_semaphore, #tpu.memory_space<semaphore_mem>> -> memref<1x1x!tpu.dma_semaphore, #tpu.memory_space<semaphore_mem>>
    %560 = tpu.memref_squeeze %559 : memref<1x1x!tpu.dma_semaphore, #tpu.memory_space<semaphore_mem>> -> memref<!tpu.dma_semaphore, #tpu.memory_space<semaphore_mem>>
    tpu.enqueue_dma source(%556 : memref<1x128xf32, #tpu.memory_space<any>>) target(%558 : memref<1x128xf32, #tpu.memory_space<vmem>>) target_semaphore(%560 : memref<!tpu.dma_semaphore, #tpu.memory_space<semaphore_mem>>)
    %c7_i32_547 = arith.constant 7 : i32
    %561 = arith.addi %0, %c7_i32_547 : i32
    %562 = arith.index_cast %561 : i32 to index
    %c3_548 = arith.constant 3 : index
    %563 = memref.load %arg2[%562, %c3_548] : memref<16x5xi32, #tpu.memory_space<smem>>
    %c7_i32_549 = arith.constant 7 : i32
    %c7_i32_550 = arith.constant 7 : i32
    %c3_i32_551 = arith.constant 3 : i32
    %c0_i32_552 = arith.constant 0 : i32
    %564 = tpu.memref_slice %arg5[%563, %c0_i32_552] : memref<16x128xf32, #tpu.memory_space<any>> -> memref<1x128xf32, #tpu.memory_space<any>>
    %c3_i32_553 = arith.constant 3 : i32
    %c0_i32_554 = arith.constant 0 : i32
    %565 = tpu.memref_slice %arg8[%c7_i32_549, %c3_i32_553, %c0_i32_554] : memref<8x5x128xf32, #tpu.memory_space<vmem>> -> memref<1x1x128xf32, #tpu.memory_space<vmem>>
    %566 = tpu.memref_squeeze %565 : memref<1x1x128xf32, #tpu.memory_space<vmem>> -> memref<1x128xf32, #tpu.memory_space<vmem>>
    %567 = tpu.memref_slice %arg10[%c7_i32_550, %c3_i32_551] : memref<8x5x!tpu.dma_semaphore, #tpu.memory_space<semaphore_mem>> -> memref<1x1x!tpu.dma_semaphore, #tpu.memory_space<semaphore_mem>>
    %568 = tpu.memref_squeeze %567 : memref<1x1x!tpu.dma_semaphore, #tpu.memory_space<semaphore_mem>> -> memref<!tpu.dma_semaphore, #tpu.memory_space<semaphore_mem>>
    tpu.enqueue_dma source(%564 : memref<1x128xf32, #tpu.memory_space<any>>) target(%566 : memref<1x128xf32, #tpu.memory_space<vmem>>) target_semaphore(%568 : memref<!tpu.dma_semaphore, #tpu.memory_space<semaphore_mem>>)
    %c7_i32_555 = arith.constant 7 : i32
    %569 = arith.addi %0, %c7_i32_555 : i32
    %570 = arith.index_cast %569 : i32 to index
    %c4_556 = arith.constant 4 : index
    %571 = memref.load %arg2[%570, %c4_556] : memref<16x5xi32, #tpu.memory_space<smem>>
    %c7_i32_557 = arith.constant 7 : i32
    %c7_i32_558 = arith.constant 7 : i32
    %c4_i32_559 = arith.constant 4 : i32
    %c0_i32_560 = arith.constant 0 : i32
    %572 = tpu.memref_slice %arg5[%571, %c0_i32_560] : memref<16x128xf32, #tpu.memory_space<any>> -> memref<1x128xf32, #tpu.memory_space<any>>
    %c4_i32_561 = arith.constant 4 : i32
    %c0_i32_562 = arith.constant 0 : i32
    %573 = tpu.memref_slice %arg8[%c7_i32_557, %c4_i32_561, %c0_i32_562] : memref<8x5x128xf32, #tpu.memory_space<vmem>> -> memref<1x1x128xf32, #tpu.memory_space<vmem>>
    %574 = tpu.memref_squeeze %573 : memref<1x1x128xf32, #tpu.memory_space<vmem>> -> memref<1x128xf32, #tpu.memory_space<vmem>>
    %575 = tpu.memref_slice %arg10[%c7_i32_558, %c4_i32_559] : memref<8x5x!tpu.dma_semaphore, #tpu.memory_space<semaphore_mem>> -> memref<1x1x!tpu.dma_semaphore, #tpu.memory_space<semaphore_mem>>
    %576 = tpu.memref_squeeze %575 : memref<1x1x!tpu.dma_semaphore, #tpu.memory_space<semaphore_mem>> -> memref<!tpu.dma_semaphore, #tpu.memory_space<semaphore_mem>>
    tpu.enqueue_dma source(%572 : memref<1x128xf32, #tpu.memory_space<any>>) target(%574 : memref<1x128xf32, #tpu.memory_space<vmem>>) target_semaphore(%576 : memref<!tpu.dma_semaphore, #tpu.memory_space<semaphore_mem>>)
    %c0_i32_563 = arith.constant 0 : i32
    %c0_i32_564 = arith.constant 0 : i32
    %c0_i32_565 = arith.constant 0 : i32
    %c0_i32_566 = arith.constant 0 : i32
    %577 = tpu.memref_slice %arg4[%3, %c0_i32_566] : memref<65x128xf32, #tpu.memory_space<any>> -> memref<1x128xf32, #tpu.memory_space<any>>
    %c0_i32_567 = arith.constant 0 : i32
    %c0_i32_568 = arith.constant 0 : i32
    %578 = tpu.memref_slice %arg7[%c0_i32_563, %c0_i32_567, %c0_i32_568] : memref<8x4x128xf32, #tpu.memory_space<vmem>> -> memref<1x1x128xf32, #tpu.memory_space<vmem>>
    %579 = tpu.memref_squeeze %578 : memref<1x1x128xf32, #tpu.memory_space<vmem>> -> memref<1x128xf32, #tpu.memory_space<vmem>>
    %580 = tpu.memref_slice %arg9[%c0_i32_564, %c0_i32_565] : memref<8x4x!tpu.dma_semaphore, #tpu.memory_space<semaphore_mem>> -> memref<1x1x!tpu.dma_semaphore, #tpu.memory_space<semaphore_mem>>
    %581 = tpu.memref_squeeze %580 : memref<1x1x!tpu.dma_semaphore, #tpu.memory_space<semaphore_mem>> -> memref<!tpu.dma_semaphore, #tpu.memory_space<semaphore_mem>>
    tpu.wait_dma2 semaphore(%581 : memref<!tpu.dma_semaphore, #tpu.memory_space<semaphore_mem>>) src(%577 : memref<1x128xf32, #tpu.memory_space<any>>) dst(%579 : memref<1x128xf32, #tpu.memory_space<vmem>>)
    %c0_i32_569 = arith.constant 0 : i32
    %c0_i32_570 = arith.constant 0 : i32
    %c1_i32_571 = arith.constant 1 : i32
    %c0_i32_572 = arith.constant 0 : i32
    %582 = tpu.memref_slice %arg4[%11, %c0_i32_572] : memref<65x128xf32, #tpu.memory_space<any>> -> memref<1x128xf32, #tpu.memory_space<any>>
    %c1_i32_573 = arith.constant 1 : i32
    %c0_i32_574 = arith.constant 0 : i32
    %583 = tpu.memref_slice %arg7[%c0_i32_569, %c1_i32_573, %c0_i32_574] : memref<8x4x128xf32, #tpu.memory_space<vmem>> -> memref<1x1x128xf32, #tpu.memory_space<vmem>>
    %584 = tpu.memref_squeeze %583 : memref<1x1x128xf32, #tpu.memory_space<vmem>> -> memref<1x128xf32, #tpu.memory_space<vmem>>
    %585 = tpu.memref_slice %arg9[%c0_i32_570, %c1_i32_571] : memref<8x4x!tpu.dma_semaphore, #tpu.memory_space<semaphore_mem>> -> memref<1x1x!tpu.dma_semaphore, #tpu.memory_space<semaphore_mem>>
    %586 = tpu.memref_squeeze %585 : memref<1x1x!tpu.dma_semaphore, #tpu.memory_space<semaphore_mem>> -> memref<!tpu.dma_semaphore, #tpu.memory_space<semaphore_mem>>
    tpu.wait_dma2 semaphore(%586 : memref<!tpu.dma_semaphore, #tpu.memory_space<semaphore_mem>>) src(%582 : memref<1x128xf32, #tpu.memory_space<any>>) dst(%584 : memref<1x128xf32, #tpu.memory_space<vmem>>)
    %c0_i32_575 = arith.constant 0 : i32
    %c0_i32_576 = arith.constant 0 : i32
    %c2_i32_577 = arith.constant 2 : i32
    %c0_i32_578 = arith.constant 0 : i32
    %587 = tpu.memref_slice %arg4[%19, %c0_i32_578] : memref<65x128xf32, #tpu.memory_space<any>> -> memref<1x128xf32, #tpu.memory_space<any>>
    %c2_i32_579 = arith.constant 2 : i32
    %c0_i32_580 = arith.constant 0 : i32
    %588 = tpu.memref_slice %arg7[%c0_i32_575, %c2_i32_579, %c0_i32_580] : memref<8x4x128xf32, #tpu.memory_space<vmem>> -> memref<1x1x128xf32, #tpu.memory_space<vmem>>
    %589 = tpu.memref_squeeze %588 : memref<1x1x128xf32, #tpu.memory_space<vmem>> -> memref<1x128xf32, #tpu.memory_space<vmem>>
    %590 = tpu.memref_slice %arg9[%c0_i32_576, %c2_i32_577] : memref<8x4x!tpu.dma_semaphore, #tpu.memory_space<semaphore_mem>> -> memref<1x1x!tpu.dma_semaphore, #tpu.memory_space<semaphore_mem>>
    %591 = tpu.memref_squeeze %590 : memref<1x1x!tpu.dma_semaphore, #tpu.memory_space<semaphore_mem>> -> memref<!tpu.dma_semaphore, #tpu.memory_space<semaphore_mem>>
    tpu.wait_dma2 semaphore(%591 : memref<!tpu.dma_semaphore, #tpu.memory_space<semaphore_mem>>) src(%587 : memref<1x128xf32, #tpu.memory_space<any>>) dst(%589 : memref<1x128xf32, #tpu.memory_space<vmem>>)
    %c0_i32_581 = arith.constant 0 : i32
    %c0_i32_582 = arith.constant 0 : i32
    %c3_i32_583 = arith.constant 3 : i32
    %c0_i32_584 = arith.constant 0 : i32
    %592 = tpu.memref_slice %arg4[%27, %c0_i32_584] : memref<65x128xf32, #tpu.memory_space<any>> -> memref<1x128xf32, #tpu.memory_space<any>>
    %c3_i32_585 = arith.constant 3 : i32
    %c0_i32_586 = arith.constant 0 : i32
    %593 = tpu.memref_slice %arg7[%c0_i32_581, %c3_i32_585, %c0_i32_586] : memref<8x4x128xf32, #tpu.memory_space<vmem>> -> memref<1x1x128xf32, #tpu.memory_space<vmem>>
    %594 = tpu.memref_squeeze %593 : memref<1x1x128xf32, #tpu.memory_space<vmem>> -> memref<1x128xf32, #tpu.memory_space<vmem>>
    %595 = tpu.memref_slice %arg9[%c0_i32_582, %c3_i32_583] : memref<8x4x!tpu.dma_semaphore, #tpu.memory_space<semaphore_mem>> -> memref<1x1x!tpu.dma_semaphore, #tpu.memory_space<semaphore_mem>>
    %596 = tpu.memref_squeeze %595 : memref<1x1x!tpu.dma_semaphore, #tpu.memory_space<semaphore_mem>> -> memref<!tpu.dma_semaphore, #tpu.memory_space<semaphore_mem>>
    tpu.wait_dma2 semaphore(%596 : memref<!tpu.dma_semaphore, #tpu.memory_space<semaphore_mem>>) src(%592 : memref<1x128xf32, #tpu.memory_space<any>>) dst(%594 : memref<1x128xf32, #tpu.memory_space<vmem>>)
    %c1_i32_587 = arith.constant 1 : i32
    %c1_i32_588 = arith.constant 1 : i32
    %c0_i32_589 = arith.constant 0 : i32
    %c0_i32_590 = arith.constant 0 : i32
    %597 = tpu.memref_slice %arg4[%35, %c0_i32_590] : memref<65x128xf32, #tpu.memory_space<any>> -> memref<1x128xf32, #tpu.memory_space<any>>
    %c0_i32_591 = arith.constant 0 : i32
    %c0_i32_592 = arith.constant 0 : i32
    %598 = tpu.memref_slice %arg7[%c1_i32_587, %c0_i32_591, %c0_i32_592] : memref<8x4x128xf32, #tpu.memory_space<vmem>> -> memref<1x1x128xf32, #tpu.memory_space<vmem>>
    %599 = tpu.memref_squeeze %598 : memref<1x1x128xf32, #tpu.memory_space<vmem>> -> memref<1x128xf32, #tpu.memory_space<vmem>>
    %600 = tpu.memref_slice %arg9[%c1_i32_588, %c0_i32_589] : memref<8x4x!tpu.dma_semaphore, #tpu.memory_space<semaphore_mem>> -> memref<1x1x!tpu.dma_semaphore, #tpu.memory_space<semaphore_mem>>
    %601 = tpu.memref_squeeze %600 : memref<1x1x!tpu.dma_semaphore, #tpu.memory_space<semaphore_mem>> -> memref<!tpu.dma_semaphore, #tpu.memory_space<semaphore_mem>>
    tpu.wait_dma2 semaphore(%601 : memref<!tpu.dma_semaphore, #tpu.memory_space<semaphore_mem>>) src(%597 : memref<1x128xf32, #tpu.memory_space<any>>) dst(%599 : memref<1x128xf32, #tpu.memory_space<vmem>>)
    %c1_i32_593 = arith.constant 1 : i32
    %c1_i32_594 = arith.constant 1 : i32
    %c1_i32_595 = arith.constant 1 : i32
    %c0_i32_596 = arith.constant 0 : i32
    %602 = tpu.memref_slice %arg4[%43, %c0_i32_596] : memref<65x128xf32, #tpu.memory_space<any>> -> memref<1x128xf32, #tpu.memory_space<any>>
    %c1_i32_597 = arith.constant 1 : i32
    %c0_i32_598 = arith.constant 0 : i32
    %603 = tpu.memref_slice %arg7[%c1_i32_593, %c1_i32_597, %c0_i32_598] : memref<8x4x128xf32, #tpu.memory_space<vmem>> -> memref<1x1x128xf32, #tpu.memory_space<vmem>>
    %604 = tpu.memref_squeeze %603 : memref<1x1x128xf32, #tpu.memory_space<vmem>> -> memref<1x128xf32, #tpu.memory_space<vmem>>
    %605 = tpu.memref_slice %arg9[%c1_i32_594, %c1_i32_595] : memref<8x4x!tpu.dma_semaphore, #tpu.memory_space<semaphore_mem>> -> memref<1x1x!tpu.dma_semaphore, #tpu.memory_space<semaphore_mem>>
    %606 = tpu.memref_squeeze %605 : memref<1x1x!tpu.dma_semaphore, #tpu.memory_space<semaphore_mem>> -> memref<!tpu.dma_semaphore, #tpu.memory_space<semaphore_mem>>
    tpu.wait_dma2 semaphore(%606 : memref<!tpu.dma_semaphore, #tpu.memory_space<semaphore_mem>>) src(%602 : memref<1x128xf32, #tpu.memory_space<any>>) dst(%604 : memref<1x128xf32, #tpu.memory_space<vmem>>)
    %c1_i32_599 = arith.constant 1 : i32
    %c1_i32_600 = arith.constant 1 : i32
    %c2_i32_601 = arith.constant 2 : i32
    %c0_i32_602 = arith.constant 0 : i32
    %607 = tpu.memref_slice %arg4[%51, %c0_i32_602] : memref<65x128xf32, #tpu.memory_space<any>> -> memref<1x128xf32, #tpu.memory_space<any>>
    %c2_i32_603 = arith.constant 2 : i32
    %c0_i32_604 = arith.constant 0 : i32
    %608 = tpu.memref_slice %arg7[%c1_i32_599, %c2_i32_603, %c0_i32_604] : memref<8x4x128xf32, #tpu.memory_space<vmem>> -> memref<1x1x128xf32, #tpu.memory_space<vmem>>
    %609 = tpu.memref_squeeze %608 : memref<1x1x128xf32, #tpu.memory_space<vmem>> -> memref<1x128xf32, #tpu.memory_space<vmem>>
    %610 = tpu.memref_slice %arg9[%c1_i32_600, %c2_i32_601] : memref<8x4x!tpu.dma_semaphore, #tpu.memory_space<semaphore_mem>> -> memref<1x1x!tpu.dma_semaphore, #tpu.memory_space<semaphore_mem>>
    %611 = tpu.memref_squeeze %610 : memref<1x1x!tpu.dma_semaphore, #tpu.memory_space<semaphore_mem>> -> memref<!tpu.dma_semaphore, #tpu.memory_space<semaphore_mem>>
    tpu.wait_dma2 semaphore(%611 : memref<!tpu.dma_semaphore, #tpu.memory_space<semaphore_mem>>) src(%607 : memref<1x128xf32, #tpu.memory_space<any>>) dst(%609 : memref<1x128xf32, #tpu.memory_space<vmem>>)
    %c1_i32_605 = arith.constant 1 : i32
    %c1_i32_606 = arith.constant 1 : i32
    %c3_i32_607 = arith.constant 3 : i32
    %c0_i32_608 = arith.constant 0 : i32
    %612 = tpu.memref_slice %arg4[%59, %c0_i32_608] : memref<65x128xf32, #tpu.memory_space<any>> -> memref<1x128xf32, #tpu.memory_space<any>>
    %c3_i32_609 = arith.constant 3 : i32
    %c0_i32_610 = arith.constant 0 : i32
    %613 = tpu.memref_slice %arg7[%c1_i32_605, %c3_i32_609, %c0_i32_610] : memref<8x4x128xf32, #tpu.memory_space<vmem>> -> memref<1x1x128xf32, #tpu.memory_space<vmem>>
    %614 = tpu.memref_squeeze %613 : memref<1x1x128xf32, #tpu.memory_space<vmem>> -> memref<1x128xf32, #tpu.memory_space<vmem>>
    %615 = tpu.memref_slice %arg9[%c1_i32_606, %c3_i32_607] : memref<8x4x!tpu.dma_semaphore, #tpu.memory_space<semaphore_mem>> -> memref<1x1x!tpu.dma_semaphore, #tpu.memory_space<semaphore_mem>>
    %616 = tpu.memref_squeeze %615 : memref<1x1x!tpu.dma_semaphore, #tpu.memory_space<semaphore_mem>> -> memref<!tpu.dma_semaphore, #tpu.memory_space<semaphore_mem>>
    tpu.wait_dma2 semaphore(%616 : memref<!tpu.dma_semaphore, #tpu.memory_space<semaphore_mem>>) src(%612 : memref<1x128xf32, #tpu.memory_space<any>>) dst(%614 : memref<1x128xf32, #tpu.memory_space<vmem>>)
    %c2_i32_611 = arith.constant 2 : i32
    %c2_i32_612 = arith.constant 2 : i32
    %c0_i32_613 = arith.constant 0 : i32
    %c0_i32_614 = arith.constant 0 : i32
    %617 = tpu.memref_slice %arg4[%67, %c0_i32_614] : memref<65x128xf32, #tpu.memory_space<any>> -> memref<1x128xf32, #tpu.memory_space<any>>
    %c0_i32_615 = arith.constant 0 : i32
    %c0_i32_616 = arith.constant 0 : i32
    %618 = tpu.memref_slice %arg7[%c2_i32_611, %c0_i32_615, %c0_i32_616] : memref<8x4x128xf32, #tpu.memory_space<vmem>> -> memref<1x1x128xf32, #tpu.memory_space<vmem>>
    %619 = tpu.memref_squeeze %618 : memref<1x1x128xf32, #tpu.memory_space<vmem>> -> memref<1x128xf32, #tpu.memory_space<vmem>>
    %620 = tpu.memref_slice %arg9[%c2_i32_612, %c0_i32_613] : memref<8x4x!tpu.dma_semaphore, #tpu.memory_space<semaphore_mem>> -> memref<1x1x!tpu.dma_semaphore, #tpu.memory_space<semaphore_mem>>
    %621 = tpu.memref_squeeze %620 : memref<1x1x!tpu.dma_semaphore, #tpu.memory_space<semaphore_mem>> -> memref<!tpu.dma_semaphore, #tpu.memory_space<semaphore_mem>>
    tpu.wait_dma2 semaphore(%621 : memref<!tpu.dma_semaphore, #tpu.memory_space<semaphore_mem>>) src(%617 : memref<1x128xf32, #tpu.memory_space<any>>) dst(%619 : memref<1x128xf32, #tpu.memory_space<vmem>>)
    %c2_i32_617 = arith.constant 2 : i32
    %c2_i32_618 = arith.constant 2 : i32
    %c1_i32_619 = arith.constant 1 : i32
    %c0_i32_620 = arith.constant 0 : i32
    %622 = tpu.memref_slice %arg4[%75, %c0_i32_620] : memref<65x128xf32, #tpu.memory_space<any>> -> memref<1x128xf32, #tpu.memory_space<any>>
    %c1_i32_621 = arith.constant 1 : i32
    %c0_i32_622 = arith.constant 0 : i32
    %623 = tpu.memref_slice %arg7[%c2_i32_617, %c1_i32_621, %c0_i32_622] : memref<8x4x128xf32, #tpu.memory_space<vmem>> -> memref<1x1x128xf32, #tpu.memory_space<vmem>>
    %624 = tpu.memref_squeeze %623 : memref<1x1x128xf32, #tpu.memory_space<vmem>> -> memref<1x128xf32, #tpu.memory_space<vmem>>
    %625 = tpu.memref_slice %arg9[%c2_i32_618, %c1_i32_619] : memref<8x4x!tpu.dma_semaphore, #tpu.memory_space<semaphore_mem>> -> memref<1x1x!tpu.dma_semaphore, #tpu.memory_space<semaphore_mem>>
    %626 = tpu.memref_squeeze %625 : memref<1x1x!tpu.dma_semaphore, #tpu.memory_space<semaphore_mem>> -> memref<!tpu.dma_semaphore, #tpu.memory_space<semaphore_mem>>
    tpu.wait_dma2 semaphore(%626 : memref<!tpu.dma_semaphore, #tpu.memory_space<semaphore_mem>>) src(%622 : memref<1x128xf32, #tpu.memory_space<any>>) dst(%624 : memref<1x128xf32, #tpu.memory_space<vmem>>)
    %c2_i32_623 = arith.constant 2 : i32
    %c2_i32_624 = arith.constant 2 : i32
    %c2_i32_625 = arith.constant 2 : i32
    %c0_i32_626 = arith.constant 0 : i32
    %627 = tpu.memref_slice %arg4[%83, %c0_i32_626] : memref<65x128xf32, #tpu.memory_space<any>> -> memref<1x128xf32, #tpu.memory_space<any>>
    %c2_i32_627 = arith.constant 2 : i32
    %c0_i32_628 = arith.constant 0 : i32
    %628 = tpu.memref_slice %arg7[%c2_i32_623, %c2_i32_627, %c0_i32_628] : memref<8x4x128xf32, #tpu.memory_space<vmem>> -> memref<1x1x128xf32, #tpu.memory_space<vmem>>
    %629 = tpu.memref_squeeze %628 : memref<1x1x128xf32, #tpu.memory_space<vmem>> -> memref<1x128xf32, #tpu.memory_space<vmem>>
    %630 = tpu.memref_slice %arg9[%c2_i32_624, %c2_i32_625] : memref<8x4x!tpu.dma_semaphore, #tpu.memory_space<semaphore_mem>> -> memref<1x1x!tpu.dma_semaphore, #tpu.memory_space<semaphore_mem>>
    %631 = tpu.memref_squeeze %630 : memref<1x1x!tpu.dma_semaphore, #tpu.memory_space<semaphore_mem>> -> memref<!tpu.dma_semaphore, #tpu.memory_space<semaphore_mem>>
    tpu.wait_dma2 semaphore(%631 : memref<!tpu.dma_semaphore, #tpu.memory_space<semaphore_mem>>) src(%627 : memref<1x128xf32, #tpu.memory_space<any>>) dst(%629 : memref<1x128xf32, #tpu.memory_space<vmem>>)
    %c2_i32_629 = arith.constant 2 : i32
    %c2_i32_630 = arith.constant 2 : i32
    %c3_i32_631 = arith.constant 3 : i32
    %c0_i32_632 = arith.constant 0 : i32
    %632 = tpu.memref_slice %arg4[%91, %c0_i32_632] : memref<65x128xf32, #tpu.memory_space<any>> -> memref<1x128xf32, #tpu.memory_space<any>>
    %c3_i32_633 = arith.constant 3 : i32
    %c0_i32_634 = arith.constant 0 : i32
    %633 = tpu.memref_slice %arg7[%c2_i32_629, %c3_i32_633, %c0_i32_634] : memref<8x4x128xf32, #tpu.memory_space<vmem>> -> memref<1x1x128xf32, #tpu.memory_space<vmem>>
    %634 = tpu.memref_squeeze %633 : memref<1x1x128xf32, #tpu.memory_space<vmem>> -> memref<1x128xf32, #tpu.memory_space<vmem>>
    %635 = tpu.memref_slice %arg9[%c2_i32_630, %c3_i32_631] : memref<8x4x!tpu.dma_semaphore, #tpu.memory_space<semaphore_mem>> -> memref<1x1x!tpu.dma_semaphore, #tpu.memory_space<semaphore_mem>>
    %636 = tpu.memref_squeeze %635 : memref<1x1x!tpu.dma_semaphore, #tpu.memory_space<semaphore_mem>> -> memref<!tpu.dma_semaphore, #tpu.memory_space<semaphore_mem>>
    tpu.wait_dma2 semaphore(%636 : memref<!tpu.dma_semaphore, #tpu.memory_space<semaphore_mem>>) src(%632 : memref<1x128xf32, #tpu.memory_space<any>>) dst(%634 : memref<1x128xf32, #tpu.memory_space<vmem>>)
    %c3_i32_635 = arith.constant 3 : i32
    %c3_i32_636 = arith.constant 3 : i32
    %c0_i32_637 = arith.constant 0 : i32
    %c0_i32_638 = arith.constant 0 : i32
    %637 = tpu.memref_slice %arg4[%99, %c0_i32_638] : memref<65x128xf32, #tpu.memory_space<any>> -> memref<1x128xf32, #tpu.memory_space<any>>
    %c0_i32_639 = arith.constant 0 : i32
    %c0_i32_640 = arith.constant 0 : i32
    %638 = tpu.memref_slice %arg7[%c3_i32_635, %c0_i32_639, %c0_i32_640] : memref<8x4x128xf32, #tpu.memory_space<vmem>> -> memref<1x1x128xf32, #tpu.memory_space<vmem>>
    %639 = tpu.memref_squeeze %638 : memref<1x1x128xf32, #tpu.memory_space<vmem>> -> memref<1x128xf32, #tpu.memory_space<vmem>>
    %640 = tpu.memref_slice %arg9[%c3_i32_636, %c0_i32_637] : memref<8x4x!tpu.dma_semaphore, #tpu.memory_space<semaphore_mem>> -> memref<1x1x!tpu.dma_semaphore, #tpu.memory_space<semaphore_mem>>
    %641 = tpu.memref_squeeze %640 : memref<1x1x!tpu.dma_semaphore, #tpu.memory_space<semaphore_mem>> -> memref<!tpu.dma_semaphore, #tpu.memory_space<semaphore_mem>>
    tpu.wait_dma2 semaphore(%641 : memref<!tpu.dma_semaphore, #tpu.memory_space<semaphore_mem>>) src(%637 : memref<1x128xf32, #tpu.memory_space<any>>) dst(%639 : memref<1x128xf32, #tpu.memory_space<vmem>>)
    %c3_i32_641 = arith.constant 3 : i32
    %c3_i32_642 = arith.constant 3 : i32
    %c1_i32_643 = arith.constant 1 : i32
    %c0_i32_644 = arith.constant 0 : i32
    %642 = tpu.memref_slice %arg4[%107, %c0_i32_644] : memref<65x128xf32, #tpu.memory_space<any>> -> memref<1x128xf32, #tpu.memory_space<any>>
    %c1_i32_645 = arith.constant 1 : i32
    %c0_i32_646 = arith.constant 0 : i32
    %643 = tpu.memref_slice %arg7[%c3_i32_641, %c1_i32_645, %c0_i32_646] : memref<8x4x128xf32, #tpu.memory_space<vmem>> -> memref<1x1x128xf32, #tpu.memory_space<vmem>>
    %644 = tpu.memref_squeeze %643 : memref<1x1x128xf32, #tpu.memory_space<vmem>> -> memref<1x128xf32, #tpu.memory_space<vmem>>
    %645 = tpu.memref_slice %arg9[%c3_i32_642, %c1_i32_643] : memref<8x4x!tpu.dma_semaphore, #tpu.memory_space<semaphore_mem>> -> memref<1x1x!tpu.dma_semaphore, #tpu.memory_space<semaphore_mem>>
    %646 = tpu.memref_squeeze %645 : memref<1x1x!tpu.dma_semaphore, #tpu.memory_space<semaphore_mem>> -> memref<!tpu.dma_semaphore, #tpu.memory_space<semaphore_mem>>
    tpu.wait_dma2 semaphore(%646 : memref<!tpu.dma_semaphore, #tpu.memory_space<semaphore_mem>>) src(%642 : memref<1x128xf32, #tpu.memory_space<any>>) dst(%644 : memref<1x128xf32, #tpu.memory_space<vmem>>)
    %c3_i32_647 = arith.constant 3 : i32
    %c3_i32_648 = arith.constant 3 : i32
    %c2_i32_649 = arith.constant 2 : i32
    %c0_i32_650 = arith.constant 0 : i32
    %647 = tpu.memref_slice %arg4[%115, %c0_i32_650] : memref<65x128xf32, #tpu.memory_space<any>> -> memref<1x128xf32, #tpu.memory_space<any>>
    %c2_i32_651 = arith.constant 2 : i32
    %c0_i32_652 = arith.constant 0 : i32
    %648 = tpu.memref_slice %arg7[%c3_i32_647, %c2_i32_651, %c0_i32_652] : memref<8x4x128xf32, #tpu.memory_space<vmem>> -> memref<1x1x128xf32, #tpu.memory_space<vmem>>
    %649 = tpu.memref_squeeze %648 : memref<1x1x128xf32, #tpu.memory_space<vmem>> -> memref<1x128xf32, #tpu.memory_space<vmem>>
    %650 = tpu.memref_slice %arg9[%c3_i32_648, %c2_i32_649] : memref<8x4x!tpu.dma_semaphore, #tpu.memory_space<semaphore_mem>> -> memref<1x1x!tpu.dma_semaphore, #tpu.memory_space<semaphore_mem>>
    %651 = tpu.memref_squeeze %650 : memref<1x1x!tpu.dma_semaphore, #tpu.memory_space<semaphore_mem>> -> memref<!tpu.dma_semaphore, #tpu.memory_space<semaphore_mem>>
    tpu.wait_dma2 semaphore(%651 : memref<!tpu.dma_semaphore, #tpu.memory_space<semaphore_mem>>) src(%647 : memref<1x128xf32, #tpu.memory_space<any>>) dst(%649 : memref<1x128xf32, #tpu.memory_space<vmem>>)
    %c3_i32_653 = arith.constant 3 : i32
    %c3_i32_654 = arith.constant 3 : i32
    %c3_i32_655 = arith.constant 3 : i32
    %c0_i32_656 = arith.constant 0 : i32
    %652 = tpu.memref_slice %arg4[%123, %c0_i32_656] : memref<65x128xf32, #tpu.memory_space<any>> -> memref<1x128xf32, #tpu.memory_space<any>>
    %c3_i32_657 = arith.constant 3 : i32
    %c0_i32_658 = arith.constant 0 : i32
    %653 = tpu.memref_slice %arg7[%c3_i32_653, %c3_i32_657, %c0_i32_658] : memref<8x4x128xf32, #tpu.memory_space<vmem>> -> memref<1x1x128xf32, #tpu.memory_space<vmem>>
    %654 = tpu.memref_squeeze %653 : memref<1x1x128xf32, #tpu.memory_space<vmem>> -> memref<1x128xf32, #tpu.memory_space<vmem>>
    %655 = tpu.memref_slice %arg9[%c3_i32_654, %c3_i32_655] : memref<8x4x!tpu.dma_semaphore, #tpu.memory_space<semaphore_mem>> -> memref<1x1x!tpu.dma_semaphore, #tpu.memory_space<semaphore_mem>>
    %656 = tpu.memref_squeeze %655 : memref<1x1x!tpu.dma_semaphore, #tpu.memory_space<semaphore_mem>> -> memref<!tpu.dma_semaphore, #tpu.memory_space<semaphore_mem>>
    tpu.wait_dma2 semaphore(%656 : memref<!tpu.dma_semaphore, #tpu.memory_space<semaphore_mem>>) src(%652 : memref<1x128xf32, #tpu.memory_space<any>>) dst(%654 : memref<1x128xf32, #tpu.memory_space<vmem>>)
    %c4_i32_659 = arith.constant 4 : i32
    %c4_i32_660 = arith.constant 4 : i32
    %c0_i32_661 = arith.constant 0 : i32
    %c0_i32_662 = arith.constant 0 : i32
    %657 = tpu.memref_slice %arg4[%131, %c0_i32_662] : memref<65x128xf32, #tpu.memory_space<any>> -> memref<1x128xf32, #tpu.memory_space<any>>
    %c0_i32_663 = arith.constant 0 : i32
    %c0_i32_664 = arith.constant 0 : i32
    %658 = tpu.memref_slice %arg7[%c4_i32_659, %c0_i32_663, %c0_i32_664] : memref<8x4x128xf32, #tpu.memory_space<vmem>> -> memref<1x1x128xf32, #tpu.memory_space<vmem>>
    %659 = tpu.memref_squeeze %658 : memref<1x1x128xf32, #tpu.memory_space<vmem>> -> memref<1x128xf32, #tpu.memory_space<vmem>>
    %660 = tpu.memref_slice %arg9[%c4_i32_660, %c0_i32_661] : memref<8x4x!tpu.dma_semaphore, #tpu.memory_space<semaphore_mem>> -> memref<1x1x!tpu.dma_semaphore, #tpu.memory_space<semaphore_mem>>
    %661 = tpu.memref_squeeze %660 : memref<1x1x!tpu.dma_semaphore, #tpu.memory_space<semaphore_mem>> -> memref<!tpu.dma_semaphore, #tpu.memory_space<semaphore_mem>>
    tpu.wait_dma2 semaphore(%661 : memref<!tpu.dma_semaphore, #tpu.memory_space<semaphore_mem>>) src(%657 : memref<1x128xf32, #tpu.memory_space<any>>) dst(%659 : memref<1x128xf32, #tpu.memory_space<vmem>>)
    %c4_i32_665 = arith.constant 4 : i32
    %c4_i32_666 = arith.constant 4 : i32
    %c1_i32_667 = arith.constant 1 : i32
    %c0_i32_668 = arith.constant 0 : i32
    %662 = tpu.memref_slice %arg4[%139, %c0_i32_668] : memref<65x128xf32, #tpu.memory_space<any>> -> memref<1x128xf32, #tpu.memory_space<any>>
    %c1_i32_669 = arith.constant 1 : i32
    %c0_i32_670 = arith.constant 0 : i32
    %663 = tpu.memref_slice %arg7[%c4_i32_665, %c1_i32_669, %c0_i32_670] : memref<8x4x128xf32, #tpu.memory_space<vmem>> -> memref<1x1x128xf32, #tpu.memory_space<vmem>>
    %664 = tpu.memref_squeeze %663 : memref<1x1x128xf32, #tpu.memory_space<vmem>> -> memref<1x128xf32, #tpu.memory_space<vmem>>
    %665 = tpu.memref_slice %arg9[%c4_i32_666, %c1_i32_667] : memref<8x4x!tpu.dma_semaphore, #tpu.memory_space<semaphore_mem>> -> memref<1x1x!tpu.dma_semaphore, #tpu.memory_space<semaphore_mem>>
    %666 = tpu.memref_squeeze %665 : memref<1x1x!tpu.dma_semaphore, #tpu.memory_space<semaphore_mem>> -> memref<!tpu.dma_semaphore, #tpu.memory_space<semaphore_mem>>
    tpu.wait_dma2 semaphore(%666 : memref<!tpu.dma_semaphore, #tpu.memory_space<semaphore_mem>>) src(%662 : memref<1x128xf32, #tpu.memory_space<any>>) dst(%664 : memref<1x128xf32, #tpu.memory_space<vmem>>)
    %c4_i32_671 = arith.constant 4 : i32
    %c4_i32_672 = arith.constant 4 : i32
    %c2_i32_673 = arith.constant 2 : i32
    %c0_i32_674 = arith.constant 0 : i32
    %667 = tpu.memref_slice %arg4[%147, %c0_i32_674] : memref<65x128xf32, #tpu.memory_space<any>> -> memref<1x128xf32, #tpu.memory_space<any>>
    %c2_i32_675 = arith.constant 2 : i32
    %c0_i32_676 = arith.constant 0 : i32
    %668 = tpu.memref_slice %arg7[%c4_i32_671, %c2_i32_675, %c0_i32_676] : memref<8x4x128xf32, #tpu.memory_space<vmem>> -> memref<1x1x128xf32, #tpu.memory_space<vmem>>
    %669 = tpu.memref_squeeze %668 : memref<1x1x128xf32, #tpu.memory_space<vmem>> -> memref<1x128xf32, #tpu.memory_space<vmem>>
    %670 = tpu.memref_slice %arg9[%c4_i32_672, %c2_i32_673] : memref<8x4x!tpu.dma_semaphore, #tpu.memory_space<semaphore_mem>> -> memref<1x1x!tpu.dma_semaphore, #tpu.memory_space<semaphore_mem>>
    %671 = tpu.memref_squeeze %670 : memref<1x1x!tpu.dma_semaphore, #tpu.memory_space<semaphore_mem>> -> memref<!tpu.dma_semaphore, #tpu.memory_space<semaphore_mem>>
    tpu.wait_dma2 semaphore(%671 : memref<!tpu.dma_semaphore, #tpu.memory_space<semaphore_mem>>) src(%667 : memref<1x128xf32, #tpu.memory_space<any>>) dst(%669 : memref<1x128xf32, #tpu.memory_space<vmem>>)
    %c4_i32_677 = arith.constant 4 : i32
    %c4_i32_678 = arith.constant 4 : i32
    %c3_i32_679 = arith.constant 3 : i32
    %c0_i32_680 = arith.constant 0 : i32
    %672 = tpu.memref_slice %arg4[%155, %c0_i32_680] : memref<65x128xf32, #tpu.memory_space<any>> -> memref<1x128xf32, #tpu.memory_space<any>>
    %c3_i32_681 = arith.constant 3 : i32
    %c0_i32_682 = arith.constant 0 : i32
    %673 = tpu.memref_slice %arg7[%c4_i32_677, %c3_i32_681, %c0_i32_682] : memref<8x4x128xf32, #tpu.memory_space<vmem>> -> memref<1x1x128xf32, #tpu.memory_space<vmem>>
    %674 = tpu.memref_squeeze %673 : memref<1x1x128xf32, #tpu.memory_space<vmem>> -> memref<1x128xf32, #tpu.memory_space<vmem>>
    %675 = tpu.memref_slice %arg9[%c4_i32_678, %c3_i32_679] : memref<8x4x!tpu.dma_semaphore, #tpu.memory_space<semaphore_mem>> -> memref<1x1x!tpu.dma_semaphore, #tpu.memory_space<semaphore_mem>>
    %676 = tpu.memref_squeeze %675 : memref<1x1x!tpu.dma_semaphore, #tpu.memory_space<semaphore_mem>> -> memref<!tpu.dma_semaphore, #tpu.memory_space<semaphore_mem>>
    tpu.wait_dma2 semaphore(%676 : memref<!tpu.dma_semaphore, #tpu.memory_space<semaphore_mem>>) src(%672 : memref<1x128xf32, #tpu.memory_space<any>>) dst(%674 : memref<1x128xf32, #tpu.memory_space<vmem>>)
    %c5_i32_683 = arith.constant 5 : i32
    %c5_i32_684 = arith.constant 5 : i32
    %c0_i32_685 = arith.constant 0 : i32
    %c0_i32_686 = arith.constant 0 : i32
    %677 = tpu.memref_slice %arg4[%163, %c0_i32_686] : memref<65x128xf32, #tpu.memory_space<any>> -> memref<1x128xf32, #tpu.memory_space<any>>
    %c0_i32_687 = arith.constant 0 : i32
    %c0_i32_688 = arith.constant 0 : i32
    %678 = tpu.memref_slice %arg7[%c5_i32_683, %c0_i32_687, %c0_i32_688] : memref<8x4x128xf32, #tpu.memory_space<vmem>> -> memref<1x1x128xf32, #tpu.memory_space<vmem>>
    %679 = tpu.memref_squeeze %678 : memref<1x1x128xf32, #tpu.memory_space<vmem>> -> memref<1x128xf32, #tpu.memory_space<vmem>>
    %680 = tpu.memref_slice %arg9[%c5_i32_684, %c0_i32_685] : memref<8x4x!tpu.dma_semaphore, #tpu.memory_space<semaphore_mem>> -> memref<1x1x!tpu.dma_semaphore, #tpu.memory_space<semaphore_mem>>
    %681 = tpu.memref_squeeze %680 : memref<1x1x!tpu.dma_semaphore, #tpu.memory_space<semaphore_mem>> -> memref<!tpu.dma_semaphore, #tpu.memory_space<semaphore_mem>>
    tpu.wait_dma2 semaphore(%681 : memref<!tpu.dma_semaphore, #tpu.memory_space<semaphore_mem>>) src(%677 : memref<1x128xf32, #tpu.memory_space<any>>) dst(%679 : memref<1x128xf32, #tpu.memory_space<vmem>>)
    %c5_i32_689 = arith.constant 5 : i32
    %c5_i32_690 = arith.constant 5 : i32
    %c1_i32_691 = arith.constant 1 : i32
    %c0_i32_692 = arith.constant 0 : i32
    %682 = tpu.memref_slice %arg4[%171, %c0_i32_692] : memref<65x128xf32, #tpu.memory_space<any>> -> memref<1x128xf32, #tpu.memory_space<any>>
    %c1_i32_693 = arith.constant 1 : i32
    %c0_i32_694 = arith.constant 0 : i32
    %683 = tpu.memref_slice %arg7[%c5_i32_689, %c1_i32_693, %c0_i32_694] : memref<8x4x128xf32, #tpu.memory_space<vmem>> -> memref<1x1x128xf32, #tpu.memory_space<vmem>>
    %684 = tpu.memref_squeeze %683 : memref<1x1x128xf32, #tpu.memory_space<vmem>> -> memref<1x128xf32, #tpu.memory_space<vmem>>
    %685 = tpu.memref_slice %arg9[%c5_i32_690, %c1_i32_691] : memref<8x4x!tpu.dma_semaphore, #tpu.memory_space<semaphore_mem>> -> memref<1x1x!tpu.dma_semaphore, #tpu.memory_space<semaphore_mem>>
    %686 = tpu.memref_squeeze %685 : memref<1x1x!tpu.dma_semaphore, #tpu.memory_space<semaphore_mem>> -> memref<!tpu.dma_semaphore, #tpu.memory_space<semaphore_mem>>
    tpu.wait_dma2 semaphore(%686 : memref<!tpu.dma_semaphore, #tpu.memory_space<semaphore_mem>>) src(%682 : memref<1x128xf32, #tpu.memory_space<any>>) dst(%684 : memref<1x128xf32, #tpu.memory_space<vmem>>)
    %c5_i32_695 = arith.constant 5 : i32
    %c5_i32_696 = arith.constant 5 : i32
    %c2_i32_697 = arith.constant 2 : i32
    %c0_i32_698 = arith.constant 0 : i32
    %687 = tpu.memref_slice %arg4[%179, %c0_i32_698] : memref<65x128xf32, #tpu.memory_space<any>> -> memref<1x128xf32, #tpu.memory_space<any>>
    %c2_i32_699 = arith.constant 2 : i32
    %c0_i32_700 = arith.constant 0 : i32
    %688 = tpu.memref_slice %arg7[%c5_i32_695, %c2_i32_699, %c0_i32_700] : memref<8x4x128xf32, #tpu.memory_space<vmem>> -> memref<1x1x128xf32, #tpu.memory_space<vmem>>
    %689 = tpu.memref_squeeze %688 : memref<1x1x128xf32, #tpu.memory_space<vmem>> -> memref<1x128xf32, #tpu.memory_space<vmem>>
    %690 = tpu.memref_slice %arg9[%c5_i32_696, %c2_i32_697] : memref<8x4x!tpu.dma_semaphore, #tpu.memory_space<semaphore_mem>> -> memref<1x1x!tpu.dma_semaphore, #tpu.memory_space<semaphore_mem>>
    %691 = tpu.memref_squeeze %690 : memref<1x1x!tpu.dma_semaphore, #tpu.memory_space<semaphore_mem>> -> memref<!tpu.dma_semaphore, #tpu.memory_space<semaphore_mem>>
    tpu.wait_dma2 semaphore(%691 : memref<!tpu.dma_semaphore, #tpu.memory_space<semaphore_mem>>) src(%687 : memref<1x128xf32, #tpu.memory_space<any>>) dst(%689 : memref<1x128xf32, #tpu.memory_space<vmem>>)
    %c5_i32_701 = arith.constant 5 : i32
    %c5_i32_702 = arith.constant 5 : i32
    %c3_i32_703 = arith.constant 3 : i32
    %c0_i32_704 = arith.constant 0 : i32
    %692 = tpu.memref_slice %arg4[%187, %c0_i32_704] : memref<65x128xf32, #tpu.memory_space<any>> -> memref<1x128xf32, #tpu.memory_space<any>>
    %c3_i32_705 = arith.constant 3 : i32
    %c0_i32_706 = arith.constant 0 : i32
    %693 = tpu.memref_slice %arg7[%c5_i32_701, %c3_i32_705, %c0_i32_706] : memref<8x4x128xf32, #tpu.memory_space<vmem>> -> memref<1x1x128xf32, #tpu.memory_space<vmem>>
    %694 = tpu.memref_squeeze %693 : memref<1x1x128xf32, #tpu.memory_space<vmem>> -> memref<1x128xf32, #tpu.memory_space<vmem>>
    %695 = tpu.memref_slice %arg9[%c5_i32_702, %c3_i32_703] : memref<8x4x!tpu.dma_semaphore, #tpu.memory_space<semaphore_mem>> -> memref<1x1x!tpu.dma_semaphore, #tpu.memory_space<semaphore_mem>>
    %696 = tpu.memref_squeeze %695 : memref<1x1x!tpu.dma_semaphore, #tpu.memory_space<semaphore_mem>> -> memref<!tpu.dma_semaphore, #tpu.memory_space<semaphore_mem>>
    tpu.wait_dma2 semaphore(%696 : memref<!tpu.dma_semaphore, #tpu.memory_space<semaphore_mem>>) src(%692 : memref<1x128xf32, #tpu.memory_space<any>>) dst(%694 : memref<1x128xf32, #tpu.memory_space<vmem>>)
    %c6_i32_707 = arith.constant 6 : i32
    %c6_i32_708 = arith.constant 6 : i32
    %c0_i32_709 = arith.constant 0 : i32
    %c0_i32_710 = arith.constant 0 : i32
    %697 = tpu.memref_slice %arg4[%195, %c0_i32_710] : memref<65x128xf32, #tpu.memory_space<any>> -> memref<1x128xf32, #tpu.memory_space<any>>
    %c0_i32_711 = arith.constant 0 : i32
    %c0_i32_712 = arith.constant 0 : i32
    %698 = tpu.memref_slice %arg7[%c6_i32_707, %c0_i32_711, %c0_i32_712] : memref<8x4x128xf32, #tpu.memory_space<vmem>> -> memref<1x1x128xf32, #tpu.memory_space<vmem>>
    %699 = tpu.memref_squeeze %698 : memref<1x1x128xf32, #tpu.memory_space<vmem>> -> memref<1x128xf32, #tpu.memory_space<vmem>>
    %700 = tpu.memref_slice %arg9[%c6_i32_708, %c0_i32_709] : memref<8x4x!tpu.dma_semaphore, #tpu.memory_space<semaphore_mem>> -> memref<1x1x!tpu.dma_semaphore, #tpu.memory_space<semaphore_mem>>
    %701 = tpu.memref_squeeze %700 : memref<1x1x!tpu.dma_semaphore, #tpu.memory_space<semaphore_mem>> -> memref<!tpu.dma_semaphore, #tpu.memory_space<semaphore_mem>>
    tpu.wait_dma2 semaphore(%701 : memref<!tpu.dma_semaphore, #tpu.memory_space<semaphore_mem>>) src(%697 : memref<1x128xf32, #tpu.memory_space<any>>) dst(%699 : memref<1x128xf32, #tpu.memory_space<vmem>>)
    %c6_i32_713 = arith.constant 6 : i32
    %c6_i32_714 = arith.constant 6 : i32
    %c1_i32_715 = arith.constant 1 : i32
    %c0_i32_716 = arith.constant 0 : i32
    %702 = tpu.memref_slice %arg4[%203, %c0_i32_716] : memref<65x128xf32, #tpu.memory_space<any>> -> memref<1x128xf32, #tpu.memory_space<any>>
    %c1_i32_717 = arith.constant 1 : i32
    %c0_i32_718 = arith.constant 0 : i32
    %703 = tpu.memref_slice %arg7[%c6_i32_713, %c1_i32_717, %c0_i32_718] : memref<8x4x128xf32, #tpu.memory_space<vmem>> -> memref<1x1x128xf32, #tpu.memory_space<vmem>>
    %704 = tpu.memref_squeeze %703 : memref<1x1x128xf32, #tpu.memory_space<vmem>> -> memref<1x128xf32, #tpu.memory_space<vmem>>
    %705 = tpu.memref_slice %arg9[%c6_i32_714, %c1_i32_715] : memref<8x4x!tpu.dma_semaphore, #tpu.memory_space<semaphore_mem>> -> memref<1x1x!tpu.dma_semaphore, #tpu.memory_space<semaphore_mem>>
    %706 = tpu.memref_squeeze %705 : memref<1x1x!tpu.dma_semaphore, #tpu.memory_space<semaphore_mem>> -> memref<!tpu.dma_semaphore, #tpu.memory_space<semaphore_mem>>
    tpu.wait_dma2 semaphore(%706 : memref<!tpu.dma_semaphore, #tpu.memory_space<semaphore_mem>>) src(%702 : memref<1x128xf32, #tpu.memory_space<any>>) dst(%704 : memref<1x128xf32, #tpu.memory_space<vmem>>)
    %c6_i32_719 = arith.constant 6 : i32
    %c6_i32_720 = arith.constant 6 : i32
    %c2_i32_721 = arith.constant 2 : i32
    %c0_i32_722 = arith.constant 0 : i32
    %707 = tpu.memref_slice %arg4[%211, %c0_i32_722] : memref<65x128xf32, #tpu.memory_space<any>> -> memref<1x128xf32, #tpu.memory_space<any>>
    %c2_i32_723 = arith.constant 2 : i32
    %c0_i32_724 = arith.constant 0 : i32
    %708 = tpu.memref_slice %arg7[%c6_i32_719, %c2_i32_723, %c0_i32_724] : memref<8x4x128xf32, #tpu.memory_space<vmem>> -> memref<1x1x128xf32, #tpu.memory_space<vmem>>
    %709 = tpu.memref_squeeze %708 : memref<1x1x128xf32, #tpu.memory_space<vmem>> -> memref<1x128xf32, #tpu.memory_space<vmem>>
    %710 = tpu.memref_slice %arg9[%c6_i32_720, %c2_i32_721] : memref<8x4x!tpu.dma_semaphore, #tpu.memory_space<semaphore_mem>> -> memref<1x1x!tpu.dma_semaphore, #tpu.memory_space<semaphore_mem>>
    %711 = tpu.memref_squeeze %710 : memref<1x1x!tpu.dma_semaphore, #tpu.memory_space<semaphore_mem>> -> memref<!tpu.dma_semaphore, #tpu.memory_space<semaphore_mem>>
    tpu.wait_dma2 semaphore(%711 : memref<!tpu.dma_semaphore, #tpu.memory_space<semaphore_mem>>) src(%707 : memref<1x128xf32, #tpu.memory_space<any>>) dst(%709 : memref<1x128xf32, #tpu.memory_space<vmem>>)
    %c6_i32_725 = arith.constant 6 : i32
    %c6_i32_726 = arith.constant 6 : i32
    %c3_i32_727 = arith.constant 3 : i32
    %c0_i32_728 = arith.constant 0 : i32
    %712 = tpu.memref_slice %arg4[%219, %c0_i32_728] : memref<65x128xf32, #tpu.memory_space<any>> -> memref<1x128xf32, #tpu.memory_space<any>>
    %c3_i32_729 = arith.constant 3 : i32
    %c0_i32_730 = arith.constant 0 : i32
    %713 = tpu.memref_slice %arg7[%c6_i32_725, %c3_i32_729, %c0_i32_730] : memref<8x4x128xf32, #tpu.memory_space<vmem>> -> memref<1x1x128xf32, #tpu.memory_space<vmem>>
    %714 = tpu.memref_squeeze %713 : memref<1x1x128xf32, #tpu.memory_space<vmem>> -> memref<1x128xf32, #tpu.memory_space<vmem>>
    %715 = tpu.memref_slice %arg9[%c6_i32_726, %c3_i32_727] : memref<8x4x!tpu.dma_semaphore, #tpu.memory_space<semaphore_mem>> -> memref<1x1x!tpu.dma_semaphore, #tpu.memory_space<semaphore_mem>>
    %716 = tpu.memref_squeeze %715 : memref<1x1x!tpu.dma_semaphore, #tpu.memory_space<semaphore_mem>> -> memref<!tpu.dma_semaphore, #tpu.memory_space<semaphore_mem>>
    tpu.wait_dma2 semaphore(%716 : memref<!tpu.dma_semaphore, #tpu.memory_space<semaphore_mem>>) src(%712 : memref<1x128xf32, #tpu.memory_space<any>>) dst(%714 : memref<1x128xf32, #tpu.memory_space<vmem>>)
    %c7_i32_731 = arith.constant 7 : i32
    %c7_i32_732 = arith.constant 7 : i32
    %c0_i32_733 = arith.constant 0 : i32
    %c0_i32_734 = arith.constant 0 : i32
    %717 = tpu.memref_slice %arg4[%227, %c0_i32_734] : memref<65x128xf32, #tpu.memory_space<any>> -> memref<1x128xf32, #tpu.memory_space<any>>
    %c0_i32_735 = arith.constant 0 : i32
    %c0_i32_736 = arith.constant 0 : i32
    %718 = tpu.memref_slice %arg7[%c7_i32_731, %c0_i32_735, %c0_i32_736] : memref<8x4x128xf32, #tpu.memory_space<vmem>> -> memref<1x1x128xf32, #tpu.memory_space<vmem>>
    %719 = tpu.memref_squeeze %718 : memref<1x1x128xf32, #tpu.memory_space<vmem>> -> memref<1x128xf32, #tpu.memory_space<vmem>>
    %720 = tpu.memref_slice %arg9[%c7_i32_732, %c0_i32_733] : memref<8x4x!tpu.dma_semaphore, #tpu.memory_space<semaphore_mem>> -> memref<1x1x!tpu.dma_semaphore, #tpu.memory_space<semaphore_mem>>
    %721 = tpu.memref_squeeze %720 : memref<1x1x!tpu.dma_semaphore, #tpu.memory_space<semaphore_mem>> -> memref<!tpu.dma_semaphore, #tpu.memory_space<semaphore_mem>>
    tpu.wait_dma2 semaphore(%721 : memref<!tpu.dma_semaphore, #tpu.memory_space<semaphore_mem>>) src(%717 : memref<1x128xf32, #tpu.memory_space<any>>) dst(%719 : memref<1x128xf32, #tpu.memory_space<vmem>>)
    %c7_i32_737 = arith.constant 7 : i32
    %c7_i32_738 = arith.constant 7 : i32
    %c1_i32_739 = arith.constant 1 : i32
    %c0_i32_740 = arith.constant 0 : i32
    %722 = tpu.memref_slice %arg4[%235, %c0_i32_740] : memref<65x128xf32, #tpu.memory_space<any>> -> memref<1x128xf32, #tpu.memory_space<any>>
    %c1_i32_741 = arith.constant 1 : i32
    %c0_i32_742 = arith.constant 0 : i32
    %723 = tpu.memref_slice %arg7[%c7_i32_737, %c1_i32_741, %c0_i32_742] : memref<8x4x128xf32, #tpu.memory_space<vmem>> -> memref<1x1x128xf32, #tpu.memory_space<vmem>>
    %724 = tpu.memref_squeeze %723 : memref<1x1x128xf32, #tpu.memory_space<vmem>> -> memref<1x128xf32, #tpu.memory_space<vmem>>
    %725 = tpu.memref_slice %arg9[%c7_i32_738, %c1_i32_739] : memref<8x4x!tpu.dma_semaphore, #tpu.memory_space<semaphore_mem>> -> memref<1x1x!tpu.dma_semaphore, #tpu.memory_space<semaphore_mem>>
    %726 = tpu.memref_squeeze %725 : memref<1x1x!tpu.dma_semaphore, #tpu.memory_space<semaphore_mem>> -> memref<!tpu.dma_semaphore, #tpu.memory_space<semaphore_mem>>
    tpu.wait_dma2 semaphore(%726 : memref<!tpu.dma_semaphore, #tpu.memory_space<semaphore_mem>>) src(%722 : memref<1x128xf32, #tpu.memory_space<any>>) dst(%724 : memref<1x128xf32, #tpu.memory_space<vmem>>)
    %c7_i32_743 = arith.constant 7 : i32
    %c7_i32_744 = arith.constant 7 : i32
    %c2_i32_745 = arith.constant 2 : i32
    %c0_i32_746 = arith.constant 0 : i32
    %727 = tpu.memref_slice %arg4[%243, %c0_i32_746] : memref<65x128xf32, #tpu.memory_space<any>> -> memref<1x128xf32, #tpu.memory_space<any>>
    %c2_i32_747 = arith.constant 2 : i32
    %c0_i32_748 = arith.constant 0 : i32
    %728 = tpu.memref_slice %arg7[%c7_i32_743, %c2_i32_747, %c0_i32_748] : memref<8x4x128xf32, #tpu.memory_space<vmem>> -> memref<1x1x128xf32, #tpu.memory_space<vmem>>
    %729 = tpu.memref_squeeze %728 : memref<1x1x128xf32, #tpu.memory_space<vmem>> -> memref<1x128xf32, #tpu.memory_space<vmem>>
    %730 = tpu.memref_slice %arg9[%c7_i32_744, %c2_i32_745] : memref<8x4x!tpu.dma_semaphore, #tpu.memory_space<semaphore_mem>> -> memref<1x1x!tpu.dma_semaphore, #tpu.memory_space<semaphore_mem>>
    %731 = tpu.memref_squeeze %730 : memref<1x1x!tpu.dma_semaphore, #tpu.memory_space<semaphore_mem>> -> memref<!tpu.dma_semaphore, #tpu.memory_space<semaphore_mem>>
    tpu.wait_dma2 semaphore(%731 : memref<!tpu.dma_semaphore, #tpu.memory_space<semaphore_mem>>) src(%727 : memref<1x128xf32, #tpu.memory_space<any>>) dst(%729 : memref<1x128xf32, #tpu.memory_space<vmem>>)
    %c7_i32_749 = arith.constant 7 : i32
    %c7_i32_750 = arith.constant 7 : i32
    %c3_i32_751 = arith.constant 3 : i32
    %c0_i32_752 = arith.constant 0 : i32
    %732 = tpu.memref_slice %arg4[%251, %c0_i32_752] : memref<65x128xf32, #tpu.memory_space<any>> -> memref<1x128xf32, #tpu.memory_space<any>>
    %c3_i32_753 = arith.constant 3 : i32
    %c0_i32_754 = arith.constant 0 : i32
    %733 = tpu.memref_slice %arg7[%c7_i32_749, %c3_i32_753, %c0_i32_754] : memref<8x4x128xf32, #tpu.memory_space<vmem>> -> memref<1x1x128xf32, #tpu.memory_space<vmem>>
    %734 = tpu.memref_squeeze %733 : memref<1x1x128xf32, #tpu.memory_space<vmem>> -> memref<1x128xf32, #tpu.memory_space<vmem>>
    %735 = tpu.memref_slice %arg9[%c7_i32_750, %c3_i32_751] : memref<8x4x!tpu.dma_semaphore, #tpu.memory_space<semaphore_mem>> -> memref<1x1x!tpu.dma_semaphore, #tpu.memory_space<semaphore_mem>>
    %736 = tpu.memref_squeeze %735 : memref<1x1x!tpu.dma_semaphore, #tpu.memory_space<semaphore_mem>> -> memref<!tpu.dma_semaphore, #tpu.memory_space<semaphore_mem>>
    tpu.wait_dma2 semaphore(%736 : memref<!tpu.dma_semaphore, #tpu.memory_space<semaphore_mem>>) src(%732 : memref<1x128xf32, #tpu.memory_space<any>>) dst(%734 : memref<1x128xf32, #tpu.memory_space<vmem>>)
    %c0_i32_755 = arith.constant 0 : i32
    %c0_i32_756 = arith.constant 0 : i32
    %c0_i32_757 = arith.constant 0 : i32
    %c0_i32_758 = arith.constant 0 : i32
    %737 = tpu.memref_slice %arg5[%259, %c0_i32_758] : memref<16x128xf32, #tpu.memory_space<any>> -> memref<1x128xf32, #tpu.memory_space<any>>
    %c0_i32_759 = arith.constant 0 : i32
    %c0_i32_760 = arith.constant 0 : i32
    %738 = tpu.memref_slice %arg8[%c0_i32_755, %c0_i32_759, %c0_i32_760] : memref<8x5x128xf32, #tpu.memory_space<vmem>> -> memref<1x1x128xf32, #tpu.memory_space<vmem>>
    %739 = tpu.memref_squeeze %738 : memref<1x1x128xf32, #tpu.memory_space<vmem>> -> memref<1x128xf32, #tpu.memory_space<vmem>>
    %740 = tpu.memref_slice %arg10[%c0_i32_756, %c0_i32_757] : memref<8x5x!tpu.dma_semaphore, #tpu.memory_space<semaphore_mem>> -> memref<1x1x!tpu.dma_semaphore, #tpu.memory_space<semaphore_mem>>
    %741 = tpu.memref_squeeze %740 : memref<1x1x!tpu.dma_semaphore, #tpu.memory_space<semaphore_mem>> -> memref<!tpu.dma_semaphore, #tpu.memory_space<semaphore_mem>>
    tpu.wait_dma2 semaphore(%741 : memref<!tpu.dma_semaphore, #tpu.memory_space<semaphore_mem>>) src(%737 : memref<1x128xf32, #tpu.memory_space<any>>) dst(%739 : memref<1x128xf32, #tpu.memory_space<vmem>>)
    %c0_i32_761 = arith.constant 0 : i32
    %c0_i32_762 = arith.constant 0 : i32
    %c1_i32_763 = arith.constant 1 : i32
    %c0_i32_764 = arith.constant 0 : i32
    %742 = tpu.memref_slice %arg5[%267, %c0_i32_764] : memref<16x128xf32, #tpu.memory_space<any>> -> memref<1x128xf32, #tpu.memory_space<any>>
    %c1_i32_765 = arith.constant 1 : i32
    %c0_i32_766 = arith.constant 0 : i32
    %743 = tpu.memref_slice %arg8[%c0_i32_761, %c1_i32_765, %c0_i32_766] : memref<8x5x128xf32, #tpu.memory_space<vmem>> -> memref<1x1x128xf32, #tpu.memory_space<vmem>>
    %744 = tpu.memref_squeeze %743 : memref<1x1x128xf32, #tpu.memory_space<vmem>> -> memref<1x128xf32, #tpu.memory_space<vmem>>
    %745 = tpu.memref_slice %arg10[%c0_i32_762, %c1_i32_763] : memref<8x5x!tpu.dma_semaphore, #tpu.memory_space<semaphore_mem>> -> memref<1x1x!tpu.dma_semaphore, #tpu.memory_space<semaphore_mem>>
    %746 = tpu.memref_squeeze %745 : memref<1x1x!tpu.dma_semaphore, #tpu.memory_space<semaphore_mem>> -> memref<!tpu.dma_semaphore, #tpu.memory_space<semaphore_mem>>
    tpu.wait_dma2 semaphore(%746 : memref<!tpu.dma_semaphore, #tpu.memory_space<semaphore_mem>>) src(%742 : memref<1x128xf32, #tpu.memory_space<any>>) dst(%744 : memref<1x128xf32, #tpu.memory_space<vmem>>)
    %c0_i32_767 = arith.constant 0 : i32
    %c0_i32_768 = arith.constant 0 : i32
    %c2_i32_769 = arith.constant 2 : i32
    %c0_i32_770 = arith.constant 0 : i32
    %747 = tpu.memref_slice %arg5[%275, %c0_i32_770] : memref<16x128xf32, #tpu.memory_space<any>> -> memref<1x128xf32, #tpu.memory_space<any>>
    %c2_i32_771 = arith.constant 2 : i32
    %c0_i32_772 = arith.constant 0 : i32
    %748 = tpu.memref_slice %arg8[%c0_i32_767, %c2_i32_771, %c0_i32_772] : memref<8x5x128xf32, #tpu.memory_space<vmem>> -> memref<1x1x128xf32, #tpu.memory_space<vmem>>
    %749 = tpu.memref_squeeze %748 : memref<1x1x128xf32, #tpu.memory_space<vmem>> -> memref<1x128xf32, #tpu.memory_space<vmem>>
    %750 = tpu.memref_slice %arg10[%c0_i32_768, %c2_i32_769] : memref<8x5x!tpu.dma_semaphore, #tpu.memory_space<semaphore_mem>> -> memref<1x1x!tpu.dma_semaphore, #tpu.memory_space<semaphore_mem>>
    %751 = tpu.memref_squeeze %750 : memref<1x1x!tpu.dma_semaphore, #tpu.memory_space<semaphore_mem>> -> memref<!tpu.dma_semaphore, #tpu.memory_space<semaphore_mem>>
    tpu.wait_dma2 semaphore(%751 : memref<!tpu.dma_semaphore, #tpu.memory_space<semaphore_mem>>) src(%747 : memref<1x128xf32, #tpu.memory_space<any>>) dst(%749 : memref<1x128xf32, #tpu.memory_space<vmem>>)
    %c0_i32_773 = arith.constant 0 : i32
    %c0_i32_774 = arith.constant 0 : i32
    %c3_i32_775 = arith.constant 3 : i32
    %c0_i32_776 = arith.constant 0 : i32
    %752 = tpu.memref_slice %arg5[%283, %c0_i32_776] : memref<16x128xf32, #tpu.memory_space<any>> -> memref<1x128xf32, #tpu.memory_space<any>>
    %c3_i32_777 = arith.constant 3 : i32
    %c0_i32_778 = arith.constant 0 : i32
    %753 = tpu.memref_slice %arg8[%c0_i32_773, %c3_i32_777, %c0_i32_778] : memref<8x5x128xf32, #tpu.memory_space<vmem>> -> memref<1x1x128xf32, #tpu.memory_space<vmem>>
    %754 = tpu.memref_squeeze %753 : memref<1x1x128xf32, #tpu.memory_space<vmem>> -> memref<1x128xf32, #tpu.memory_space<vmem>>
    %755 = tpu.memref_slice %arg10[%c0_i32_774, %c3_i32_775] : memref<8x5x!tpu.dma_semaphore, #tpu.memory_space<semaphore_mem>> -> memref<1x1x!tpu.dma_semaphore, #tpu.memory_space<semaphore_mem>>
    %756 = tpu.memref_squeeze %755 : memref<1x1x!tpu.dma_semaphore, #tpu.memory_space<semaphore_mem>> -> memref<!tpu.dma_semaphore, #tpu.memory_space<semaphore_mem>>
    tpu.wait_dma2 semaphore(%756 : memref<!tpu.dma_semaphore, #tpu.memory_space<semaphore_mem>>) src(%752 : memref<1x128xf32, #tpu.memory_space<any>>) dst(%754 : memref<1x128xf32, #tpu.memory_space<vmem>>)
    %c0_i32_779 = arith.constant 0 : i32
    %c0_i32_780 = arith.constant 0 : i32
    %c4_i32_781 = arith.constant 4 : i32
    %c0_i32_782 = arith.constant 0 : i32
    %757 = tpu.memref_slice %arg5[%291, %c0_i32_782] : memref<16x128xf32, #tpu.memory_space<any>> -> memref<1x128xf32, #tpu.memory_space<any>>
    %c4_i32_783 = arith.constant 4 : i32
    %c0_i32_784 = arith.constant 0 : i32
    %758 = tpu.memref_slice %arg8[%c0_i32_779, %c4_i32_783, %c0_i32_784] : memref<8x5x128xf32, #tpu.memory_space<vmem>> -> memref<1x1x128xf32, #tpu.memory_space<vmem>>
    %759 = tpu.memref_squeeze %758 : memref<1x1x128xf32, #tpu.memory_space<vmem>> -> memref<1x128xf32, #tpu.memory_space<vmem>>
    %760 = tpu.memref_slice %arg10[%c0_i32_780, %c4_i32_781] : memref<8x5x!tpu.dma_semaphore, #tpu.memory_space<semaphore_mem>> -> memref<1x1x!tpu.dma_semaphore, #tpu.memory_space<semaphore_mem>>
    %761 = tpu.memref_squeeze %760 : memref<1x1x!tpu.dma_semaphore, #tpu.memory_space<semaphore_mem>> -> memref<!tpu.dma_semaphore, #tpu.memory_space<semaphore_mem>>
    tpu.wait_dma2 semaphore(%761 : memref<!tpu.dma_semaphore, #tpu.memory_space<semaphore_mem>>) src(%757 : memref<1x128xf32, #tpu.memory_space<any>>) dst(%759 : memref<1x128xf32, #tpu.memory_space<vmem>>)
    %c1_i32_785 = arith.constant 1 : i32
    %c1_i32_786 = arith.constant 1 : i32
    %c0_i32_787 = arith.constant 0 : i32
    %c0_i32_788 = arith.constant 0 : i32
    %762 = tpu.memref_slice %arg5[%299, %c0_i32_788] : memref<16x128xf32, #tpu.memory_space<any>> -> memref<1x128xf32, #tpu.memory_space<any>>
    %c0_i32_789 = arith.constant 0 : i32
    %c0_i32_790 = arith.constant 0 : i32
    %763 = tpu.memref_slice %arg8[%c1_i32_785, %c0_i32_789, %c0_i32_790] : memref<8x5x128xf32, #tpu.memory_space<vmem>> -> memref<1x1x128xf32, #tpu.memory_space<vmem>>
    %764 = tpu.memref_squeeze %763 : memref<1x1x128xf32, #tpu.memory_space<vmem>> -> memref<1x128xf32, #tpu.memory_space<vmem>>
    %765 = tpu.memref_slice %arg10[%c1_i32_786, %c0_i32_787] : memref<8x5x!tpu.dma_semaphore, #tpu.memory_space<semaphore_mem>> -> memref<1x1x!tpu.dma_semaphore, #tpu.memory_space<semaphore_mem>>
    %766 = tpu.memref_squeeze %765 : memref<1x1x!tpu.dma_semaphore, #tpu.memory_space<semaphore_mem>> -> memref<!tpu.dma_semaphore, #tpu.memory_space<semaphore_mem>>
    tpu.wait_dma2 semaphore(%766 : memref<!tpu.dma_semaphore, #tpu.memory_space<semaphore_mem>>) src(%762 : memref<1x128xf32, #tpu.memory_space<any>>) dst(%764 : memref<1x128xf32, #tpu.memory_space<vmem>>)
    %c1_i32_791 = arith.constant 1 : i32
    %c1_i32_792 = arith.constant 1 : i32
    %c1_i32_793 = arith.constant 1 : i32
    %c0_i32_794 = arith.constant 0 : i32
    %767 = tpu.memref_slice %arg5[%307, %c0_i32_794] : memref<16x128xf32, #tpu.memory_space<any>> -> memref<1x128xf32, #tpu.memory_space<any>>
    %c1_i32_795 = arith.constant 1 : i32
    %c0_i32_796 = arith.constant 0 : i32
    %768 = tpu.memref_slice %arg8[%c1_i32_791, %c1_i32_795, %c0_i32_796] : memref<8x5x128xf32, #tpu.memory_space<vmem>> -> memref<1x1x128xf32, #tpu.memory_space<vmem>>
    %769 = tpu.memref_squeeze %768 : memref<1x1x128xf32, #tpu.memory_space<vmem>> -> memref<1x128xf32, #tpu.memory_space<vmem>>
    %770 = tpu.memref_slice %arg10[%c1_i32_792, %c1_i32_793] : memref<8x5x!tpu.dma_semaphore, #tpu.memory_space<semaphore_mem>> -> memref<1x1x!tpu.dma_semaphore, #tpu.memory_space<semaphore_mem>>
    %771 = tpu.memref_squeeze %770 : memref<1x1x!tpu.dma_semaphore, #tpu.memory_space<semaphore_mem>> -> memref<!tpu.dma_semaphore, #tpu.memory_space<semaphore_mem>>
    tpu.wait_dma2 semaphore(%771 : memref<!tpu.dma_semaphore, #tpu.memory_space<semaphore_mem>>) src(%767 : memref<1x128xf32, #tpu.memory_space<any>>) dst(%769 : memref<1x128xf32, #tpu.memory_space<vmem>>)
    %c1_i32_797 = arith.constant 1 : i32
    %c1_i32_798 = arith.constant 1 : i32
    %c2_i32_799 = arith.constant 2 : i32
    %c0_i32_800 = arith.constant 0 : i32
    %772 = tpu.memref_slice %arg5[%315, %c0_i32_800] : memref<16x128xf32, #tpu.memory_space<any>> -> memref<1x128xf32, #tpu.memory_space<any>>
    %c2_i32_801 = arith.constant 2 : i32
    %c0_i32_802 = arith.constant 0 : i32
    %773 = tpu.memref_slice %arg8[%c1_i32_797, %c2_i32_801, %c0_i32_802] : memref<8x5x128xf32, #tpu.memory_space<vmem>> -> memref<1x1x128xf32, #tpu.memory_space<vmem>>
    %774 = tpu.memref_squeeze %773 : memref<1x1x128xf32, #tpu.memory_space<vmem>> -> memref<1x128xf32, #tpu.memory_space<vmem>>
    %775 = tpu.memref_slice %arg10[%c1_i32_798, %c2_i32_799] : memref<8x5x!tpu.dma_semaphore, #tpu.memory_space<semaphore_mem>> -> memref<1x1x!tpu.dma_semaphore, #tpu.memory_space<semaphore_mem>>
    %776 = tpu.memref_squeeze %775 : memref<1x1x!tpu.dma_semaphore, #tpu.memory_space<semaphore_mem>> -> memref<!tpu.dma_semaphore, #tpu.memory_space<semaphore_mem>>
    tpu.wait_dma2 semaphore(%776 : memref<!tpu.dma_semaphore, #tpu.memory_space<semaphore_mem>>) src(%772 : memref<1x128xf32, #tpu.memory_space<any>>) dst(%774 : memref<1x128xf32, #tpu.memory_space<vmem>>)
    %c1_i32_803 = arith.constant 1 : i32
    %c1_i32_804 = arith.constant 1 : i32
    %c3_i32_805 = arith.constant 3 : i32
    %c0_i32_806 = arith.constant 0 : i32
    %777 = tpu.memref_slice %arg5[%323, %c0_i32_806] : memref<16x128xf32, #tpu.memory_space<any>> -> memref<1x128xf32, #tpu.memory_space<any>>
    %c3_i32_807 = arith.constant 3 : i32
    %c0_i32_808 = arith.constant 0 : i32
    %778 = tpu.memref_slice %arg8[%c1_i32_803, %c3_i32_807, %c0_i32_808] : memref<8x5x128xf32, #tpu.memory_space<vmem>> -> memref<1x1x128xf32, #tpu.memory_space<vmem>>
    %779 = tpu.memref_squeeze %778 : memref<1x1x128xf32, #tpu.memory_space<vmem>> -> memref<1x128xf32, #tpu.memory_space<vmem>>
    %780 = tpu.memref_slice %arg10[%c1_i32_804, %c3_i32_805] : memref<8x5x!tpu.dma_semaphore, #tpu.memory_space<semaphore_mem>> -> memref<1x1x!tpu.dma_semaphore, #tpu.memory_space<semaphore_mem>>
    %781 = tpu.memref_squeeze %780 : memref<1x1x!tpu.dma_semaphore, #tpu.memory_space<semaphore_mem>> -> memref<!tpu.dma_semaphore, #tpu.memory_space<semaphore_mem>>
    tpu.wait_dma2 semaphore(%781 : memref<!tpu.dma_semaphore, #tpu.memory_space<semaphore_mem>>) src(%777 : memref<1x128xf32, #tpu.memory_space<any>>) dst(%779 : memref<1x128xf32, #tpu.memory_space<vmem>>)
    %c1_i32_809 = arith.constant 1 : i32
    %c1_i32_810 = arith.constant 1 : i32
    %c4_i32_811 = arith.constant 4 : i32
    %c0_i32_812 = arith.constant 0 : i32
    %782 = tpu.memref_slice %arg5[%331, %c0_i32_812] : memref<16x128xf32, #tpu.memory_space<any>> -> memref<1x128xf32, #tpu.memory_space<any>>
    %c4_i32_813 = arith.constant 4 : i32
    %c0_i32_814 = arith.constant 0 : i32
    %783 = tpu.memref_slice %arg8[%c1_i32_809, %c4_i32_813, %c0_i32_814] : memref<8x5x128xf32, #tpu.memory_space<vmem>> -> memref<1x1x128xf32, #tpu.memory_space<vmem>>
    %784 = tpu.memref_squeeze %783 : memref<1x1x128xf32, #tpu.memory_space<vmem>> -> memref<1x128xf32, #tpu.memory_space<vmem>>
    %785 = tpu.memref_slice %arg10[%c1_i32_810, %c4_i32_811] : memref<8x5x!tpu.dma_semaphore, #tpu.memory_space<semaphore_mem>> -> memref<1x1x!tpu.dma_semaphore, #tpu.memory_space<semaphore_mem>>
    %786 = tpu.memref_squeeze %785 : memref<1x1x!tpu.dma_semaphore, #tpu.memory_space<semaphore_mem>> -> memref<!tpu.dma_semaphore, #tpu.memory_space<semaphore_mem>>
    tpu.wait_dma2 semaphore(%786 : memref<!tpu.dma_semaphore, #tpu.memory_space<semaphore_mem>>) src(%782 : memref<1x128xf32, #tpu.memory_space<any>>) dst(%784 : memref<1x128xf32, #tpu.memory_space<vmem>>)
    %c2_i32_815 = arith.constant 2 : i32
    %c2_i32_816 = arith.constant 2 : i32
    %c0_i32_817 = arith.constant 0 : i32
    %c0_i32_818 = arith.constant 0 : i32
    %787 = tpu.memref_slice %arg5[%339, %c0_i32_818] : memref<16x128xf32, #tpu.memory_space<any>> -> memref<1x128xf32, #tpu.memory_space<any>>
    %c0_i32_819 = arith.constant 0 : i32
    %c0_i32_820 = arith.constant 0 : i32
    %788 = tpu.memref_slice %arg8[%c2_i32_815, %c0_i32_819, %c0_i32_820] : memref<8x5x128xf32, #tpu.memory_space<vmem>> -> memref<1x1x128xf32, #tpu.memory_space<vmem>>
    %789 = tpu.memref_squeeze %788 : memref<1x1x128xf32, #tpu.memory_space<vmem>> -> memref<1x128xf32, #tpu.memory_space<vmem>>
    %790 = tpu.memref_slice %arg10[%c2_i32_816, %c0_i32_817] : memref<8x5x!tpu.dma_semaphore, #tpu.memory_space<semaphore_mem>> -> memref<1x1x!tpu.dma_semaphore, #tpu.memory_space<semaphore_mem>>
    %791 = tpu.memref_squeeze %790 : memref<1x1x!tpu.dma_semaphore, #tpu.memory_space<semaphore_mem>> -> memref<!tpu.dma_semaphore, #tpu.memory_space<semaphore_mem>>
    tpu.wait_dma2 semaphore(%791 : memref<!tpu.dma_semaphore, #tpu.memory_space<semaphore_mem>>) src(%787 : memref<1x128xf32, #tpu.memory_space<any>>) dst(%789 : memref<1x128xf32, #tpu.memory_space<vmem>>)
    %c2_i32_821 = arith.constant 2 : i32
    %c2_i32_822 = arith.constant 2 : i32
    %c1_i32_823 = arith.constant 1 : i32
    %c0_i32_824 = arith.constant 0 : i32
    %792 = tpu.memref_slice %arg5[%347, %c0_i32_824] : memref<16x128xf32, #tpu.memory_space<any>> -> memref<1x128xf32, #tpu.memory_space<any>>
    %c1_i32_825 = arith.constant 1 : i32
    %c0_i32_826 = arith.constant 0 : i32
    %793 = tpu.memref_slice %arg8[%c2_i32_821, %c1_i32_825, %c0_i32_826] : memref<8x5x128xf32, #tpu.memory_space<vmem>> -> memref<1x1x128xf32, #tpu.memory_space<vmem>>
    %794 = tpu.memref_squeeze %793 : memref<1x1x128xf32, #tpu.memory_space<vmem>> -> memref<1x128xf32, #tpu.memory_space<vmem>>
    %795 = tpu.memref_slice %arg10[%c2_i32_822, %c1_i32_823] : memref<8x5x!tpu.dma_semaphore, #tpu.memory_space<semaphore_mem>> -> memref<1x1x!tpu.dma_semaphore, #tpu.memory_space<semaphore_mem>>
    %796 = tpu.memref_squeeze %795 : memref<1x1x!tpu.dma_semaphore, #tpu.memory_space<semaphore_mem>> -> memref<!tpu.dma_semaphore, #tpu.memory_space<semaphore_mem>>
    tpu.wait_dma2 semaphore(%796 : memref<!tpu.dma_semaphore, #tpu.memory_space<semaphore_mem>>) src(%792 : memref<1x128xf32, #tpu.memory_space<any>>) dst(%794 : memref<1x128xf32, #tpu.memory_space<vmem>>)
    %c2_i32_827 = arith.constant 2 : i32
    %c2_i32_828 = arith.constant 2 : i32
    %c2_i32_829 = arith.constant 2 : i32
    %c0_i32_830 = arith.constant 0 : i32
    %797 = tpu.memref_slice %arg5[%355, %c0_i32_830] : memref<16x128xf32, #tpu.memory_space<any>> -> memref<1x128xf32, #tpu.memory_space<any>>
    %c2_i32_831 = arith.constant 2 : i32
    %c0_i32_832 = arith.constant 0 : i32
    %798 = tpu.memref_slice %arg8[%c2_i32_827, %c2_i32_831, %c0_i32_832] : memref<8x5x128xf32, #tpu.memory_space<vmem>> -> memref<1x1x128xf32, #tpu.memory_space<vmem>>
    %799 = tpu.memref_squeeze %798 : memref<1x1x128xf32, #tpu.memory_space<vmem>> -> memref<1x128xf32, #tpu.memory_space<vmem>>
    %800 = tpu.memref_slice %arg10[%c2_i32_828, %c2_i32_829] : memref<8x5x!tpu.dma_semaphore, #tpu.memory_space<semaphore_mem>> -> memref<1x1x!tpu.dma_semaphore, #tpu.memory_space<semaphore_mem>>
    %801 = tpu.memref_squeeze %800 : memref<1x1x!tpu.dma_semaphore, #tpu.memory_space<semaphore_mem>> -> memref<!tpu.dma_semaphore, #tpu.memory_space<semaphore_mem>>
    tpu.wait_dma2 semaphore(%801 : memref<!tpu.dma_semaphore, #tpu.memory_space<semaphore_mem>>) src(%797 : memref<1x128xf32, #tpu.memory_space<any>>) dst(%799 : memref<1x128xf32, #tpu.memory_space<vmem>>)
    %c2_i32_833 = arith.constant 2 : i32
    %c2_i32_834 = arith.constant 2 : i32
    %c3_i32_835 = arith.constant 3 : i32
    %c0_i32_836 = arith.constant 0 : i32
    %802 = tpu.memref_slice %arg5[%363, %c0_i32_836] : memref<16x128xf32, #tpu.memory_space<any>> -> memref<1x128xf32, #tpu.memory_space<any>>
    %c3_i32_837 = arith.constant 3 : i32
    %c0_i32_838 = arith.constant 0 : i32
    %803 = tpu.memref_slice %arg8[%c2_i32_833, %c3_i32_837, %c0_i32_838] : memref<8x5x128xf32, #tpu.memory_space<vmem>> -> memref<1x1x128xf32, #tpu.memory_space<vmem>>
    %804 = tpu.memref_squeeze %803 : memref<1x1x128xf32, #tpu.memory_space<vmem>> -> memref<1x128xf32, #tpu.memory_space<vmem>>
    %805 = tpu.memref_slice %arg10[%c2_i32_834, %c3_i32_835] : memref<8x5x!tpu.dma_semaphore, #tpu.memory_space<semaphore_mem>> -> memref<1x1x!tpu.dma_semaphore, #tpu.memory_space<semaphore_mem>>
    %806 = tpu.memref_squeeze %805 : memref<1x1x!tpu.dma_semaphore, #tpu.memory_space<semaphore_mem>> -> memref<!tpu.dma_semaphore, #tpu.memory_space<semaphore_mem>>
    tpu.wait_dma2 semaphore(%806 : memref<!tpu.dma_semaphore, #tpu.memory_space<semaphore_mem>>) src(%802 : memref<1x128xf32, #tpu.memory_space<any>>) dst(%804 : memref<1x128xf32, #tpu.memory_space<vmem>>)
    %c2_i32_839 = arith.constant 2 : i32
    %c2_i32_840 = arith.constant 2 : i32
    %c4_i32_841 = arith.constant 4 : i32
    %c0_i32_842 = arith.constant 0 : i32
    %807 = tpu.memref_slice %arg5[%371, %c0_i32_842] : memref<16x128xf32, #tpu.memory_space<any>> -> memref<1x128xf32, #tpu.memory_space<any>>
    %c4_i32_843 = arith.constant 4 : i32
    %c0_i32_844 = arith.constant 0 : i32
    %808 = tpu.memref_slice %arg8[%c2_i32_839, %c4_i32_843, %c0_i32_844] : memref<8x5x128xf32, #tpu.memory_space<vmem>> -> memref<1x1x128xf32, #tpu.memory_space<vmem>>
    %809 = tpu.memref_squeeze %808 : memref<1x1x128xf32, #tpu.memory_space<vmem>> -> memref<1x128xf32, #tpu.memory_space<vmem>>
    %810 = tpu.memref_slice %arg10[%c2_i32_840, %c4_i32_841] : memref<8x5x!tpu.dma_semaphore, #tpu.memory_space<semaphore_mem>> -> memref<1x1x!tpu.dma_semaphore, #tpu.memory_space<semaphore_mem>>
    %811 = tpu.memref_squeeze %810 : memref<1x1x!tpu.dma_semaphore, #tpu.memory_space<semaphore_mem>> -> memref<!tpu.dma_semaphore, #tpu.memory_space<semaphore_mem>>
    tpu.wait_dma2 semaphore(%811 : memref<!tpu.dma_semaphore, #tpu.memory_space<semaphore_mem>>) src(%807 : memref<1x128xf32, #tpu.memory_space<any>>) dst(%809 : memref<1x128xf32, #tpu.memory_space<vmem>>)
    %c3_i32_845 = arith.constant 3 : i32
    %c3_i32_846 = arith.constant 3 : i32
    %c0_i32_847 = arith.constant 0 : i32
    %c0_i32_848 = arith.constant 0 : i32
    %812 = tpu.memref_slice %arg5[%379, %c0_i32_848] : memref<16x128xf32, #tpu.memory_space<any>> -> memref<1x128xf32, #tpu.memory_space<any>>
    %c0_i32_849 = arith.constant 0 : i32
    %c0_i32_850 = arith.constant 0 : i32
    %813 = tpu.memref_slice %arg8[%c3_i32_845, %c0_i32_849, %c0_i32_850] : memref<8x5x128xf32, #tpu.memory_space<vmem>> -> memref<1x1x128xf32, #tpu.memory_space<vmem>>
    %814 = tpu.memref_squeeze %813 : memref<1x1x128xf32, #tpu.memory_space<vmem>> -> memref<1x128xf32, #tpu.memory_space<vmem>>
    %815 = tpu.memref_slice %arg10[%c3_i32_846, %c0_i32_847] : memref<8x5x!tpu.dma_semaphore, #tpu.memory_space<semaphore_mem>> -> memref<1x1x!tpu.dma_semaphore, #tpu.memory_space<semaphore_mem>>
    %816 = tpu.memref_squeeze %815 : memref<1x1x!tpu.dma_semaphore, #tpu.memory_space<semaphore_mem>> -> memref<!tpu.dma_semaphore, #tpu.memory_space<semaphore_mem>>
    tpu.wait_dma2 semaphore(%816 : memref<!tpu.dma_semaphore, #tpu.memory_space<semaphore_mem>>) src(%812 : memref<1x128xf32, #tpu.memory_space<any>>) dst(%814 : memref<1x128xf32, #tpu.memory_space<vmem>>)
    %c3_i32_851 = arith.constant 3 : i32
    %c3_i32_852 = arith.constant 3 : i32
    %c1_i32_853 = arith.constant 1 : i32
    %c0_i32_854 = arith.constant 0 : i32
    %817 = tpu.memref_slice %arg5[%387, %c0_i32_854] : memref<16x128xf32, #tpu.memory_space<any>> -> memref<1x128xf32, #tpu.memory_space<any>>
    %c1_i32_855 = arith.constant 1 : i32
    %c0_i32_856 = arith.constant 0 : i32
    %818 = tpu.memref_slice %arg8[%c3_i32_851, %c1_i32_855, %c0_i32_856] : memref<8x5x128xf32, #tpu.memory_space<vmem>> -> memref<1x1x128xf32, #tpu.memory_space<vmem>>
    %819 = tpu.memref_squeeze %818 : memref<1x1x128xf32, #tpu.memory_space<vmem>> -> memref<1x128xf32, #tpu.memory_space<vmem>>
    %820 = tpu.memref_slice %arg10[%c3_i32_852, %c1_i32_853] : memref<8x5x!tpu.dma_semaphore, #tpu.memory_space<semaphore_mem>> -> memref<1x1x!tpu.dma_semaphore, #tpu.memory_space<semaphore_mem>>
    %821 = tpu.memref_squeeze %820 : memref<1x1x!tpu.dma_semaphore, #tpu.memory_space<semaphore_mem>> -> memref<!tpu.dma_semaphore, #tpu.memory_space<semaphore_mem>>
    tpu.wait_dma2 semaphore(%821 : memref<!tpu.dma_semaphore, #tpu.memory_space<semaphore_mem>>) src(%817 : memref<1x128xf32, #tpu.memory_space<any>>) dst(%819 : memref<1x128xf32, #tpu.memory_space<vmem>>)
    %c3_i32_857 = arith.constant 3 : i32
    %c3_i32_858 = arith.constant 3 : i32
    %c2_i32_859 = arith.constant 2 : i32
    %c0_i32_860 = arith.constant 0 : i32
    %822 = tpu.memref_slice %arg5[%395, %c0_i32_860] : memref<16x128xf32, #tpu.memory_space<any>> -> memref<1x128xf32, #tpu.memory_space<any>>
    %c2_i32_861 = arith.constant 2 : i32
    %c0_i32_862 = arith.constant 0 : i32
    %823 = tpu.memref_slice %arg8[%c3_i32_857, %c2_i32_861, %c0_i32_862] : memref<8x5x128xf32, #tpu.memory_space<vmem>> -> memref<1x1x128xf32, #tpu.memory_space<vmem>>
    %824 = tpu.memref_squeeze %823 : memref<1x1x128xf32, #tpu.memory_space<vmem>> -> memref<1x128xf32, #tpu.memory_space<vmem>>
    %825 = tpu.memref_slice %arg10[%c3_i32_858, %c2_i32_859] : memref<8x5x!tpu.dma_semaphore, #tpu.memory_space<semaphore_mem>> -> memref<1x1x!tpu.dma_semaphore, #tpu.memory_space<semaphore_mem>>
    %826 = tpu.memref_squeeze %825 : memref<1x1x!tpu.dma_semaphore, #tpu.memory_space<semaphore_mem>> -> memref<!tpu.dma_semaphore, #tpu.memory_space<semaphore_mem>>
    tpu.wait_dma2 semaphore(%826 : memref<!tpu.dma_semaphore, #tpu.memory_space<semaphore_mem>>) src(%822 : memref<1x128xf32, #tpu.memory_space<any>>) dst(%824 : memref<1x128xf32, #tpu.memory_space<vmem>>)
    %c3_i32_863 = arith.constant 3 : i32
    %c3_i32_864 = arith.constant 3 : i32
    %c3_i32_865 = arith.constant 3 : i32
    %c0_i32_866 = arith.constant 0 : i32
    %827 = tpu.memref_slice %arg5[%403, %c0_i32_866] : memref<16x128xf32, #tpu.memory_space<any>> -> memref<1x128xf32, #tpu.memory_space<any>>
    %c3_i32_867 = arith.constant 3 : i32
    %c0_i32_868 = arith.constant 0 : i32
    %828 = tpu.memref_slice %arg8[%c3_i32_863, %c3_i32_867, %c0_i32_868] : memref<8x5x128xf32, #tpu.memory_space<vmem>> -> memref<1x1x128xf32, #tpu.memory_space<vmem>>
    %829 = tpu.memref_squeeze %828 : memref<1x1x128xf32, #tpu.memory_space<vmem>> -> memref<1x128xf32, #tpu.memory_space<vmem>>
    %830 = tpu.memref_slice %arg10[%c3_i32_864, %c3_i32_865] : memref<8x5x!tpu.dma_semaphore, #tpu.memory_space<semaphore_mem>> -> memref<1x1x!tpu.dma_semaphore, #tpu.memory_space<semaphore_mem>>
    %831 = tpu.memref_squeeze %830 : memref<1x1x!tpu.dma_semaphore, #tpu.memory_space<semaphore_mem>> -> memref<!tpu.dma_semaphore, #tpu.memory_space<semaphore_mem>>
    tpu.wait_dma2 semaphore(%831 : memref<!tpu.dma_semaphore, #tpu.memory_space<semaphore_mem>>) src(%827 : memref<1x128xf32, #tpu.memory_space<any>>) dst(%829 : memref<1x128xf32, #tpu.memory_space<vmem>>)
    %c3_i32_869 = arith.constant 3 : i32
    %c3_i32_870 = arith.constant 3 : i32
    %c4_i32_871 = arith.constant 4 : i32
    %c0_i32_872 = arith.constant 0 : i32
    %832 = tpu.memref_slice %arg5[%411, %c0_i32_872] : memref<16x128xf32, #tpu.memory_space<any>> -> memref<1x128xf32, #tpu.memory_space<any>>
    %c4_i32_873 = arith.constant 4 : i32
    %c0_i32_874 = arith.constant 0 : i32
    %833 = tpu.memref_slice %arg8[%c3_i32_869, %c4_i32_873, %c0_i32_874] : memref<8x5x128xf32, #tpu.memory_space<vmem>> -> memref<1x1x128xf32, #tpu.memory_space<vmem>>
    %834 = tpu.memref_squeeze %833 : memref<1x1x128xf32, #tpu.memory_space<vmem>> -> memref<1x128xf32, #tpu.memory_space<vmem>>
    %835 = tpu.memref_slice %arg10[%c3_i32_870, %c4_i32_871] : memref<8x5x!tpu.dma_semaphore, #tpu.memory_space<semaphore_mem>> -> memref<1x1x!tpu.dma_semaphore, #tpu.memory_space<semaphore_mem>>
    %836 = tpu.memref_squeeze %835 : memref<1x1x!tpu.dma_semaphore, #tpu.memory_space<semaphore_mem>> -> memref<!tpu.dma_semaphore, #tpu.memory_space<semaphore_mem>>
    tpu.wait_dma2 semaphore(%836 : memref<!tpu.dma_semaphore, #tpu.memory_space<semaphore_mem>>) src(%832 : memref<1x128xf32, #tpu.memory_space<any>>) dst(%834 : memref<1x128xf32, #tpu.memory_space<vmem>>)
    %c4_i32_875 = arith.constant 4 : i32
    %c4_i32_876 = arith.constant 4 : i32
    %c0_i32_877 = arith.constant 0 : i32
    %c0_i32_878 = arith.constant 0 : i32
    %837 = tpu.memref_slice %arg5[%419, %c0_i32_878] : memref<16x128xf32, #tpu.memory_space<any>> -> memref<1x128xf32, #tpu.memory_space<any>>
    %c0_i32_879 = arith.constant 0 : i32
    %c0_i32_880 = arith.constant 0 : i32
    %838 = tpu.memref_slice %arg8[%c4_i32_875, %c0_i32_879, %c0_i32_880] : memref<8x5x128xf32, #tpu.memory_space<vmem>> -> memref<1x1x128xf32, #tpu.memory_space<vmem>>
    %839 = tpu.memref_squeeze %838 : memref<1x1x128xf32, #tpu.memory_space<vmem>> -> memref<1x128xf32, #tpu.memory_space<vmem>>
    %840 = tpu.memref_slice %arg10[%c4_i32_876, %c0_i32_877] : memref<8x5x!tpu.dma_semaphore, #tpu.memory_space<semaphore_mem>> -> memref<1x1x!tpu.dma_semaphore, #tpu.memory_space<semaphore_mem>>
    %841 = tpu.memref_squeeze %840 : memref<1x1x!tpu.dma_semaphore, #tpu.memory_space<semaphore_mem>> -> memref<!tpu.dma_semaphore, #tpu.memory_space<semaphore_mem>>
    tpu.wait_dma2 semaphore(%841 : memref<!tpu.dma_semaphore, #tpu.memory_space<semaphore_mem>>) src(%837 : memref<1x128xf32, #tpu.memory_space<any>>) dst(%839 : memref<1x128xf32, #tpu.memory_space<vmem>>)
    %c4_i32_881 = arith.constant 4 : i32
    %c4_i32_882 = arith.constant 4 : i32
    %c1_i32_883 = arith.constant 1 : i32
    %c0_i32_884 = arith.constant 0 : i32
    %842 = tpu.memref_slice %arg5[%427, %c0_i32_884] : memref<16x128xf32, #tpu.memory_space<any>> -> memref<1x128xf32, #tpu.memory_space<any>>
    %c1_i32_885 = arith.constant 1 : i32
    %c0_i32_886 = arith.constant 0 : i32
    %843 = tpu.memref_slice %arg8[%c4_i32_881, %c1_i32_885, %c0_i32_886] : memref<8x5x128xf32, #tpu.memory_space<vmem>> -> memref<1x1x128xf32, #tpu.memory_space<vmem>>
    %844 = tpu.memref_squeeze %843 : memref<1x1x128xf32, #tpu.memory_space<vmem>> -> memref<1x128xf32, #tpu.memory_space<vmem>>
    %845 = tpu.memref_slice %arg10[%c4_i32_882, %c1_i32_883] : memref<8x5x!tpu.dma_semaphore, #tpu.memory_space<semaphore_mem>> -> memref<1x1x!tpu.dma_semaphore, #tpu.memory_space<semaphore_mem>>
    %846 = tpu.memref_squeeze %845 : memref<1x1x!tpu.dma_semaphore, #tpu.memory_space<semaphore_mem>> -> memref<!tpu.dma_semaphore, #tpu.memory_space<semaphore_mem>>
    tpu.wait_dma2 semaphore(%846 : memref<!tpu.dma_semaphore, #tpu.memory_space<semaphore_mem>>) src(%842 : memref<1x128xf32, #tpu.memory_space<any>>) dst(%844 : memref<1x128xf32, #tpu.memory_space<vmem>>)
    %c4_i32_887 = arith.constant 4 : i32
    %c4_i32_888 = arith.constant 4 : i32
    %c2_i32_889 = arith.constant 2 : i32
    %c0_i32_890 = arith.constant 0 : i32
    %847 = tpu.memref_slice %arg5[%435, %c0_i32_890] : memref<16x128xf32, #tpu.memory_space<any>> -> memref<1x128xf32, #tpu.memory_space<any>>
    %c2_i32_891 = arith.constant 2 : i32
    %c0_i32_892 = arith.constant 0 : i32
    %848 = tpu.memref_slice %arg8[%c4_i32_887, %c2_i32_891, %c0_i32_892] : memref<8x5x128xf32, #tpu.memory_space<vmem>> -> memref<1x1x128xf32, #tpu.memory_space<vmem>>
    %849 = tpu.memref_squeeze %848 : memref<1x1x128xf32, #tpu.memory_space<vmem>> -> memref<1x128xf32, #tpu.memory_space<vmem>>
    %850 = tpu.memref_slice %arg10[%c4_i32_888, %c2_i32_889] : memref<8x5x!tpu.dma_semaphore, #tpu.memory_space<semaphore_mem>> -> memref<1x1x!tpu.dma_semaphore, #tpu.memory_space<semaphore_mem>>
    %851 = tpu.memref_squeeze %850 : memref<1x1x!tpu.dma_semaphore, #tpu.memory_space<semaphore_mem>> -> memref<!tpu.dma_semaphore, #tpu.memory_space<semaphore_mem>>
    tpu.wait_dma2 semaphore(%851 : memref<!tpu.dma_semaphore, #tpu.memory_space<semaphore_mem>>) src(%847 : memref<1x128xf32, #tpu.memory_space<any>>) dst(%849 : memref<1x128xf32, #tpu.memory_space<vmem>>)
    %c4_i32_893 = arith.constant 4 : i32
    %c4_i32_894 = arith.constant 4 : i32
    %c3_i32_895 = arith.constant 3 : i32
    %c0_i32_896 = arith.constant 0 : i32
    %852 = tpu.memref_slice %arg5[%443, %c0_i32_896] : memref<16x128xf32, #tpu.memory_space<any>> -> memref<1x128xf32, #tpu.memory_space<any>>
    %c3_i32_897 = arith.constant 3 : i32
    %c0_i32_898 = arith.constant 0 : i32
    %853 = tpu.memref_slice %arg8[%c4_i32_893, %c3_i32_897, %c0_i32_898] : memref<8x5x128xf32, #tpu.memory_space<vmem>> -> memref<1x1x128xf32, #tpu.memory_space<vmem>>
    %854 = tpu.memref_squeeze %853 : memref<1x1x128xf32, #tpu.memory_space<vmem>> -> memref<1x128xf32, #tpu.memory_space<vmem>>
    %855 = tpu.memref_slice %arg10[%c4_i32_894, %c3_i32_895] : memref<8x5x!tpu.dma_semaphore, #tpu.memory_space<semaphore_mem>> -> memref<1x1x!tpu.dma_semaphore, #tpu.memory_space<semaphore_mem>>
    %856 = tpu.memref_squeeze %855 : memref<1x1x!tpu.dma_semaphore, #tpu.memory_space<semaphore_mem>> -> memref<!tpu.dma_semaphore, #tpu.memory_space<semaphore_mem>>
    tpu.wait_dma2 semaphore(%856 : memref<!tpu.dma_semaphore, #tpu.memory_space<semaphore_mem>>) src(%852 : memref<1x128xf32, #tpu.memory_space<any>>) dst(%854 : memref<1x128xf32, #tpu.memory_space<vmem>>)
    %c4_i32_899 = arith.constant 4 : i32
    %c4_i32_900 = arith.constant 4 : i32
    %c4_i32_901 = arith.constant 4 : i32
    %c0_i32_902 = arith.constant 0 : i32
    %857 = tpu.memref_slice %arg5[%451, %c0_i32_902] : memref<16x128xf32, #tpu.memory_space<any>> -> memref<1x128xf32, #tpu.memory_space<any>>
    %c4_i32_903 = arith.constant 4 : i32
    %c0_i32_904 = arith.constant 0 : i32
    %858 = tpu.memref_slice %arg8[%c4_i32_899, %c4_i32_903, %c0_i32_904] : memref<8x5x128xf32, #tpu.memory_space<vmem>> -> memref<1x1x128xf32, #tpu.memory_space<vmem>>
    %859 = tpu.memref_squeeze %858 : memref<1x1x128xf32, #tpu.memory_space<vmem>> -> memref<1x128xf32, #tpu.memory_space<vmem>>
    %860 = tpu.memref_slice %arg10[%c4_i32_900, %c4_i32_901] : memref<8x5x!tpu.dma_semaphore, #tpu.memory_space<semaphore_mem>> -> memref<1x1x!tpu.dma_semaphore, #tpu.memory_space<semaphore_mem>>
    %861 = tpu.memref_squeeze %860 : memref<1x1x!tpu.dma_semaphore, #tpu.memory_space<semaphore_mem>> -> memref<!tpu.dma_semaphore, #tpu.memory_space<semaphore_mem>>
    tpu.wait_dma2 semaphore(%861 : memref<!tpu.dma_semaphore, #tpu.memory_space<semaphore_mem>>) src(%857 : memref<1x128xf32, #tpu.memory_space<any>>) dst(%859 : memref<1x128xf32, #tpu.memory_space<vmem>>)
    %c5_i32_905 = arith.constant 5 : i32
    %c5_i32_906 = arith.constant 5 : i32
    %c0_i32_907 = arith.constant 0 : i32
    %c0_i32_908 = arith.constant 0 : i32
    %862 = tpu.memref_slice %arg5[%459, %c0_i32_908] : memref<16x128xf32, #tpu.memory_space<any>> -> memref<1x128xf32, #tpu.memory_space<any>>
    %c0_i32_909 = arith.constant 0 : i32
    %c0_i32_910 = arith.constant 0 : i32
    %863 = tpu.memref_slice %arg8[%c5_i32_905, %c0_i32_909, %c0_i32_910] : memref<8x5x128xf32, #tpu.memory_space<vmem>> -> memref<1x1x128xf32, #tpu.memory_space<vmem>>
    %864 = tpu.memref_squeeze %863 : memref<1x1x128xf32, #tpu.memory_space<vmem>> -> memref<1x128xf32, #tpu.memory_space<vmem>>
    %865 = tpu.memref_slice %arg10[%c5_i32_906, %c0_i32_907] : memref<8x5x!tpu.dma_semaphore, #tpu.memory_space<semaphore_mem>> -> memref<1x1x!tpu.dma_semaphore, #tpu.memory_space<semaphore_mem>>
    %866 = tpu.memref_squeeze %865 : memref<1x1x!tpu.dma_semaphore, #tpu.memory_space<semaphore_mem>> -> memref<!tpu.dma_semaphore, #tpu.memory_space<semaphore_mem>>
    tpu.wait_dma2 semaphore(%866 : memref<!tpu.dma_semaphore, #tpu.memory_space<semaphore_mem>>) src(%862 : memref<1x128xf32, #tpu.memory_space<any>>) dst(%864 : memref<1x128xf32, #tpu.memory_space<vmem>>)
    %c5_i32_911 = arith.constant 5 : i32
    %c5_i32_912 = arith.constant 5 : i32
    %c1_i32_913 = arith.constant 1 : i32
    %c0_i32_914 = arith.constant 0 : i32
    %867 = tpu.memref_slice %arg5[%467, %c0_i32_914] : memref<16x128xf32, #tpu.memory_space<any>> -> memref<1x128xf32, #tpu.memory_space<any>>
    %c1_i32_915 = arith.constant 1 : i32
    %c0_i32_916 = arith.constant 0 : i32
    %868 = tpu.memref_slice %arg8[%c5_i32_911, %c1_i32_915, %c0_i32_916] : memref<8x5x128xf32, #tpu.memory_space<vmem>> -> memref<1x1x128xf32, #tpu.memory_space<vmem>>
    %869 = tpu.memref_squeeze %868 : memref<1x1x128xf32, #tpu.memory_space<vmem>> -> memref<1x128xf32, #tpu.memory_space<vmem>>
    %870 = tpu.memref_slice %arg10[%c5_i32_912, %c1_i32_913] : memref<8x5x!tpu.dma_semaphore, #tpu.memory_space<semaphore_mem>> -> memref<1x1x!tpu.dma_semaphore, #tpu.memory_space<semaphore_mem>>
    %871 = tpu.memref_squeeze %870 : memref<1x1x!tpu.dma_semaphore, #tpu.memory_space<semaphore_mem>> -> memref<!tpu.dma_semaphore, #tpu.memory_space<semaphore_mem>>
    tpu.wait_dma2 semaphore(%871 : memref<!tpu.dma_semaphore, #tpu.memory_space<semaphore_mem>>) src(%867 : memref<1x128xf32, #tpu.memory_space<any>>) dst(%869 : memref<1x128xf32, #tpu.memory_space<vmem>>)
    %c5_i32_917 = arith.constant 5 : i32
    %c5_i32_918 = arith.constant 5 : i32
    %c2_i32_919 = arith.constant 2 : i32
    %c0_i32_920 = arith.constant 0 : i32
    %872 = tpu.memref_slice %arg5[%475, %c0_i32_920] : memref<16x128xf32, #tpu.memory_space<any>> -> memref<1x128xf32, #tpu.memory_space<any>>
    %c2_i32_921 = arith.constant 2 : i32
    %c0_i32_922 = arith.constant 0 : i32
    %873 = tpu.memref_slice %arg8[%c5_i32_917, %c2_i32_921, %c0_i32_922] : memref<8x5x128xf32, #tpu.memory_space<vmem>> -> memref<1x1x128xf32, #tpu.memory_space<vmem>>
    %874 = tpu.memref_squeeze %873 : memref<1x1x128xf32, #tpu.memory_space<vmem>> -> memref<1x128xf32, #tpu.memory_space<vmem>>
    %875 = tpu.memref_slice %arg10[%c5_i32_918, %c2_i32_919] : memref<8x5x!tpu.dma_semaphore, #tpu.memory_space<semaphore_mem>> -> memref<1x1x!tpu.dma_semaphore, #tpu.memory_space<semaphore_mem>>
    %876 = tpu.memref_squeeze %875 : memref<1x1x!tpu.dma_semaphore, #tpu.memory_space<semaphore_mem>> -> memref<!tpu.dma_semaphore, #tpu.memory_space<semaphore_mem>>
    tpu.wait_dma2 semaphore(%876 : memref<!tpu.dma_semaphore, #tpu.memory_space<semaphore_mem>>) src(%872 : memref<1x128xf32, #tpu.memory_space<any>>) dst(%874 : memref<1x128xf32, #tpu.memory_space<vmem>>)
    %c5_i32_923 = arith.constant 5 : i32
    %c5_i32_924 = arith.constant 5 : i32
    %c3_i32_925 = arith.constant 3 : i32
    %c0_i32_926 = arith.constant 0 : i32
    %877 = tpu.memref_slice %arg5[%483, %c0_i32_926] : memref<16x128xf32, #tpu.memory_space<any>> -> memref<1x128xf32, #tpu.memory_space<any>>
    %c3_i32_927 = arith.constant 3 : i32
    %c0_i32_928 = arith.constant 0 : i32
    %878 = tpu.memref_slice %arg8[%c5_i32_923, %c3_i32_927, %c0_i32_928] : memref<8x5x128xf32, #tpu.memory_space<vmem>> -> memref<1x1x128xf32, #tpu.memory_space<vmem>>
    %879 = tpu.memref_squeeze %878 : memref<1x1x128xf32, #tpu.memory_space<vmem>> -> memref<1x128xf32, #tpu.memory_space<vmem>>
    %880 = tpu.memref_slice %arg10[%c5_i32_924, %c3_i32_925] : memref<8x5x!tpu.dma_semaphore, #tpu.memory_space<semaphore_mem>> -> memref<1x1x!tpu.dma_semaphore, #tpu.memory_space<semaphore_mem>>
    %881 = tpu.memref_squeeze %880 : memref<1x1x!tpu.dma_semaphore, #tpu.memory_space<semaphore_mem>> -> memref<!tpu.dma_semaphore, #tpu.memory_space<semaphore_mem>>
    tpu.wait_dma2 semaphore(%881 : memref<!tpu.dma_semaphore, #tpu.memory_space<semaphore_mem>>) src(%877 : memref<1x128xf32, #tpu.memory_space<any>>) dst(%879 : memref<1x128xf32, #tpu.memory_space<vmem>>)
    %c5_i32_929 = arith.constant 5 : i32
    %c5_i32_930 = arith.constant 5 : i32
    %c4_i32_931 = arith.constant 4 : i32
    %c0_i32_932 = arith.constant 0 : i32
    %882 = tpu.memref_slice %arg5[%491, %c0_i32_932] : memref<16x128xf32, #tpu.memory_space<any>> -> memref<1x128xf32, #tpu.memory_space<any>>
    %c4_i32_933 = arith.constant 4 : i32
    %c0_i32_934 = arith.constant 0 : i32
    %883 = tpu.memref_slice %arg8[%c5_i32_929, %c4_i32_933, %c0_i32_934] : memref<8x5x128xf32, #tpu.memory_space<vmem>> -> memref<1x1x128xf32, #tpu.memory_space<vmem>>
    %884 = tpu.memref_squeeze %883 : memref<1x1x128xf32, #tpu.memory_space<vmem>> -> memref<1x128xf32, #tpu.memory_space<vmem>>
    %885 = tpu.memref_slice %arg10[%c5_i32_930, %c4_i32_931] : memref<8x5x!tpu.dma_semaphore, #tpu.memory_space<semaphore_mem>> -> memref<1x1x!tpu.dma_semaphore, #tpu.memory_space<semaphore_mem>>
    %886 = tpu.memref_squeeze %885 : memref<1x1x!tpu.dma_semaphore, #tpu.memory_space<semaphore_mem>> -> memref<!tpu.dma_semaphore, #tpu.memory_space<semaphore_mem>>
    tpu.wait_dma2 semaphore(%886 : memref<!tpu.dma_semaphore, #tpu.memory_space<semaphore_mem>>) src(%882 : memref<1x128xf32, #tpu.memory_space<any>>) dst(%884 : memref<1x128xf32, #tpu.memory_space<vmem>>)
    %c6_i32_935 = arith.constant 6 : i32
    %c6_i32_936 = arith.constant 6 : i32
    %c0_i32_937 = arith.constant 0 : i32
    %c0_i32_938 = arith.constant 0 : i32
    %887 = tpu.memref_slice %arg5[%499, %c0_i32_938] : memref<16x128xf32, #tpu.memory_space<any>> -> memref<1x128xf32, #tpu.memory_space<any>>
    %c0_i32_939 = arith.constant 0 : i32
    %c0_i32_940 = arith.constant 0 : i32
    %888 = tpu.memref_slice %arg8[%c6_i32_935, %c0_i32_939, %c0_i32_940] : memref<8x5x128xf32, #tpu.memory_space<vmem>> -> memref<1x1x128xf32, #tpu.memory_space<vmem>>
    %889 = tpu.memref_squeeze %888 : memref<1x1x128xf32, #tpu.memory_space<vmem>> -> memref<1x128xf32, #tpu.memory_space<vmem>>
    %890 = tpu.memref_slice %arg10[%c6_i32_936, %c0_i32_937] : memref<8x5x!tpu.dma_semaphore, #tpu.memory_space<semaphore_mem>> -> memref<1x1x!tpu.dma_semaphore, #tpu.memory_space<semaphore_mem>>
    %891 = tpu.memref_squeeze %890 : memref<1x1x!tpu.dma_semaphore, #tpu.memory_space<semaphore_mem>> -> memref<!tpu.dma_semaphore, #tpu.memory_space<semaphore_mem>>
    tpu.wait_dma2 semaphore(%891 : memref<!tpu.dma_semaphore, #tpu.memory_space<semaphore_mem>>) src(%887 : memref<1x128xf32, #tpu.memory_space<any>>) dst(%889 : memref<1x128xf32, #tpu.memory_space<vmem>>)
    %c6_i32_941 = arith.constant 6 : i32
    %c6_i32_942 = arith.constant 6 : i32
    %c1_i32_943 = arith.constant 1 : i32
    %c0_i32_944 = arith.constant 0 : i32
    %892 = tpu.memref_slice %arg5[%507, %c0_i32_944] : memref<16x128xf32, #tpu.memory_space<any>> -> memref<1x128xf32, #tpu.memory_space<any>>
    %c1_i32_945 = arith.constant 1 : i32
    %c0_i32_946 = arith.constant 0 : i32
    %893 = tpu.memref_slice %arg8[%c6_i32_941, %c1_i32_945, %c0_i32_946] : memref<8x5x128xf32, #tpu.memory_space<vmem>> -> memref<1x1x128xf32, #tpu.memory_space<vmem>>
    %894 = tpu.memref_squeeze %893 : memref<1x1x128xf32, #tpu.memory_space<vmem>> -> memref<1x128xf32, #tpu.memory_space<vmem>>
    %895 = tpu.memref_slice %arg10[%c6_i32_942, %c1_i32_943] : memref<8x5x!tpu.dma_semaphore, #tpu.memory_space<semaphore_mem>> -> memref<1x1x!tpu.dma_semaphore, #tpu.memory_space<semaphore_mem>>
    %896 = tpu.memref_squeeze %895 : memref<1x1x!tpu.dma_semaphore, #tpu.memory_space<semaphore_mem>> -> memref<!tpu.dma_semaphore, #tpu.memory_space<semaphore_mem>>
    tpu.wait_dma2 semaphore(%896 : memref<!tpu.dma_semaphore, #tpu.memory_space<semaphore_mem>>) src(%892 : memref<1x128xf32, #tpu.memory_space<any>>) dst(%894 : memref<1x128xf32, #tpu.memory_space<vmem>>)
    %c6_i32_947 = arith.constant 6 : i32
    %c6_i32_948 = arith.constant 6 : i32
    %c2_i32_949 = arith.constant 2 : i32
    %c0_i32_950 = arith.constant 0 : i32
    %897 = tpu.memref_slice %arg5[%515, %c0_i32_950] : memref<16x128xf32, #tpu.memory_space<any>> -> memref<1x128xf32, #tpu.memory_space<any>>
    %c2_i32_951 = arith.constant 2 : i32
    %c0_i32_952 = arith.constant 0 : i32
    %898 = tpu.memref_slice %arg8[%c6_i32_947, %c2_i32_951, %c0_i32_952] : memref<8x5x128xf32, #tpu.memory_space<vmem>> -> memref<1x1x128xf32, #tpu.memory_space<vmem>>
    %899 = tpu.memref_squeeze %898 : memref<1x1x128xf32, #tpu.memory_space<vmem>> -> memref<1x128xf32, #tpu.memory_space<vmem>>
    %900 = tpu.memref_slice %arg10[%c6_i32_948, %c2_i32_949] : memref<8x5x!tpu.dma_semaphore, #tpu.memory_space<semaphore_mem>> -> memref<1x1x!tpu.dma_semaphore, #tpu.memory_space<semaphore_mem>>
    %901 = tpu.memref_squeeze %900 : memref<1x1x!tpu.dma_semaphore, #tpu.memory_space<semaphore_mem>> -> memref<!tpu.dma_semaphore, #tpu.memory_space<semaphore_mem>>
    tpu.wait_dma2 semaphore(%901 : memref<!tpu.dma_semaphore, #tpu.memory_space<semaphore_mem>>) src(%897 : memref<1x128xf32, #tpu.memory_space<any>>) dst(%899 : memref<1x128xf32, #tpu.memory_space<vmem>>)
    %c6_i32_953 = arith.constant 6 : i32
    %c6_i32_954 = arith.constant 6 : i32
    %c3_i32_955 = arith.constant 3 : i32
    %c0_i32_956 = arith.constant 0 : i32
    %902 = tpu.memref_slice %arg5[%523, %c0_i32_956] : memref<16x128xf32, #tpu.memory_space<any>> -> memref<1x128xf32, #tpu.memory_space<any>>
    %c3_i32_957 = arith.constant 3 : i32
    %c0_i32_958 = arith.constant 0 : i32
    %903 = tpu.memref_slice %arg8[%c6_i32_953, %c3_i32_957, %c0_i32_958] : memref<8x5x128xf32, #tpu.memory_space<vmem>> -> memref<1x1x128xf32, #tpu.memory_space<vmem>>
    %904 = tpu.memref_squeeze %903 : memref<1x1x128xf32, #tpu.memory_space<vmem>> -> memref<1x128xf32, #tpu.memory_space<vmem>>
    %905 = tpu.memref_slice %arg10[%c6_i32_954, %c3_i32_955] : memref<8x5x!tpu.dma_semaphore, #tpu.memory_space<semaphore_mem>> -> memref<1x1x!tpu.dma_semaphore, #tpu.memory_space<semaphore_mem>>
    %906 = tpu.memref_squeeze %905 : memref<1x1x!tpu.dma_semaphore, #tpu.memory_space<semaphore_mem>> -> memref<!tpu.dma_semaphore, #tpu.memory_space<semaphore_mem>>
    tpu.wait_dma2 semaphore(%906 : memref<!tpu.dma_semaphore, #tpu.memory_space<semaphore_mem>>) src(%902 : memref<1x128xf32, #tpu.memory_space<any>>) dst(%904 : memref<1x128xf32, #tpu.memory_space<vmem>>)
    %c6_i32_959 = arith.constant 6 : i32
    %c6_i32_960 = arith.constant 6 : i32
    %c4_i32_961 = arith.constant 4 : i32
    %c0_i32_962 = arith.constant 0 : i32
    %907 = tpu.memref_slice %arg5[%531, %c0_i32_962] : memref<16x128xf32, #tpu.memory_space<any>> -> memref<1x128xf32, #tpu.memory_space<any>>
    %c4_i32_963 = arith.constant 4 : i32
    %c0_i32_964 = arith.constant 0 : i32
    %908 = tpu.memref_slice %arg8[%c6_i32_959, %c4_i32_963, %c0_i32_964] : memref<8x5x128xf32, #tpu.memory_space<vmem>> -> memref<1x1x128xf32, #tpu.memory_space<vmem>>
    %909 = tpu.memref_squeeze %908 : memref<1x1x128xf32, #tpu.memory_space<vmem>> -> memref<1x128xf32, #tpu.memory_space<vmem>>
    %910 = tpu.memref_slice %arg10[%c6_i32_960, %c4_i32_961] : memref<8x5x!tpu.dma_semaphore, #tpu.memory_space<semaphore_mem>> -> memref<1x1x!tpu.dma_semaphore, #tpu.memory_space<semaphore_mem>>
    %911 = tpu.memref_squeeze %910 : memref<1x1x!tpu.dma_semaphore, #tpu.memory_space<semaphore_mem>> -> memref<!tpu.dma_semaphore, #tpu.memory_space<semaphore_mem>>
    tpu.wait_dma2 semaphore(%911 : memref<!tpu.dma_semaphore, #tpu.memory_space<semaphore_mem>>) src(%907 : memref<1x128xf32, #tpu.memory_space<any>>) dst(%909 : memref<1x128xf32, #tpu.memory_space<vmem>>)
    %c7_i32_965 = arith.constant 7 : i32
    %c7_i32_966 = arith.constant 7 : i32
    %c0_i32_967 = arith.constant 0 : i32
    %c0_i32_968 = arith.constant 0 : i32
    %912 = tpu.memref_slice %arg5[%539, %c0_i32_968] : memref<16x128xf32, #tpu.memory_space<any>> -> memref<1x128xf32, #tpu.memory_space<any>>
    %c0_i32_969 = arith.constant 0 : i32
    %c0_i32_970 = arith.constant 0 : i32
    %913 = tpu.memref_slice %arg8[%c7_i32_965, %c0_i32_969, %c0_i32_970] : memref<8x5x128xf32, #tpu.memory_space<vmem>> -> memref<1x1x128xf32, #tpu.memory_space<vmem>>
    %914 = tpu.memref_squeeze %913 : memref<1x1x128xf32, #tpu.memory_space<vmem>> -> memref<1x128xf32, #tpu.memory_space<vmem>>
    %915 = tpu.memref_slice %arg10[%c7_i32_966, %c0_i32_967] : memref<8x5x!tpu.dma_semaphore, #tpu.memory_space<semaphore_mem>> -> memref<1x1x!tpu.dma_semaphore, #tpu.memory_space<semaphore_mem>>
    %916 = tpu.memref_squeeze %915 : memref<1x1x!tpu.dma_semaphore, #tpu.memory_space<semaphore_mem>> -> memref<!tpu.dma_semaphore, #tpu.memory_space<semaphore_mem>>
    tpu.wait_dma2 semaphore(%916 : memref<!tpu.dma_semaphore, #tpu.memory_space<semaphore_mem>>) src(%912 : memref<1x128xf32, #tpu.memory_space<any>>) dst(%914 : memref<1x128xf32, #tpu.memory_space<vmem>>)
    %c7_i32_971 = arith.constant 7 : i32
    %c7_i32_972 = arith.constant 7 : i32
    %c1_i32_973 = arith.constant 1 : i32
    %c0_i32_974 = arith.constant 0 : i32
    %917 = tpu.memref_slice %arg5[%547, %c0_i32_974] : memref<16x128xf32, #tpu.memory_space<any>> -> memref<1x128xf32, #tpu.memory_space<any>>
    %c1_i32_975 = arith.constant 1 : i32
    %c0_i32_976 = arith.constant 0 : i32
    %918 = tpu.memref_slice %arg8[%c7_i32_971, %c1_i32_975, %c0_i32_976] : memref<8x5x128xf32, #tpu.memory_space<vmem>> -> memref<1x1x128xf32, #tpu.memory_space<vmem>>
    %919 = tpu.memref_squeeze %918 : memref<1x1x128xf32, #tpu.memory_space<vmem>> -> memref<1x128xf32, #tpu.memory_space<vmem>>
    %920 = tpu.memref_slice %arg10[%c7_i32_972, %c1_i32_973] : memref<8x5x!tpu.dma_semaphore, #tpu.memory_space<semaphore_mem>> -> memref<1x1x!tpu.dma_semaphore, #tpu.memory_space<semaphore_mem>>
    %921 = tpu.memref_squeeze %920 : memref<1x1x!tpu.dma_semaphore, #tpu.memory_space<semaphore_mem>> -> memref<!tpu.dma_semaphore, #tpu.memory_space<semaphore_mem>>
    tpu.wait_dma2 semaphore(%921 : memref<!tpu.dma_semaphore, #tpu.memory_space<semaphore_mem>>) src(%917 : memref<1x128xf32, #tpu.memory_space<any>>) dst(%919 : memref<1x128xf32, #tpu.memory_space<vmem>>)
    %c7_i32_977 = arith.constant 7 : i32
    %c7_i32_978 = arith.constant 7 : i32
    %c2_i32_979 = arith.constant 2 : i32
    %c0_i32_980 = arith.constant 0 : i32
    %922 = tpu.memref_slice %arg5[%555, %c0_i32_980] : memref<16x128xf32, #tpu.memory_space<any>> -> memref<1x128xf32, #tpu.memory_space<any>>
    %c2_i32_981 = arith.constant 2 : i32
    %c0_i32_982 = arith.constant 0 : i32
    %923 = tpu.memref_slice %arg8[%c7_i32_977, %c2_i32_981, %c0_i32_982] : memref<8x5x128xf32, #tpu.memory_space<vmem>> -> memref<1x1x128xf32, #tpu.memory_space<vmem>>
    %924 = tpu.memref_squeeze %923 : memref<1x1x128xf32, #tpu.memory_space<vmem>> -> memref<1x128xf32, #tpu.memory_space<vmem>>
    %925 = tpu.memref_slice %arg10[%c7_i32_978, %c2_i32_979] : memref<8x5x!tpu.dma_semaphore, #tpu.memory_space<semaphore_mem>> -> memref<1x1x!tpu.dma_semaphore, #tpu.memory_space<semaphore_mem>>
    %926 = tpu.memref_squeeze %925 : memref<1x1x!tpu.dma_semaphore, #tpu.memory_space<semaphore_mem>> -> memref<!tpu.dma_semaphore, #tpu.memory_space<semaphore_mem>>
    tpu.wait_dma2 semaphore(%926 : memref<!tpu.dma_semaphore, #tpu.memory_space<semaphore_mem>>) src(%922 : memref<1x128xf32, #tpu.memory_space<any>>) dst(%924 : memref<1x128xf32, #tpu.memory_space<vmem>>)
    %c7_i32_983 = arith.constant 7 : i32
    %c7_i32_984 = arith.constant 7 : i32
    %c3_i32_985 = arith.constant 3 : i32
    %c0_i32_986 = arith.constant 0 : i32
    %927 = tpu.memref_slice %arg5[%563, %c0_i32_986] : memref<16x128xf32, #tpu.memory_space<any>> -> memref<1x128xf32, #tpu.memory_space<any>>
    %c3_i32_987 = arith.constant 3 : i32
    %c0_i32_988 = arith.constant 0 : i32
    %928 = tpu.memref_slice %arg8[%c7_i32_983, %c3_i32_987, %c0_i32_988] : memref<8x5x128xf32, #tpu.memory_space<vmem>> -> memref<1x1x128xf32, #tpu.memory_space<vmem>>
    %929 = tpu.memref_squeeze %928 : memref<1x1x128xf32, #tpu.memory_space<vmem>> -> memref<1x128xf32, #tpu.memory_space<vmem>>
    %930 = tpu.memref_slice %arg10[%c7_i32_984, %c3_i32_985] : memref<8x5x!tpu.dma_semaphore, #tpu.memory_space<semaphore_mem>> -> memref<1x1x!tpu.dma_semaphore, #tpu.memory_space<semaphore_mem>>
    %931 = tpu.memref_squeeze %930 : memref<1x1x!tpu.dma_semaphore, #tpu.memory_space<semaphore_mem>> -> memref<!tpu.dma_semaphore, #tpu.memory_space<semaphore_mem>>
    tpu.wait_dma2 semaphore(%931 : memref<!tpu.dma_semaphore, #tpu.memory_space<semaphore_mem>>) src(%927 : memref<1x128xf32, #tpu.memory_space<any>>) dst(%929 : memref<1x128xf32, #tpu.memory_space<vmem>>)
    %c7_i32_989 = arith.constant 7 : i32
    %c7_i32_990 = arith.constant 7 : i32
    %c4_i32_991 = arith.constant 4 : i32
    %c0_i32_992 = arith.constant 0 : i32
    %932 = tpu.memref_slice %arg5[%571, %c0_i32_992] : memref<16x128xf32, #tpu.memory_space<any>> -> memref<1x128xf32, #tpu.memory_space<any>>
    %c4_i32_993 = arith.constant 4 : i32
    %c0_i32_994 = arith.constant 0 : i32
    %933 = tpu.memref_slice %arg8[%c7_i32_989, %c4_i32_993, %c0_i32_994] : memref<8x5x128xf32, #tpu.memory_space<vmem>> -> memref<1x1x128xf32, #tpu.memory_space<vmem>>
    %934 = tpu.memref_squeeze %933 : memref<1x1x128xf32, #tpu.memory_space<vmem>> -> memref<1x128xf32, #tpu.memory_space<vmem>>
    %935 = tpu.memref_slice %arg10[%c7_i32_990, %c4_i32_991] : memref<8x5x!tpu.dma_semaphore, #tpu.memory_space<semaphore_mem>> -> memref<1x1x!tpu.dma_semaphore, #tpu.memory_space<semaphore_mem>>
    %936 = tpu.memref_squeeze %935 : memref<1x1x!tpu.dma_semaphore, #tpu.memory_space<semaphore_mem>> -> memref<!tpu.dma_semaphore, #tpu.memory_space<semaphore_mem>>
    tpu.wait_dma2 semaphore(%936 : memref<!tpu.dma_semaphore, #tpu.memory_space<semaphore_mem>>) src(%932 : memref<1x128xf32, #tpu.memory_space<any>>) dst(%934 : memref<1x128xf32, #tpu.memory_space<vmem>>)
    %c0_995 = arith.constant 0 : index
    %c0_996 = arith.constant 0 : index
    %c0_997 = arith.constant 0 : index
    %937 = vector.load %arg7[%c0_995, %c0_996, %c0_997] : memref<8x4x128xf32, #tpu.memory_space<vmem>>, vector<8x4x128xf32>
    %c0_998 = arith.constant 0 : index
    %c0_999 = arith.constant 0 : index
    %c0_1000 = arith.constant 0 : index
    %938 = vector.load %arg8[%c0_998, %c0_999, %c0_1000] : memref<8x5x128xf32, #tpu.memory_space<vmem>>, vector<8x5x128xf32>
    %cst = arith.constant dense<0.000000e+00> : vector<8x128xf32>
    %939 = vector.multi_reduction <add>, %937, %cst [1] : vector<8x4x128xf32> to vector<8x128xf32>
    %940 = vector.shape_cast %939 : vector<8x128xf32> to vector<8x1x128xf32>
    "tpu.trace_start"() <{level = 10 : i32, message = "bqk,bjk->bqj"}> : () -> ()
    %cst_1001 = arith.constant dense<0.000000e+00> : vector<8x1x5xf32>
    %941 = tpu.matmul %940, %938, %cst_1001 {dimension_numbers = #tpu.dot_dimension_numbers<[2], [2], [1], [1], [0, 0, 0, 1, 1, 1], [0], [0]>} : vector<8x1x128xf32>, vector<8x5x128xf32>, vector<8x1x5xf32> -> vector<8x1x5xf32>
    "tpu.trace_stop"() : () -> ()
    %942 = vector.shape_cast %941 : vector<8x1x5xf32> to vector<8x5xf32>
    %c0_1002 = arith.constant 0 : index
    %c0_1003 = arith.constant 0 : index
    %943 = vector.load %arg3[%c0_1002, %c0_1003] : memref<8x1xf32, #tpu.memory_space<vmem>>, vector<8x1xf32>
    %944 = vector.broadcast %943 : vector<8x1xf32> to vector<8x5xf32>
    %945 = arith.mulf %942, %944 : vector<8x5xf32>
    %c0_1004 = arith.constant 0 : index
    %c0_1005 = arith.constant 0 : index
    %946 = vector.load %arg6[%c0_1004, %c0_1005] : memref<8x5xf32, #tpu.memory_space<vmem>>, vector<8x5xf32>
    tpu.vector_store %arg6[%c0_1004, %c0_1005], %945 {strides = array<i32>} : memref<8x5xf32, #tpu.memory_space<vmem>>, vector<8x5xf32>,
    return
  }
  func.func @transform_0(%arg0: i32, %arg1: memref<16x4xi32, #tpu.memory_space<smem>>, %arg2: memref<16x5xi32, #tpu.memory_space<smem>>) -> (i32, i32) {
    %c0_i32 = arith.constant 0 : i32
    %c0_i32_0 = arith.constant 0 : i32
    return %arg0, %c0_i32 : i32, i32
  }
  func.func @transform_3(%arg0: i32, %arg1: memref<16x4xi32, #tpu.memory_space<smem>>, %arg2: memref<16x5xi32, #tpu.memory_space<smem>>) -> (i32, i32) {
    %c0_i32 = arith.constant 0 : i32
    %c0_i32_0 = arith.constant 0 : i32
    return %arg0, %c0_i32 : i32, i32
  }
}

</mosaic_0001>

<bundles_post_ra>
// kernel: tpu_custom_call.1
= control target key start
LH: loop header
LB: loop body
LE: loop exit
PB: predicated region body
PF: predicated region fallthrough
CT: control target
= control target key end

     0   :  { %s6619_s0 = inlined_call_operand.vmem [shape: s32[16,4], index: 0, kind: input, shape index: {}]   ;;  %s6620_s2 = inlined_call_operand.vmem [shape: f32[16,1], index: 2, kind: input, shape index: {}]   ;;  %s6621_s3 = inlined_call_operand.vmem [shape: f32[65,128], index: 3, kind: input, shape index: {}]   ;;  %s6622_s4 = inlined_call_operand.hbm [shape: f32[16,128], index: 4, kind: input, shape index: {}]   ;;  %s6623_s5 = inlined_call_operand.vmem [shape: f32[16,5], index: 5, kind: output, shape index: {}]   ;;  %s6624_s1 = inlined_call_operand.vmem [shape: s32[16,5], index: 1, kind: input, shape index: {}]  }
   0x1   :  { %6646 = sst [smem:[#allocation196_spill]] %s6620_s2  ;;  %s10_s20 = sshll.u32 %s6619_s0, 4  ;;  %s11_s20 = int_to_ptr.vmem [resolvable:$true] %s10_s20 }
   0x2   :  { %6647 = sst [smem:[#allocation197_spill]] %s6621_s3  ;;  %s14_s23 = sshll.u32 %s6624_s1, 4  ;;  %s15_s23 = int_to_ptr.vmem [resolvable:$true] %s14_s23 }
   0x3   :  { %6648 = sst [smem:[#allocation198_spill]] %s6623_s5  ;;  %s4464_s24 = scalar_lea.vmem %s11_s20, 256 }
   0x4   :  { %p4465_p0 = scmp.ne.s32.totalorder %s11_s20, %s4464_s24  ;;  %p4469_p1 = scmp.lt.s32.totalorder %s11_s20, %s11_s20 }
   0x5   :  { %p4470_p2 = scmp.lt.s32.totalorder %s4464_s24, %s4464_s24 }
   0x7   :  { %p4471_p3 = por %p4470_p2, %p4469_p1 }
   0x9   :  { %p4472_p4 = pnand %p4471_p3, %p4465_p0 }
   0xb   :  { %4475 = shalt.err (!%p4472_p4)  }
   0xc   :  { %s5602_s25 = smov [#allocation7]   ;;  %s4476_s26 = scalar_lea.vmem %s15_s23, 256 }
   0xd   :  { %13 = dma.vmem_to_smem %s11_s20, 256, %s5602_s25, [#allocation6] }
   0xe   :  { %p4477_p5 = scmp.ne.s32.totalorder %s15_s23, %s4476_s26  ;;  %p4481_p6 = scmp.lt.s32.totalorder %s15_s23, %s15_s23 }
   0xf   :  { %p4482_p7 = scmp.lt.s32.totalorder %s4476_s26, %s4476_s26 }
  0x11   :  { %p4483_p8 = por %p4482_p7, %p4481_p6 }
  0x13   :  { %p4484_p9 = pnand %p4483_p8, %p4477_p5 }
  0x15   :  { %4487 = shalt.err (!%p4484_p9)  }
  0x16   :  { %s5603_s0 = smov [#allocation8]  }
  0x17   :  { %17 = dma.vmem_to_smem %s15_s23, 256, %s5603_s0, [#allocation6] }
  0x18   :  { %5452 = dma.done.wait [#allocation6], 512 }
  0x19   :  { %5453 = vsyncadd [#allocation6], 4294966784 }
  0x1a   :  { %19 = sfence }
  0x1b   :  { %s5683_s1 = smov 0  }
  0x1c LB: > { %s4202_s27 = sadd.s32 4294967295, %s5600_s1   ;;  %p4206_p10 = scmp.ge.s32.totalorder %s5600_s1, 1  ;;  %s5600_s1 = sphi %s5683_s1, %s25_s1  }
  0x1d   : > { %p100_p11 = scmp.lt.s32.totalorder %s5600_s1, 3 }
  0x1f   : > { %p101_p12 = pnand %p4206_p10, %p100_p11 }
  0x20   : > { %p118_p13 = scmp.lt.s32.totalorder (!%p101_p12), %s4202_s27, 1  ;;  %s5691_s28 = sshll.u32 (!%p101_p12), %s4202_s27, 10 }
  0x21   : > { %104 = sbr.rel (%p101_p12) target bundleno = 1632 (0x660), region = 24  ;;  %s128_s29 = sld [smem:[#allocation7 + %s5691_s28]] (!%p101_p12) }
  0x22   : > { %s6649_s2 = sld [smem:[#allocation196_spill]] (!%p101_p12)  ;;  %s6650_s5 = sld [smem:[#allocation198_spill]] (!%p101_p12) }
  0x23   : > { %s6651_s3 = sld [smem:[#allocation197_spill]] (!%p101_p12) }
  0x28   : > { %s6674_s27 = smov (!%p118_p13, %s4202_s27), 1 }
  0x29   : > { %s4207_s30 = sshll.u32 %s6674_s27, 3  ;;  %s129_s14 = scalar_lea.vmem %s6651_s3, %s128_s29 }
  0x2a   : > { %s5697_s8 = scalar_lea.vmem %s6649_s2, %s4207_s30  ;;  %s5702_s11 = scalar_lea.vmem %s6650_s5, %s4207_s30  ;;  %v147_v0 = vld [vmem:[%s129_s14] sm:$0x1] }
  0x2b   : > { %148 = vst [vmem:[#allocation2] sm:$0x1] %v147_v0 }
  0x2c   : > { %173 = vsyncadd [#allocation4], 16  ;;  %s174_s15 = sadd.s32 1, %s5691_s28 }
  0x2d   : > { %s175_s16 = sld [smem:[#allocation7 + %s174_s15]] }
  0x33   : > { %s176_s19 = scalar_lea.vmem %s6651_s3, %s175_s16 }
  0x34   : > { %v196_v1 = vld [vmem:[%s176_s19] sm:$0x1] }
  0x35   : > { %197 = vst [vmem:[#allocation2 + $0x1] sm:$0x1] %v196_v1 }
  0x36   : > { %222 = vsyncadd [#allocation4 + $0x1], 16  ;;  %s223_s20 = sadd.s32 2, %s5691_s28 }
  0x37   : > { %s224_s21 = sld [smem:[#allocation7 + %s223_s20]] }
  0x3d   : > { %s225_s24 = scalar_lea.vmem %s6651_s3, %s224_s21 }
  0x3e   : > { %v245_v2 = vld [vmem:[%s225_s24] sm:$0x1] }
  0x3f   : > { %246 = vst [vmem:[#allocation2 + $0x2] sm:$0x1] %v245_v2 }
  0x40   : > { %271 = vsyncadd [#allocation4 + $0x2], 16  ;;  %s272_s25 = sadd.s32 3, %s5691_s28 }
  0x41   : > { %s273_s26 = sld [smem:[#allocation7 + %s272_s25]] }
  0x47   : > { %s274_s29 = scalar_lea.vmem %s6651_s3, %s273_s26 }
  0x48   : > { %v294_v3 = vld [vmem:[%s274_s29] sm:$0x1] }
  0x49   : > { %295 = vst [vmem:[#allocation2 + $0x3] sm:$0x1] %v294_v3 }
  0x4a   : > { %320 = vsyncadd [#allocation4 + $0x3], 16  ;;  %s5726_s30 = sadd.s32 128, %s5691_s28 }
  0x4b   : > { %s323_s6 = sld [smem:[#allocation7 + %s5726_s30]] }
  0x51   : > { %s324_s10 = scalar_lea.vmem %s6651_s3, %s323_s6 }
  0x52   : > { %v344_v4 = vld [vmem:[%s324_s10] sm:$0x1] }
  0x53   : > { %345 = vst [vmem:[#allocation2 + $0x4] sm:$0x1] %v344_v4 }
  0x54   : > { %370 = vsyncadd [#allocation4 + $0x4], 16  ;;  %s6645_s12 = sadd.s32 1, %s5726_s30 }
  0x55   : > { %s372_s13 = sld [smem:[#allocation7 + %s6645_s12]] }
  0x5b   : > { %s373_s17 = scalar_lea.vmem %s6651_s3, %s372_s13 }
  0x5c   : > { %v393_v5 = vld [vmem:[%s373_s17] sm:$0x1] }
  0x5d   : > { %394 = vst [vmem:[#allocation2 + $0x5] sm:$0x1] %v393_v5 }
  0x5e   : > { %419 = vsyncadd [#allocation4 + $0x5], 16  ;;  %s6644_s18 = sadd.s32 2, %s5726_s30 }
  0x5f   : > { %s421_s19 = sld [smem:[#allocation7 + %s6644_s18]] }
  0x65   : > { %s422_s23 = scalar_lea.vmem %s6651_s3, %s421_s19 }
  0x66   : > { %v442_v6 = vld [vmem:[%s422_s23] sm:$0x1] }
  0x67   : > { %443 = vst [vmem:[#allocation2 + $0x6] sm:$0x1] %v442_v6 }
  0x68   : > { %468 = vsyncadd [#allocation4 + $0x6], 16  ;;  %s6643_s24 = sadd.s32 3, %s5726_s30 }
  0x69   : > { %s470_s26 = sld [smem:[#allocation7 + %s6643_s24]] }
  0x6f   : > { %s471_s29 = scalar_lea.vmem %s6651_s3, %s470_s26 }
  0x70   : > { %v491_v7 = vld [vmem:[%s471_s29] sm:$0x1] }
  0x71   : > { %492 = vst [vmem:[#allocation2 + $0x7] sm:$0x1] %v491_v7 }
  0x72   : > { %517 = vsyncadd [#allocation4 + $0x7], 16  ;;  %s5751_s6 = sadd.s32 256, %s5691_s28 }
  0x73   : > { %s520_s7 = sld [smem:[#allocation7 + %s5751_s6]] }
  0x79   : > { %s521_s13 = scalar_lea.vmem %s6651_s3, %s520_s7 }
  0x7a   : > { %v541_v8 = vld [vmem:[%s521_s13] sm:$0x1] }
  0x7b   : > { %542 = vst [vmem:[#allocation2 + $0x8] sm:$0x1] %v541_v8 }
  0x7c   : > { %567 = vsyncadd [#allocation4 + $0x8], 16  ;;  %s6639_s14 = sadd.s32 1, %s5751_s6 }
  0x7d   : > { %s569_s16 = sld [smem:[#allocation7 + %s6639_s14]] }
  0x83   : > { %s570_s21 = scalar_lea.vmem %s6651_s3, %s569_s16 }
  0x84   : > { %v590_v9 = vld [vmem:[%s570_s21] sm:$0x1] }
  0x85   : > { %591 = vst [vmem:[#allocation2 + $0x9] sm:$0x1] %v590_v9 }
  0x86   : > { %616 = vsyncadd [#allocation4 + $0x9], 16  ;;  %s6635_s22 = sadd.s32 2, %s5751_s6 }
  0x87   : > { %s618_s23 = sld [smem:[#allocation7 + %s6635_s22]] }
  0x8d   : > { %s619_s27 = scalar_lea.vmem %s6651_s3, %s618_s23 }
  0x8e   : > { %v639_v10 = vld [vmem:[%s619_s27] sm:$0x1] }
  0x8f   : > { %640 = vst [vmem:[#allocation2 + $0xa] sm:$0x1] %v639_v10 }
  0x90   : > { %665 = vsyncadd [#allocation4 + $0xa], 16  ;;  %s6631_s29 = sadd.s32 3, %s5751_s6 }
  0x91   : > { %s667_s7 = sld [smem:[#allocation7 + %s6631_s29]] }
  0x97   : > { %s668_s13 = scalar_lea.vmem %s6651_s3, %s667_s7 }
  0x98   : > { %v688_v11 = vld [vmem:[%s668_s13] sm:$0x1] }
  0x99   : > { %689 = vst [vmem:[#allocation2 + $0xb] sm:$0x1] %v688_v11 }
  0x9a   : > { %714 = vsyncadd [#allocation4 + $0xb], 16  ;;  %s5776_s16 = sadd.s32 384, %s5691_s28 }
  0x9b   : > { %s717_s17 = sld [smem:[#allocation7 + %s5776_s16]] }
  0xa1   : > { %s718_s23 = scalar_lea.vmem %s6651_s3, %s717_s17 }
  0xa2   : > { %v738_v12 = vld [vmem:[%s718_s23] sm:$0x1] }
  0xa3   : > { %739 = vst [vmem:[#allocation2 + $0xc] sm:$0x1] %v738_v12 }
  0xa4   : > { %764 = vsyncadd [#allocation4 + $0xc], 16  ;;  %s6627_s26 = sadd.s32 1, %s5776_s16 }
  0xa5   : > { %s766_s0 = sld [smem:[#allocation7 + %s6627_s26]] }
  0xab   : > { %s767_s9 = scalar_lea.vmem %s6651_s3, %s766_s0 }
  0xac   : > { %v787_v13 = vld [vmem:[%s767_s9] sm:$0x1] }
  0xad   : > { %788 = vst [vmem:[#allocation2 + $0xd] sm:$0x1] %v787_v13 }
  0xae   : > { %813 = vsyncadd [#allocation4 + $0xd], 16  ;;  %s6625_s10 = sadd.s32 2, %s5776_s16 }
  0xaf   : > { %s815_s13 = sld [smem:[#allocation7 + %s6625_s10]] }
  0xb5   : > { %s816_s21 = scalar_lea.vmem %s6651_s3, %s815_s13 }
  0xb6   : > { %v836_v14 = vld [vmem:[%s816_s21] sm:$0x1] }
  0xb7   : > { %837 = vst [vmem:[#allocation2 + $0xe] sm:$0x1] %v836_v14 }
  0xb8   : > { %862 = vsyncadd [#allocation4 + $0xe], 16  ;;  %s6626_s23 = sadd.s32 3, %s5776_s16 }
  0xb9   : > { %s864_s0 = sld [smem:[#allocation7 + %s6626_s23]] }
  0xbf   : > { %s865_s9 = scalar_lea.vmem %s6651_s3, %s864_s0 }
  0xc0   : > { %v885_v15 = vld [vmem:[%s865_s9] sm:$0x1] }
  0xc1   : > { %886 = vst [vmem:[#allocation2 + $0xf] sm:$0x1] %v885_v15 }
  0xc2   : > { %911 = vsyncadd [#allocation4 + $0xf], 16  ;;  %s5801_s10 = sadd.s32 512, %s5691_s28 }
  0xc3   : > { %s914_s13 = sld [smem:[#allocation7 + %s5801_s10]] }
  0xc9   : > { %s915_s21 = scalar_lea.vmem %s6651_s3, %s914_s13 }
  0xca   : > { %v935_v16 = vld [vmem:[%s915_s21] sm:$0x1] }
  0xcb   : > { %936 = vst [vmem:[#allocation2 + $0x10] sm:$0x1] %v935_v16 }
  0xcc   : > { %961 = vsyncadd [#allocation4 + $0x10], 16  ;;  %s6628_s23 = sadd.s32 1, %s5801_s10 }
  0xcd   : > { %s963_s0 = sld [smem:[#allocation7 + %s6628_s23]] }
  0xd3   : > { %s964_s9 = scalar_lea.vmem %s6651_s3, %s963_s0 }
  0xd4   : > { %v984_v17 = vld [vmem:[%s964_s9] sm:$0x1] }
  0xd5   : > { %985 = vst [vmem:[#allocation2 + $0x11] sm:$0x1] %v984_v17 }
  0xd6   : > { %1010 = vsyncadd [#allocation4 + $0x11], 16  ;;  %s6629_s26 = sadd.s32 2, %s5801_s10 }
  0xd7   : > { %s1012_s13 = sld [smem:[#allocation7 + %s6629_s26]] }
  0xdd   : > { %s1013_s21 = scalar_lea.vmem %s6651_s3, %s1012_s13 }
  0xde   : > { %v1033_v18 = vld [vmem:[%s1013_s21] sm:$0x1] }
  0xdf   : > { %1034 = vst [vmem:[#allocation2 + $0x12] sm:$0x1] %v1033_v18 }
  0xe0   : > { %1059 = vsyncadd [#allocation4 + $0x12], 16  ;;  %s6630_s23 = sadd.s32 3, %s5801_s10 }
  0xe1   : > { %s1061_s0 = sld [smem:[#allocation7 + %s6630_s23]] }
  0xe7   : > { %s1062_s9 = scalar_lea.vmem %s6651_s3, %s1061_s0 }
  0xe8   : > { %v1082_v19 = vld [vmem:[%s1062_s9] sm:$0x1] }
  0xe9   : > { %1083 = vst [vmem:[#allocation2 + $0x13] sm:$0x1] %v1082_v19 }
  0xea   : > { %1108 = vsyncadd [#allocation4 + $0x13], 16  ;;  %s5826_s26 = sadd.s32 640, %s5691_s28 }
  0xeb   : > { %s1111_s13 = sld [smem:[#allocation7 + %s5826_s26]] }
  0xf1   : > { %s1112_s21 = scalar_lea.vmem %s6651_s3, %s1111_s13 }
  0xf2   : > { %v1132_v20 = vld [vmem:[%s1112_s21] sm:$0x1] }
  0xf3   : > { %1133 = vst [vmem:[#allocation2 + $0x14] sm:$0x1] %v1132_v20 }
  0xf4   : > { %1158 = vsyncadd [#allocation4 + $0x14], 16  ;;  %s6632_s23 = sadd.s32 1, %s5826_s26 }
  0xf5   : > { %s1160_s0 = sld [smem:[#allocation7 + %s6632_s23]] }
  0xfb   : > { %s1161_s9 = scalar_lea.vmem %s6651_s3, %s1160_s0 }
  0xfc   : > { %v1181_v21 = vld [vmem:[%s1161_s9] sm:$0x1] }
  0xfd   : > { %1182 = vst [vmem:[#allocation2 + $0x15] sm:$0x1] %v1181_v21 }
  0xfe   : > { %1207 = vsyncadd [#allocation4 + $0x15], 16  ;;  %s6633_s29 = sadd.s32 2, %s5826_s26 }
  0xff   : > { %s1209_s13 = sld [smem:[#allocation7 + %s6633_s29]] }
 0x105   : > { %s1210_s21 = scalar_lea.vmem %s6651_s3, %s1209_s13 }
 0x106   : > { %v1230_v22 = vld [vmem:[%s1210_s21] sm:$0x1] }
 0x107   : > { %1231 = vst [vmem:[#allocation2 + $0x16] sm:$0x1] %v1230_v22 }
 0x108   : > { %1256 = vsyncadd [#allocation4 + $0x16], 16  ;;  %s6634_s23 = sadd.s32 3, %s5826_s26 }
 0x109   : > { %s1258_s0 = sld [smem:[#allocation7 + %s6634_s23]] }
 0x10f   : > { %s1259_s9 = scalar_lea.vmem %s6651_s3, %s1258_s0 }
 0x110   : > { %v1279_v23 = vld [vmem:[%s1259_s9] sm:$0x1] }
 0x111   : > { %1280 = vst [vmem:[#allocation2 + $0x17] sm:$0x1] %v1279_v23 }
 0x112   : > { %1305 = vsyncadd [#allocation4 + $0x17], 16  ;;  %s5851_s29 = sadd.s32 768, %s5691_s28 }
 0x113   : > { %s1308_s13 = sld [smem:[#allocation7 + %s5851_s29]] }
 0x119   : > { %s1309_s21 = scalar_lea.vmem %s6651_s3, %s1308_s13 }
 0x11a   : > { %v1329_v24 = vld [vmem:[%s1309_s21] sm:$0x1] }
 0x11b   : > { %1330 = vst [vmem:[#allocation2 + $0x18] sm:$0x1] %v1329_v24 }
 0x11c   : > { %1355 = vsyncadd [#allocation4 + $0x18], 16  ;;  %s6636_s23 = sadd.s32 1, %s5851_s29 }
 0x11d   : > { %s1357_s0 = sld [smem:[#allocation7 + %s6636_s23]] }
 0x123   : > { %s1358_s9 = scalar_lea.vmem %s6651_s3, %s1357_s0 }
 0x124   : > { %v1378_v25 = vld [vmem:[%s1358_s9] sm:$0x1] }
 0x125   : > { %1379 = vst [vmem:[#allocation2 + $0x19] sm:$0x1] %v1378_v25 }
 0x126   : > { %1404 = vsyncadd [#allocation4 + $0x19], 16  ;;  %s6637_s22 = sadd.s32 2, %s5851_s29 }
 0x127   : > { %s1406_s13 = sld [smem:[#allocation7 + %s6637_s22]] }
 0x12d   : > { %s1407_s21 = scalar_lea.vmem %s6651_s3, %s1406_s13 }
 0x12e   : > { %v1427_v26 = vld [vmem:[%s1407_s21] sm:$0x1] }
 0x12f   : > { %1428 = vst [vmem:[#allocation2 + $0x1a] sm:$0x1] %v1427_v26 }
 0x130   : > { %1453 = vsyncadd [#allocation4 + $0x1a], 16  ;;  %s6638_s23 = sadd.s32 3, %s5851_s29 }
 0x131   : > { %s1455_s0 = sld [smem:[#allocation7 + %s6638_s23]] }
 0x137   : > { %s1456_s9 = scalar_lea.vmem %s6651_s3, %s1455_s0 }
 0x138   : > { %v1476_v27 = vld [vmem:[%s1456_s9] sm:$0x1] }
 0x139   : > { %1477 = vst [vmem:[#allocation2 + $0x1b] sm:$0x1] %v1476_v27 }
 0x13a   : > { %1502 = vsyncadd [#allocation4 + $0x1b], 16  ;;  %s5876_s22 = sadd.s32 896, %s5691_s28 }
 0x13b   : > { %s1505_s13 = sld [smem:[#allocation7 + %s5876_s22]] }
 0x141   : > { %s1506_s21 = scalar_lea.vmem %s6651_s3, %s1505_s13 }
 0x142   : > { %v1526_v28 = vld [vmem:[%s1506_s21] sm:$0x1] }
 0x143   : > { %1527 = vst [vmem:[#allocation2 + $0x1c] sm:$0x1] %v1526_v28 }
 0x144   : > { %1552 = vsyncadd [#allocation4 + $0x1c], 16  ;;  %s6640_s23 = sadd.s32 1, %s5876_s22 }
 0x145   : > { %s1554_s0 = sld [smem:[#allocation7 + %s6640_s23]] }
 0x14b   : > { %s1555_s9 = scalar_lea.vmem %s6651_s3, %s1554_s0 }
 0x14c   : > { %v1575_v29 = vld [vmem:[%s1555_s9] sm:$0x1] }
 0x14d   : > { %1576 = vst [vmem:[#allocation2 + $0x1d] sm:$0x1] %v1575_v29 }
 0x14e   : > { %1601 = vsyncadd [#allocation4 + $0x1d], 16  ;;  %s6642_s14 = sadd.s32 2, %s5876_s22 }
 0x14f   : > { %s1603_s13 = sld [smem:[#allocation7 + %s6642_s14]] }
 0x155   : > { %s1604_s21 = scalar_lea.vmem %s6651_s3, %s1603_s13 }
 0x156   : > { %v1624_v30 = vld [vmem:[%s1604_s21] sm:$0x1] }
 0x157   : > { %1625 = vst [vmem:[#allocation2 + $0x1e] sm:$0x1] %v1624_v30 }
 0x158   : > { %1650 = vsyncadd [#allocation4 + $0x1e], 16  ;;  %s6641_s23 = sadd.s32 3, %s5876_s22 }
 0x159   : > { %s1652_s0 = sld [smem:[#allocation7 + %s6641_s23]] }
 0x15f   : > { %s1653_s9 = scalar_lea.vmem %s6651_s3, %s1652_s0 }
 0x160   : > { %v1673_v31 = vld [vmem:[%s1653_s9] sm:$0x1] }
 0x161   : > { %1674 = vst [vmem:[#allocation2 + $0x1f] sm:$0x1] %v1673_v31 }
 0x162   : > { %1699 = vsyncadd [#allocation4 + $0x1f], 16  ;;  %s1700_s13 = sld [smem:[#allocation8 + %s5691_s28]]  ;;  %s5604_s17 = smov [#allocation3]  }
 0x163   : > { %s1710_s19 = sshll.u32 %s5604_s17, 4  ;;  %s5903_s21 = sld [smem:[#allocation8 + %s174_s15]]  ;;  %s5905_s19 = int_to_ptr.vmem [resolvable:$true] %s1710_s19 }
 0x164   : > { %s5605_s23 = smov [#allocation3 + $0x1]   ;;  %s5909_s0 = sld [smem:[#allocation8 + %s223_s20]] }
 0x165   : > { %s1726_s14 = sshll.u32 %s5605_s23, 4  ;;  %s5606_s27 = smov [#allocation3 + $0x2]   ;;  %s5911_s14 = int_to_ptr.vmem [resolvable:$true] %s1726_s14 }
 0x166   : > { %s1742_s7 = sshll.u32 %s5606_s27, 4  ;;  %s5915_s9 = sld [smem:[#allocation8 + %s272_s25]]  ;;  %s5917_s7 = int_to_ptr.vmem [resolvable:$true] %s1742_s7 }
 0x167   : > { %s5926_s3 = scalar_lea.hbm %s6622_s4, 256 }
 0x168   : > { %s4218_s24 = sshll.u32 %s1700_s13, 4 }
 0x169   : > { %s1702_s18 = scalar_lea.hbm %s6622_s4, %s4218_s24  ;;  %s4219_s12 = sshll.u32 %s5903_s21, 4 }
 0x16a   : > { %s4488_s2 = scalar_lea.hbm %s1702_s18, 16  ;;  %p4491_p1 = scmp.lt.u32.totalorder %s1702_s18, %s6622_s4 }
 0x16b   : > { %p4489_p0 = scmp.ne.s32.totalorder %s1702_s18, %s4488_s2  ;;  %p4492_p2 = scmp.lt.u32.totalorder %s5926_s3, %s4488_s2 }
 0x16c   : > { %p4494_p4 = scmp.lt.u32.totalorder %s4488_s2, %s1702_s18 }
 0x16d   : > { %p4493_p3 = por %p4492_p2, %p4491_p1 }
 0x16f   : > { %p4495_p5 = por %p4494_p4, %p4493_p3 }
 0x171   : > { %p4496_p6 = pnand %p4495_p5, %p4489_p0 }
 0x173   : > { %4499 = shalt.err (!%p4496_p6)  }
 0x174   : > { %s4500_s25 = scalar_lea.vmem %s5905_s19, 16  ;;  %s5935_s24 = scalar_lea.vmem %s5905_s19, 1024 }
 0x175   : > { %p4501_p7 = scmp.ne.s32.totalorder %s5905_s19, %s4500_s25  ;;  %p4505_p8 = scmp.lt.s32.totalorder %s5905_s19, %s5905_s19 }
 0x176   : > { %p4506_p9 = scmp.lt.s32.totalorder %s5935_s24, %s4500_s25 }
 0x178   : > { %p4507_p10 = por %p4506_p9, %p4505_p8 }
 0x17a   : > { %p4508_p11 = pnand %p4507_p10, %p4501_p7 }
 0x17c   : > { %4511 = shalt.err (!%p4508_p11)  }
 0x17d   : > { %1713 = dma.hbm_to_vmem [thread:$0]  %s1702_s18, 16, %s5905_s19, [#allocation5] }
 0x17e   : > { %s1716_s13 = scalar_lea.hbm %s6622_s4, %s4219_s12  ;;  %s4220_s21 = sshll.u32 %s5909_s0, 4 }
 0x17f   : > { %s4512_s15 = scalar_lea.hbm %s1716_s13, 16  ;;  %p4515_p13 = scmp.lt.u32.totalorder %s1716_s13, %s6622_s4 }
 0x180   : > { %p4513_p12 = scmp.ne.s32.totalorder %s1716_s13, %s4512_s15  ;;  %p4516_p0 = scmp.lt.u32.totalorder %s5926_s3, %s4512_s15 }
 0x181   : > { %p4518_p2 = scmp.lt.u32.totalorder %s4512_s15, %s1716_s13 }
 0x182   : > { %p4517_p1 = por %p4516_p0, %p4515_p13 }
 0x184   : > { %p4519_p3 = por %p4518_p2, %p4517_p1 }
 0x186   : > { %p4520_p4 = pnand %p4519_p3, %p4513_p12 }
 0x188   : > { %4523 = shalt.err (!%p4520_p4)  }
 0x189   : > { %s4524_s18 = scalar_lea.vmem %s5911_s14, 16  ;;  %p4529_p6 = scmp.lt.s32.totalorder %s5911_s14, %s5905_s19 }
 0x18a   : > { %p4525_p5 = scmp.ne.s32.totalorder %s5911_s14, %s4524_s18  ;;  %p4530_p7 = scmp.lt.s32.totalorder %s5935_s24, %s4524_s18 }
 0x18c   : > { %p4531_p8 = por %p4530_p7, %p4529_p6 }
 0x18e   : > { %p4532_p9 = pnand %p4531_p8, %p4525_p5 }
 0x190   : > { %4535 = shalt.err (!%p4532_p9)  }
 0x191   : > { %1729 = dma.hbm_to_vmem [thread:$0]  %s1716_s13, 16, %s5911_s14, [#allocation5 + $0x1] }
 0x192   : > { %s1732_s20 = scalar_lea.hbm %s6622_s4, %s4220_s21  ;;  %s4221_s27 = sshll.u32 %s5915_s9, 4 }
 0x193   : > { %s4536_s25 = scalar_lea.hbm %s1732_s20, 16  ;;  %p4539_p11 = scmp.lt.u32.totalorder %s1732_s20, %s6622_s4 }
 0x194   : > { %p4537_p10 = scmp.ne.s32.totalorder %s1732_s20, %s4536_s25  ;;  %p4540_p12 = scmp.lt.u32.totalorder %s5926_s3, %s4536_s25 }
 0x195   : > { %p4542_p0 = scmp.lt.u32.totalorder %s4536_s25, %s1732_s20 }
 0x196   : > { %p4541_p13 = por %p4540_p12, %p4539_p11 }
 0x198   : > { %p4543_p1 = por %p4542_p0, %p4541_p13 }
 0x19a   : > { %p4544_p2 = pnand %p4543_p1, %p4537_p10 }
 0x19c   : > { %4547 = shalt.err (!%p4544_p2)  }
 0x19d   : > { %s4548_s14 = scalar_lea.vmem %s5917_s7, 16  ;;  %p4553_p4 = scmp.lt.s32.totalorder %s5917_s7, %s5905_s19 }
 0x19e   : > { %p4549_p3 = scmp.ne.s32.totalorder %s5917_s7, %s4548_s14  ;;  %p4554_p5 = scmp.lt.s32.totalorder %s5935_s24, %s4548_s14 }
 0x1a0   : > { %p4555_p6 = por %p4554_p5, %p4553_p4 }
 0x1a2   : > { %p4556_p7 = pnand %p4555_p6, %p4549_p3 }
 0x1a4   : > { %4559 = shalt.err (!%p4556_p7)  }
 0x1a5   : > { %1745 = dma.hbm_to_vmem [thread:$0]  %s1732_s20, 16, %s5917_s7, [#allocation5 + $0x2] }
 0x1a6   : > { %s1748_s21 = scalar_lea.hbm %s6622_s4, %s4221_s27  ;;  %s5607_s15 = smov [#allocation3 + $0x3]  }
 0x1a7   : > { %s1758_s17 = sshll.u32 %s5607_s15, 4  ;;  %s1762_s23 = sadd.s32 4, %s5691_s28  ;;  %s1759_s17 = int_to_ptr.vmem [resolvable:$true] %s1758_s17 }
 0x1a8   : > { %s1763_s18 = sld [smem:[#allocation8 + %s1762_s23]]  ;;  %s4560_s12 = scalar_lea.hbm %s1748_s21, 16 }
 0x1a9   : > { %p4561_p8 = scmp.ne.s32.totalorder %s1748_s21, %s4560_s12  ;;  %p4563_p9 = scmp.lt.u32.totalorder %s1748_s21, %s6622_s4 }
 0x1aa   : > { %p4564_p10 = scmp.lt.u32.totalorder %s5926_s3, %s4560_s12  ;;  %p4566_p12 = scmp.lt.u32.totalorder %s4560_s12, %s1748_s21 }
 0x1ac   : > { %p4565_p11 = por %p4564_p10, %p4563_p9 }
 0x1ae   : > { %p4567_p13 = por %p4566_p12, %p4565_p11 }
 0x1b0   : > { %p4568_p0 = pnand %p4567_p13, %p4561_p8 }
 0x1b2   : > { %4571 = shalt.err (!%p4568_p0)  }
 0x1b3   : > { %s4572_s7 = scalar_lea.vmem %s1759_s17, 16  ;;  %p4577_p2 = scmp.lt.s32.totalorder %s1759_s17, %s5905_s19 }
 0x1b4   : > { %p4573_p1 = scmp.ne.s32.totalorder %s1759_s17, %s4572_s7  ;;  %p4578_p3 = scmp.lt.s32.totalorder %s5935_s24, %s4572_s7 }
 0x1b6   : > { %p4579_p4 = por %p4578_p3, %p4577_p2 }
 0x1b8   : > { %p4580_p5 = pnand %p4579_p4, %p4573_p1 }
 0x1ba   : > { %4583 = shalt.err (!%p4580_p5)  }
 0x1bb   : > { %1761 = dma.hbm_to_vmem [thread:$0]  %s1748_s21, 16, %s1759_s17, [#allocation5 + $0x3] }
 0x1bc   : > { %s5980_s28 = sld [smem:[#allocation8 + %s5726_s30]]  ;;  %s5608_s20 = smov [#allocation3 + $0x4]  }
 0x1bd   : > { %s1775_s27 = sshll.u32 %s5608_s20, 4  ;;  %s5609_s2 = smov [#allocation3 + $0x8]   ;;  %s1776_s27 = int_to_ptr.vmem [resolvable:$true] %s1775_s27 }
 0x1be   : > { %s1791_s5 = sshll.u32 %s5609_s2, 4  ;;  %s6652_s14 = sadd.s32 1, %s5726_s30  ;;  %s5982_s5 = int_to_ptr.vmem [resolvable:$true] %s1791_s5 }
 0x1bf   : > { %s5986_s9 = sld [smem:[#allocation8 + %s6652_s14]]  ;;  %s4222_s13 = sshll.u32 %s1763_s18, 4 }
 0x1c0   : > { %s1765_s21 = scalar_lea.hbm %s6622_s4, %s4222_s13  ;;  %s5610_s17 = smov [#allocation3 + $0x9]  }
 0x1c1   : > { %s1807_s12 = sshll.u32 %s5610_s17, 4  ;;  %s4584_s0 = scalar_lea.hbm %s1765_s21, 16  ;;  %s5998_s12 = int_to_ptr.vmem [resolvable:$true] %s1807_s12 }
 0x1c2   : > { %p4585_p6 = scmp.ne.s32.totalorder %s1765_s21, %s4584_s0  ;;  %p4587_p7 = scmp.lt.u32.totalorder %s1765_s21, %s6622_s4 }
 0x1c3   : > { %p4588_p8 = scmp.lt.u32.totalorder %s5926_s3, %s4584_s0  ;;  %p4590_p10 = scmp.lt.u32.totalorder %s4584_s0, %s1765_s21 }
 0x1c5   : > { %p4589_p9 = por %p4588_p8, %p4587_p7 }
 0x1c7   : > { %p4591_p11 = por %p4590_p10, %p4589_p9 }
 0x1c9   : > { %p4592_p12 = pnand %p4591_p11, %p4585_p6 }
 0x1cb   : > { %4595 = shalt.err (!%p4592_p12)  }
 0x1cc   : > { %s4596_s20 = scalar_lea.vmem %s1776_s27, 16  ;;  %p4601_p0 = scmp.lt.s32.totalorder %s1776_s27, %s5905_s19 }
 0x1cd   : > { %p4597_p13 = scmp.ne.s32.totalorder %s1776_s27, %s4596_s20  ;;  %p4602_p1 = scmp.lt.s32.totalorder %s5935_s24, %s4596_s20 }
 0x1cf   : > { %p4603_p2 = por %p4602_p1, %p4601_p0 }
 0x1d1   : > { %p4604_p3 = pnand %p4603_p2, %p4597_p13 }
 0x1d3   : > { %4607 = shalt.err (!%p4604_p3)  }
 0x1d4   : > { %1778 = dma.hbm_to_vmem [thread:$0]  %s1765_s21, 16, %s1776_s27, [#allocation5 + $0x4] }
 0x1d5   : > { %s4223_s18 = sshll.u32 %s5980_s28, 4  ;;  %s6653_s15 = sadd.s32 2, %s5726_s30 }
 0x1d6   : > { %s1781_s13 = scalar_lea.hbm %s6622_s4, %s4223_s18  ;;  %s6005_s23 = sld [smem:[#allocation8 + %s6653_s15]] }
 0x1d7   : > { %s4608_s17 = scalar_lea.hbm %s1781_s13, 16  ;;  %p4611_p5 = scmp.lt.u32.totalorder %s1781_s13, %s6622_s4 }
 0x1d8   : > { %p4609_p4 = scmp.ne.s32.totalorder %s1781_s13, %s4608_s17  ;;  %p4612_p6 = scmp.lt.u32.totalorder %s5926_s3, %s4608_s17 }
 0x1d9   : > { %p4614_p8 = scmp.lt.u32.totalorder %s4608_s17, %s1781_s13 }
 0x1da   : > { %p4613_p7 = por %p4612_p6, %p4611_p5 }
 0x1dc   : > { %p4615_p9 = por %p4614_p8, %p4613_p7 }
 0x1de   : > { %p4616_p10 = pnand %p4615_p9, %p4609_p4 }
 0x1e0   : > { %4619 = shalt.err (!%p4616_p10)  }
 0x1e1   : > { %s4620_s28 = scalar_lea.vmem %s5982_s5, 16  ;;  %p4625_p12 = scmp.lt.s32.totalorder %s5982_s5, %s5905_s19 }
 0x1e2   : > { %p4621_p11 = scmp.ne.s32.totalorder %s5982_s5, %s4620_s28  ;;  %p4626_p13 = scmp.lt.s32.totalorder %s5935_s24, %s4620_s28 }
 0x1e4   : > { %p4627_p0 = por %p4626_p13, %p4625_p12 }
 0x1e6   : > { %p4628_p1 = pnand %p4627_p0, %p4621_p11 }
 0x1e8   : > { %4631 = shalt.err (!%p4628_p1)  }
 0x1e9   : > { %1794 = dma.hbm_to_vmem [thread:$0]  %s1781_s13, 16, %s5982_s5, [#allocation5 + $0x5] }
 0x1ea   : > { %s4224_s27 = sshll.u32 %s5986_s9, 4  ;;  %s5611_s18 = smov [#allocation3 + $0xa]  }
 0x1eb   : > { %s1797_s20 = scalar_lea.hbm %s6622_s4, %s4224_s27  ;;  %s1823_s2 = sshll.u32 %s5611_s18, 4  ;;  %s1824_s2 = int_to_ptr.vmem [resolvable:$true] %s1823_s2 }
 0x1ec   : > { %s4632_s14 = scalar_lea.hbm %s1797_s20, 16  ;;  %p4635_p3 = scmp.lt.u32.totalorder %s1797_s20, %s6622_s4 }
 0x1ed   : > { %p4633_p2 = scmp.ne.s32.totalorder %s1797_s20, %s4632_s14  ;;  %p4636_p4 = scmp.lt.u32.totalorder %s5926_s3, %s4632_s14 }
 0x1ee   : > { %p4638_p6 = scmp.lt.u32.totalorder %s4632_s14, %s1797_s20 }
 0x1ef   : > { %p4637_p5 = por %p4636_p4, %p4635_p3 }
 0x1f1   : > { %p4639_p7 = por %p4638_p6, %p4637_p5 }
 0x1f3   : > { %p4640_p8 = pnand %p4639_p7, %p4633_p2 }
 0x1f5   : > { %4643 = shalt.err (!%p4640_p8)  }
 0x1f6   : > { %s4644_s5 = scalar_lea.vmem %s5998_s12, 16  ;;  %p4649_p10 = scmp.lt.s32.totalorder %s5998_s12, %s5905_s19 }
 0x1f7   : > { %p4645_p9 = scmp.ne.s32.totalorder %s5998_s12, %s4644_s5  ;;  %p4650_p11 = scmp.lt.s32.totalorder %s5935_s24, %s4644_s5 }
 0x1f9   : > { %p4651_p12 = por %p4650_p11, %p4649_p10 }
 0x1fb   : > { %p4652_p13 = pnand %p4651_p12, %p4645_p9 }
 0x1fd   : > { %4655 = shalt.err (!%p4652_p13)  }
 0x1fe   : > { %1810 = dma.hbm_to_vmem [thread:$0]  %s1797_s20, 16, %s5998_s12, [#allocation5 + $0x6] }
 0x1ff   : > { %s6654_s9 = sadd.s32 3, %s5726_s30  ;;  %s4225_s0 = sshll.u32 %s6005_s23, 4 }
 0x200   : > { %s6033_s13 = sld [smem:[#allocation8 + %s6654_s9]]  ;;  %s1813_s27 = scalar_lea.hbm %s6622_s4, %s4225_s0 }
 0x201   : > { %s5612_s21 = smov [#allocation3 + $0xb]   ;;  %s4656_s18 = scalar_lea.hbm %s1813_s27, 16 }
 0x202   : > { %s1839_s7 = sshll.u32 %s5612_s21, 4  ;;  %p4657_p0 = scmp.ne.s32.totalorder %s1813_s27, %s4656_s18  ;;  %s1840_s7 = int_to_ptr.vmem [resolvable:$true] %s1839_s7 }
 0x203   : > { %p4659_p1 = scmp.lt.u32.totalorder %s1813_s27, %s6622_s4  ;;  %p4660_p2 = scmp.lt.u32.totalorder %s5926_s3, %s4656_s18 }
 0x204   : > { %p4662_p4 = scmp.lt.u32.totalorder %s4656_s18, %s1813_s27 }
 0x205   : > { %p4661_p3 = por %p4660_p2, %p4659_p1 }
 0x207   : > { %p4663_p5 = por %p4662_p4, %p4661_p3 }
 0x209   : > { %p4664_p6 = pnand %p4663_p5, %p4657_p0 }
 0x20b   : > { %4667 = shalt.err (!%p4664_p6)  }
 0x20c   : > { %s4668_s12 = scalar_lea.vmem %s1824_s2, 16  ;;  %p4673_p8 = scmp.lt.s32.totalorder %s1824_s2, %s5905_s19 }
 0x20d   : > { %p4669_p7 = scmp.ne.s32.totalorder %s1824_s2, %s4668_s12  ;;  %p4674_p9 = scmp.lt.s32.totalorder %s5935_s24, %s4668_s12 }
 0x20f   : > { %p4675_p10 = por %p4674_p9, %p4673_p8 }
 0x211   : > { %p4676_p11 = pnand %p4675_p10, %p4669_p7 }
 0x213   : > { %4679 = shalt.err (!%p4676_p11)  }
 0x214   : > { %1826 = dma.hbm_to_vmem [thread:$0]  %s1813_s27, 16, %s1824_s2, [#allocation5 + $0x7] }
 0x215   : > { %s1843_s23 = sadd.s32 4, %s5726_s30  ;;  %s4226_s17 = sshll.u32 %s6033_s13, 4 }
 0x216   : > { %s6046_s20 = sld [smem:[#allocation8 + %s1843_s23]]  ;;  %s5613_s5 = smov [#allocation3 + $0xc]  }
 0x217   : > { %s1856_s9 = sshll.u32 %s5613_s5, 4  ;;  %s1829_s28 = scalar_lea.hbm %s6622_s4, %s4226_s17  ;;  %s6052_s9 = int_to_ptr.vmem [resolvable:$true] %s1856_s9 }
 0x218   : > { %s4680_s21 = scalar_lea.hbm %s1829_s28, 16  ;;  %p4683_p13 = scmp.lt.u32.totalorder %s1829_s28, %s6622_s4 }
 0x219   : > { %p4681_p12 = scmp.ne.s32.totalorder %s1829_s28, %s4680_s21  ;;  %p4684_p0 = scmp.lt.u32.totalorder %s5926_s3, %s4680_s21 }
 0x21a   : > { %p4686_p2 = scmp.lt.u32.totalorder %s4680_s21, %s1829_s28 }
 0x21b   : > { %p4685_p1 = por %p4684_p0, %p4683_p13 }
 0x21d   : > { %p4687_p3 = por %p4686_p2, %p4685_p1 }
 0x21f   : > { %p4688_p4 = pnand %p4687_p3, %p4681_p12 }
 0x221   : > { %4691 = shalt.err (!%p4688_p4)  }
 0x222   : > { %s4692_s30 = scalar_lea.vmem %s1840_s7, 16  ;;  %p4697_p6 = scmp.lt.s32.totalorder %s1840_s7, %s5905_s19 }
 0x223   : > { %p4693_p5 = scmp.ne.s32.totalorder %s1840_s7, %s4692_s30  ;;  %p4698_p7 = scmp.lt.s32.totalorder %s5935_s24, %s4692_s30 }
 0x225   : > { %p4699_p8 = por %p4698_p7, %p4697_p6 }
 0x227   : > { %p4700_p9 = pnand %p4699_p8, %p4693_p5 }
 0x229   : > { %4703 = shalt.err (!%p4700_p9)  }
 0x22a   : > { %1842 = dma.hbm_to_vmem [thread:$0]  %s1829_s28, 16, %s1840_s7, [#allocation5 + $0x8] }
 0x22b   : > { %s6061_s13 = sld [smem:[#allocation8 + %s5751_s6]]  ;;  %s5614_s27 = smov [#allocation3 + $0x10]  }
 0x22c   : > { %s1872_s14 = sshll.u32 %s5614_s27, 4  ;;  %s6655_s15 = sadd.s32 1, %s5751_s6  ;;  %s6068_s14 = int_to_ptr.vmem [resolvable:$true] %s1872_s14 }
 0x22d   : > { %s6065_s12 = sld [smem:[#allocation8 + %s6655_s15]]  ;;  %s4227_s23 = sshll.u32 %s6046_s20, 4 }
 0x22e   : > { %s1846_s0 = scalar_lea.hbm %s6622_s4, %s4227_s23 }
 0x22f   : > { %s4704_s25 = scalar_lea.hbm %s1846_s0, 16  ;;  %p4707_p11 = scmp.lt.u32.totalorder %s1846_s0, %s6622_s4 }
 0x230   : > { %p4705_p10 = scmp.ne.s32.totalorder %s1846_s0, %s4704_s25  ;;  %p4708_p12 = scmp.lt.u32.totalorder %s5926_s3, %s4704_s25 }
 0x231   : > { %p4710_p0 = scmp.lt.u32.totalorder %s4704_s25, %s1846_s0 }
 0x232   : > { %p4709_p13 = por %p4708_p12, %p4707_p11 }
 0x234   : > { %p4711_p1 = por %p4710_p0, %p4709_p13 }
 0x236   : > { %p4712_p2 = pnand %p4711_p1, %p4705_p10 }
 0x238   : > { %4715 = shalt.err (!%p4712_p2)  }
 0x239   : > { %s4716_s20 = scalar_lea.vmem %s6052_s9, 16  ;;  %p4721_p4 = scmp.lt.s32.totalorder %s6052_s9, %s5905_s19 }
 0x23a   : > { %p4717_p3 = scmp.ne.s32.totalorder %s6052_s9, %s4716_s20  ;;  %p4722_p5 = scmp.lt.s32.totalorder %s5935_s24, %s4716_s20 }
 0x23c   : > { %p4723_p6 = por %p4722_p5, %p4721_p4 }
 0x23e   : > { %p4724_p7 = pnand %p4723_p6, %p4717_p3 }
 0x240   : > { %4727 = shalt.err (!%p4724_p7)  }
 0x241   : > { %1859 = dma.hbm_to_vmem [thread:$0]  %s1846_s0, 16, %s6052_s9, [#allocation5 + $0x9] }
 0x242   : > { %s5615_s21 = smov [#allocation3 + $0x11]   ;;  %s6656_s2 = sadd.s32 2, %s5751_s6 }
 0x243   : > { %s1888_s18 = sshll.u32 %s5615_s21, 4  ;;  %s6085_s30 = sld [smem:[#allocation8 + %s6656_s2]]  ;;  %s6088_s18 = int_to_ptr.vmem [resolvable:$true] %s1888_s18 }
 0x244   : > { %s4228_s27 = sshll.u32 %s6061_s13, 4  ;;  %s4229_s5 = sshll.u32 %s6065_s12, 4 }
 0x245   : > { %s1862_s17 = scalar_lea.hbm %s6622_s4, %s4228_s27 }
 0x246   : > { %s4728_s25 = scalar_lea.hbm %s1862_s17, 16  ;;  %p4731_p9 = scmp.lt.u32.totalorder %s1862_s17, %s6622_s4 }
 0x247   : > { %p4729_p8 = scmp.ne.s32.totalorder %s1862_s17, %s4728_s25  ;;  %p4732_p10 = scmp.lt.u32.totalorder %s5926_s3, %s4728_s25 }
 0x248   : > { %p4734_p12 = scmp.lt.u32.totalorder %s4728_s25, %s1862_s17 }
 0x249   : > { %p4733_p11 = por %p4732_p10, %p4731_p9 }
 0x24b   : > { %p4735_p13 = por %p4734_p12, %p4733_p11 }
 0x24d   : > { %p4736_p0 = pnand %p4735_p13, %p4729_p8 }
 0x24f   : > { %4739 = shalt.err (!%p4736_p0)  }
 0x250   : > { %s4740_s9 = scalar_lea.vmem %s6068_s14, 16  ;;  %p4745_p2 = scmp.lt.s32.totalorder %s6068_s14, %s5905_s19 }
 0x251   : > { %p4741_p1 = scmp.ne.s32.totalorder %s6068_s14, %s4740_s9  ;;  %p4746_p3 = scmp.lt.s32.totalorder %s5935_s24, %s4740_s9 }
 0x253   : > { %p4747_p4 = por %p4746_p3, %p4745_p2 }
 0x255   : > { %p4748_p5 = pnand %p4747_p4, %p4741_p1 }
 0x257   : > { %4751 = shalt.err (!%p4748_p5)  }
 0x258   : > { %1875 = dma.hbm_to_vmem [thread:$0]  %s1862_s17, 16, %s6068_s14, [#allocation5 + $0xa] }
 0x259   : > { %s1878_s0 = scalar_lea.hbm %s6622_s4, %s4229_s5 }
 0x25a   : > { %s4752_s20 = scalar_lea.hbm %s1878_s0, 16  ;;  %p4755_p7 = scmp.lt.u32.totalorder %s1878_s0, %s6622_s4 }
 0x25b   : > { %p4753_p6 = scmp.ne.s32.totalorder %s1878_s0, %s4752_s20  ;;  %p4756_p8 = scmp.lt.u32.totalorder %s5926_s3, %s4752_s20 }
 0x25c   : > { %p4758_p10 = scmp.lt.u32.totalorder %s4752_s20, %s1878_s0 }
 0x25d   : > { %p4757_p9 = por %p4756_p8, %p4755_p7 }
 0x25f   : > { %p4759_p11 = por %p4758_p10, %p4757_p9 }
 0x261   : > { %p4760_p12 = pnand %p4759_p11, %p4753_p6 }
 0x263   : > { %4763 = shalt.err (!%p4760_p12)  }
 0x264   : > { %s4764_s14 = scalar_lea.vmem %s6088_s18, 16  ;;  %p4769_p0 = scmp.lt.s32.totalorder %s6088_s18, %s5905_s19 }
 0x265   : > { %p4765_p13 = scmp.ne.s32.totalorder %s6088_s18, %s4764_s14  ;;  %p4770_p1 = scmp.lt.s32.totalorder %s5935_s24, %s4764_s14 }
 0x267   : > { %p4771_p2 = por %p4770_p1, %p4769_p0 }
 0x269   : > { %p4772_p3 = pnand %p4771_p2, %p4765_p13 }
 0x26b   : > { %4775 = shalt.err (!%p4772_p3)  }
 0x26c   : > { %1891 = dma.hbm_to_vmem [thread:$0]  %s1878_s0, 16, %s6088_s18, [#allocation5 + $0xb] }
 0x26d   : > { %s4230_s27 = sshll.u32 %s6085_s30, 4  ;;  %s5616_s15 = smov [#allocation3 + $0x12]  }
 0x26e   : > { %s1904_s23 = sshll.u32 %s5616_s15, 4  ;;  %s1894_s25 = scalar_lea.hbm %s6622_s4, %s4230_s27  ;;  %s1905_s23 = int_to_ptr.vmem [resolvable:$true] %s1904_s23 }
 0x26f   : > { %s4776_s7 = scalar_lea.hbm %s1894_s25, 16  ;;  %p4779_p5 = scmp.lt.u32.totalorder %s1894_s25, %s6622_s4 }
 0x270   : > { %p4777_p4 = scmp.ne.s32.totalorder %s1894_s25, %s4776_s7  ;;  %p4780_p6 = scmp.lt.u32.totalorder %s5926_s3, %s4776_s7 }
 0x271   : > { %p4782_p8 = scmp.lt.u32.totalorder %s4776_s7, %s1894_s25 }
 0x272   : > { %p4781_p7 = por %p4780_p6, %p4779_p5 }
 0x274   : > { %p4783_p9 = por %p4782_p8, %p4781_p7 }
 0x276   : > { %p4784_p10 = pnand %p4783_p9, %p4777_p4 }
 0x278   : > { %4787 = shalt.err (!%p4784_p10)  }
 0x279   : > { %s4788_s18 = scalar_lea.vmem %s1905_s23, 16  ;;  %p4793_p12 = scmp.lt.s32.totalorder %s1905_s23, %s5905_s19 }
 0x27a   : > { %p4789_p11 = scmp.ne.s32.totalorder %s1905_s23, %s4788_s18  ;;  %p4794_p13 = scmp.lt.s32.totalorder %s5935_s24, %s4788_s18 }
 0x27c   : > { %p4795_p0 = por %p4794_p13, %p4793_p12 }
 0x27e   : > { %p4796_p1 = pnand %p4795_p0, %p4789_p11 }
 0x280   : > { %4799 = shalt.err (!%p4796_p1)  }
 0x281   : > { %1907 = dma.hbm_to_vmem [thread:$0]  %s1894_s25, 16, %s1905_s23, [#allocation5 + $0xc] }
 0x282   : > { %s6657_s30 = sadd.s32 3, %s5751_s6  ;;  %s5617_s12 = smov [#allocation3 + $0x13]  }
 0x283   : > { %s1908_s13 = sld [smem:[#allocation8 + %s6657_s30]]  ;;  %s1920_s0 = sshll.u32 %s5617_s12, 4  ;;  %s1921_s0 = int_to_ptr.vmem [resolvable:$true] %s1920_s0 }
 0x284   : > { %s1924_s20 = sadd.s32 4, %s5751_s6  ;;  %s6133_s2 = sld [smem:[#allocation8 + %s5776_s16]] }
 0x285   : > { %s6130_s21 = sld [smem:[#allocation8 + %s1924_s20]]  ;;  %s5618_s14 = smov [#allocation3 + $0x14]  }
 0x286   : > { %s1937_s27 = sshll.u32 %s5618_s14, 4  ;;  %s5619_s15 = smov [#allocation3 + $0x18]   ;;  %s6135_s27 = int_to_ptr.vmem [resolvable:$true] %s1937_s27 }
 0x287   : > { %s1953_s23 = sshll.u32 %s5619_s15, 4  ;;  %s6658_s6 = sadd.s32 1, %s5776_s16  ;;  %s6137_s23 = int_to_ptr.vmem [resolvable:$true] %s1953_s23 }
 0x288   : > { %s6144_s28 = sld [smem:[#allocation8 + %s6658_s6]] }
 0x289   : > { %s4231_s17 = sshll.u32 %s1908_s13, 4 }
 0x28a   : > { %s1910_s7 = scalar_lea.hbm %s6622_s4, %s4231_s17 }
 0x28b   : > { %s4800_s9 = scalar_lea.hbm %s1910_s7, 16  ;;  %p4803_p3 = scmp.lt.u32.totalorder %s1910_s7, %s6622_s4 }
 0x28c   : > { %p4801_p2 = scmp.ne.s32.totalorder %s1910_s7, %s4800_s9  ;;  %p4804_p4 = scmp.lt.u32.totalorder %s5926_s3, %s4800_s9 }
 0x28d   : > { %p4806_p6 = scmp.lt.u32.totalorder %s4800_s9, %s1910_s7 }
 0x28e   : > { %p4805_p5 = por %p4804_p4, %p4803_p3 }
 0x290   : > { %p4807_p7 = por %p4806_p6, %p4805_p5 }
 0x292   : > { %p4808_p8 = pnand %p4807_p7, %p4801_p2 }
 0x294   : > { %4811 = shalt.err (!%p4808_p8)  }
 0x295   : > { %s4812_s13 = scalar_lea.vmem %s1921_s0, 16  ;;  %p4817_p10 = scmp.lt.s32.totalorder %s1921_s0, %s5905_s19 }
 0x296   : > { %p4813_p9 = scmp.ne.s32.totalorder %s1921_s0, %s4812_s13  ;;  %p4818_p11 = scmp.lt.s32.totalorder %s5935_s24, %s4812_s13 }
 0x298   : > { %p4819_p12 = por %p4818_p11, %p4817_p10 }
 0x29a   : > { %p4820_p13 = pnand %p4819_p12, %p4813_p9 }
 0x29c   : > { %4823 = shalt.err (!%p4820_p13)  }
 0x29d   : > { %1923 = dma.hbm_to_vmem [thread:$0]  %s1910_s7, 16, %s1921_s0, [#allocation5 + $0xd] }
 0x29e   : > { %s4232_s12 = sshll.u32 %s6130_s21, 4  ;;  %s4233_s20 = sshll.u32 %s6133_s2, 4 }
 0x29f   : > { %s1927_s17 = scalar_lea.hbm %s6622_s4, %s4232_s12  ;;  %s6160_s6 = scalar_lea.hbm %s6622_s4, %s4233_s20 }
 0x2a0   : > { %s4824_s9 = scalar_lea.hbm %s1927_s17, 16  ;;  %p4827_p1 = scmp.lt.u32.totalorder %s1927_s17, %s6622_s4 }
 0x2a1   : > { %p4825_p0 = scmp.ne.s32.totalorder %s1927_s17, %s4824_s9  ;;  %p4828_p2 = scmp.lt.u32.totalorder %s5926_s3, %s4824_s9 }
 0x2a2   : > { %p4830_p4 = scmp.lt.u32.totalorder %s4824_s9, %s1927_s17 }
 0x2a3   : > { %p4829_p3 = por %p4828_p2, %p4827_p1 }
 0x2a5   : > { %p4831_p5 = por %p4830_p4, %p4829_p3 }
 0x2a7   : > { %p4832_p6 = pnand %p4831_p5, %p4825_p0 }
 0x2a9   : > { %4835 = shalt.err (!%p4832_p6)  }
 0x2aa   : > { %s4836_s0 = scalar_lea.vmem %s6135_s27, 16  ;;  %p4841_p8 = scmp.lt.s32.totalorder %s6135_s27, %s5905_s19 }
 0x2ab   : > { %p4837_p7 = scmp.ne.s32.totalorder %s6135_s27, %s4836_s0  ;;  %p4842_p9 = scmp.lt.s32.totalorder %s5935_s24, %s4836_s0 }
 0x2ad   : > { %p4843_p10 = por %p4842_p9, %p4841_p8 }
 0x2af   : > { %p4844_p11 = pnand %p4843_p10, %p4837_p7 }
 0x2b1   : > { %4847 = shalt.err (!%p4844_p11)  }
 0x2b2   : > { %1940 = dma.hbm_to_vmem [thread:$0]  %s1927_s17, 16, %s6135_s27, [#allocation5 + $0xe] }
 0x2b3   : > { %s4848_s21 = scalar_lea.hbm %s6160_s6, 16  ;;  %p4851_p13 = scmp.lt.u32.totalorder %s6160_s6, %s6622_s4 }
 0x2b4   : > { %p4849_p12 = scmp.ne.s32.totalorder %s6160_s6, %s4848_s21  ;;  %p4852_p0 = scmp.lt.u32.totalorder %s5926_s3, %s4848_s21 }
 0x2b5   : > { %p4854_p2 = scmp.lt.u32.totalorder %s4848_s21, %s6160_s6 }
 0x2b6   : > { %p4853_p1 = por %p4852_p0, %p4851_p13 }
 0x2b8   : > { %p4855_p3 = por %p4854_p2, %p4853_p1 }
 0x2ba   : > { %p4856_p4 = pnand %p4855_p3, %p4849_p12 }
 0x2bc   : > { %4859 = shalt.err (!%p4856_p4)  }
 0x2bd   : > { %s4860_s13 = scalar_lea.vmem %s6137_s23, 16  ;;  %p4865_p6 = scmp.lt.s32.totalorder %s6137_s23, %s5905_s19 }
 0x2be   : > { %p4861_p5 = scmp.ne.s32.totalorder %s6137_s23, %s4860_s13  ;;  %p4866_p7 = scmp.lt.s32.totalorder %s5935_s24, %s4860_s13 }
 0x2c0   : > { %p4867_p8 = por %p4866_p7, %p4865_p6 }
 0x2c2   : > { %p4868_p9 = pnand %p4867_p8, %p4861_p5 }
 0x2c4   : > { %4871 = shalt.err (!%p4868_p9)  }
 0x2c5   : > { %1956 = dma.hbm_to_vmem [thread:$0]  %s6160_s6, 16, %s6137_s23, [#allocation5 + $0xf] }
 0x2c6   : > { %s4234_s27 = sshll.u32 %s6144_s28, 4  ;;  %s5620_s15 = smov [#allocation3 + $0x19]  }
 0x2c7   : > { %s1959_s14 = scalar_lea.hbm %s6622_s4, %s4234_s27  ;;  %s1969_s17 = sshll.u32 %s5620_s15, 4  ;;  %s1970_s17 = int_to_ptr.vmem [resolvable:$true] %s1969_s17 }
 0x2c8   : > { %s6659_s5 = sadd.s32 2, %s5776_s16  ;;  %s4872_s9 = scalar_lea.hbm %s1959_s14, 16 }
 0x2c9   : > { %s6193_s25 = sld [smem:[#allocation8 + %s6659_s5]]  ;;  %p4873_p10 = scmp.ne.s32.totalorder %s1959_s14, %s4872_s9 }
 0x2ca   : > { %p4875_p11 = scmp.lt.u32.totalorder %s1959_s14, %s6622_s4  ;;  %p4876_p12 = scmp.lt.u32.totalorder %s5926_s3, %s4872_s9 }
 0x2cb   : > { %p4878_p0 = scmp.lt.u32.totalorder %s4872_s9, %s1959_s14 }
 0x2cc   : > { %p4877_p13 = por %p4876_p12, %p4875_p11 }
 0x2ce   : > { %p4879_p1 = por %p4878_p0, %p4877_p13 }
 0x2d0   : > { %p4880_p2 = pnand %p4879_p1, %p4873_p10 }
 0x2d2   : > { %4883 = shalt.err (!%p4880_p2)  }
 0x2d3   : > { %s4884_s23 = scalar_lea.vmem %s1970_s17, 16  ;;  %p4889_p4 = scmp.lt.s32.totalorder %s1970_s17, %s5905_s19 }
 0x2d4   : > { %p4885_p3 = scmp.ne.s32.totalorder %s1970_s17, %s4884_s23  ;;  %p4890_p5 = scmp.lt.s32.totalorder %s5935_s24, %s4884_s23 }
 0x2d6   : > { %p4891_p6 = por %p4890_p5, %p4889_p4 }
 0x2d8   : > { %p4892_p7 = pnand %p4891_p6, %p4885_p3 }
 0x2da   : > { %4895 = shalt.err (!%p4892_p7)  }
 0x2db   : > { %1972 = dma.hbm_to_vmem [thread:$0]  %s1959_s14, 16, %s1970_s17, [#allocation5 + $0x10] }
 0x2dc   : > { %s6660_s28 = sadd.s32 3, %s5776_s16  ;;  %s5621_s0 = smov [#allocation3 + $0x1a]  }
 0x2dd   : > { %s6203_s6 = sld [smem:[#allocation8 + %s6660_s28]]  ;;  %s1985_s21 = sshll.u32 %s5621_s0, 4  ;;  %s1986_s21 = int_to_ptr.vmem [resolvable:$true] %s1985_s21 }
 0x2de   : > { %s5622_s2 = smov [#allocation3 + $0x1b]   ;;  %s2005_s13 = sadd.s32 4, %s5776_s16 }
 0x2df   : > { %s2001_s7 = sshll.u32 %s5622_s2, 4  ;;  %s4235_s27 = sshll.u32 %s6193_s25, 4  ;;  %s6205_s7 = int_to_ptr.vmem [resolvable:$true] %s2001_s7 }
 0x2e0   : > { %s6209_s12 = sld [smem:[#allocation8 + %s2005_s13]]  ;;  %s1975_s15 = scalar_lea.hbm %s6622_s4, %s4235_s27 }
 0x2e1   : > { %s4896_s17 = scalar_lea.hbm %s1975_s15, 16  ;;  %p4899_p9 = scmp.lt.u32.totalorder %s1975_s15, %s6622_s4 }
 0x2e2   : > { %p4897_p8 = scmp.ne.s32.totalorder %s1975_s15, %s4896_s17  ;;  %p4900_p10 = scmp.lt.u32.totalorder %s5926_s3, %s4896_s17 }
 0x2e3   : > { %p4902_p12 = scmp.lt.u32.totalorder %s4896_s17, %s1975_s15 }
 0x2e4   : > { %p4901_p11 = por %p4900_p10, %p4899_p9 }
 0x2e6   : > { %p4903_p13 = por %p4902_p12, %p4901_p11 }
 0x2e8   : > { %p4904_p0 = pnand %p4903_p13, %p4897_p8 }
 0x2ea   : > { %4907 = shalt.err (!%p4904_p0)  }
 0x2eb   : > { %s4908_s16 = scalar_lea.vmem %s1986_s21, 16  ;;  %p4913_p2 = scmp.lt.s32.totalorder %s1986_s21, %s5905_s19 }
 0x2ec   : > { %p4909_p1 = scmp.ne.s32.totalorder %s1986_s21, %s4908_s16  ;;  %p4914_p3 = scmp.lt.s32.totalorder %s5935_s24, %s4908_s16 }
 0x2ee   : > { %p4915_p4 = por %p4914_p3, %p4913_p2 }
 0x2f0   : > { %p4916_p5 = pnand %p4915_p4, %p4909_p1 }
 0x2f2   : > { %4919 = shalt.err (!%p4916_p5)  }
 0x2f3   : > { %1988 = dma.hbm_to_vmem [thread:$0]  %s1975_s15, 16, %s1986_s21, [#allocation5 + $0x11] }
 0x2f4   : > { %s4236_s25 = sshll.u32 %s6203_s6, 4  ;;  %s5623_s18 = smov [#allocation3 + $0x1c]  }
 0x2f5   : > { %s2018_s30 = sshll.u32 %s5623_s18, 4  ;;  %s1991_s0 = scalar_lea.hbm %s6622_s4, %s4236_s25  ;;  %s6224_s30 = int_to_ptr.vmem [resolvable:$true] %s2018_s30 }
 0x2f6   : > { %s4920_s2 = scalar_lea.hbm %s1991_s0, 16  ;;  %p4923_p7 = scmp.lt.u32.totalorder %s1991_s0, %s6622_s4 }
 0x2f7   : > { %p4921_p6 = scmp.ne.s32.totalorder %s1991_s0, %s4920_s2  ;;  %p4924_p8 = scmp.lt.u32.totalorder %s5926_s3, %s4920_s2 }
 0x2f8   : > { %p4926_p10 = scmp.lt.u32.totalorder %s4920_s2, %s1991_s0 }
 0x2f9   : > { %p4925_p9 = por %p4924_p8, %p4923_p7 }
 0x2fb   : > { %p4927_p11 = por %p4926_p10, %p4925_p9 }
 0x2fd   : > { %p4928_p12 = pnand %p4927_p11, %p4921_p6 }
 0x2ff   : > { %4931 = shalt.err (!%p4928_p12)  }
 0x300   : > { %s4932_s6 = scalar_lea.vmem %s6205_s7, 16  ;;  %p4937_p0 = scmp.lt.s32.totalorder %s6205_s7, %s5905_s19 }
 0x301   : > { %p4933_p13 = scmp.ne.s32.totalorder %s6205_s7, %s4932_s6  ;;  %p4938_p1 = scmp.lt.s32.totalorder %s5935_s24, %s4932_s6 }
 0x303   : > { %p4939_p2 = por %p4938_p1, %p4937_p0 }
 0x305   : > { %p4940_p3 = pnand %p4939_p2, %p4933_p13 }
 0x307   : > { %4943 = shalt.err (!%p4940_p3)  }
 0x308   : > { %2004 = dma.hbm_to_vmem [thread:$0]  %s1991_s0, 16, %s6205_s7, [#allocation5 + $0x12] }
 0x309   : > { %s4237_s21 = sshll.u32 %s6209_s12, 4  ;;  %s6238_s20 = sld [smem:[#allocation8 + %s5801_s10]] }
 0x30a   : > { %s2008_s17 = scalar_lea.hbm %s6622_s4, %s4237_s21 }
 0x30b   : > { %s4944_s5 = scalar_lea.hbm %s2008_s17, 16  ;;  %p4947_p5 = scmp.lt.u32.totalorder %s2008_s17, %s6622_s4 }
 0x30c   : > { %p4945_p4 = scmp.ne.s32.totalorder %s2008_s17, %s4944_s5  ;;  %p4948_p6 = scmp.lt.u32.totalorder %s5926_s3, %s4944_s5 }
 0x30d   : > { %p4950_p8 = scmp.lt.u32.totalorder %s4944_s5, %s2008_s17 }
 0x30e   : > { %p4949_p7 = por %p4948_p6, %p4947_p5 }
 0x310   : > { %p4951_p9 = por %p4950_p8, %p4949_p7 }
 0x312   : > { %p4952_p10 = pnand %p4951_p9, %p4945_p4 }
 0x314   : > { %4955 = shalt.err (!%p4952_p10)  }
 0x315   : > { %s4956_s7 = scalar_lea.vmem %s6224_s30, 16  ;;  %p4961_p12 = scmp.lt.s32.totalorder %s6224_s30, %s5905_s19 }
 0x316   : > { %p4957_p11 = scmp.ne.s32.totalorder %s6224_s30, %s4956_s7  ;;  %p4962_p13 = scmp.lt.s32.totalorder %s5935_s24, %s4956_s7 }
 0x318   : > { %p4963_p0 = por %p4962_p13, %p4961_p12 }
 0x31a   : > { %p4964_p1 = pnand %p4963_p0, %p4957_p11 }
 0x31c   : > { %4967 = shalt.err (!%p4964_p1)  }
 0x31d   : > { %2021 = dma.hbm_to_vmem [thread:$0]  %s2008_s17, 16, %s6224_s30, [#allocation5 + $0x13] }
 0x31e   : > { %s5624_s12 = smov [#allocation3 + $0x20]   ;;  %s6661_s18 = sadd.s32 1, %s5801_s10 }
 0x31f   : > { %s2034_s25 = sshll.u32 %s5624_s12, 4  ;;  %s6255_s23 = sld [smem:[#allocation8 + %s6661_s18]]  ;;  %s2035_s25 = int_to_ptr.vmem [resolvable:$true] %s2034_s25 }
 0x320   : > { %s5625_s28 = smov [#allocation3 + $0x21]   ;;  %s6662_s2 = sadd.s32 2, %s5801_s10 }
 0x321   : > { %s2050_s0 = sshll.u32 %s5625_s28, 4  ;;  %s6259_s13 = sld [smem:[#allocation8 + %s6662_s2]]  ;;  %s6262_s0 = int_to_ptr.vmem [resolvable:$true] %s2050_s0 }
 0x322   : > { %s4238_s27 = sshll.u32 %s6238_s20, 4 }
 0x323   : > { %s2024_s14 = scalar_lea.hbm %s6622_s4, %s4238_s27 }
 0x324   : > { %s4968_s15 = scalar_lea.hbm %s2024_s14, 16  ;;  %p4971_p3 = scmp.lt.u32.totalorder %s2024_s14, %s6622_s4 }
 0x325   : > { %p4969_p2 = scmp.ne.s32.totalorder %s2024_s14, %s4968_s15  ;;  %p4972_p4 = scmp.lt.u32.totalorder %s5926_s3, %s4968_s15 }
 0x326   : > { %p4974_p6 = scmp.lt.u32.totalorder %s4968_s15, %s2024_s14 }
 0x327   : > { %p4973_p5 = por %p4972_p4, %p4971_p3 }
 0x329   : > { %p4975_p7 = por %p4974_p6, %p4973_p5 }
 0x32b   : > { %p4976_p8 = pnand %p4975_p7, %p4969_p2 }
 0x32d   : > { %4979 = shalt.err (!%p4976_p8)  }
 0x32e   : > { %s4980_s5 = scalar_lea.vmem %s2035_s25, 16  ;;  %p4985_p10 = scmp.lt.s32.totalorder %s2035_s25, %s5905_s19 }
 0x32f   : > { %p4981_p9 = scmp.ne.s32.totalorder %s2035_s25, %s4980_s5  ;;  %p4986_p11 = scmp.lt.s32.totalorder %s5935_s24, %s4980_s5 }
 0x331   : > { %p4987_p12 = por %p4986_p11, %p4985_p10 }
 0x333   : > { %p4988_p13 = pnand %p4987_p12, %p4981_p9 }
 0x335   : > { %4991 = shalt.err (!%p4988_p13)  }
 0x336   : > { %2037 = dma.hbm_to_vmem [thread:$0]  %s2024_s14, 16, %s2035_s25, [#allocation5 + $0x14] }
 0x337   : > { %s4239_s20 = sshll.u32 %s6255_s23, 4  ;;  %s5626_s9 = smov [#allocation3 + $0x22]  }
 0x338   : > { %s2066_s16 = sshll.u32 %s5626_s9, 4  ;;  %s2040_s18 = scalar_lea.hbm %s6622_s4, %s4239_s20  ;;  %s6277_s16 = int_to_ptr.vmem [resolvable:$true] %s2066_s16 }
 0x339   : > { %s4992_s28 = scalar_lea.hbm %s2040_s18, 16  ;;  %p4995_p1 = scmp.lt.u32.totalorder %s2040_s18, %s6622_s4 }
 0x33a   : > { %p4993_p0 = scmp.ne.s32.totalorder %s2040_s18, %s4992_s28  ;;  %p4996_p2 = scmp.lt.u32.totalorder %s5926_s3, %s4992_s28 }
 0x33b   : > { %p4998_p4 = scmp.lt.u32.totalorder %s4992_s28, %s2040_s18 }
 0x33c   : > { %p4997_p3 = por %p4996_p2, %p4995_p1 }
 0x33e   : > { %p4999_p5 = por %p4998_p4, %p4997_p3 }
 0x340   : > { %p5000_p6 = pnand %p4999_p5, %p4993_p0 }
 0x342   : > { %5003 = shalt.err (!%p5000_p6)  }
 0x343   : > { %s5004_s25 = scalar_lea.vmem %s6262_s0, 16  ;;  %p5009_p8 = scmp.lt.s32.totalorder %s6262_s0, %s5905_s19 }
 0x344   : > { %p5005_p7 = scmp.ne.s32.totalorder %s6262_s0, %s5004_s25  ;;  %p5010_p9 = scmp.lt.s32.totalorder %s5935_s24, %s5004_s25 }
 0x346   : > { %p5011_p10 = por %p5010_p9, %p5009_p8 }
 0x348   : > { %p5012_p11 = pnand %p5011_p10, %p5005_p7 }
 0x34a   : > { %5015 = shalt.err (!%p5012_p11)  }
 0x34b   : > { %2053 = dma.hbm_to_vmem [thread:$0]  %s2040_s18, 16, %s6262_s0, [#allocation5 + $0x15] }
 0x34c   : > { %s4240_s23 = sshll.u32 %s6259_s13, 4  ;;  %s6663_s6 = sadd.s32 3, %s5801_s10 }
 0x34d   : > { %s6292_s21 = sld [smem:[#allocation8 + %s6663_s6]]  ;;  %s2056_s30 = scalar_lea.hbm %s6622_s4, %s4240_s23 }
 0x34e   : > { %s5016_s17 = scalar_lea.hbm %s2056_s30, 16  ;;  %p5019_p13 = scmp.lt.u32.totalorder %s2056_s30, %s6622_s4 }
 0x34f   : > { %p5017_p12 = scmp.ne.s32.totalorder %s2056_s30, %s5016_s17  ;;  %p5020_p0 = scmp.lt.u32.totalorder %s5926_s3, %s5016_s17 }
 0x350   : > { %p5022_p2 = scmp.lt.u32.totalorder %s5016_s17, %s2056_s30 }
 0x351   : > { %p5021_p1 = por %p5020_p0, %p5019_p13 }
 0x353   : > { %p5023_p3 = por %p5022_p2, %p5021_p1 }
 0x355   : > { %p5024_p4 = pnand %p5023_p3, %p5017_p12 }
 0x357   : > { %5027 = shalt.err (!%p5024_p4)  }
 0x358   : > { %s5028_s0 = scalar_lea.vmem %s6277_s16, 16  ;;  %p5033_p6 = scmp.lt.s32.totalorder %s6277_s16, %s5905_s19 }
 0x359   : > { %p5029_p5 = scmp.ne.s32.totalorder %s6277_s16, %s5028_s0  ;;  %p5034_p7 = scmp.lt.s32.totalorder %s5935_s24, %s5028_s0 }
 0x35b   : > { %p5035_p8 = por %p5034_p7, %p5033_p6 }
 0x35d   : > { %p5036_p9 = pnand %p5035_p8, %p5029_p5 }
 0x35f   : > { %5039 = shalt.err (!%p5036_p9)  }
 0x360   : > { %2069 = dma.hbm_to_vmem [thread:$0]  %s2056_s30, 16, %s6277_s16, [#allocation5 + $0x16] }
 0x361   : > { %s5627_s13 = smov [#allocation3 + $0x23]   ;;  %s2086_s7 = sadd.s32 4, %s5801_s10 }
 0x362   : > { %s2082_s9 = sshll.u32 %s5627_s13, 4  ;;  %s6308_s12 = sld [smem:[#allocation8 + %s2086_s7]]  ;;  %s2083_s9 = int_to_ptr.vmem [resolvable:$true] %s2082_s9 }
 0x363   : > { %s6311_s18 = sld [smem:[#allocation8 + %s5826_s26]]  ;;  %s4241_s28 = sshll.u32 %s6292_s21, 4 }
 0x364   : > { %s5628_s2 = smov [#allocation3 + $0x24]   ;;  %s2072_s6 = scalar_lea.hbm %s6622_s4, %s4241_s28 }
 0x365   : > { %s2099_s27 = sshll.u32 %s5628_s2, 4  ;;  %s5040_s14 = scalar_lea.hbm %s2072_s6, 16  ;;  %s6317_s27 = int_to_ptr.vmem [resolvable:$true] %s2099_s27 }
 0x366   : > { %p5041_p10 = scmp.ne.s32.totalorder %s2072_s6, %s5040_s14  ;;  %p5043_p11 = scmp.lt.u32.totalorder %s2072_s6, %s6622_s4 }
 0x367   : > { %p5044_p12 = scmp.lt.u32.totalorder %s5926_s3, %s5040_s14  ;;  %p5046_p0 = scmp.lt.u32.totalorder %s5040_s14, %s2072_s6 }
 0x369   : > { %p5045_p13 = por %p5044_p12, %p5043_p11 }
 0x36b   : > { %p5047_p1 = por %p5046_p0, %p5045_p13 }
 0x36d   : > { %p5048_p2 = pnand %p5047_p1, %p5041_p10 }
 0x36f   : > { %5051 = shalt.err (!%p5048_p2)  }
 0x370   : > { %s5052_s10 = scalar_lea.vmem %s2083_s9, 16  ;;  %p5057_p4 = scmp.lt.s32.totalorder %s2083_s9, %s5905_s19 }
 0x371   : > { %p5053_p3 = scmp.ne.s32.totalorder %s2083_s9, %s5052_s10  ;;  %p5058_p5 = scmp.lt.s32.totalorder %s5935_s24, %s5052_s10 }
 0x373   : > { %p5059_p6 = por %p5058_p5, %p5057_p4 }
 0x375   : > { %p5060_p7 = pnand %p5059_p6, %p5053_p3 }
 0x377   : > { %5063 = shalt.err (!%p5060_p7)  }
 0x378   : > { %2085 = dma.hbm_to_vmem [thread:$0]  %s2072_s6, 16, %s2083_s9, [#allocation5 + $0x17] }
 0x379   : > { %s6664_s21 = sadd.s32 1, %s5826_s26  ;;  %s4242_s17 = sshll.u32 %s6308_s12, 4 }
 0x37a   : > { %s6327_s30 = sld [smem:[#allocation8 + %s6664_s21]]  ;;  %s5629_s5 = smov [#allocation3 + $0x28]  }
 0x37b   : > { %s2115_s20 = sshll.u32 %s5629_s5, 4  ;;  %s2089_s7 = scalar_lea.hbm %s6622_s4, %s4242_s17  ;;  %s2116_s20 = int_to_ptr.vmem [resolvable:$true] %s2115_s20 }
 0x37c   : > { %s4243_s28 = sshll.u32 %s6311_s18, 4  ;;  %s5064_s2 = scalar_lea.hbm %s2089_s7, 16 }
 0x37d   : > { %p5065_p8 = scmp.ne.s32.totalorder %s2089_s7, %s5064_s2  ;;  %p5067_p9 = scmp.lt.u32.totalorder %s2089_s7, %s6622_s4 }
 0x37e   : > { %p5068_p10 = scmp.lt.u32.totalorder %s5926_s3, %s5064_s2  ;;  %p5070_p12 = scmp.lt.u32.totalorder %s5064_s2, %s2089_s7 }
 0x380   : > { %p5069_p11 = por %p5068_p10, %p5067_p9 }
 0x382   : > { %p5071_p13 = por %p5070_p12, %p5069_p11 }
 0x384   : > { %p5072_p0 = pnand %p5071_p13, %p5065_p8 }
 0x386   : > { %5075 = shalt.err (!%p5072_p0)  }
 0x387   : > { %s5076_s9 = scalar_lea.vmem %s6317_s27, 16  ;;  %p5081_p2 = scmp.lt.s32.totalorder %s6317_s27, %s5905_s19 }
 0x388   : > { %p5077_p1 = scmp.ne.s32.totalorder %s6317_s27, %s5076_s9  ;;  %p5082_p3 = scmp.lt.s32.totalorder %s5935_s24, %s5076_s9 }
 0x38a   : > { %p5083_p4 = por %p5082_p3, %p5081_p2 }
 0x38c   : > { %p5084_p5 = pnand %p5083_p4, %p5077_p1 }
 0x38e   : > { %5087 = shalt.err (!%p5084_p5)  }
 0x38f   : > { %2102 = dma.hbm_to_vmem [thread:$0]  %s2089_s7, 16, %s6317_s27, [#allocation5 + $0x18] }
 0x390   : > { %s2105_s6 = scalar_lea.hbm %s6622_s4, %s4243_s28 }
 0x391   : > { %s5088_s14 = scalar_lea.hbm %s2105_s6, 16  ;;  %p5091_p7 = scmp.lt.u32.totalorder %s2105_s6, %s6622_s4 }
 0x392   : > { %p5089_p6 = scmp.ne.s32.totalorder %s2105_s6, %s5088_s14  ;;  %p5092_p8 = scmp.lt.u32.totalorder %s5926_s3, %s5088_s14 }
 0x393   : > { %p5094_p10 = scmp.lt.u32.totalorder %s5088_s14, %s2105_s6 }
 0x394   : > { %p5093_p9 = por %p5092_p8, %p5091_p7 }
 0x396   : > { %p5095_p11 = por %p5094_p10, %p5093_p9 }
 0x398   : > { %p5096_p12 = pnand %p5095_p11, %p5089_p6 }
 0x39a   : > { %5099 = shalt.err (!%p5096_p12)  }
 0x39b   : > { %s5100_s10 = scalar_lea.vmem %s2116_s20, 16  ;;  %p5105_p0 = scmp.lt.s32.totalorder %s2116_s20, %s5905_s19 }
 0x39c   : > { %p5101_p13 = scmp.ne.s32.totalorder %s2116_s20, %s5100_s10  ;;  %p5106_p1 = scmp.lt.s32.totalorder %s5935_s24, %s5100_s10 }
 0x39e   : > { %p5107_p2 = por %p5106_p1, %p5105_p0 }
 0x3a0   : > { %p5108_p3 = pnand %p5107_p2, %p5101_p13 }
 0x3a2   : > { %5111 = shalt.err (!%p5108_p3)  }
 0x3a3   : > { %2118 = dma.hbm_to_vmem [thread:$0]  %s2105_s6, 16, %s2116_s20, [#allocation5 + $0x19] }
 0x3a4   : > { %s4244_s27 = sshll.u32 %s6327_s30, 4  ;;  %s5630_s0 = smov [#allocation3 + $0x29]  }
 0x3a5   : > { %s2121_s5 = scalar_lea.hbm %s6622_s4, %s4244_s27  ;;  %s2131_s13 = sshll.u32 %s5630_s0, 4  ;;  %s2132_s13 = int_to_ptr.vmem [resolvable:$true] %s2131_s13 }
 0x3a6   : > { %s6665_s7 = sadd.s32 2, %s5826_s26  ;;  %s5112_s2 = scalar_lea.hbm %s2121_s5, 16 }
 0x3a7   : > { %s6359_s28 = sld [smem:[#allocation8 + %s6665_s7]]  ;;  %p5113_p4 = scmp.ne.s32.totalorder %s2121_s5, %s5112_s2 }
 0x3a8   : > { %p5115_p5 = scmp.lt.u32.totalorder %s2121_s5, %s6622_s4  ;;  %p5116_p6 = scmp.lt.u32.totalorder %s5926_s3, %s5112_s2 }
 0x3a9   : > { %p5118_p8 = scmp.lt.u32.totalorder %s5112_s2, %s2121_s5 }
 0x3aa   : > { %p5117_p7 = por %p5116_p6, %p5115_p5 }
 0x3ac   : > { %p5119_p9 = por %p5118_p8, %p5117_p7 }
 0x3ae   : > { %p5120_p10 = pnand %p5119_p9, %p5113_p4 }
 0x3b0   : > { %5123 = shalt.err (!%p5120_p10)  }
 0x3b1   : > { %s5124_s30 = scalar_lea.vmem %s2132_s13, 16  ;;  %p5129_p12 = scmp.lt.s32.totalorder %s2132_s13, %s5905_s19 }
 0x3b2   : > { %p5125_p11 = scmp.ne.s32.totalorder %s2132_s13, %s5124_s30  ;;  %p5130_p13 = scmp.lt.s32.totalorder %s5935_s24, %s5124_s30 }
 0x3b4   : > { %p5131_p0 = por %p5130_p13, %p5129_p12 }
 0x3b6   : > { %p5132_p1 = pnand %p5131_p0, %p5125_p11 }
 0x3b8   : > { %5135 = shalt.err (!%p5132_p1)  }
 0x3b9   : > { %2134 = dma.hbm_to_vmem [thread:$0]  %s2121_s5, 16, %s2132_s13, [#allocation5 + $0x1a] }
 0x3ba   : > { %s6666_s20 = sadd.s32 3, %s5826_s26  ;;  %s5631_s12 = smov [#allocation3 + $0x2a]  }
 0x3bb   : > { %s6369_s9 = sld [smem:[#allocation8 + %s6666_s20]]  ;;  %s2147_s18 = sshll.u32 %s5631_s12, 4  ;;  %s2148_s18 = int_to_ptr.vmem [resolvable:$true] %s2147_s18 }
 0x3bc   : > { %s5632_s6 = smov [#allocation3 + $0x2b]   ;;  %s2167_s16 = sadd.s32 4, %s5826_s26 }
 0x3bd   : > { %s2163_s14 = sshll.u32 %s5632_s6, 4  ;;  %s4245_s15 = sshll.u32 %s6359_s28, 4  ;;  %s6371_s14 = int_to_ptr.vmem [resolvable:$true] %s2163_s14 }
 0x3be   : > { %s6375_s10 = sld [smem:[#allocation8 + %s2167_s16]]  ;;  %s2137_s17 = scalar_lea.hbm %s6622_s4, %s4245_s15 }
 0x3bf   : > { %s5136_s5 = scalar_lea.hbm %s2137_s17, 16  ;;  %p5139_p3 = scmp.lt.u32.totalorder %s2137_s17, %s6622_s4 }
 0x3c0   : > { %p5137_p2 = scmp.ne.s32.totalorder %s2137_s17, %s5136_s5  ;;  %p5140_p4 = scmp.lt.u32.totalorder %s5926_s3, %s5136_s5 }
 0x3c1   : > { %p5142_p6 = scmp.lt.u32.totalorder %s5136_s5, %s2137_s17 }
 0x3c2   : > { %p5141_p5 = por %p5140_p4, %p5139_p3 }
 0x3c4   : > { %p5143_p7 = por %p5142_p6, %p5141_p5 }
 0x3c6   : > { %p5144_p8 = pnand %p5143_p7, %p5137_p2 }
 0x3c8   : > { %5147 = shalt.err (!%p5144_p8)  }
 0x3c9   : > { %s5148_s26 = scalar_lea.vmem %s2148_s18, 16  ;;  %p5153_p10 = scmp.lt.s32.totalorder %s2148_s18, %s5905_s19 }
 0x3ca   : > { %p5149_p9 = scmp.ne.s32.totalorder %s2148_s18, %s5148_s26  ;;  %p5154_p11 = scmp.lt.s32.totalorder %s5935_s24, %s5148_s26 }
 0x3cc   : > { %p5155_p12 = por %p5154_p11, %p5153_p10 }
 0x3ce   : > { %p5156_p13 = pnand %p5155_p12, %p5149_p9 }
 0x3d0   : > { %5159 = shalt.err (!%p5156_p13)  }
 0x3d1   : > { %2150 = dma.hbm_to_vmem [thread:$0]  %s2137_s17, 16, %s2148_s18, [#allocation5 + $0x1b] }
 0x3d2   : > { %s4246_s7 = sshll.u32 %s6369_s9, 4  ;;  %s5633_s28 = smov [#allocation3 + $0x2c]  }
 0x3d3   : > { %s2180_s2 = sshll.u32 %s5633_s28, 4  ;;  %s2153_s30 = scalar_lea.hbm %s6622_s4, %s4246_s7  ;;  %s6390_s2 = int_to_ptr.vmem [resolvable:$true] %s2180_s2 }
 0x3d4   : > { %s5160_s20 = scalar_lea.hbm %s2153_s30, 16  ;;  %p5163_p1 = scmp.lt.u32.totalorder %s2153_s30, %s6622_s4 }
 0x3d5   : > { %p5161_p0 = scmp.ne.s32.totalorder %s2153_s30, %s5160_s20  ;;  %p5164_p2 = scmp.lt.u32.totalorder %s5926_s3, %s5160_s20 }
 0x3d6   : > { %p5166_p4 = scmp.lt.u32.totalorder %s5160_s20, %s2153_s30 }
 0x3d7   : > { %p5165_p3 = por %p5164_p2, %p5163_p1 }
 0x3d9   : > { %p5167_p5 = por %p5166_p4, %p5165_p3 }
 0x3db   : > { %p5168_p6 = pnand %p5167_p5, %p5161_p0 }
 0x3dd   : > { %5171 = shalt.err (!%p5168_p6)  }
 0x3de   : > { %s5172_s9 = scalar_lea.vmem %s6371_s14, 16  ;;  %p5177_p8 = scmp.lt.s32.totalorder %s6371_s14, %s5905_s19 }
 0x3df   : > { %p5173_p7 = scmp.ne.s32.totalorder %s6371_s14, %s5172_s9  ;;  %p5178_p9 = scmp.lt.s32.totalorder %s5935_s24, %s5172_s9 }
 0x3e1   : > { %p5179_p10 = por %p5178_p9, %p5177_p8 }
 0x3e3   : > { %p5180_p11 = pnand %p5179_p10, %p5173_p7 }
 0x3e5   : > { %5183 = shalt.err (!%p5180_p11)  }
 0x3e6   : > { %2166 = dma.hbm_to_vmem [thread:$0]  %s2153_s30, 16, %s6371_s14, [#allocation5 + $0x1c] }
 0x3e7   : > { %s4247_s18 = sshll.u32 %s6375_s10, 4  ;;  %s6404_s16 = sld [smem:[#allocation8 + %s5851_s29]] }
 0x3e8   : > { %s2170_s21 = scalar_lea.hbm %s6622_s4, %s4247_s18 }
 0x3e9   : > { %s5184_s17 = scalar_lea.hbm %s2170_s21, 16  ;;  %p5187_p13 = scmp.lt.u32.totalorder %s2170_s21, %s6622_s4 }
 0x3ea   : > { %p5185_p12 = scmp.ne.s32.totalorder %s2170_s21, %s5184_s17  ;;  %p5188_p0 = scmp.lt.u32.totalorder %s5926_s3, %s5184_s17 }
 0x3eb   : > { %p5190_p2 = scmp.lt.u32.totalorder %s5184_s17, %s2170_s21 }
 0x3ec   : > { %p5189_p1 = por %p5188_p0, %p5187_p13 }
 0x3ee   : > { %p5191_p3 = por %p5190_p2, %p5189_p1 }
 0x3f0   : > { %p5192_p4 = pnand %p5191_p3, %p5185_p12 }
 0x3f2   : > { %5195 = shalt.err (!%p5192_p4)  }
 0x3f3   : > { %s5196_s14 = scalar_lea.vmem %s6390_s2, 16  ;;  %p5201_p6 = scmp.lt.s32.totalorder %s6390_s2, %s5905_s19 }
 0x3f4   : > { %p5197_p5 = scmp.ne.s32.totalorder %s6390_s2, %s5196_s14  ;;  %p5202_p7 = scmp.lt.s32.totalorder %s5935_s24, %s5196_s14 }
 0x3f6   : > { %p5203_p8 = por %p5202_p7, %p5201_p6 }
 0x3f8   : > { %p5204_p9 = pnand %p5203_p8, %p5197_p5 }
 0x3fa   : > { %5207 = shalt.err (!%p5204_p9)  }
 0x3fb   : > { %2183 = dma.hbm_to_vmem [thread:$0]  %s2170_s21, 16, %s6390_s2, [#allocation5 + $0x1d] }
 0x3fc   : > { %s5634_s10 = smov [#allocation3 + $0x30]   ;;  %s6667_s26 = sadd.s32 1, %s5851_s29 }
 0x3fd   : > { %s2196_s13 = sshll.u32 %s5634_s10, 4  ;;  %s6421_s7 = sld [smem:[#allocation8 + %s6667_s26]]  ;;  %s2197_s13 = int_to_ptr.vmem [resolvable:$true] %s2196_s13 }
 0x3fe   : > { %s5635_s28 = smov [#allocation3 + $0x31]   ;;  %s6668_s23 = sadd.s32 2, %s5851_s29 }
 0x3ff   : > { %s2212_s25 = sshll.u32 %s5635_s28, 4  ;;  %s6425_s30 = sld [smem:[#allocation8 + %s6668_s23]]  ;;  %s6428_s25 = int_to_ptr.vmem [resolvable:$true] %s2212_s25 }
 0x400   : > { %s4248_s20 = sshll.u32 %s6404_s16, 4 }
 0x401   : > { %s2186_s9 = scalar_lea.hbm %s6622_s4, %s4248_s20 }
 0x402   : > { %s5208_s18 = scalar_lea.hbm %s2186_s9, 16  ;;  %p5211_p11 = scmp.lt.u32.totalorder %s2186_s9, %s6622_s4 }
 0x403   : > { %p5209_p10 = scmp.ne.s32.totalorder %s2186_s9, %s5208_s18  ;;  %p5212_p12 = scmp.lt.u32.totalorder %s5926_s3, %s5208_s18 }
 0x404   : > { %p5214_p0 = scmp.lt.u32.totalorder %s5208_s18, %s2186_s9 }
 0x405   : > { %p5213_p13 = por %p5212_p12, %p5211_p11 }
 0x407   : > { %p5215_p1 = por %p5214_p0, %p5213_p13 }
 0x409   : > { %p5216_p2 = pnand %p5215_p1, %p5209_p10 }
 0x40b   : > { %5219 = shalt.err (!%p5216_p2)  }
 0x40c   : > { %s5220_s27 = scalar_lea.vmem %s2197_s13, 16  ;;  %p5225_p4 = scmp.lt.s32.totalorder %s2197_s13, %s5905_s19 }
 0x40d   : > { %p5221_p3 = scmp.ne.s32.totalorder %s2197_s13, %s5220_s27  ;;  %p5226_p5 = scmp.lt.s32.totalorder %s5935_s24, %s5220_s27 }
 0x40f   : > { %p5227_p6 = por %p5226_p5, %p5225_p4 }
 0x411   : > { %p5228_p7 = pnand %p5227_p6, %p5221_p3 }
 0x413   : > { %5231 = shalt.err (!%p5228_p7)  }
 0x414   : > { %2199 = dma.hbm_to_vmem [thread:$0]  %s2186_s9, 16, %s2197_s13, [#allocation5 + $0x1e] }
 0x415   : > { %s4249_s16 = sshll.u32 %s6421_s7, 4  ;;  %s5636_s21 = smov [#allocation3 + $0x32]  }
 0x416   : > { %s2228_s17 = sshll.u32 %s5636_s21, 4  ;;  %s2202_s14 = scalar_lea.hbm %s6622_s4, %s4249_s16  ;;  %s6443_s17 = int_to_ptr.vmem [resolvable:$true] %s2228_s17 }
 0x417   : > { %s5232_s10 = scalar_lea.hbm %s2202_s14, 16  ;;  %p5235_p9 = scmp.lt.u32.totalorder %s2202_s14, %s6622_s4 }
 0x418   : > { %p5233_p8 = scmp.ne.s32.totalorder %s2202_s14, %s5232_s10  ;;  %p5236_p10 = scmp.lt.u32.totalorder %s5926_s3, %s5232_s10 }
 0x419   : > { %p5238_p12 = scmp.lt.u32.totalorder %s5232_s10, %s2202_s14 }
 0x41a   : > { %p5237_p11 = por %p5236_p10, %p5235_p9 }
 0x41c   : > { %p5239_p13 = por %p5238_p12, %p5237_p11 }
 0x41e   : > { %p5240_p0 = pnand %p5239_p13, %p5233_p8 }
 0x420   : > { %5243 = shalt.err (!%p5240_p0)  }
 0x421   : > { %s5244_s13 = scalar_lea.vmem %s6428_s25, 16  ;;  %p5249_p2 = scmp.lt.s32.totalorder %s6428_s25, %s5905_s19 }
 0x422   : > { %p5245_p1 = scmp.ne.s32.totalorder %s6428_s25, %s5244_s13  ;;  %p5250_p3 = scmp.lt.s32.totalorder %s5935_s24, %s5244_s13 }
 0x424   : > { %p5251_p4 = por %p5250_p3, %p5249_p2 }
 0x426   : > { %p5252_p5 = pnand %p5251_p4, %p5245_p1 }
 0x428   : > { %5255 = shalt.err (!%p5252_p5)  }
 0x429   : > { %2215 = dma.hbm_to_vmem [thread:$0]  %s2202_s14, 16, %s6428_s25, [#allocation5 + $0x1f] }
 0x42a   : > { %s4250_s7 = sshll.u32 %s6425_s30, 4  ;;  %s6669_s23 = sadd.s32 3, %s5851_s29 }
 0x42b   : > { %s6458_s20 = sld [smem:[#allocation8 + %s6669_s23]]  ;;  %s2218_s9 = scalar_lea.hbm %s6622_s4, %s4250_s7 }
 0x42c   : > { %s5256_s18 = scalar_lea.hbm %s2218_s9, 16  ;;  %p5259_p7 = scmp.lt.u32.totalorder %s2218_s9, %s6622_s4 }
 0x42d   : > { %p5257_p6 = scmp.ne.s32.totalorder %s2218_s9, %s5256_s18  ;;  %p5260_p8 = scmp.lt.u32.totalorder %s5926_s3, %s5256_s18 }
 0x42e   : > { %p5262_p10 = scmp.lt.u32.totalorder %s5256_s18, %s2218_s9 }
 0x42f   : > { %p5261_p9 = por %p5260_p8, %p5259_p7 }
 0x431   : > { %p5263_p11 = por %p5262_p10, %p5261_p9 }
 0x433   : > { %p5264_p12 = pnand %p5263_p11, %p5257_p6 }
 0x435   : > { %5267 = shalt.err (!%p5264_p12)  }
 0x436   : > { %s5268_s25 = scalar_lea.vmem %s6443_s17, 16  ;;  %p5273_p0 = scmp.lt.s32.totalorder %s6443_s17, %s5905_s19 }
 0x437   : > { %p5269_p13 = scmp.ne.s32.totalorder %s6443_s17, %s5268_s25  ;;  %p5274_p1 = scmp.lt.s32.totalorder %s5935_s24, %s5268_s25 }
 0x439   : > { %p5275_p2 = por %p5274_p1, %p5273_p0 }
 0x43b   : > { %p5276_p3 = pnand %p5275_p2, %p5269_p13 }
 0x43d   : > { %5279 = shalt.err (!%p5276_p3)  }
 0x43e   : > { %2231 = dma.hbm_to_vmem [thread:$0]  %s2218_s9, 16, %s6443_s17, [#allocation5 + $0x20] }
 0x43f   : > { %s5637_s30 = smov [#allocation3 + $0x33]   ;;  %s2248_s16 = sadd.s32 4, %s5851_s29 }
 0x440   : > { %s2244_s27 = sshll.u32 %s5637_s30, 4  ;;  %s6474_s21 = sld [smem:[#allocation8 + %s2248_s16]]  ;;  %s2245_s27 = int_to_ptr.vmem [resolvable:$true] %s2244_s27 }
 0x441   : > { %s6477_s5 = sld [smem:[#allocation8 + %s5876_s22]]  ;;  %s4251_s0 = sshll.u32 %s6458_s20, 4 }
 0x442   : > { %s5638_s14 = smov [#allocation3 + $0x34]   ;;  %s2234_s13 = scalar_lea.hbm %s6622_s4, %s4251_s0 }
 0x443   : > { %s2261_s10 = sshll.u32 %s5638_s14, 4  ;;  %s5280_s7 = scalar_lea.hbm %s2234_s13, 16  ;;  %s6483_s10 = int_to_ptr.vmem [resolvable:$true] %s2261_s10 }
 0x444   : > { %p5281_p4 = scmp.ne.s32.totalorder %s2234_s13, %s5280_s7  ;;  %p5283_p5 = scmp.lt.u32.totalorder %s2234_s13, %s6622_s4 }
 0x445   : > { %p5284_p6 = scmp.lt.u32.totalorder %s5926_s3, %s5280_s7  ;;  %p5286_p8 = scmp.lt.u32.totalorder %s5280_s7, %s2234_s13 }
 0x447   : > { %p5285_p7 = por %p5284_p6, %p5283_p5 }
 0x449   : > { %p5287_p9 = por %p5286_p8, %p5285_p7 }
 0x44b   : > { %p5288_p10 = pnand %p5287_p9, %p5281_p4 }
 0x44d   : > { %5291 = shalt.err (!%p5288_p10)  }
 0x44e   : > { %s5292_s29 = scalar_lea.vmem %s2245_s27, 16  ;;  %p5297_p12 = scmp.lt.s32.totalorder %s2245_s27, %s5905_s19 }
 0x44f   : > { %p5293_p11 = scmp.ne.s32.totalorder %s2245_s27, %s5292_s29  ;;  %p5298_p13 = scmp.lt.s32.totalorder %s5935_s24, %s5292_s29 }
 0x451   : > { %p5299_p0 = por %p5298_p13, %p5297_p12 }
 0x453   : > { %p5300_p1 = pnand %p5299_p0, %p5293_p11 }
 0x455   : > { %5303 = shalt.err (!%p5300_p1)  }
 0x456   : > { %2247 = dma.hbm_to_vmem [thread:$0]  %s2234_s13, 16, %s2245_s27, [#allocation5 + $0x21] }
 0x457   : > { %s6670_s20 = sadd.s32 1, %s5876_s22  ;;  %s4252_s6 = sshll.u32 %s6474_s21, 4 }
 0x458   : > { %s6493_s12 = sld [smem:[#allocation8 + %s6670_s20]]  ;;  %s5639_s9 = smov [#allocation3 + $0x38]  }
 0x459   : > { %s2277_s18 = sshll.u32 %s5639_s9, 4  ;;  %s2251_s25 = scalar_lea.hbm %s6622_s4, %s4252_s6  ;;  %s2278_s18 = int_to_ptr.vmem [resolvable:$true] %s2277_s18 }
 0x45a   : > { %s4253_s30 = sshll.u32 %s6477_s5, 4  ;;  %s5304_s16 = scalar_lea.hbm %s2251_s25, 16 }
 0x45b   : > { %p5305_p2 = scmp.ne.s32.totalorder %s2251_s25, %s5304_s16  ;;  %p5307_p3 = scmp.lt.u32.totalorder %s2251_s25, %s6622_s4 }
 0x45c   : > { %p5308_p4 = scmp.lt.u32.totalorder %s5926_s3, %s5304_s16  ;;  %p5310_p6 = scmp.lt.u32.totalorder %s5304_s16, %s2251_s25 }
 0x45e   : > { %p5309_p5 = por %p5308_p4, %p5307_p3 }
 0x460   : > { %p5311_p7 = por %p5310_p6, %p5309_p5 }
 0x462   : > { %p5312_p8 = pnand %p5311_p7, %p5305_p2 }
 0x464   : > { %5315 = shalt.err (!%p5312_p8)  }
 0x465   : > { %s5316_s27 = scalar_lea.vmem %s6483_s10, 16  ;;  %p5321_p10 = scmp.lt.s32.totalorder %s6483_s10, %s5905_s19 }
 0x466   : > { %p5317_p9 = scmp.ne.s32.totalorder %s6483_s10, %s5316_s27  ;;  %p5322_p11 = scmp.lt.s32.totalorder %s5935_s24, %s5316_s27 }
 0x468   : > { %p5323_p12 = por %p5322_p11, %p5321_p10 }
 0x46a   : > { %p5324_p13 = pnand %p5323_p12, %p5317_p9 }
 0x46c   : > { %5327 = shalt.err (!%p5324_p13)  }
 0x46d   : > { %2264 = dma.hbm_to_vmem [thread:$0]  %s2251_s25, 16, %s6483_s10, [#allocation5 + $0x22] }
 0x46e   : > { %s2267_s26 = scalar_lea.hbm %s6622_s4, %s4253_s30 }
 0x46f   : > { %s5328_s28 = scalar_lea.hbm %s2267_s26, 16  ;;  %p5331_p1 = scmp.lt.u32.totalorder %s2267_s26, %s6622_s4 }
 0x470   : > { %p5329_p0 = scmp.ne.s32.totalorder %s2267_s26, %s5328_s28  ;;  %p5332_p2 = scmp.lt.u32.totalorder %s5926_s3, %s5328_s28 }
 0x471   : > { %p5334_p4 = scmp.lt.u32.totalorder %s5328_s28, %s2267_s26 }
 0x472   : > { %p5333_p3 = por %p5332_p2, %p5331_p1 }
 0x474   : > { %p5335_p5 = por %p5334_p4, %p5333_p3 }
 0x476   : > { %p5336_p6 = pnand %p5335_p5, %p5329_p0 }
 0x478   : > { %5339 = shalt.err (!%p5336_p6)  }
 0x479   : > { %s5340_s17 = scalar_lea.vmem %s2278_s18, 16  ;;  %p5345_p8 = scmp.lt.s32.totalorder %s2278_s18, %s5905_s19 }
 0x47a   : > { %p5341_p7 = scmp.ne.s32.totalorder %s2278_s18, %s5340_s17  ;;  %p5346_p9 = scmp.lt.s32.totalorder %s5935_s24, %s5340_s17 }
 0x47c   : > { %p5347_p10 = por %p5346_p9, %p5345_p8 }
 0x47e   : > { %p5348_p11 = pnand %p5347_p10, %p5341_p7 }
 0x480   : > { %5351 = shalt.err (!%p5348_p11)  }
 0x481   : > { %2280 = dma.hbm_to_vmem [thread:$0]  %s2267_s26, 16, %s2278_s18, [#allocation5 + $0x23] }
 0x482   : > { %s4254_s10 = sshll.u32 %s6493_s12, 4  ;;  %s5640_s6 = smov [#allocation3 + $0x39]  }
 0x483   : > { %s2283_s20 = scalar_lea.hbm %s6622_s4, %s4254_s10  ;;  %s2293_s9 = sshll.u32 %s5640_s6, 4  ;;  %s2294_s9 = int_to_ptr.vmem [resolvable:$true] %s2293_s9 }
 0x484   : > { %s6671_s2 = sadd.s32 2, %s5876_s22  ;;  %s5352_s25 = scalar_lea.hbm %s2283_s20, 16 }
 0x485   : > { %s6525_s15 = sld [smem:[#allocation8 + %s6671_s2]]  ;;  %p5353_p12 = scmp.ne.s32.totalorder %s2283_s20, %s5352_s25 }
 0x486   : > { %p5355_p13 = scmp.lt.u32.totalorder %s2283_s20, %s6622_s4  ;;  %p5356_p0 = scmp.lt.u32.totalorder %s5926_s3, %s5352_s25 }
 0x487   : > { %p5358_p2 = scmp.lt.u32.totalorder %s5352_s25, %s2283_s20 }
 0x488   : > { %p5357_p1 = por %p5356_p0, %p5355_p13 }
 0x48a   : > { %p5359_p3 = por %p5358_p2, %p5357_p1 }
 0x48c   : > { %p5360_p4 = pnand %p5359_p3, %p5353_p12 }
 0x48e   : > { %5363 = shalt.err (!%p5360_p4)  }
 0x48f   : > { %s5364_s12 = scalar_lea.vmem %s2294_s9, 16  ;;  %p5369_p6 = scmp.lt.s32.totalorder %s2294_s9, %s5905_s19 }
 0x490   : > { %p5365_p5 = scmp.ne.s32.totalorder %s2294_s9, %s5364_s12  ;;  %p5370_p7 = scmp.lt.s32.totalorder %s5935_s24, %s5364_s12 }
 0x492   : > { %p5371_p8 = por %p5370_p7, %p5369_p6 }
 0x494   : > { %p5372_p9 = pnand %p5371_p8, %p5365_p5 }
 0x496   : > { %5375 = shalt.err (!%p5372_p9)  }
 0x497   : > { %2296 = dma.hbm_to_vmem [thread:$0]  %s2283_s20, 16, %s2294_s9, [#allocation5 + $0x24] }
 0x498   : > { %s6672_s18 = sadd.s32 3, %s5876_s22  ;;  %s5641_s14 = smov [#allocation3 + $0x3a]  }
 0x499   : > { %s6535_s0 = sld [smem:[#allocation8 + %s6672_s18]]  ;;  %s2309_s27 = sshll.u32 %s5641_s14, 4  ;;  %s2310_s27 = int_to_ptr.vmem [resolvable:$true] %s2309_s27 }
 0x49a   : > { %s5642_s21 = smov [#allocation3 + $0x3b]   ;;  %s2329_s26 = sadd.s32 4, %s5876_s22 }
 0x49b   : > { %s2325_s5 = sshll.u32 %s5642_s21, 4  ;;  %s4255_s28 = sshll.u32 %s6525_s15, 4  ;;  %s6537_s5 = int_to_ptr.vmem [resolvable:$true] %s2325_s5 }
 0x49c   : > { %s6541_s13 = sld [smem:[#allocation8 + %s2329_s26]]  ;;  %s2299_s10 = scalar_lea.hbm %s6622_s4, %s4255_s28 }
 0x49d   : > { %s5376_s23 = scalar_lea.hbm %s2299_s10, 16  ;;  %p5379_p11 = scmp.lt.u32.totalorder %s2299_s10, %s6622_s4 }
 0x49e   : > { %p5377_p10 = scmp.ne.s32.totalorder %s2299_s10, %s5376_s23  ;;  %p5380_p12 = scmp.lt.u32.totalorder %s5926_s3, %s5376_s23 }
 0x49f   : > { %p5382_p0 = scmp.lt.u32.totalorder %s5376_s23, %s2299_s10 }
 0x4a0   : > { %p5381_p13 = por %p5380_p12, %p5379_p11 }
 0x4a2   : > { %p5383_p1 = por %p5382_p0, %p5381_p13 }
 0x4a4   : > { %p5384_p2 = pnand %p5383_p1, %p5377_p10 }
 0x4a6   : > { %5387 = shalt.err (!%p5384_p2)  }
 0x4a7   : > { %s5388_s22 = scalar_lea.vmem %s2310_s27, 16  ;;  %p5393_p4 = scmp.lt.s32.totalorder %s2310_s27, %s5905_s19 }
 0x4a8   : > { %p5389_p3 = scmp.ne.s32.totalorder %s2310_s27, %s5388_s22  ;;  %p5394_p5 = scmp.lt.s32.totalorder %s5935_s24, %s5388_s22 }
 0x4aa   : > { %p5395_p6 = por %p5394_p5, %p5393_p4 }
 0x4ac   : > { %p5396_p7 = pnand %p5395_p6, %p5389_p3 }
 0x4ae   : > { %5399 = shalt.err (!%p5396_p7)  }
 0x4af   : > { %2312 = dma.hbm_to_vmem [thread:$0]  %s2299_s10, 16, %s2310_s27, [#allocation5 + $0x25] }
 0x4b0   : > { %s4256_s6 = sshll.u32 %s6535_s0, 4  ;;  %s5643_s9 = smov [#allocation3 + $0x3c]  }
 0x4b1   : > { %s2342_s2 = sshll.u32 %s5643_s9, 4  ;;  %s2315_s30 = scalar_lea.hbm %s6622_s4, %s4256_s6  ;;  %s6556_s2 = int_to_ptr.vmem [resolvable:$true] %s2342_s2 }
 0x4b2   : > { %s5400_s16 = scalar_lea.hbm %s2315_s30, 16  ;;  %p5403_p9 = scmp.lt.u32.totalorder %s2315_s30, %s6622_s4 }
 0x4b3   : > { %p5401_p8 = scmp.ne.s32.totalorder %s2315_s30, %s5400_s16  ;;  %p5404_p10 = scmp.lt.u32.totalorder %s5926_s3, %s5400_s16 }
 0x4b4   : > { %p5406_p12 = scmp.lt.u32.totalorder %s5400_s16, %s2315_s30 }
 0x4b5   : > { %p5405_p11 = por %p5404_p10, %p5403_p9 }
 0x4b7   : > { %p5407_p13 = por %p5406_p12, %p5405_p11 }
 0x4b9   : > { %p5408_p0 = pnand %p5407_p13, %p5401_p8 }
 0x4bb   : > { %5411 = shalt.err (!%p5408_p0)  }
 0x4bc   : > { %s5412_s0 = scalar_lea.vmem %s6537_s5, 16  ;;  %p5417_p2 = scmp.lt.s32.totalorder %s6537_s5, %s5905_s19 }
 0x4bd   : > { %p5413_p1 = scmp.ne.s32.totalorder %s6537_s5, %s5412_s0  ;;  %p5418_p3 = scmp.lt.s32.totalorder %s5935_s24, %s5412_s0 }
 0x4bf   : > { %p5419_p4 = por %p5418_p3, %p5417_p2 }
 0x4c1   : > { %p5420_p5 = pnand %p5419_p4, %p5413_p1 }
 0x4c3   : > { %5423 = shalt.err (!%p5420_p5)  }
 0x4c4   : > { %2328 = dma.hbm_to_vmem [thread:$0]  %s2315_s30, 16, %s6537_s5, [#allocation5 + $0x26] }
 0x4c5   : > { %s4257_s14 = sshll.u32 %s6541_s13, 4 }
 0x4c6   : > { %s2332_s26 = scalar_lea.hbm %s6622_s4, %s4257_s14 }
 0x4c7   : > { %s5424_s28 = scalar_lea.hbm %s2332_s26, 16  ;;  %p5427_p7 = scmp.lt.u32.totalorder %s2332_s26, %s6622_s4 }
 0x4c8   : > { %p5425_p6 = scmp.ne.s32.totalorder %s2332_s26, %s5424_s28  ;;  %p5428_p8 = scmp.lt.u32.totalorder %s5926_s3, %s5424_s28 }
 0x4c9   : > { %p5430_p10 = scmp.lt.u32.totalorder %s5424_s28, %s2332_s26 }
 0x4ca   : > { %p5429_p9 = por %p5428_p8, %p5427_p7 }
 0x4cc   : > { %p5431_p11 = por %p5430_p10, %p5429_p9 }
 0x4ce   : > { %p5432_p12 = pnand %p5431_p11, %p5425_p6 }
 0x4d0   : > { %5435 = shalt.err (!%p5432_p12)  }
 0x4d1   : > { %s5436_s5 = scalar_lea.vmem %s6556_s2, 16  ;;  %p5441_p0 = scmp.lt.s32.totalorder %s6556_s2, %s5905_s19 }
 0x4d2   : > { %p5437_p13 = scmp.ne.s32.totalorder %s6556_s2, %s5436_s5  ;;  %p5442_p1 = scmp.lt.s32.totalorder %s5935_s24, %s5436_s5 }
 0x4d4   : > { %p5443_p2 = por %p5442_p1, %p5441_p0 }
 0x4d6   : > { %p5444_p3 = pnand %p5443_p2, %p5437_p13 }
 0x4d8   : > { %5447 = shalt.err (!%p5444_p3)  }
 0x4d9   : > { %2345 = dma.hbm_to_vmem [thread:$0]  %s2332_s26, 16, %s6556_s2, [#allocation5 + $0x27] }
 0x4da   : > { %5454 = dma.done.wait [#allocation4], 16 }
 0x4db   : > { %5455 = vsyncadd [#allocation4], 4294967280 }
 0x4dc   : > { %5456 = dma.done.wait [#allocation4 + $0x1], 16 }
 0x4dd   : > { %5457 = vsyncadd [#allocation4 + $0x1], 4294967280 }
 0x4de   : > { %5458 = dma.done.wait [#allocation4 + $0x2], 16 }
 0x4df   : > { %5459 = vsyncadd [#allocation4 + $0x2], 4294967280 }
 0x4e0   : > { %5460 = dma.done.wait [#allocation4 + $0x3], 16 }
 0x4e1   : > { %5461 = vsyncadd [#allocation4 + $0x3], 4294967280 }
 0x4e2   : > { %5462 = dma.done.wait [#allocation4 + $0x4], 16 }
 0x4e3   : > { %5463 = vsyncadd [#allocation4 + $0x4], 4294967280 }
 0x4e4   : > { %5464 = dma.done.wait [#allocation4 + $0x5], 16 }
 0x4e5   : > { %5465 = vsyncadd [#allocation4 + $0x5], 4294967280 }
 0x4e6   : > { %5466 = dma.done.wait [#allocation4 + $0x6], 16 }
 0x4e7   : > { %5467 = vsyncadd [#allocation4 + $0x6], 4294967280 }
 0x4e8   : > { %5468 = dma.done.wait [#allocation4 + $0x7], 16 }
 0x4e9   : > { %5469 = vsyncadd [#allocation4 + $0x7], 4294967280 }
 0x4ea   : > { %5470 = dma.done.wait [#allocation4 + $0x8], 16 }
 0x4eb   : > { %5471 = vsyncadd [#allocation4 + $0x8], 4294967280 }
 0x4ec   : > { %5472 = dma.done.wait [#allocation4 + $0x9], 16 }
 0x4ed   : > { %5473 = vsyncadd [#allocation4 + $0x9], 4294967280 }
 0x4ee   : > { %5474 = dma.done.wait [#allocation4 + $0xa], 16 }
 0x4ef   : > { %5475 = vsyncadd [#allocation4 + $0xa], 4294967280 }
 0x4f0   : > { %5476 = dma.done.wait [#allocation4 + $0xb], 16 }
 0x4f1   : > { %5477 = vsyncadd [#allocation4 + $0xb], 4294967280 }
 0x4f2   : > { %5478 = dma.done.wait [#allocation4 + $0xc], 16 }
 0x4f3   : > { %5479 = vsyncadd [#allocation4 + $0xc], 4294967280 }
 0x4f4   : > { %5480 = dma.done.wait [#allocation4 + $0xd], 16 }
 0x4f5   : > { %5481 = vsyncadd [#allocation4 + $0xd], 4294967280 }
 0x4f6   : > { %5482 = dma.done.wait [#allocation4 + $0xe], 16 }
 0x4f7   : > { %5483 = vsyncadd [#allocation4 + $0xe], 4294967280 }
 0x4f8   : > { %5484 = dma.done.wait [#allocation4 + $0xf], 16 }
 0x4f9   : > { %5485 = vsyncadd [#allocation4 + $0xf], 4294967280 }
 0x4fa   : > { %5486 = dma.done.wait [#allocation4 + $0x10], 16 }
 0x4fb   : > { %5487 = vsyncadd [#allocation4 + $0x10], 4294967280 }
 0x4fc   : > { %5488 = dma.done.wait [#allocation4 + $0x11], 16 }
 0x4fd   : > { %5489 = vsyncadd [#allocation4 + $0x11], 4294967280 }
 0x4fe   : > { %5490 = dma.done.wait [#allocation4 + $0x12], 16 }
 0x4ff   : > { %5491 = vsyncadd [#allocation4 + $0x12], 4294967280 }
 0x500   : > { %5492 = dma.done.wait [#allocation4 + $0x13], 16 }
 0x501   : > { %5493 = vsyncadd [#allocation4 + $0x13], 4294967280 }
 0x502   : > { %5494 = dma.done.wait [#allocation4 + $0x14], 16 }
 0x503   : > { %5495 = vsyncadd [#allocation4 + $0x14], 4294967280 }
 0x504   : > { %5496 = dma.done.wait [#allocation4 + $0x15], 16 }
 0x505   : > { %5497 = vsyncadd [#allocation4 + $0x15], 4294967280 }
 0x506   : > { %5498 = dma.done.wait [#allocation4 + $0x16], 16 }
 0x507   : > { %5499 = vsyncadd [#allocation4 + $0x16], 4294967280 }
 0x508   : > { %5500 = dma.done.wait [#allocation4 + $0x17], 16 }
 0x509   : > { %5501 = vsyncadd [#allocation4 + $0x17], 4294967280 }
 0x50a   : > { %5502 = dma.done.wait [#allocation4 + $0x18], 16 }
 0x50b   : > { %5503 = vsyncadd [#allocation4 + $0x18], 4294967280 }
 0x50c   : > { %5504 = dma.done.wait [#allocation4 + $0x19], 16 }
 0x50d   : > { %5505 = vsyncadd [#allocation4 + $0x19], 4294967280 }
 0x50e   : > { %5506 = dma.done.wait [#allocation4 + $0x1a], 16 }
 0x50f   : > { %5507 = vsyncadd [#allocation4 + $0x1a], 4294967280 }
 0x510   : > { %5508 = dma.done.wait [#allocation4 + $0x1b], 16 }
 0x511   : > { %5509 = vsyncadd [#allocation4 + $0x1b], 4294967280 }
 0x512   : > { %5510 = dma.done.wait [#allocation4 + $0x1c], 16 }
 0x513   : > { %5511 = vsyncadd [#allocation4 + $0x1c], 4294967280 }
 0x514   : > { %5512 = dma.done.wait [#allocation4 + $0x1d], 16 }
 0x515   : > { %5513 = vsyncadd [#allocation4 + $0x1d], 4294967280 }
 0x516   : > { %5514 = dma.done.wait [#allocation4 + $0x1e], 16 }
 0x517   : > { %5515 = vsyncadd [#allocation4 + $0x1e], 4294967280 }
 0x518   : > { %5516 = dma.done.wait [#allocation4 + $0x1f], 16 }
 0x519   : > { %5517 = vsyncadd [#allocation4 + $0x1f], 4294967280 }
 0x51a   : > { %5518 = dma.done.wait [#allocation5], 16 }
 0x51b   : > { %5519 = vsyncadd [#allocation5], 4294967280 }
 0x51c   : > { %5520 = dma.done.wait [#allocation5 + $0x1], 16 }
 0x51d   : > { %5521 = vsyncadd [#allocation5 + $0x1], 4294967280 }
 0x51e   : > { %5522 = dma.done.wait [#allocation5 + $0x2], 16 }
 0x51f   : > { %5523 = vsyncadd [#allocation5 + $0x2], 4294967280 }
 0x520   : > { %5524 = dma.done.wait [#allocation5 + $0x3], 16 }
 0x521   : > { %5525 = vsyncadd [#allocation5 + $0x3], 4294967280 }
 0x522   : > { %5526 = dma.done.wait [#allocation5 + $0x4], 16 }
 0x523   : > { %5527 = vsyncadd [#allocation5 + $0x4], 4294967280 }
 0x524   : > { %5528 = dma.done.wait [#allocation5 + $0x5], 16 }
 0x525   : > { %5529 = vsyncadd [#allocation5 + $0x5], 4294967280 }
 0x526   : > { %5530 = dma.done.wait [#allocation5 + $0x6], 16 }
 0x527   : > { %5531 = vsyncadd [#allocation5 + $0x6], 4294967280 }
 0x528   : > { %5532 = dma.done.wait [#allocation5 + $0x7], 16 }
 0x529   : > { %5533 = vsyncadd [#allocation5 + $0x7], 4294967280 }
 0x52a   : > { %5534 = dma.done.wait [#allocation5 + $0x8], 16 }
 0x52b   : > { %5535 = vsyncadd [#allocation5 + $0x8], 4294967280 }
 0x52c   : > { %5536 = dma.done.wait [#allocation5 + $0x9], 16 }
 0x52d   : > { %5537 = vsyncadd [#allocation5 + $0x9], 4294967280 }
 0x52e   : > { %5538 = dma.done.wait [#allocation5 + $0xa], 16 }
 0x52f   : > { %5539 = vsyncadd [#allocation5 + $0xa], 4294967280 }
 0x530   : > { %5540 = dma.done.wait [#allocation5 + $0xb], 16 }
 0x531   : > { %5541 = vsyncadd [#allocation5 + $0xb], 4294967280 }
 0x532   : > { %5542 = dma.done.wait [#allocation5 + $0xc], 16 }
 0x533   : > { %5543 = vsyncadd [#allocation5 + $0xc], 4294967280 }
 0x534   : > { %5544 = dma.done.wait [#allocation5 + $0xd], 16 }
 0x535   : > { %5545 = vsyncadd [#allocation5 + $0xd], 4294967280 }
 0x536   : > { %5546 = dma.done.wait [#allocation5 + $0xe], 16 }
 0x537   : > { %5547 = vsyncadd [#allocation5 + $0xe], 4294967280 }
 0x538   : > { %5548 = dma.done.wait [#allocation5 + $0xf], 16 }
 0x539   : > { %5549 = vsyncadd [#allocation5 + $0xf], 4294967280 }
 0x53a   : > { %5550 = dma.done.wait [#allocation5 + $0x10], 16 }
 0x53b   : > { %5551 = vsyncadd [#allocation5 + $0x10], 4294967280 }
 0x53c   : > { %5552 = dma.done.wait [#allocation5 + $0x11], 16 }
 0x53d   : > { %5553 = vsyncadd [#allocation5 + $0x11], 4294967280 }
 0x53e   : > { %5554 = dma.done.wait [#allocation5 + $0x12], 16 }
 0x53f   : > { %5555 = vsyncadd [#allocation5 + $0x12], 4294967280 }
 0x540   : > { %5556 = dma.done.wait [#allocation5 + $0x13], 16 }
 0x541   : > { %5557 = vsyncadd [#allocation5 + $0x13], 4294967280 }
 0x542   : > { %5558 = dma.done.wait [#allocation5 + $0x14], 16 }
 0x543   : > { %5559 = vsyncadd [#allocation5 + $0x14], 4294967280 }
 0x544   : > { %5560 = dma.done.wait [#allocation5 + $0x15], 16 }
 0x545   : > { %5561 = vsyncadd [#allocation5 + $0x15], 4294967280 }
 0x546   : > { %5562 = dma.done.wait [#allocation5 + $0x16], 16 }
 0x547   : > { %5563 = vsyncadd [#allocation5 + $0x16], 4294967280 }
 0x548   : > { %5564 = dma.done.wait [#allocation5 + $0x17], 16 }
 0x549   : > { %5565 = vsyncadd [#allocation5 + $0x17], 4294967280 }
 0x54a   : > { %5566 = dma.done.wait [#allocation5 + $0x18], 16 }
 0x54b   : > { %5567 = vsyncadd [#allocation5 + $0x18], 4294967280 }
 0x54c   : > { %5568 = dma.done.wait [#allocation5 + $0x19], 16 }
 0x54d   : > { %5569 = vsyncadd [#allocation5 + $0x19], 4294967280 }
 0x54e   : > { %5570 = dma.done.wait [#allocation5 + $0x1a], 16 }
 0x54f   : > { %5571 = vsyncadd [#allocation5 + $0x1a], 4294967280 }
 0x550   : > { %5572 = dma.done.wait [#allocation5 + $0x1b], 16 }
 0x551   : > { %5573 = vsyncadd [#allocation5 + $0x1b], 4294967280 }
 0x552   : > { %5574 = dma.done.wait [#allocation5 + $0x1c], 16 }
 0x553   : > { %5575 = vsyncadd [#allocation5 + $0x1c], 4294967280 }
 0x554   : > { %5576 = dma.done.wait [#allocation5 + $0x1d], 16 }
 0x555   : > { %5577 = vsyncadd [#allocation5 + $0x1d], 4294967280 }
 0x556   : > { %5578 = dma.done.wait [#allocation5 + $0x1e], 16 }
 0x557   : > { %5579 = vsyncadd [#allocation5 + $0x1e], 4294967280 }
 0x558   : > { %5580 = dma.done.wait [#allocation5 + $0x1f], 16 }
 0x559   : > { %5581 = vsyncadd [#allocation5 + $0x1f], 4294967280 }
 0x55a   : > { %5582 = dma.done.wait [#allocation5 + $0x20], 16 }
 0x55b   : > { %5583 = vsyncadd [#allocation5 + $0x20], 4294967280 }
 0x55c   : > { %5584 = dma.done.wait [#allocation5 + $0x21], 16 }
 0x55d   : > { %5585 = vsyncadd [#allocation5 + $0x21], 4294967280 }
 0x55e   : > { %5586 = dma.done.wait [#allocation5 + $0x22], 16 }
 0x55f   : > { %5587 = vsyncadd [#allocation5 + $0x22], 4294967280 }
 0x560   : > { %5588 = dma.done.wait [#allocation5 + $0x23], 16 }
 0x561   : > { %5589 = vsyncadd [#allocation5 + $0x23], 4294967280 }
 0x562   : > { %5590 = dma.done.wait [#allocation5 + $0x24], 16 }
 0x563   : > { %5591 = vsyncadd [#allocation5 + $0x24], 4294967280 }
 0x564   : > { %5592 = dma.done.wait [#allocation5 + $0x25], 16 }
 0x565   : > { %5593 = vsyncadd [#allocation5 + $0x25], 4294967280 }
 0x566   : > { %5594 = dma.done.wait [#allocation5 + $0x26], 16 }
 0x567   : > { %5595 = vsyncadd [#allocation5 + $0x26], 4294967280 }
 0x568   : > { %5596 = dma.done.wait [#allocation5 + $0x27], 16 }
 0x569   : > { %5597 = vsyncadd [#allocation5 + $0x27], 4294967280  ;;  %v5644_v32 = vmov 0.0   ;;  %vm5645_vm0 = vmmov 0   ;;  %v5646_v33 = vmov 0   ;;  %vm2507_vm1 = vcmask 1043456  }
 0x56a   : > { %4370 = vmatprep.subr.mxu0 %v5644_v32  ;;  %4375 = vmatprep.subr.mxu1 %v5644_v32  ;;  %v2499_v34 = vld [vmem:[#allocation3] sm:$0x1f]  ;;  %v2500_v35 = vld [vmem:[#allocation3 + $0x8] sm:$0x1f]  ;;  %v3124_v39 = vld [vmem:[%s5697_s8] sm:$0xff]  ;;  %vm3161_vm2 = vcmask 1041409  }
 0x56b   : > { %4372 = vmatprep.mubr.msk.f32.mxu0 %vm5645_vm0, %v5644_v32  ;;  %4377 = vmatprep.mubr.msk.f32.mxu1 %vm5645_vm0, %v5644_v32  ;;  %v2491_v36 = vld [vmem:[#allocation2] sm:$0xf]  ;;  %v2492_v38 = vld [vmem:[#allocation2 + $0x4] sm:$0xf]  ;;  %v2493_v42 = vld [vmem:[#allocation2 + $0x8] sm:$0xf] }
 0x56c   : > { %4463 = vset.pattern.permute.xlu0 %v5646_v33  ;;  %4371 = vmatpush3.xpose.msra.mxu0 %v2499_v34  ;;  %v2508_v37 = vsel %vm2507_vm1, %v2491_v36, 0.0  ;;  %v2515_v41 = vsel %vm2507_vm1, %v2492_v38, 0.0  ;;  %v2522_v44 = vsel %vm2507_vm1, %v2493_v42, 0.0  ;;  %v2494_v45 = vld [vmem:[#allocation2 + $0xc] sm:$0xf]  ;;  %vm3164_vm3 = vcmask 1042434  }
 0x56d   : > { %4376 = vmatpush3.xpose.msra.mxu1 %v2500_v35  ;;  %4380 = vmatprep.subr.mxu0 %v5644_v32  ;;  %v2509_v40 = vrot.slane %v2508_v37, 4  ;;  %v2516_v43 = vrot.slane %v2515_v41, 4  ;;  %v2523_v47 = vrot.slane %v2522_v44, 4  ;;  %v2529_v48 = vsel %vm2507_vm1, %v2494_v45, 0.0  ;;  %v2495_v49 = vld [vmem:[#allocation2 + $0x10] sm:$0xf] }
 0x56e   : > { %4385 = vmatprep.subr.mxu1 %v5644_v32  ;;  %3127 = vperm.xlu0 %4463, %v3124_v39   ;;  %v2530_v51 = vrot.slane %v2529_v48, 4  ;;  %v2536_v52 = vsel %vm2507_vm1, %v2495_v49, 0.0  ;;  %v2496_v53 = vld [vmem:[#allocation2 + $0x14] sm:$0xf]  ;;  %v2497_v61 = vld [vmem:[#allocation2 + $0x18] sm:$0xf] }
 0x56f   : > { %v2510_v46 = vadd.f32 %v2509_v40, %v2508_v37  ;;  %v2517_v50 = vadd.f32 %v2516_v43, %v2515_v41  ;;  %v2524_v55 = vadd.f32 %v2523_v47, %v2522_v44  ;;  %v2537_v56 = vrot.slane %v2536_v52, 4  ;;  %v2498_v62 = vld [vmem:[#allocation2 + $0x1c] sm:$0xf]  ;;  %v2501_v16 = vld [vmem:[#allocation3 + $0x10] sm:$0x1f] }
 0x570   : > { %v2543_v57 = vsel %vm2507_vm1, %v2496_v53, 0.0  ;;  %v2531_v59 = vadd.f32 %v2530_v51, %v2529_v48  ;;  %v2550_v2 = vsel %vm2507_vm1, %v2497_v61, 0.0  ;;  %v2557_v10 = vsel %vm2507_vm1, %v2498_v62, 0.0  ;;  %v2502_v21 = vld [vmem:[#allocation3 + $0x18] sm:$0x1f] }
 0x571   : > { %v2511_v54 = vrot.slane %v2510_v46, 2  ;;  %v2518_v58 = vrot.slane %v2517_v50, 2  ;;  %v2544_v60 = vrot.slane %v2543_v57, 4  ;;  %v2525_v0 = vrot.slane %v2524_v55, 2  ;;  %v2503_v31 = vld [vmem:[#allocation3 + $0x20] sm:$0x1f] }
 0x572   : > { %v2538_v1 = vadd.f32 %v2537_v56, %v2536_v52  ;;  %v2532_v4 = vrot.slane %v2531_v59, 2  ;;  %v2551_v6 = vrot.slane %v2550_v2, 4  ;;  %v2558_v19 = vrot.slane %v2557_v10, 4  ;;  %v2504_v34 = vld [vmem:[#allocation3 + $0x28] sm:$0x1f] }
 0x573   : > { %v2512_v63 = vadd.f32 %v2511_v54, %v2510_v46  ;;  %v2519_v3 = vadd.f32 %v2518_v58, %v2517_v50  ;;  %v2545_v5 = vadd.f32 %v2544_v60, %v2543_v57  ;;  %v2526_v8 = vadd.f32 %v2525_v0, %v2524_v55  ;;  %v2505_v39 = vld [vmem:[#allocation3 + $0x30] sm:$0x1f]  ;;  %v2506_v41 = vld [vmem:[#allocation3 + $0x38] sm:$0x1f] }
 0x574   : > { %v2539_v9 = vrot.slane %v2538_v1, 2  ;;  %v2533_v12 = vadd.f32 %v2532_v4, %v2531_v59  ;;  %v2552_v14 = vadd.f32 %v2551_v6, %v2550_v2  ;;  %v2559_v27 = vadd.f32 %v2558_v19, %v2557_v10 }
 0x575   : > { %v2513_v7 = vrot.slane %v2512_v63, 1  ;;  %v2520_v11 = vrot.slane %v2519_v3, 1  ;;  %v2546_v13 = vrot.slane %v2545_v5, 2  ;;  %v2527_v17 = vrot.slane %v2526_v8, 1 }
 0x576   : > { %v2540_v18 = vadd.f32 %v2539_v9, %v2538_v1  ;;  %v2534_v22 = vrot.slane %v2533_v12, 1  ;;  %v2553_v24 = vrot.slane %v2552_v14, 2  ;;  %v2560_v33 = vrot.slane %v2559_v27, 2 }
 0x577   : > { %v2514_v15 = vadd.f32 %v2513_v7, %v2512_v63  ;;  %v2521_v20 = vadd.f32 %v2520_v11, %v2519_v3  ;;  %v2547_v23 = vadd.f32 %v2546_v13, %v2545_v5  ;;  %v2528_v25 = vadd.f32 %v2527_v17, %v2526_v8 }
 0x578   : > { %v2541_v26 = vrot.slane %v2540_v18, 1  ;;  %v2535_v28 = vadd.f32 %v2534_v22, %v2533_v12  ;;  %v2554_v30 = vadd.f32 %v2553_v24, %v2552_v14  ;;  %v2561_v37 = vadd.f32 %v2560_v33, %v2559_v27 }
 0x579   : > { %4373 = vmatmul.mubr.f32.vlgmr.msra.gmra.mrb[0].mxu0 %v2514_v15  ;;  %4378 = vmatmul.mubr.f32.vlgmr.msra.gmra.mrb[0].mxu1 %v2521_v20  ;;  %v2548_v29 = vrot.slane %v2547_v23, 1  ;;  %vm3167_vm4 = vcmask 1043459   ;;  %vm3170_vm5 = vcmask 1044484   ;;  %vm3173_vm6 = vcmask 1045509  }
 0x57a   : > { %4381 = vmatpush3.xpose.msra.mxu0 %v2501_v16  ;;  %4386 = vmatpush3.xpose.msra.mxu1 %v2502_v21  ;;  %v2542_v35 = vadd.f32 %v2541_v26, %v2540_v18  ;;  %v2555_v36 = vrot.slane %v2554_v30, 1  ;;  %v2562_v40 = vrot.slane %v2561_v37, 1  ;;  %vm3176_vm7 = vcmask 1046534  }
 0x57b   : > { %4382 = vmatprep.mubr.msk.f32.mxu0 %vm5645_vm0, %v5644_v32  ;;  %4387 = vmatprep.mubr.msk.f32.mxu1 %vm5645_vm0, %v5644_v32  ;;  %v2549_v38 = vadd.f32 %v2548_v29, %v2547_v23  ;;  %vm3179_vm8 = vcmask 1047559   ;;  %vm3182_vm9 = vcmask 39936  }
 0x57c   : > { %4390 = vmatprep.subr.mxu0 %v5644_v32  ;;  %4395 = vmatprep.subr.mxu1 %v5644_v32  ;;  %v2556_v42 = vadd.f32 %v2555_v36, %v2554_v30  ;;  %v2563_v43 = vadd.f32 %v2562_v40, %v2561_v37 }
 0x57d   : > { %4383 = vmatmul.mubr.f32.vlgmr.msra.gmra.mrb[2].mxu0 %v2528_v25  ;;  %4388 = vmatmul.mubr.f32.vlgmr.msra.gmra.mrb[2].mxu1 %v2535_v28 }
 0x57e   : > { %4391 = vmatpush3.xpose.msra.mxu0 %v2503_v31  ;;  %4396 = vmatpush3.xpose.msra.mxu1 %v2504_v34 }
 0x57f   : > { %4392 = vmatprep.mubr.msk.f32.mxu0 %vm5645_vm0, %v5644_v32  ;;  %4397 = vmatprep.mubr.msk.f32.mxu1 %vm5645_vm0, %v5644_v32 }
 0x580   : > { %4400 = vmatprep.subr.mxu0 %v5644_v32  ;;  %4405 = vmatprep.subr.mxu1 %v5644_v32 }
 0x581   : > { %4393 = vmatmul.mubr.f32.vlgmr.msra.gmra.mrb[4].mxu0 %v2542_v35  ;;  %4398 = vmatmul.mubr.f32.vlgmr.msra.gmra.mrb[4].mxu1 %v2549_v38 }
 0x582   : > { %4401 = vmatpush3.xpose.msra.mxu0 %v2505_v39  ;;  %4406 = vmatpush3.xpose.msra.mxu1 %v2506_v41 }
 0x583   : > { %4402 = vmatprep.mubr.msk.f32.mxu0 %vm5645_vm0, %v5644_v32  ;;  %4407 = vmatprep.mubr.msk.f32.mxu1 %vm5645_vm0, %v5644_v32 }
 0x585   : > { %4403 = vmatmul.mubr.f32.vlgmr.msra.gmra.mrb[6].mxu0 %v2556_v42  ;;  %4408 = vmatmul.mubr.f32.vlgmr.msra.gmra.mrb[6].mxu1 %v2563_v43 }
 0x5ed   : > { %v3128_v44 = vpop.permute.xlu0 %3127 }
 0x5ee   : > { %v3129_v45 = vrot.slane %v3128_v44, 1  ;;  %v3130_v49 = vrot.slane %v3128_v44, 2  ;;  %v3131_v52 = vrot.slane %v3128_v44, 3  ;;  %v3132_v59 = vrot.slane %v3128_v44, 4 }
 0x5ef   : > { %v3133_v62 = vrot.slane %v3128_v44, 5  ;;  %v3134_v10 = vrot.slane %v3128_v44, 6  ;;  %v3135_v13 = vrot.slane %v3128_v44, 7 }
 0x64c   : > { %v2630_v46 = vpop.f32.mrb[0].mxu0  ;;  %v2700_v47 = vpop.f32.mrb[0].mxu1 }
 0x64d   : > { %v4374_v48 = vpop.f32.mrb[1].mxu0  ;;  %v3145_v50 = vmul.f32 %v3129_v45, %v2700_v47  ;;  %v4379_v51 = vpop.f32.mrb[1].mxu1  ;;  %v3144_v53 = vmul.f32 %v3128_v44, %v2630_v46 }
 0x64f   : > { %v3160_v54 = vrot.slane %v3145_v50, 7 }
 0x650   : > { %v2770_v55 = vpop.f32.mrb[2].mxu0  ;;  %v2840_v57 = vpop.f32.mrb[2].mxu1 }
 0x651   : > { %v3146_v56 = vmul.f32 %v3130_v49, %v2770_v55  ;;  %v4384_v58 = vpop.f32.mrb[3].mxu0  ;;  %v3162_v32 = vsel %vm3161_vm2, %v3160_v54, %v3144_v53  ;;  %v3147_v60 = vmul.f32 %v3131_v52, %v2840_v57  ;;  %v4389_v61 = vpop.f32.mrb[3].mxu1 }
 0x653   : > { %v3163_v63 = vrot.slane %v3146_v56, 6  ;;  %v3166_v0 = vrot.slane %v3147_v60, 5 }
 0x654   : > { %v2910_v1 = vpop.f32.mrb[4].mxu0  ;;  %v2980_v4 = vpop.f32.mrb[4].mxu1 }
 0x655   : > { %v3165_v2 = vsel %vm3164_vm3, %v3163_v63, %v3162_v32  ;;  %v3148_v3 = vmul.f32 %v3132_v59, %v2910_v1  ;;  %v4394_v5 = vpop.f32.mrb[5].mxu0  ;;  %v3149_v7 = vmul.f32 %v3133_v62, %v2980_v4  ;;  %v4399_v8 = vpop.f32.mrb[5].mxu1 }
 0x656   : > { %v3168_v6 = vsel %vm3167_vm4, %v3166_v0, %v3165_v2 }
 0x657   : > { %v3169_v9 = vrot.slane %v3148_v3, 4  ;;  %v3172_v11 = vrot.slane %v3149_v7, 3 }
 0x658   : > { %v3050_v12 = vpop.f32.mrb[6].mxu0  ;;  %v3120_v16 = vpop.f32.mrb[6].mxu1 }
 0x659   : > { %v3171_v14 = vsel %vm3170_vm5, %v3169_v9, %v3168_v6  ;;  %v3150_v15 = vmul.f32 %v3134_v10, %v3050_v12  ;;  %v4404_v17 = vpop.f32.mrb[7].mxu0  ;;  %v3151_v19 = vmul.f32 %v3135_v13, %v3120_v16  ;;  %v4409_v20 = vpop.f32.mrb[7].mxu1 }
 0x65a   : > { %v3174_v18 = vsel %vm3173_vm6, %v3172_v11, %v3171_v14 }
 0x65b   : > { %v3175_v21 = vrot.slane %v3150_v15, 2  ;;  %v3178_v22 = vrot.slane %v3151_v19, 1 }
 0x65d   : > { %v3177_v23 = vsel %vm3176_vm7, %v3175_v21, %v3174_v18 }
 0x65e   : > { %v3180_v24 = vsel %vm3179_vm8, %v3178_v22, %v3177_v23 }
 0x65f   : > { %3183 = vst.msk [vmem:[%s5702_s11] sm:$0xff] %vm3182_vm9, %v3180_v24 }
 0x660 PF: > { %s25_s1 = sadd.s32 1, %s5600_s1  }
 0x661   : > { %p22_p4 = scmp.ge.s32.totalorder %s25_s1, 4  }
 0x663   :  { %24 = sbr.rel (!%p22_p4) target bundleno = 28 (0x1c), region = 1776 }
 0x66a   :  { %3203 = vsyncmov [#allocation4] }
 0x66d   :  { %s3204_s3 = vpop.sfrf %3203 }
 0x66e   :  { %p4260_p5 = scmp.ne.s32.totalorder %s3204_s3, 0 }
 0x670   :  { %3208 = shalt.err (%p4260_p5)  }
 0x671   :  { %3210 = vsyncmov [#allocation4 + $0x1] }
 0x674   :  { %s3211_s8 = vpop.sfrf %3210 }
 0x675   :  { %p4261_p6 = scmp.ne.s32.totalorder %s3211_s8, 0 }
 0x677   :  { %3215 = shalt.err (%p4261_p6)  }
 0x678   :  { %3217 = vsyncmov [#allocation4 + $0x2] }
 0x67b   :  { %s3218_s19 = vpop.sfrf %3217 }
 0x67c   :  { %p4262_p7 = scmp.ne.s32.totalorder %s3218_s19, 0 }
 0x67e   :  { %3222 = shalt.err (%p4262_p7)  }
 0x67f   :  { %3224 = vsyncmov [#allocation4 + $0x3] }
 0x682   :  { %s3225_s11 = vpop.sfrf %3224 }
 0x683   :  { %p4263_p8 = scmp.ne.s32.totalorder %s3225_s11, 0 }
 0x685   :  { %3229 = shalt.err (%p4263_p8)  }
 0x686   :  { %3231 = vsyncmov [#allocation4 + $0x4] }
 0x689   :  { %s3232_s24 = vpop.sfrf %3231 }
 0x68a   :  { %p4264_p9 = scmp.ne.s32.totalorder %s3232_s24, 0 }
 0x68c   :  { %3236 = shalt.err (%p4264_p9)  }
 0x68d   :  { %3238 = vsyncmov [#allocation4 + $0x5] }
 0x690   :  { %s3239_s4 = vpop.sfrf %3238 }
 0x691   :  { %p4265_p10 = scmp.ne.s32.totalorder %s3239_s4, 0 }
 0x693   :  { %3243 = shalt.err (%p4265_p10)  }
 0x694   :  { %3245 = vsyncmov [#allocation4 + $0x6] }
 0x697   :  { %s3246_s1 = vpop.sfrf %3245 }
 0x698   :  { %p4266_p11 = scmp.ne.s32.totalorder %s3246_s1, 0 }
 0x69a   :  { %3250 = shalt.err (%p4266_p11)  }
 0x69b   :  { %3252 = vsyncmov [#allocation4 + $0x7] }
 0x69e   :  { %s3253_s13 = vpop.sfrf %3252 }
 0x69f   :  { %p4267_p12 = scmp.ne.s32.totalorder %s3253_s13, 0 }
 0x6a1   :  { %3257 = shalt.err (%p4267_p12)  }
 0x6a2   :  { %3259 = vsyncmov [#allocation4 + $0x8] }
 0x6a5   :  { %s3260_s10 = vpop.sfrf %3259 }
 0x6a6   :  { %p4268_p13 = scmp.ne.s32.totalorder %s3260_s10, 0 }
 0x6a8   :  { %3264 = shalt.err (%p4268_p13)  }
 0x6a9   :  { %3266 = vsyncmov [#allocation4 + $0x9] }
 0x6ac   :  { %s3267_s23 = vpop.sfrf %3266 }
 0x6ad   :  { %p4269_p0 = scmp.ne.s32.totalorder %s3267_s23, 0 }
 0x6af   :  { %3271 = shalt.err (%p4269_p0)  }
 0x6b0   :  { %3273 = vsyncmov [#allocation4 + $0xa] }
 0x6b3   :  { %s3274_s29 = vpop.sfrf %3273 }
 0x6b4   :  { %p4270_p1 = scmp.ne.s32.totalorder %s3274_s29, 0 }
 0x6b6   :  { %3278 = shalt.err (%p4270_p1)  }
 0x6b7   :  { %3280 = vsyncmov [#allocation4 + $0xb] }
 0x6ba   :  { %s3281_s20 = vpop.sfrf %3280 }
 0x6bb   :  { %p4271_p2 = scmp.ne.s32.totalorder %s3281_s20, 0 }
 0x6bd   :  { %3285 = shalt.err (%p4271_p2)  }
 0x6be   :  { %3287 = vsyncmov [#allocation4 + $0xc] }
 0x6c1   :  { %s3288_s22 = vpop.sfrf %3287 }
 0x6c2   :  { %p4272_p3 = scmp.ne.s32.totalorder %s3288_s22, 0 }
 0x6c4   :  { %3292 = shalt.err (%p4272_p3)  }
 0x6c5   :  { %3294 = vsyncmov [#allocation4 + $0xd] }
 0x6c8   :  { %s3295_s6 = vpop.sfrf %3294 }
 0x6c9   :  { %p4273_p4 = scmp.ne.s32.totalorder %s3295_s6, 0 }
 0x6cb   :  { %3299 = shalt.err (%p4273_p4)  }
 0x6cc   :  { %3301 = vsyncmov [#allocation4 + $0xe] }
 0x6cf   :  { %s3302_s9 = vpop.sfrf %3301 }
 0x6d0   :  { %p4274_p5 = scmp.ne.s32.totalorder %s3302_s9, 0 }
 0x6d2   :  { %3306 = shalt.err (%p4274_p5)  }
 0x6d3   :  { %3308 = vsyncmov [#allocation4 + $0xf] }
 0x6d6   :  { %s3309_s2 = vpop.sfrf %3308 }
 0x6d7   :  { %p4275_p6 = scmp.ne.s32.totalorder %s3309_s2, 0 }
 0x6d9   :  { %3313 = shalt.err (%p4275_p6)  }
 0x6da   :  { %3315 = vsyncmov [#allocation4 + $0x10] }
 0x6dd   :  { %s3316_s15 = vpop.sfrf %3315 }
 0x6de   :  { %p4276_p7 = scmp.ne.s32.totalorder %s3316_s15, 0 }
 0x6e0   :  { %3320 = shalt.err (%p4276_p7)  }
 0x6e1   :  { %3322 = vsyncmov [#allocation4 + $0x11] }
 0x6e4   :  { %s3323_s25 = vpop.sfrf %3322 }
 0x6e5   :  { %p4277_p8 = scmp.ne.s32.totalorder %s3323_s25, 0 }
 0x6e7   :  { %3327 = shalt.err (%p4277_p8)  }
 0x6e8   :  { %3329 = vsyncmov [#allocation4 + $0x12] }
 0x6eb   :  { %s3330_s30 = vpop.sfrf %3329 }
 0x6ec   :  { %p4278_p9 = scmp.ne.s32.totalorder %s3330_s30, 0 }
 0x6ee   :  { %3334 = shalt.err (%p4278_p9)  }
 0x6ef   :  { %3336 = vsyncmov [#allocation4 + $0x13] }
 0x6f2   :  { %s3337_s16 = vpop.sfrf %3336 }
 0x6f3   :  { %p4279_p10 = scmp.ne.s32.totalorder %s3337_s16, 0 }
 0x6f5   :  { %3341 = shalt.err (%p4279_p10)  }
 0x6f6   :  { %3343 = vsyncmov [#allocation4 + $0x14] }
 0x6f9   :  { %s3344_s12 = vpop.sfrf %3343 }
 0x6fa   :  { %p4280_p11 = scmp.ne.s32.totalorder %s3344_s12, 0 }
 0x6fc   :  { %3348 = shalt.err (%p4280_p11)  }
 0x6fd   :  { %3350 = vsyncmov [#allocation4 + $0x15] }
 0x700   :  { %s3351_s18 = vpop.sfrf %3350 }
 0x701   :  { %p4281_p12 = scmp.ne.s32.totalorder %s3351_s18, 0 }
 0x703   :  { %3355 = shalt.err (%p4281_p12)  }
 0x704   :  { %3357 = vsyncmov [#allocation4 + $0x16] }
 0x707   :  { %s3358_s0 = vpop.sfrf %3357 }
 0x708   :  { %p4282_p13 = scmp.ne.s32.totalorder %s3358_s0, 0 }
 0x70a   :  { %3362 = shalt.err (%p4282_p13)  }
 0x70b   :  { %3364 = vsyncmov [#allocation4 + $0x17] }
 0x70e   :  { %s3365_s14 = vpop.sfrf %3364 }
 0x70f   :  { %p4283_p0 = scmp.ne.s32.totalorder %s3365_s14, 0 }
 0x711   :  { %3369 = shalt.err (%p4283_p0)  }
 0x712   :  { %3371 = vsyncmov [#allocation4 + $0x18] }
 0x715   :  { %s3372_s27 = vpop.sfrf %3371 }
 0x716   :  { %p4284_p1 = scmp.ne.s32.totalorder %s3372_s27, 0 }
 0x718   :  { %3376 = shalt.err (%p4284_p1)  }
 0x719   :  { %3378 = vsyncmov [#allocation4 + $0x19] }
 0x71c   :  { %s3379_s21 = vpop.sfrf %3378 }
 0x71d   :  { %p4285_p2 = scmp.ne.s32.totalorder %s3379_s21, 0 }
 0x71f   :  { %3383 = shalt.err (%p4285_p2)  }
 0x720   :  { %3385 = vsyncmov [#allocation4 + $0x1a] }
 0x723   :  { %s3386_s26 = vpop.sfrf %3385 }
 0x724   :  { %p4286_p3 = scmp.ne.s32.totalorder %s3386_s26, 0 }
 0x726   :  { %3390 = shalt.err (%p4286_p3)  }
 0x727   :  { %3392 = vsyncmov [#allocation4 + $0x1b] }
 0x72a   :  { %s3393_s28 = vpop.sfrf %3392 }
 0x72b   :  { %p4287_p4 = scmp.ne.s32.totalorder %s3393_s28, 0 }
 0x72d   :  { %3397 = shalt.err (%p4287_p4)  }
 0x72e   :  { %3399 = vsyncmov [#allocation4 + $0x1c] }
 0x731   :  { %s3400_s7 = vpop.sfrf %3399 }
 0x732   :  { %p4288_p5 = scmp.ne.s32.totalorder %s3400_s7, 0 }
 0x734   :  { %3404 = shalt.err (%p4288_p5)  }
 0x735   :  { %3406 = vsyncmov [#allocation4 + $0x1d] }
 0x738   :  { %s3407_s17 = vpop.sfrf %3406 }
 0x739   :  { %p4289_p6 = scmp.ne.s32.totalorder %s3407_s17, 0 }
 0x73b   :  { %3411 = shalt.err (%p4289_p6)  }
 0x73c   :  { %3413 = vsyncmov [#allocation4 + $0x1e] }
 0x73f   :  { %s3414_s5 = vpop.sfrf %3413 }
 0x740   :  { %p4290_p7 = scmp.ne.s32.totalorder %s3414_s5, 0 }
 0x742   :  { %3418 = shalt.err (%p4290_p7)  }
 0x743   :  { %3420 = vsyncmov [#allocation4 + $0x1f] }
 0x746   :  { %s3421_s3 = vpop.sfrf %3420 }
 0x747   :  { %p4291_p8 = scmp.ne.s32.totalorder %s3421_s3, 0 }
 0x749   :  { %3425 = shalt.err (%p4291_p8)  }
 0x74a   :  { %3426 = vsyncmov [#allocation5] }
 0x74d   :  { %s3427_s8 = vpop.sfrf %3426 }
 0x74e   :  { %p4292_p9 = scmp.ne.s32.totalorder %s3427_s8, 0 }
 0x750   :  { %3431 = shalt.err (%p4292_p9)  }
 0x751   :  { %3433 = vsyncmov [#allocation5 + $0x1] }
 0x754   :  { %s3434_s19 = vpop.sfrf %3433 }
 0x755   :  { %p4293_p10 = scmp.ne.s32.totalorder %s3434_s19, 0 }
 0x757   :  { %3438 = shalt.err (%p4293_p10)  }
 0x758   :  { %3440 = vsyncmov [#allocation5 + $0x2] }
 0x75b   :  { %s3441_s11 = vpop.sfrf %3440 }
 0x75c   :  { %p4294_p11 = scmp.ne.s32.totalorder %s3441_s11, 0 }
 0x75e   :  { %3445 = shalt.err (%p4294_p11)  }
 0x75f   :  { %3447 = vsyncmov [#allocation5 + $0x3] }
 0x762   :  { %s3448_s24 = vpop.sfrf %3447 }
 0x763   :  { %p4295_p12 = scmp.ne.s32.totalorder %s3448_s24, 0 }
 0x765   :  { %3452 = shalt.err (%p4295_p12)  }
 0x766   :  { %3454 = vsyncmov [#allocation5 + $0x4] }
 0x769   :  { %s3455_s4 = vpop.sfrf %3454 }
 0x76a   :  { %p4296_p13 = scmp.ne.s32.totalorder %s3455_s4, 0 }
 0x76c   :  { %3459 = shalt.err (%p4296_p13)  }
 0x76d   :  { %3461 = vsyncmov [#allocation5 + $0x5] }
 0x770   :  { %s3462_s1 = vpop.sfrf %3461 }
 0x771   :  { %p4297_p0 = scmp.ne.s32.totalorder %s3462_s1, 0 }
 0x773   :  { %3466 = shalt.err (%p4297_p0)  }
 0x774   :  { %3468 = vsyncmov [#allocation5 + $0x6] }
 0x777   :  { %s3469_s13 = vpop.sfrf %3468 }
 0x778   :  { %p4298_p1 = scmp.ne.s32.totalorder %s3469_s13, 0 }
 0x77a   :  { %3473 = shalt.err (%p4298_p1)  }
 0x77b   :  { %3475 = vsyncmov [#allocation5 + $0x7] }
 0x77e   :  { %s3476_s10 = vpop.sfrf %3475 }
 0x77f   :  { %p4299_p2 = scmp.ne.s32.totalorder %s3476_s10, 0 }
 0x781   :  { %3480 = shalt.err (%p4299_p2)  }
 0x782   :  { %3482 = vsyncmov [#allocation5 + $0x8] }
 0x785   :  { %s3483_s23 = vpop.sfrf %3482 }
 0x786   :  { %p4300_p3 = scmp.ne.s32.totalorder %s3483_s23, 0 }
 0x788   :  { %3487 = shalt.err (%p4300_p3)  }
 0x789   :  { %3489 = vsyncmov [#allocation5 + $0x9] }
 0x78c   :  { %s3490_s29 = vpop.sfrf %3489 }
 0x78d   :  { %p4301_p4 = scmp.ne.s32.totalorder %s3490_s29, 0 }
 0x78f   :  { %3494 = shalt.err (%p4301_p4)  }
 0x790   :  { %3496 = vsyncmov [#allocation5 + $0xa] }
 0x793   :  { %s3497_s20 = vpop.sfrf %3496 }
 0x794   :  { %p4302_p5 = scmp.ne.s32.totalorder %s3497_s20, 0 }
 0x796   :  { %3501 = shalt.err (%p4302_p5)  }
 0x797   :  { %3503 = vsyncmov [#allocation5 + $0xb] }
 0x79a   :  { %s3504_s22 = vpop.sfrf %3503 }
 0x79b   :  { %p4303_p6 = scmp.ne.s32.totalorder %s3504_s22, 0 }
 0x79d   :  { %3508 = shalt.err (%p4303_p6)  }
 0x79e   :  { %3510 = vsyncmov [#allocation5 + $0xc] }
 0x7a1   :  { %s3511_s6 = vpop.sfrf %3510 }
 0x7a2   :  { %p4304_p7 = scmp.ne.s32.totalorder %s3511_s6, 0 }
 0x7a4   :  { %3515 = shalt.err (%p4304_p7)  }
 0x7a5   :  { %3517 = vsyncmov [#allocation5 + $0xd] }
 0x7a8   :  { %s3518_s9 = vpop.sfrf %3517 }
 0x7a9   :  { %p4305_p8 = scmp.ne.s32.totalorder %s3518_s9, 0 }
 0x7ab   :  { %3522 = shalt.err (%p4305_p8)  }
 0x7ac   :  { %3524 = vsyncmov [#allocation5 + $0xe] }
 0x7af   :  { %s3525_s2 = vpop.sfrf %3524 }
 0x7b0   :  { %p4306_p9 = scmp.ne.s32.totalorder %s3525_s2, 0 }
 0x7b2   :  { %3529 = shalt.err (%p4306_p9)  }
 0x7b3   :  { %3531 = vsyncmov [#allocation5 + $0xf] }
 0x7b6   :  { %s3532_s15 = vpop.sfrf %3531 }
 0x7b7   :  { %p4307_p10 = scmp.ne.s32.totalorder %s3532_s15, 0 }
 0x7b9   :  { %3536 = shalt.err (%p4307_p10)  }
 0x7ba   :  { %3538 = vsyncmov [#allocation5 + $0x10] }
 0x7bd   :  { %s3539_s25 = vpop.sfrf %3538 }
 0x7be   :  { %p4308_p11 = scmp.ne.s32.totalorder %s3539_s25, 0 }
 0x7c0   :  { %3543 = shalt.err (%p4308_p11)  }
 0x7c1   :  { %3545 = vsyncmov [#allocation5 + $0x11] }
 0x7c4   :  { %s3546_s30 = vpop.sfrf %3545 }
 0x7c5   :  { %p4309_p12 = scmp.ne.s32.totalorder %s3546_s30, 0 }
 0x7c7   :  { %3550 = shalt.err (%p4309_p12)  }
 0x7c8   :  { %3552 = vsyncmov [#allocation5 + $0x12] }
 0x7cb   :  { %s3553_s16 = vpop.sfrf %3552 }
 0x7cc   :  { %p4310_p13 = scmp.ne.s32.totalorder %s3553_s16, 0 }
 0x7ce   :  { %3557 = shalt.err (%p4310_p13)  }
 0x7cf   :  { %3559 = vsyncmov [#allocation5 + $0x13] }
 0x7d2   :  { %s3560_s12 = vpop.sfrf %3559 }
 0x7d3   :  { %p4311_p0 = scmp.ne.s32.totalorder %s3560_s12, 0 }
 0x7d5   :  { %3564 = shalt.err (%p4311_p0)  }
 0x7d6   :  { %3566 = vsyncmov [#allocation5 + $0x14] }
 0x7d9   :  { %s3567_s18 = vpop.sfrf %3566 }
 0x7da   :  { %p4312_p1 = scmp.ne.s32.totalorder %s3567_s18, 0 }
 0x7dc   :  { %3571 = shalt.err (%p4312_p1)  }
 0x7dd   :  { %3573 = vsyncmov [#allocation5 + $0x15] }
 0x7e0   :  { %s3574_s0 = vpop.sfrf %3573 }
 0x7e1   :  { %p4313_p2 = scmp.ne.s32.totalorder %s3574_s0, 0 }
 0x7e3   :  { %3578 = shalt.err (%p4313_p2)  }
 0x7e4   :  { %3580 = vsyncmov [#allocation5 + $0x16] }
 0x7e7   :  { %s3581_s14 = vpop.sfrf %3580 }
 0x7e8   :  { %p4314_p3 = scmp.ne.s32.totalorder %s3581_s14, 0 }
 0x7ea   :  { %3585 = shalt.err (%p4314_p3)  }
 0x7eb   :  { %3587 = vsyncmov [#allocation5 + $0x17] }
 0x7ee   :  { %s3588_s27 = vpop.sfrf %3587 }
 0x7ef   :  { %p4315_p4 = scmp.ne.s32.totalorder %s3588_s27, 0 }
 0x7f1   :  { %3592 = shalt.err (%p4315_p4)  }
 0x7f2   :  { %3594 = vsyncmov [#allocation5 + $0x18] }
 0x7f5   :  { %s3595_s21 = vpop.sfrf %3594 }
 0x7f6   :  { %p4316_p5 = scmp.ne.s32.totalorder %s3595_s21, 0 }
 0x7f8   :  { %3599 = shalt.err (%p4316_p5)  }
 0x7f9   :  { %3601 = vsyncmov [#allocation5 + $0x19] }
 0x7fc   :  { %s3602_s26 = vpop.sfrf %3601 }
 0x7fd   :  { %p4317_p6 = scmp.ne.s32.totalorder %s3602_s26, 0 }
 0x7ff   :  { %3606 = shalt.err (%p4317_p6)  }
 0x800   :  { %3608 = vsyncmov [#allocation5 + $0x1a] }
 0x803   :  { %s3609_s28 = vpop.sfrf %3608 }
 0x804   :  { %p4318_p7 = scmp.ne.s32.totalorder %s3609_s28, 0 }
 0x806   :  { %3613 = shalt.err (%p4318_p7)  }
 0x807   :  { %3615 = vsyncmov [#allocation5 + $0x1b] }
 0x80a   :  { %s3616_s7 = vpop.sfrf %3615 }
 0x80b   :  { %p4319_p8 = scmp.ne.s32.totalorder %s3616_s7, 0 }
 0x80d   :  { %3620 = shalt.err (%p4319_p8)  }
 0x80e   :  { %3622 = vsyncmov [#allocation5 + $0x1c] }
 0x811   :  { %s3623_s17 = vpop.sfrf %3622 }
 0x812   :  { %p4320_p9 = scmp.ne.s32.totalorder %s3623_s17, 0 }
 0x814   :  { %3627 = shalt.err (%p4320_p9)  }
 0x815   :  { %3629 = vsyncmov [#allocation5 + $0x1d] }
 0x818   :  { %s3630_s5 = vpop.sfrf %3629 }
 0x819   :  { %p4321_p10 = scmp.ne.s32.totalorder %s3630_s5, 0 }
 0x81b   :  { %3634 = shalt.err (%p4321_p10)  }
 0x81c   :  { %3636 = vsyncmov [#allocation5 + $0x1e] }
 0x81f   :  { %s3637_s3 = vpop.sfrf %3636 }
 0x820   :  { %p4322_p11 = scmp.ne.s32.totalorder %s3637_s3, 0 }
 0x822   :  { %3641 = shalt.err (%p4322_p11)  }
 0x823   :  { %3643 = vsyncmov [#allocation5 + $0x1f] }
 0x826   :  { %s3644_s8 = vpop.sfrf %3643 }
 0x827   :  { %p4323_p12 = scmp.ne.s32.totalorder %s3644_s8, 0 }
 0x829   :  { %3648 = shalt.err (%p4323_p12)  }
 0x82a   :  { %3650 = vsyncmov [#allocation5 + $0x20] }
 0x82d   :  { %s3651_s19 = vpop.sfrf %3650 }
 0x82e   :  { %p4324_p13 = scmp.ne.s32.totalorder %s3651_s19, 0 }
 0x830   :  { %3655 = shalt.err (%p4324_p13)  }
 0x831   :  { %3657 = vsyncmov [#allocation5 + $0x21] }
 0x834   :  { %s3658_s11 = vpop.sfrf %3657 }
 0x835   :  { %p4325_p0 = scmp.ne.s32.totalorder %s3658_s11, 0 }
 0x837   :  { %3662 = shalt.err (%p4325_p0)  }
 0x838   :  { %3664 = vsyncmov [#allocation5 + $0x22] }
 0x83b   :  { %s3665_s24 = vpop.sfrf %3664 }
 0x83c   :  { %p4326_p1 = scmp.ne.s32.totalorder %s3665_s24, 0 }
 0x83e   :  { %3669 = shalt.err (%p4326_p1)  }
 0x83f   :  { %3671 = vsyncmov [#allocation5 + $0x23] }
 0x842   :  { %s3672_s4 = vpop.sfrf %3671 }
 0x843   :  { %p4327_p2 = scmp.ne.s32.totalorder %s3672_s4, 0 }
 0x845   :  { %3676 = shalt.err (%p4327_p2)  }
 0x846   :  { %3678 = vsyncmov [#allocation5 + $0x24] }
 0x849   :  { %s3679_s1 = vpop.sfrf %3678 }
 0x84a   :  { %p4328_p3 = scmp.ne.s32.totalorder %s3679_s1, 0 }
 0x84c   :  { %3683 = shalt.err (%p4328_p3)  }
 0x84d   :  { %3685 = vsyncmov [#allocation5 + $0x25] }
 0x850   :  { %s3686_s13 = vpop.sfrf %3685 }
 0x851   :  { %p4329_p4 = scmp.ne.s32.totalorder %s3686_s13, 0 }
 0x853   :  { %3690 = shalt.err (%p4329_p4)  }
 0x854   :  { %3692 = vsyncmov [#allocation5 + $0x26] }
 0x857   :  { %s3693_s10 = vpop.sfrf %3692 }
 0x858   :  { %p4330_p5 = scmp.ne.s32.totalorder %s3693_s10, 0 }
 0x85a   :  { %3697 = shalt.err (%p4330_p5)  }
 0x85b   :  { %3699 = vsyncmov [#allocation5 + $0x27] }
 0x85e   :  { %s3700_s23 = vpop.sfrf %3699 }
 0x85f   :  { %p4331_p6 = scmp.ne.s32.totalorder %s3700_s23, 0 }
 0x861   :  { %3704 = shalt.err (%p4331_p6)  }

</bundles_post_ra>
